<compile_context>
chip_gen: v5e
topology: v5e:2x2
jax: 0.10.0
libtpu: 0.0.40
codegen_flags: <defaults>
</compile_context>

<pallas_src>
import math
import numpy as np
import jax
import jax.numpy as jnp
from jax import lax
from jax.experimental import pallas as pl
from jax.experimental.pallas import tpu as pltpu

# --- model constants (from the PyTorch script) ---
ACT_SIZE = 27                                   # conv output spatial size
KERNEL_SIZE = 6
N_KERNELS = 16
RNN_UNITS = 16
IN_CH = 2
IN_SPATIAL = ACT_SIZE + KERNEL_SIZE - 1         # 32 -> VALID conv gives 27
K_DIM = IN_CH * KERNEL_SIZE * KERNEL_SIZE       # 72
OHW = ACT_SIZE * ACT_SIZE                       # 729
FLAT_DIM = OHW * N_KERNELS                      # 11664


# ---------------------------------------------------------------------------
# Pallas kernel 1: conv-as-matmul (lane-dense NCHW output), fused ReLU flat
# output, and the hoisted x @ W_ih^T projection (so the RNN stays tiny).
# ---------------------------------------------------------------------------
def _conv_kernel(p_ref, w_ref, b_ref, w3_ref, conv_ref, flat_ref, xp_ref):
    # p_ref:  (F, 72, 729)   im2col patches
    # w_ref:  (16, 72)       conv weight (flattened)
    # b_ref:  (16, 1)        conv bias (column)
    # w3_ref: (16, 729, H)   W_ih reshaped channel-chunked
    # conv_ref/flat_ref: (F, 16, 729),  xp_ref: (F, 1, H)
    w = w_ref[...]
    b = b_ref[...]
    F = p_ref.shape[0]

    def frame_body(f, carry):
        o = jnp.dot(w, p_ref[f], preferred_element_type=jnp.float32) + b  # (16, 729)
        conv_ref[f] = o
        flat_ref[f] = jnp.maximum(o, 0.0)
        return carry

    lax.fori_loop(0, F, frame_body, 0)

    # Hoisted x_t @ W_ih^T, batched over the F frames of this block:
    # xproj[f, h] = sum_c sum_s relu(conv)[f, c, s] * W_ih[h, c*729 + s]
    # 16 chunked (F,729)@(729,H) MXU matmuls, 4 independent accumulator chains.
    H = w3_ref.shape[2]
    parts = []
    for g in range(4):
        acc = jnp.zeros((F, H), jnp.float32)
        for c in range(g * 4, (g + 1) * 4):
            acc = acc + jnp.dot(
                flat_ref[:, c, :], w3_ref[c], preferred_element_type=jnp.float32
            )
        parts.append(acc)
    xp_ref[:, 0, :] = (parts[0] + parts[1]) + (parts[2] + parts[3])


def _choose_frames(bt, target=16):
    """Pick frames-per-block F and the (possibly padded) total frame count."""
    if bt <= target:
        return bt, bt
    best = max(f for f in range(1, target + 1) if bt % f == 0)
    if best * 2 >= target:
        return best, bt
    # divisors are all tiny -> pad BT up to a multiple of `target`
    return target, ((bt + target - 1) // target) * target


def conv2d_pallas(patches, w_flat, b_col, w3):
    """patches: (B*T, 72, 729) -> (conv_raw, flat_raw, xproj)."""
    BT = patches.shape[0]
    F, BT_pad = _choose_frames(BT)
    if BT_pad != BT:
        patches = jnp.pad(patches, ((0, BT_pad - BT), (0, 0), (0, 0)))

    out_shapes = (
        jax.ShapeDtypeStruct((BT_pad, N_KERNELS, OHW), jnp.float32),
        jax.ShapeDtypeStruct((BT_pad, N_KERNELS, OHW), jnp.float32),
        jax.ShapeDtypeStruct((BT_pad, 1, RNN_UNITS), jnp.float32),
    )
    conv, flat, xproj = pl.pallas_call(
        _conv_kernel,
        out_shape=out_shapes,
        grid=(BT_pad // F,),
        in_specs=[
            pl.BlockSpec((F, K_DIM, OHW), lambda i: (i, 0, 0)),
            pl.BlockSpec((N_KERNELS, K_DIM), lambda i: (0, 0)),
            pl.BlockSpec((N_KERNELS, 1), lambda i: (0, 0)),
            pl.BlockSpec((N_KERNELS, OHW, RNN_UNITS), lambda i: (0, 0, 0)),
        ],
        out_specs=(
            pl.BlockSpec((F, N_KERNELS, OHW), lambda i: (i, 0, 0)),
            pl.BlockSpec((F, N_KERNELS, OHW), lambda i: (i, 0, 0)),
            pl.BlockSpec((F, 1, RNN_UNITS), lambda i: (i, 0, 0)),
        ),
        compiler_params=pltpu.CompilerParams(
            dimension_semantics=("parallel",),
            vmem_limit_bytes=48 * 1024 * 1024,
        ),
    )(patches, w_flat, b_col, w3)

    if BT_pad != BT:
        conv, flat, xproj = conv[:BT], flat[:BT], xproj[:BT]
    return conv, flat, xproj


# ---------------------------------------------------------------------------
# Pallas kernel 2: fused SimpleRNN(relu) + final Linear.
# Single grid step; fori_loop over T with the hidden state in VMEM scratch.
# Per step the work is only h@Whh (16x16), +xproj[t], relu, and h@Wfc (16x2).
# ---------------------------------------------------------------------------
def _rnn_fc_kernel(xp_ref, whh_ref, b_ref, wfc_ref, bfc_ref, rnn_ref, fc_ref, h_scr):
    # xp_ref: (T, B, H), whh_ref: (H, H), b_ref: (1, H)
    # wfc_ref: (H, 2), bfc_ref: (1, 2)
    # rnn_ref: (T, B, H), fc_ref: (T, B, 2), h_scr: (B, H)
    T = xp_ref.shape[0]
    whh = whh_ref[...]
    b = b_ref[...]
    wfc = wfc_ref[...]
    bfc = bfc_ref[...]

    h_scr[...] = jnp.zeros_like(h_scr)

    def step(t, carry):
        h = jnp.maximum(
            jnp.dot(h_scr[...], whh, preferred_element_type=jnp.float32)
            + xp_ref[t]
            + b,
            0.0,
        )
        h_scr[...] = h
        rnn_ref[t] = h
        fc_ref[t] = jnp.dot(h, wfc, preferred_element_type=jnp.float32) + bfc
        return carry

    lax.fori_loop(0, T, step, 0)


def rnn_fc_pallas(xproj_tb, whh_t, b_comb, wfc_t, bfc):
    """xproj_tb: (T, B, H). Returns (out_rnn (T,B,H), out_fc (T,B,2))."""
    T, B, H = xproj_tb.shape
    return pl.pallas_call(
        _rnn_fc_kernel,
        out_shape=(
            jax.ShapeDtypeStruct((T, B, H), jnp.float32),
            jax.ShapeDtypeStruct((T, B, 2), jnp.float32),
        ),
        grid=(1,),
        in_specs=[
            pl.BlockSpec((T, B, H), lambda i: (0, 0, 0)),
            pl.BlockSpec((H, H), lambda i: (0, 0)),
            pl.BlockSpec((1, H), lambda i: (0, 0)),
            pl.BlockSpec((H, 2), lambda i: (0, 0)),
            pl.BlockSpec((1, 2), lambda i: (0, 0)),
        ],
        out_specs=(
            pl.BlockSpec((T, B, H), lambda i: (0, 0, 0)),
            pl.BlockSpec((T, B, 2), lambda i: (0, 0, 0)),
        ),
        scratch_shapes=[pltpu.VMEM((B, H), jnp.float32)],
        compiler_params=pltpu.CompilerParams(
            dimension_semantics=("arbitrary",),
        ),
    )(xproj_tb, whh_t, b_comb, wfc_t, bfc)


# ---------------------------------------------------------------------------
# Wrapper glue
# ---------------------------------------------------------------------------
def _im2col(xc):
    """xc: (N, C, 32, 32) -> (N, 72, 729); row k = c*36 + kh*6 + kw, col = oh*27 + ow."""
    N = xc.shape[0]
    slabs = [
        xc[:, :, i:i + ACT_SIZE, j:j + ACT_SIZE]
        for i in range(KERNEL_SIZE)
        for j in range(KERNEL_SIZE)
    ]
    p = jnp.stack(slabs, axis=2)            # (N, C, 36, 27, 27)
    return p.reshape(N, K_DIM, OHW)


def model_n_forward(x, params):
    """x: (B, T, 2, 32, 32) f32.
    Returns (out_fc, out_conv, out_flat, out_rnn) with PyTorch shapes:
      (B,T,2), (B,T,16,27,27), (B,T,11664), (B,T,16)."""
    B, T = x.shape[0], x.shape[1]
    BT = B * T

    xc = x.reshape(BT, IN_CH, IN_SPATIAL, IN_SPATIAL)
    patches = _im2col(xc)                                        # (BT, 72, 729)
    w_flat = params["w_conv"].reshape(N_KERNELS, K_DIM)          # (16, 72)
    b_col = params["b_conv"].reshape(N_KERNELS, 1)               # (16, 1)
    # W_ih (H, 11664) -> (16, 729, H) channel-chunked, once, in the wrapper
    w3 = params["w_ih"].reshape(RNN_UNITS, N_KERNELS, OHW).transpose(1, 2, 0)

    conv_raw, flat_raw, xproj = conv2d_pallas(patches, w_flat, b_col, w3)

    # free (order-preserving) reshapes back to the PyTorch output layouts
    out_conv = conv_raw.reshape(B, T, N_KERNELS, ACT_SIZE, ACT_SIZE)
    out_flat = flat_raw.reshape(B, T, FLAT_DIM)

    # tiny (BT, 1, H) projection -> (T, B, H) for the serial RNN kernel
    xproj_tb = xproj.reshape(B, T, RNN_UNITS).transpose(1, 0, 2)

    whh_t = params["w_hh"].T                                     # (H, H)
    b_comb = (params["b_ih"] + params["b_hh"]).reshape(1, RNN_UNITS)
    wfc_t = params["w_fc"].T                                     # (H, 2)
    bfc = params["b_fc"].reshape(1, 2)

    rnn_tb, fc_tb = rnn_fc_pallas(xproj_tb, whh_t, b_comb, wfc_t, bfc)

    out_rnn = rnn_tb.transpose(1, 0, 2)   # tiny (B, T, 16)
    out_fc = fc_tb.transpose(1, 0, 2)     # tiny (B, T, 2)
    return out_fc, out_conv, out_flat, out_rnn


# ---------------------------------------------------------------------------
# Deterministic parameter init (mirrors the PyTorch __init__ / init_weights)
# ---------------------------------------------------------------------------
def init_params(key):
    ks = jax.random.split(key, 6)
    stdv = 1.0 / math.sqrt(RNN_UNITS)
    return {
        "w_conv": 0.01 * jax.random.normal(
            ks[0], (N_KERNELS, IN_CH, KERNEL_SIZE, KERNEL_SIZE), jnp.float32),
        "b_conv": jnp.full((N_KERNELS,), 0.01, jnp.float32),
        "w_fc": 0.01 * jax.random.normal(ks[1], (2, RNN_UNITS), jnp.float32),
        "b_fc": jnp.full((2,), 0.01, jnp.float32),
        "w_ih": jax.random.uniform(ks[2], (RNN_UNITS, FLAT_DIM), jnp.float32, -stdv, stdv),
        "w_hh": jax.random.uniform(ks[3], (RNN_UNITS, RNN_UNITS), jnp.float32, -stdv, stdv),
        "b_ih": jax.random.uniform(ks[4], (RNN_UNITS,), jnp.float32, -stdv, stdv),
        "b_hh": jax.random.uniform(ks[5], (RNN_UNITS,), jnp.float32, -stdv, stdv),
    }


# ---------------------------------------------------------------------------
# Plain-JAX reference for a sanity check
# ---------------------------------------------------------------------------
def model_n_reference(x, p):
    B, T = x.shape[0], x.shape[1]
    xc = x.reshape(B * T, IN_CH, IN_SPATIAL, IN_SPATIAL)
    conv = lax.conv_general_dilated(
        xc, p["w_conv"], (1, 1), "VALID",
        dimension_numbers=("NCHW", "OIHW", "NCHW"),
    ) + p["b_conv"].reshape(1, N_KERNELS, 1, 1)
    out_conv = conv.reshape(B, T, N_KERNELS, ACT_SIZE, ACT_SIZE)
    out_flat = jnp.maximum(out_conv.reshape(B, T, FLAT_DIM), 0.0)
    h = jnp.zeros((B, RNN_UNITS), jnp.float32)
    hs = []
    for t in range(T):
        h = jnp.maximum(
            out_flat[:, t] @ p["w_ih"].T + p["b_ih"] + h @ p["w_hh"].T + p["b_hh"], 0.0)
        hs.append(h)
    out_rnn = jnp.stack(hs, axis=1)
    out_fc = out_rnn @ p["w_fc"].T + p["b_fc"]
    return out_fc, out_conv, out_flat, out_rnn


if __name__ == "__main__":
    B, T = 2, 3   # small batch / num_frames; spatial fixed at 32 so conv out = 27
    key = jax.random.PRNGKey(0)
    k_x, k_p = jax.random.split(key)
    x = jax.random.normal(k_x, (B, T, IN_CH, IN_SPATIAL, IN_SPATIAL), jnp.float32)
    params = init_params(k_p)

    outs = jax.block_until_ready(model_n_forward(x, params))
    refs = jax.block_until_ready(model_n_reference(x, params))

    for o, r in zip(outs, refs):
        assert o.shape == r.shape and o.dtype == r.dtype
        np.testing.assert_allclose(np.asarray(o), np.asarray(r), rtol=2e-2, atol=2e-2)

    print("KERNEL_OK")
</pallas_src>

<mosaic_0001>
module attributes {stable_mosaic.version = 11 : i64} {
  func.func @_conv_kernel(%arg0: i32, %arg1: memref<6x72x729xf32, #tpu.memory_space<vmem>>, %arg2: memref<16x72xf32, #tpu.memory_space<vmem>>, %arg3: memref<16x1xf32, #tpu.memory_space<vmem>>, %arg4: memref<16x729x16xf32, #tpu.memory_space<vmem>>, %arg5: memref<6x16x729xf32, #tpu.memory_space<vmem>>, %arg6: memref<6x16x729xf32, #tpu.memory_space<vmem>>, %arg7: memref<6x1x16xf32, #tpu.memory_space<vmem>>) attributes {dimension_semantics = [#tpu.dimension_semantics<parallel>], iteration_bounds = array<i64: 1>, scalar_prefetch = 0 : i64, scratch_operands = 0 : i64, tpu.core_type = #tpu.core_type<tc>, window_params = [{transform_indices = @transform_0, window_bounds = array<i64: 6, 72, 729>}, {pipeline_mode = #tpu.pipeline_mode<synchronous>, transform_indices = @transform_1, window_bounds = array<i64: 16, 72>}, {pipeline_mode = #tpu.pipeline_mode<synchronous>, transform_indices = @transform_2, window_bounds = array<i64: 16, 1>}, {pipeline_mode = #tpu.pipeline_mode<synchronous>, transform_indices = @transform_3, window_bounds = array<i64: 16, 729, 16>}, {transform_indices = @transform_4, window_bounds = array<i64: 6, 16, 729>}, {transform_indices = @transform_5, window_bounds = array<i64: 6, 16, 729>}, {transform_indices = @transform_6, window_bounds = array<i64: 6, 1, 16>}]} {
    %c0 = arith.constant 0 : index
    %c0_0 = arith.constant 0 : index
    %0 = vector.load %arg2[%c0, %c0_0] : memref<16x72xf32, #tpu.memory_space<vmem>>, vector<16x72xf32>
    %c0_1 = arith.constant 0 : index
    %c0_2 = arith.constant 0 : index
    %1 = vector.load %arg3[%c0_1, %c0_2] : memref<16x1xf32, #tpu.memory_space<vmem>>, vector<16x1xf32>
    %c0_i32 = arith.constant 0 : i32
    %c6_i32 = arith.constant 6 : i32
    %2 = arith.addi %c0_i32, %c6_i32 : i32
    %c1_i32 = arith.constant 1 : i32
    scf.for %arg8 = %c0_i32 to %2 step %c1_i32  : i32 {
      %109 = arith.index_cast %arg8 : i32 to index
      %c0_107 = arith.constant 0 : index
      %c0_108 = arith.constant 0 : index
      %110 = vector.load %arg1[%109, %c0_107, %c0_108] : memref<6x72x729xf32, #tpu.memory_space<vmem>>, vector<1x72x729xf32>
      %111 = vector.shape_cast %110 : vector<1x72x729xf32> to vector<72x729xf32>
      %cst_109 = arith.constant dense<0.000000e+00> : vector<16x729xf32>
      %112 = tpu.matmul %0, %111, %cst_109 {dimension_numbers = #tpu.dot_dimension_numbers<[1], [0], [0], [1], [0, 0, 1, 1], [], []>} : vector<16x72xf32>, vector<72x729xf32>, vector<16x729xf32> -> vector<16x729xf32>
      %113 = vector.broadcast %1 : vector<16x1xf32> to vector<16x729xf32>
      %114 = arith.addf %112, %113 : vector<16x729xf32>
      %115 = arith.index_cast %arg8 : i32 to index
      %c0_110 = arith.constant 0 : index
      %c0_111 = arith.constant 0 : index
      %116 = vector.load %arg5[%115, %c0_110, %c0_111] : memref<6x16x729xf32, #tpu.memory_space<vmem>>, vector<1x16x729xf32>
      %117 = vector.shape_cast %116 : vector<1x16x729xf32> to vector<16x729xf32>
      %118 = vector.shape_cast %114 : vector<16x729xf32> to vector<1x16x729xf32>
      tpu.vector_store %arg5[%115, %c0_110, %c0_111], %118 {strides = array<i32>} : memref<6x16x729xf32, #tpu.memory_space<vmem>>, vector<1x16x729xf32>,
      %cst_112 = arith.constant 0.000000e+00 : f32
      %119 = vector.broadcast %cst_112 : f32 to vector<16x729xf32>
      %120 = arith.maximumf %114, %119 : vector<16x729xf32>
      %121 = arith.index_cast %arg8 : i32 to index
      %c0_113 = arith.constant 0 : index
      %c0_114 = arith.constant 0 : index
      %122 = vector.load %arg6[%121, %c0_113, %c0_114] : memref<6x16x729xf32, #tpu.memory_space<vmem>>, vector<1x16x729xf32>
      %123 = vector.shape_cast %122 : vector<1x16x729xf32> to vector<16x729xf32>
      %124 = vector.shape_cast %120 : vector<16x729xf32> to vector<1x16x729xf32>
      tpu.vector_store %arg6[%121, %c0_113, %c0_114], %124 {strides = array<i32>} : memref<6x16x729xf32, #tpu.memory_space<vmem>>, vector<1x16x729xf32>,
    }
    %c6_i32_3 = arith.constant 6 : i32
    %cst = arith.constant 0.000000e+00 : f32
    %3 = vector.broadcast %cst : f32 to vector<6x16xf32>
    %c0_4 = arith.constant 0 : index
    %c0_5 = arith.constant 0 : index
    %c0_6 = arith.constant 0 : index
    %4 = vector.load %arg6[%c0_4, %c0_5, %c0_6] : memref<6x16x729xf32, #tpu.memory_space<vmem>>, vector<6x1x729xf32>
    %5 = vector.shape_cast %4 : vector<6x1x729xf32> to vector<6x729xf32>
    %c0_7 = arith.constant 0 : index
    %c0_8 = arith.constant 0 : index
    %c0_9 = arith.constant 0 : index
    %6 = vector.load %arg4[%c0_7, %c0_8, %c0_9] : memref<16x729x16xf32, #tpu.memory_space<vmem>>, vector<1x729x16xf32>
    %7 = vector.shape_cast %6 : vector<1x729x16xf32> to vector<729x16xf32>
    %cst_10 = arith.constant dense<0.000000e+00> : vector<6x16xf32>
    %8 = tpu.matmul %5, %7, %cst_10 {dimension_numbers = #tpu.dot_dimension_numbers<[1], [0], [0], [1], [0, 0, 1, 1], [], []>} : vector<6x729xf32>, vector<729x16xf32>, vector<6x16xf32> -> vector<6x16xf32>
    %9 = arith.addf %3, %8 : vector<6x16xf32>
    %c0_11 = arith.constant 0 : index
    %c1 = arith.constant 1 : index
    %c0_12 = arith.constant 0 : index
    %10 = vector.load %arg6[%c0_11, %c1, %c0_12] : memref<6x16x729xf32, #tpu.memory_space<vmem>>, vector<6x1x729xf32>
    %11 = vector.shape_cast %10 : vector<6x1x729xf32> to vector<6x729xf32>
    %c1_13 = arith.constant 1 : index
    %c0_14 = arith.constant 0 : index
    %c0_15 = arith.constant 0 : index
    %12 = vector.load %arg4[%c1_13, %c0_14, %c0_15] : memref<16x729x16xf32, #tpu.memory_space<vmem>>, vector<1x729x16xf32>
    %13 = vector.shape_cast %12 : vector<1x729x16xf32> to vector<729x16xf32>
    %cst_16 = arith.constant dense<0.000000e+00> : vector<6x16xf32>
    %14 = tpu.matmul %11, %13, %cst_16 {dimension_numbers = #tpu.dot_dimension_numbers<[1], [0], [0], [1], [0, 0, 1, 1], [], []>} : vector<6x729xf32>, vector<729x16xf32>, vector<6x16xf32> -> vector<6x16xf32>
    %15 = arith.addf %9, %14 : vector<6x16xf32>
    %c0_17 = arith.constant 0 : index
    %c2 = arith.constant 2 : index
    %c0_18 = arith.constant 0 : index
    %16 = vector.load %arg6[%c0_17, %c2, %c0_18] : memref<6x16x729xf32, #tpu.memory_space<vmem>>, vector<6x1x729xf32>
    %17 = vector.shape_cast %16 : vector<6x1x729xf32> to vector<6x729xf32>
    %c2_19 = arith.constant 2 : index
    %c0_20 = arith.constant 0 : index
    %c0_21 = arith.constant 0 : index
    %18 = vector.load %arg4[%c2_19, %c0_20, %c0_21] : memref<16x729x16xf32, #tpu.memory_space<vmem>>, vector<1x729x16xf32>
    %19 = vector.shape_cast %18 : vector<1x729x16xf32> to vector<729x16xf32>
    %cst_22 = arith.constant dense<0.000000e+00> : vector<6x16xf32>
    %20 = tpu.matmul %17, %19, %cst_22 {dimension_numbers = #tpu.dot_dimension_numbers<[1], [0], [0], [1], [0, 0, 1, 1], [], []>} : vector<6x729xf32>, vector<729x16xf32>, vector<6x16xf32> -> vector<6x16xf32>
    %21 = arith.addf %15, %20 : vector<6x16xf32>
    %c0_23 = arith.constant 0 : index
    %c3 = arith.constant 3 : index
    %c0_24 = arith.constant 0 : index
    %22 = vector.load %arg6[%c0_23, %c3, %c0_24] : memref<6x16x729xf32, #tpu.memory_space<vmem>>, vector<6x1x729xf32>
    %23 = vector.shape_cast %22 : vector<6x1x729xf32> to vector<6x729xf32>
    %c3_25 = arith.constant 3 : index
    %c0_26 = arith.constant 0 : index
    %c0_27 = arith.constant 0 : index
    %24 = vector.load %arg4[%c3_25, %c0_26, %c0_27] : memref<16x729x16xf32, #tpu.memory_space<vmem>>, vector<1x729x16xf32>
    %25 = vector.shape_cast %24 : vector<1x729x16xf32> to vector<729x16xf32>
    %cst_28 = arith.constant dense<0.000000e+00> : vector<6x16xf32>
    %26 = tpu.matmul %23, %25, %cst_28 {dimension_numbers = #tpu.dot_dimension_numbers<[1], [0], [0], [1], [0, 0, 1, 1], [], []>} : vector<6x729xf32>, vector<729x16xf32>, vector<6x16xf32> -> vector<6x16xf32>
    %27 = arith.addf %21, %26 : vector<6x16xf32>
    %cst_29 = arith.constant 0.000000e+00 : f32
    %28 = vector.broadcast %cst_29 : f32 to vector<6x16xf32>
    %c0_30 = arith.constant 0 : index
    %c4 = arith.constant 4 : index
    %c0_31 = arith.constant 0 : index
    %29 = vector.load %arg6[%c0_30, %c4, %c0_31] : memref<6x16x729xf32, #tpu.memory_space<vmem>>, vector<6x1x729xf32>
    %30 = vector.shape_cast %29 : vector<6x1x729xf32> to vector<6x729xf32>
    %c4_32 = arith.constant 4 : index
    %c0_33 = arith.constant 0 : index
    %c0_34 = arith.constant 0 : index
    %31 = vector.load %arg4[%c4_32, %c0_33, %c0_34] : memref<16x729x16xf32, #tpu.memory_space<vmem>>, vector<1x729x16xf32>
    %32 = vector.shape_cast %31 : vector<1x729x16xf32> to vector<729x16xf32>
    %cst_35 = arith.constant dense<0.000000e+00> : vector<6x16xf32>
    %33 = tpu.matmul %30, %32, %cst_35 {dimension_numbers = #tpu.dot_dimension_numbers<[1], [0], [0], [1], [0, 0, 1, 1], [], []>} : vector<6x729xf32>, vector<729x16xf32>, vector<6x16xf32> -> vector<6x16xf32>
    %34 = arith.addf %28, %33 : vector<6x16xf32>
    %c0_36 = arith.constant 0 : index
    %c5 = arith.constant 5 : index
    %c0_37 = arith.constant 0 : index
    %35 = vector.load %arg6[%c0_36, %c5, %c0_37] : memref<6x16x729xf32, #tpu.memory_space<vmem>>, vector<6x1x729xf32>
    %36 = vector.shape_cast %35 : vector<6x1x729xf32> to vector<6x729xf32>
    %c5_38 = arith.constant 5 : index
    %c0_39 = arith.constant 0 : index
    %c0_40 = arith.constant 0 : index
    %37 = vector.load %arg4[%c5_38, %c0_39, %c0_40] : memref<16x729x16xf32, #tpu.memory_space<vmem>>, vector<1x729x16xf32>
    %38 = vector.shape_cast %37 : vector<1x729x16xf32> to vector<729x16xf32>
    %cst_41 = arith.constant dense<0.000000e+00> : vector<6x16xf32>
    %39 = tpu.matmul %36, %38, %cst_41 {dimension_numbers = #tpu.dot_dimension_numbers<[1], [0], [0], [1], [0, 0, 1, 1], [], []>} : vector<6x729xf32>, vector<729x16xf32>, vector<6x16xf32> -> vector<6x16xf32>
    %40 = arith.addf %34, %39 : vector<6x16xf32>
    %c0_42 = arith.constant 0 : index
    %c6 = arith.constant 6 : index
    %c0_43 = arith.constant 0 : index
    %41 = vector.load %arg6[%c0_42, %c6, %c0_43] : memref<6x16x729xf32, #tpu.memory_space<vmem>>, vector<6x1x729xf32>
    %42 = vector.shape_cast %41 : vector<6x1x729xf32> to vector<6x729xf32>
    %c6_44 = arith.constant 6 : index
    %c0_45 = arith.constant 0 : index
    %c0_46 = arith.constant 0 : index
    %43 = vector.load %arg4[%c6_44, %c0_45, %c0_46] : memref<16x729x16xf32, #tpu.memory_space<vmem>>, vector<1x729x16xf32>
    %44 = vector.shape_cast %43 : vector<1x729x16xf32> to vector<729x16xf32>
    %cst_47 = arith.constant dense<0.000000e+00> : vector<6x16xf32>
    %45 = tpu.matmul %42, %44, %cst_47 {dimension_numbers = #tpu.dot_dimension_numbers<[1], [0], [0], [1], [0, 0, 1, 1], [], []>} : vector<6x729xf32>, vector<729x16xf32>, vector<6x16xf32> -> vector<6x16xf32>
    %46 = arith.addf %40, %45 : vector<6x16xf32>
    %c0_48 = arith.constant 0 : index
    %c7 = arith.constant 7 : index
    %c0_49 = arith.constant 0 : index
    %47 = vector.load %arg6[%c0_48, %c7, %c0_49] : memref<6x16x729xf32, #tpu.memory_space<vmem>>, vector<6x1x729xf32>
    %48 = vector.shape_cast %47 : vector<6x1x729xf32> to vector<6x729xf32>
    %c7_50 = arith.constant 7 : index
    %c0_51 = arith.constant 0 : index
    %c0_52 = arith.constant 0 : index
    %49 = vector.load %arg4[%c7_50, %c0_51, %c0_52] : memref<16x729x16xf32, #tpu.memory_space<vmem>>, vector<1x729x16xf32>
    %50 = vector.shape_cast %49 : vector<1x729x16xf32> to vector<729x16xf32>
    %cst_53 = arith.constant dense<0.000000e+00> : vector<6x16xf32>
    %51 = tpu.matmul %48, %50, %cst_53 {dimension_numbers = #tpu.dot_dimension_numbers<[1], [0], [0], [1], [0, 0, 1, 1], [], []>} : vector<6x729xf32>, vector<729x16xf32>, vector<6x16xf32> -> vector<6x16xf32>
    %52 = arith.addf %46, %51 : vector<6x16xf32>
    %cst_54 = arith.constant 0.000000e+00 : f32
    %53 = vector.broadcast %cst_54 : f32 to vector<6x16xf32>
    %c0_55 = arith.constant 0 : index
    %c8 = arith.constant 8 : index
    %c0_56 = arith.constant 0 : index
    %54 = vector.load %arg6[%c0_55, %c8, %c0_56] : memref<6x16x729xf32, #tpu.memory_space<vmem>>, vector<6x1x729xf32>
    %55 = vector.shape_cast %54 : vector<6x1x729xf32> to vector<6x729xf32>
    %c8_57 = arith.constant 8 : index
    %c0_58 = arith.constant 0 : index
    %c0_59 = arith.constant 0 : index
    %56 = vector.load %arg4[%c8_57, %c0_58, %c0_59] : memref<16x729x16xf32, #tpu.memory_space<vmem>>, vector<1x729x16xf32>
    %57 = vector.shape_cast %56 : vector<1x729x16xf32> to vector<729x16xf32>
    %cst_60 = arith.constant dense<0.000000e+00> : vector<6x16xf32>
    %58 = tpu.matmul %55, %57, %cst_60 {dimension_numbers = #tpu.dot_dimension_numbers<[1], [0], [0], [1], [0, 0, 1, 1], [], []>} : vector<6x729xf32>, vector<729x16xf32>, vector<6x16xf32> -> vector<6x16xf32>
    %59 = arith.addf %53, %58 : vector<6x16xf32>
    %c0_61 = arith.constant 0 : index
    %c9 = arith.constant 9 : index
    %c0_62 = arith.constant 0 : index
    %60 = vector.load %arg6[%c0_61, %c9, %c0_62] : memref<6x16x729xf32, #tpu.memory_space<vmem>>, vector<6x1x729xf32>
    %61 = vector.shape_cast %60 : vector<6x1x729xf32> to vector<6x729xf32>
    %c9_63 = arith.constant 9 : index
    %c0_64 = arith.constant 0 : index
    %c0_65 = arith.constant 0 : index
    %62 = vector.load %arg4[%c9_63, %c0_64, %c0_65] : memref<16x729x16xf32, #tpu.memory_space<vmem>>, vector<1x729x16xf32>
    %63 = vector.shape_cast %62 : vector<1x729x16xf32> to vector<729x16xf32>
    %cst_66 = arith.constant dense<0.000000e+00> : vector<6x16xf32>
    %64 = tpu.matmul %61, %63, %cst_66 {dimension_numbers = #tpu.dot_dimension_numbers<[1], [0], [0], [1], [0, 0, 1, 1], [], []>} : vector<6x729xf32>, vector<729x16xf32>, vector<6x16xf32> -> vector<6x16xf32>
    %65 = arith.addf %59, %64 : vector<6x16xf32>
    %c0_67 = arith.constant 0 : index
    %c10 = arith.constant 10 : index
    %c0_68 = arith.constant 0 : index
    %66 = vector.load %arg6[%c0_67, %c10, %c0_68] : memref<6x16x729xf32, #tpu.memory_space<vmem>>, vector<6x1x729xf32>
    %67 = vector.shape_cast %66 : vector<6x1x729xf32> to vector<6x729xf32>
    %c10_69 = arith.constant 10 : index
    %c0_70 = arith.constant 0 : index
    %c0_71 = arith.constant 0 : index
    %68 = vector.load %arg4[%c10_69, %c0_70, %c0_71] : memref<16x729x16xf32, #tpu.memory_space<vmem>>, vector<1x729x16xf32>
    %69 = vector.shape_cast %68 : vector<1x729x16xf32> to vector<729x16xf32>
    %cst_72 = arith.constant dense<0.000000e+00> : vector<6x16xf32>
    %70 = tpu.matmul %67, %69, %cst_72 {dimension_numbers = #tpu.dot_dimension_numbers<[1], [0], [0], [1], [0, 0, 1, 1], [], []>} : vector<6x729xf32>, vector<729x16xf32>, vector<6x16xf32> -> vector<6x16xf32>
    %71 = arith.addf %65, %70 : vector<6x16xf32>
    %c0_73 = arith.constant 0 : index
    %c11 = arith.constant 11 : index
    %c0_74 = arith.constant 0 : index
    %72 = vector.load %arg6[%c0_73, %c11, %c0_74] : memref<6x16x729xf32, #tpu.memory_space<vmem>>, vector<6x1x729xf32>
    %73 = vector.shape_cast %72 : vector<6x1x729xf32> to vector<6x729xf32>
    %c11_75 = arith.constant 11 : index
    %c0_76 = arith.constant 0 : index
    %c0_77 = arith.constant 0 : index
    %74 = vector.load %arg4[%c11_75, %c0_76, %c0_77] : memref<16x729x16xf32, #tpu.memory_space<vmem>>, vector<1x729x16xf32>
    %75 = vector.shape_cast %74 : vector<1x729x16xf32> to vector<729x16xf32>
    %cst_78 = arith.constant dense<0.000000e+00> : vector<6x16xf32>
    %76 = tpu.matmul %73, %75, %cst_78 {dimension_numbers = #tpu.dot_dimension_numbers<[1], [0], [0], [1], [0, 0, 1, 1], [], []>} : vector<6x729xf32>, vector<729x16xf32>, vector<6x16xf32> -> vector<6x16xf32>
    %77 = arith.addf %71, %76 : vector<6x16xf32>
    %cst_79 = arith.constant 0.000000e+00 : f32
    %78 = vector.broadcast %cst_79 : f32 to vector<6x16xf32>
    %c0_80 = arith.constant 0 : index
    %c12 = arith.constant 12 : index
    %c0_81 = arith.constant 0 : index
    %79 = vector.load %arg6[%c0_80, %c12, %c0_81] : memref<6x16x729xf32, #tpu.memory_space<vmem>>, vector<6x1x729xf32>
    %80 = vector.shape_cast %79 : vector<6x1x729xf32> to vector<6x729xf32>
    %c12_82 = arith.constant 12 : index
    %c0_83 = arith.constant 0 : index
    %c0_84 = arith.constant 0 : index
    %81 = vector.load %arg4[%c12_82, %c0_83, %c0_84] : memref<16x729x16xf32, #tpu.memory_space<vmem>>, vector<1x729x16xf32>
    %82 = vector.shape_cast %81 : vector<1x729x16xf32> to vector<729x16xf32>
    %cst_85 = arith.constant dense<0.000000e+00> : vector<6x16xf32>
    %83 = tpu.matmul %80, %82, %cst_85 {dimension_numbers = #tpu.dot_dimension_numbers<[1], [0], [0], [1], [0, 0, 1, 1], [], []>} : vector<6x729xf32>, vector<729x16xf32>, vector<6x16xf32> -> vector<6x16xf32>
    %84 = arith.addf %78, %83 : vector<6x16xf32>
    %c0_86 = arith.constant 0 : index
    %c13 = arith.constant 13 : index
    %c0_87 = arith.constant 0 : index
    %85 = vector.load %arg6[%c0_86, %c13, %c0_87] : memref<6x16x729xf32, #tpu.memory_space<vmem>>, vector<6x1x729xf32>
    %86 = vector.shape_cast %85 : vector<6x1x729xf32> to vector<6x729xf32>
    %c13_88 = arith.constant 13 : index
    %c0_89 = arith.constant 0 : index
    %c0_90 = arith.constant 0 : index
    %87 = vector.load %arg4[%c13_88, %c0_89, %c0_90] : memref<16x729x16xf32, #tpu.memory_space<vmem>>, vector<1x729x16xf32>
    %88 = vector.shape_cast %87 : vector<1x729x16xf32> to vector<729x16xf32>
    %cst_91 = arith.constant dense<0.000000e+00> : vector<6x16xf32>
    %89 = tpu.matmul %86, %88, %cst_91 {dimension_numbers = #tpu.dot_dimension_numbers<[1], [0], [0], [1], [0, 0, 1, 1], [], []>} : vector<6x729xf32>, vector<729x16xf32>, vector<6x16xf32> -> vector<6x16xf32>
    %90 = arith.addf %84, %89 : vector<6x16xf32>
    %c0_92 = arith.constant 0 : index
    %c14 = arith.constant 14 : index
    %c0_93 = arith.constant 0 : index
    %91 = vector.load %arg6[%c0_92, %c14, %c0_93] : memref<6x16x729xf32, #tpu.memory_space<vmem>>, vector<6x1x729xf32>
    %92 = vector.shape_cast %91 : vector<6x1x729xf32> to vector<6x729xf32>
    %c14_94 = arith.constant 14 : index
    %c0_95 = arith.constant 0 : index
    %c0_96 = arith.constant 0 : index
    %93 = vector.load %arg4[%c14_94, %c0_95, %c0_96] : memref<16x729x16xf32, #tpu.memory_space<vmem>>, vector<1x729x16xf32>
    %94 = vector.shape_cast %93 : vector<1x729x16xf32> to vector<729x16xf32>
    %cst_97 = arith.constant dense<0.000000e+00> : vector<6x16xf32>
    %95 = tpu.matmul %92, %94, %cst_97 {dimension_numbers = #tpu.dot_dimension_numbers<[1], [0], [0], [1], [0, 0, 1, 1], [], []>} : vector<6x729xf32>, vector<729x16xf32>, vector<6x16xf32> -> vector<6x16xf32>
    %96 = arith.addf %90, %95 : vector<6x16xf32>
    %c0_98 = arith.constant 0 : index
    %c15 = arith.constant 15 : index
    %c0_99 = arith.constant 0 : index
    %97 = vector.load %arg6[%c0_98, %c15, %c0_99] : memref<6x16x729xf32, #tpu.memory_space<vmem>>, vector<6x1x729xf32>
    %98 = vector.shape_cast %97 : vector<6x1x729xf32> to vector<6x729xf32>
    %c15_100 = arith.constant 15 : index
    %c0_101 = arith.constant 0 : index
    %c0_102 = arith.constant 0 : index
    %99 = vector.load %arg4[%c15_100, %c0_101, %c0_102] : memref<16x729x16xf32, #tpu.memory_space<vmem>>, vector<1x729x16xf32>
    %100 = vector.shape_cast %99 : vector<1x729x16xf32> to vector<729x16xf32>
    %cst_103 = arith.constant dense<0.000000e+00> : vector<6x16xf32>
    %101 = tpu.matmul %98, %100, %cst_103 {dimension_numbers = #tpu.dot_dimension_numbers<[1], [0], [0], [1], [0, 0, 1, 1], [], []>} : vector<6x729xf32>, vector<729x16xf32>, vector<6x16xf32> -> vector<6x16xf32>
    %102 = arith.addf %96, %101 : vector<6x16xf32>
    %103 = arith.addf %27, %52 : vector<6x16xf32>
    %104 = arith.addf %77, %102 : vector<6x16xf32>
    %105 = arith.addf %103, %104 : vector<6x16xf32>
    %c0_104 = arith.constant 0 : index
    %c0_105 = arith.constant 0 : index
    %c0_106 = arith.constant 0 : index
    %106 = vector.load %arg7[%c0_104, %c0_105, %c0_106] : memref<6x1x16xf32, #tpu.memory_space<vmem>>, vector<6x1x16xf32>
    %107 = vector.shape_cast %106 : vector<6x1x16xf32> to vector<6x16xf32>
    %108 = vector.shape_cast %105 : vector<6x16xf32> to vector<6x1x16xf32>
    tpu.vector_store %arg7[%c0_104, %c0_105, %c0_106], %108 {strides = array<i32>} : memref<6x1x16xf32, #tpu.memory_space<vmem>>, vector<6x1x16xf32>,
    return
  }
  func.func @transform_0(%arg0: i32) -> (i32, i32, i32) {
    %c0_i32 = arith.constant 0 : i32
    %c0_i32_0 = arith.constant 0 : i32
    %c0_i32_1 = arith.constant 0 : i32
    return %arg0, %c0_i32, %c0_i32_0 : i32, i32, i32
  }
  func.func @transform_1(%arg0: i32) -> (i32, i32) {
    %c0_i32 = arith.constant 0 : i32
    %c0_i32_0 = arith.constant 0 : i32
    %c0_i32_1 = arith.constant 0 : i32
    return %c0_i32, %c0_i32_0 : i32, i32
  }
  func.func @transform_2(%arg0: i32) -> (i32, i32) {
    %c0_i32 = arith.constant 0 : i32
    %c0_i32_0 = arith.constant 0 : i32
    %c0_i32_1 = arith.constant 0 : i32
    return %c0_i32, %c0_i32_0 : i32, i32
  }
  func.func @transform_3(%arg0: i32) -> (i32, i32, i32) {
    %c0_i32 = arith.constant 0 : i32
    %c0_i32_0 = arith.constant 0 : i32
    %c0_i32_1 = arith.constant 0 : i32
    %c0_i32_2 = arith.constant 0 : i32
    return %c0_i32, %c0_i32_0, %c0_i32_1 : i32, i32, i32
  }
  func.func @transform_4(%arg0: i32) -> (i32, i32, i32) {
    %c0_i32 = arith.constant 0 : i32
    %c0_i32_0 = arith.constant 0 : i32
    %c0_i32_1 = arith.constant 0 : i32
    return %arg0, %c0_i32, %c0_i32_0 : i32, i32, i32
  }
  func.func @transform_5(%arg0: i32) -> (i32, i32, i32) {
    %c0_i32 = arith.constant 0 : i32
    %c0_i32_0 = arith.constant 0 : i32
    %c0_i32_1 = arith.constant 0 : i32
    return %arg0, %c0_i32, %c0_i32_0 : i32, i32, i32
  }
  func.func @transform_6(%arg0: i32) -> (i32, i32, i32) {
    %c0_i32 = arith.constant 0 : i32
    %c0_i32_0 = arith.constant 0 : i32
    %c0_i32_1 = arith.constant 0 : i32
    return %arg0, %c0_i32, %c0_i32_0 : i32, i32, i32
  }
}

</mosaic_0001>

<bundles_post_ra>
// kernel: tpu_custom_call.1
= control target key start
LH: loop header
LB: loop body
LE: loop exit
PB: predicated region body
PF: predicated region fallthrough
CT: control target
= control target key end

     0   :  { %12 = vsyncpa [#allocation3], 0  ;;  %s10994_s0 = inlined_call_operand.vmem [shape: f32[6,72,729], index: 0, kind: input, shape index: {}]   ;;  %s10995_s1 = inlined_call_operand.vmem [shape: f32[16,72], index: 1, kind: input, shape index: {}]   ;;  %s10996_s2 = inlined_call_operand.vmem [shape: f32[16,1], index: 2, kind: input, shape index: {}]   ;;  %s10997_s3 = inlined_call_operand.vmem [shape: f32[16,729,16], index: 3, kind: input, shape index: {}]   ;;  %s10998_s4 = inlined_call_operand.hbm [shape: f32[6,16,729], index: 4, kind: output, shape index: {0}]   ;;  %s10999_s5 = inlined_call_operand.hbm [shape: f32[6,16,729], index: 5, kind: output, shape index: {1}]   ;;  %s11000_s6 = inlined_call_operand.hbm [shape: f32[6,1,16], index: 6, kind: output, shape index: {2}]  }
   0x1   :  { %13 = vsyncpa [#allocation5], 0  ;;  %v6294_v0 = vld [vmem:[%s10995_s1] sm:$0xff]  ;;  %v6299_v1 = vld [vmem:[%s10995_s1 + $0x8] sm:$0xff]  ;;  %s6311_s29 = smov 0  }
   0x2   :  { %v6304_v2 = vld [vmem:[%s10996_s2] sm:$0xff]  ;;  %v6309_v3 = vld [vmem:[%s10996_s2 + $0x8] sm:$0xff] }
   0x3 LB: > { %s6126_s1 = smul.u32 432, %s6246_s29  ;;  %vm99_vm0 = vcmask 588800   ;;  %v6248_v58 = vmov 0   ;;  %vm252_vm1 = vcmask 728064   ;;  %s6246_s29 = sphi %s6311_s29, %s31_s29  }
   0x4   : > { %6163 = vset.pattern.permute.xlu0 %v6248_v58  ;;  %s6127_s2 = smul.u32 96, %s6246_s29  ;;  %s31_s29 = sadd.s32 1, %s6246_s29  }
   0x5   : > { %s6320_s8 = scalar_lea.vmem %s10994_s0, %s6126_s1  ;;  %91 = vperm.xlu0 %6163, %v6304_v2   ;;  %p28_p0 = scmp.ge.s32.totalorder %s31_s29, 6  }
   0x6   : > { %v83_v4 = vld [vmem:[%s6320_s8 + $0x180] sm:$0xff]  ;;  %v84_v5 = vld [vmem:[%s6320_s8 + $0x188] sm:$0xff]  ;;  %v85_v6 = vld [vmem:[%s6320_s8 + $0x190] sm:$0xff]  ;;  %s6403_s9 = scalar_lea.vmem [#allocation2], %s6127_s2  ;;  %s6407_s10 = scalar_lea.vmem [#allocation4], %s6127_s2  ;;  %vm549_vm2 = vcmask (%p28_p0), 1040384  }
   0x7   : > { %113 = vmatpush.msra.mxu0 %v83_v4  ;;  %136 = vmatpush.msra.mxu1 %v84_v5  ;;  %v86_v7 = vld [vmem:[%s6320_s8 + $0x198] sm:$0xff]  ;;  %v77_v8 = vld [vmem:[%s6320_s8 + $0x150] sm:$0xff]  ;;  %v79_v10 = vld [vmem:[%s6320_s8 + $0x160] sm:$0xff]  ;;  %s6249_s12 = smov (%p28_p0), [#allocation4]   ;;  %s4654_s16 = sshll.u32 (%p28_p0), %s10999_s5, 4  ;;  %vm4628_vm3 = vcmask (%p28_p0), 122880   ;;  %s4655_s16 = int_to_ptr.hbm [resolvable:$true] %s4654_s16 }
   0x8   : > { %v78_v9 = vld [vmem:[%s6320_s8 + $0x158] sm:$0xff]  ;;  %159 = vmatpush.msra.mxu2 %v85_v6  ;;  %182 = vmatpush.msra.mxu3 %v86_v7  ;;  %v80_v11 = vld [vmem:[%s6320_s8 + $0x168] sm:$0xff]  ;;  %v71_v12 = vld [vmem:[%s6320_s8 + $0x120] sm:$0xff]  ;;  %s4652_s13 = sshll.u32 (%p28_p0), %s6249_s12, 4  ;;  %s6250_s17 = smov (%p28_p0), 768   ;;  %s4653_s13 = int_to_ptr.vmem [resolvable:$true] %s4652_s13 }
   0x9   : > { %114 = vmatpush.msra.mxu0 %v77_v8  ;;  %137 = vmatpush.msra.mxu1 %v78_v9  ;;  %v72_v13 = vld [vmem:[%s6320_s8 + $0x128] sm:$0xff]  ;;  %v73_v14 = vld [vmem:[%s6320_s8 + $0x130] sm:$0xff]  ;;  %v74_v15 = vld [vmem:[%s6320_s8 + $0x138] sm:$0xff]  ;;  %s6251_s18 = smov (%p28_p0), 48   ;;  %s6252_s0 = smov (%p28_p0), [#allocation2]  }
   0xa   : > { %160 = vmatpush.msra.mxu2 %v79_v10  ;;  %183 = vmatpush.msra.mxu3 %v80_v11  ;;  %v65_v16 = vld [vmem:[%s6320_s8 + $0xf0] sm:$0xff]  ;;  %v66_v17 = vld [vmem:[%s6320_s8 + $0xf8] sm:$0xff]  ;;  %v67_v18 = vld [vmem:[%s6320_s8 + $0x100] sm:$0xff]  ;;  %s4639_s21 = sshll.u32 (%p28_p0), %s6252_s0, 4  ;;  %s4667_s24 = sshll.u32 (%p28_p0), %s11000_s6, 4  ;;  %s4640_s21 = int_to_ptr.vmem [resolvable:$true] %s4639_s21  ;;  %s4668_s24 = int_to_ptr.hbm [resolvable:$true] %s4667_s24 }
   0xb   : > { %115 = vmatpush.msra.mxu0 %v71_v12  ;;  %138 = vmatpush.msra.mxu1 %v72_v13  ;;  %v68_v19 = vld [vmem:[%s6320_s8 + $0x108] sm:$0xff]  ;;  %v59_v20 = vld [vmem:[%s6320_s8 + $0xc0] sm:$0xff]  ;;  %v61_v22 = vld [vmem:[%s6320_s8 + $0xd0] sm:$0xff]  ;;  %s6254_s25 = smov (%p28_p0), 16   ;;  %s6255_s26 = smov (%p28_p0), 1  }
   0xc   : > { %161 = vmatpush.msra.mxu2 %v73_v14  ;;  %184 = vmatpush.msra.mxu3 %v74_v15  ;;  %v60_v21 = vld [vmem:[%s6320_s8 + $0xc8] sm:$0xff]  ;;  %v62_v23 = vld [vmem:[%s6320_s8 + $0xd8] sm:$0xff]  ;;  %v53_v24 = vld [vmem:[%s6320_s8 + $0x90] sm:$0xff] }
   0xd   : > { %116 = vmatpush.msra.mxu0 %v65_v16  ;;  %139 = vmatpush.msra.mxu1 %v66_v17  ;;  %v54_v25 = vld [vmem:[%s6320_s8 + $0x98] sm:$0xff]  ;;  %v55_v26 = vld [vmem:[%s6320_s8 + $0xa0] sm:$0xff]  ;;  %v56_v27 = vld [vmem:[%s6320_s8 + $0xa8] sm:$0xff] }
   0xe   : > { %162 = vmatpush.msra.mxu2 %v67_v18  ;;  %185 = vmatpush.msra.mxu3 %v68_v19  ;;  %v47_v28 = vld [vmem:[%s6320_s8 + $0x60] sm:$0xff]  ;;  %v48_v29 = vld [vmem:[%s6320_s8 + $0x68] sm:$0xff]  ;;  %v49_v30 = vld [vmem:[%s6320_s8 + $0x70] sm:$0xff] }
   0xf   : > { %117 = vmatpush.msra.mxu0 %v59_v20  ;;  %140 = vmatpush.msra.mxu1 %v60_v21  ;;  %v50_v31 = vld [vmem:[%s6320_s8 + $0x78] sm:$0xff]  ;;  %v41_v32 = vld [vmem:[%s6320_s8 + $0x30] sm:$0xff]  ;;  %v43_v34 = vld [vmem:[%s6320_s8 + $0x40] sm:$0xff] }
  0x10   : > { %163 = vmatpush.msra.mxu2 %v61_v22  ;;  %186 = vmatpush.msra.mxu3 %v62_v23  ;;  %v42_v33 = vld [vmem:[%s6320_s8 + $0x38] sm:$0xff]  ;;  %v44_v35 = vld [vmem:[%s6320_s8 + $0x48] sm:$0xff]  ;;  %v35_v36 = vld [vmem:[%s6320_s8] sm:$0xff] }
  0x11   : > { %118 = vmatpush.msra.mxu0 %v53_v24  ;;  %141 = vmatpush.msra.mxu1 %v54_v25  ;;  %v36_v37 = vld [vmem:[%s6320_s8 + $0x8] sm:$0xff]  ;;  %v37_v38 = vld [vmem:[%s6320_s8 + $0x10] sm:$0xff]  ;;  %v38_v39 = vld [vmem:[%s6320_s8 + $0x18] sm:$0xff] }
  0x12   : > { %164 = vmatpush.msra.mxu2 %v55_v26  ;;  %187 = vmatpush.msra.mxu3 %v56_v27  ;;  %v87_v40 = vld [vmem:[%s6320_s8 + $0x1a0] sm:$0xff]  ;;  %v88_v41 = vld [vmem:[%s6320_s8 + $0x1a8] sm:$0xff]  ;;  %v81_v42 = vld [vmem:[%s6320_s8 + $0x170] sm:$0xff] }
  0x13   : > { %119 = vmatpush.msra.mxu0 %v47_v28  ;;  %142 = vmatpush.msra.mxu1 %v48_v29  ;;  %v82_v43 = vld [vmem:[%s6320_s8 + $0x178] sm:$0xff]  ;;  %v75_v44 = vld [vmem:[%s6320_s8 + $0x140] sm:$0xff]  ;;  %v76_v45 = vld [vmem:[%s6320_s8 + $0x148] sm:$0xff] }
  0x14   : > { %165 = vmatpush.msra.mxu2 %v49_v30  ;;  %188 = vmatpush.msra.mxu3 %v50_v31  ;;  %v69_v46 = vld [vmem:[%s6320_s8 + $0x110] sm:$0xff]  ;;  %v70_v47 = vld [vmem:[%s6320_s8 + $0x118] sm:$0xff]  ;;  %v63_v48 = vld [vmem:[%s6320_s8 + $0xe0] sm:$0xff] }
  0x15   : > { %120 = vmatpush.msra.mxu0 %v41_v32  ;;  %143 = vmatpush.msra.mxu1 %v42_v33  ;;  %v64_v49 = vld [vmem:[%s6320_s8 + $0xe8] sm:$0xff]  ;;  %v57_v50 = vld [vmem:[%s6320_s8 + $0xb0] sm:$0xff]  ;;  %v58_v51 = vld [vmem:[%s6320_s8 + $0xb8] sm:$0xff] }
  0x16   : > { %166 = vmatpush.msra.mxu2 %v43_v34  ;;  %189 = vmatpush.msra.mxu3 %v44_v35  ;;  %v51_v52 = vld [vmem:[%s6320_s8 + $0x80] sm:$0xff]  ;;  %v52_v53 = vld [vmem:[%s6320_s8 + $0x88] sm:$0xff]  ;;  %v45_v54 = vld [vmem:[%s6320_s8 + $0x50] sm:$0xff] }
  0x17   : > { %121 = vmatpush.msra.mxu0 %v35_v36  ;;  %144 = vmatpush.msra.mxu1 %v36_v37  ;;  %v46_v55 = vld [vmem:[%s6320_s8 + $0x58] sm:$0xff]  ;;  %v39_v56 = vld [vmem:[%s6320_s8 + $0x20] sm:$0xff]  ;;  %v40_v57 = vld [vmem:[%s6320_s8 + $0x28] sm:$0xff] }
  0x18   : > { %167 = vmatpush.msra.mxu2 %v37_v38  ;;  %190 = vmatpush.msra.mxu3 %v38_v39  ;;  %v4729_v37 = vld [vmem:[%s10997_s3 + $0x358] sm:$0xff] (%p28_p0)  ;;  %v4760_v2 = vld [vmem:[%s10997_s3 + $0x450] sm:$0xff] (%p28_p0)  ;;  %v4739_v58 = vld [vmem:[%s10997_s3 + $0x3a8] sm:$0xff] (%p28_p0) }
  0x19   : > { %205 = vmatpush.msrb.mxu0 %v87_v40  ;;  %228 = vmatpush.msrb.mxu1 %v88_v41  ;;  %v4745_v38 = vld [vmem:[%s10997_s3 + $0x3d8] sm:$0xff] (%p28_p0) }
  0x1a   : > { %6129 = vmatpush.msrb.mxu2 %v87_v40  ;;  %6138 = vmatpush.msrb.mxu3 %v88_v41  ;;  %v4761_v39 = vld [vmem:[%s10997_s3 + $0x458] sm:$0xff] (%p28_p0)  ;;  %v4727_v41 = vld [vmem:[%s10997_s3 + $0x348] sm:$0xff] (%p28_p0) }
  0x1b   : > { %4700 = vmatmul.msk.f32.vlgmr.msra.gmra.mxu0 %vm99_vm0, %v6294_v0  ;;  %4702 = vmatmul.msk.f32.vlgmr.msra.gmra.mxu1 %vm99_vm0, %v6294_v0  ;;  %v4777_v40 = vld [vmem:[%s10997_s3 + $0x4d8] sm:$0xff] (%p28_p0) }
  0x1c   : > { %4704 = vmatmul.msk.f32.vlgmr.msra.gmra.mxu2 %vm99_vm0, %v6294_v0  ;;  %4706 = vmatmul.msk.f32.vlgmr.msra.gmra.mxu3 %vm99_vm0, %v6294_v0 }
  0x1d   : > { %206 = vmatpush.msrb.mxu0 %v81_v42  ;;  %6130 = vmatpush.msrb.mxu2 %v81_v42  ;;  %v4743_v42 = vld [vmem:[%s10997_s3 + $0x3c8] sm:$0xff] (%p28_p0) }
  0x1e   : > { %229 = vmatpush.msrb.mxu1 %v82_v43  ;;  %6139 = vmatpush.msrb.mxu3 %v82_v43  ;;  %v4759_v43 = vld [vmem:[%s10997_s3 + $0x448] sm:$0xff] (%p28_p0) }
  0x1f   : > { %207 = vmatpush.msrb.mxu0 %v75_v44  ;;  %6131 = vmatpush.msrb.mxu2 %v75_v44  ;;  %v4775_v44 = vld [vmem:[%s10997_s3 + $0x4c8] sm:$0xff] (%p28_p0) }
  0x20   : > { %230 = vmatpush.msrb.mxu1 %v76_v45  ;;  %6140 = vmatpush.msrb.mxu3 %v76_v45  ;;  %v4726_v45 = vld [vmem:[%s10997_s3 + $0x340] sm:$0xff] (%p28_p0) }
  0x21   : > { %208 = vmatpush.msrb.mxu0 %v69_v46  ;;  %6132 = vmatpush.msrb.mxu2 %v69_v46  ;;  %v4742_v46 = vld [vmem:[%s10997_s3 + $0x3c0] sm:$0xff] (%p28_p0) }
  0x22   : > { %231 = vmatpush.msrb.mxu1 %v70_v47  ;;  %6141 = vmatpush.msrb.mxu3 %v70_v47  ;;  %v4758_v47 = vld [vmem:[%s10997_s3 + $0x440] sm:$0xff] (%p28_p0) }
  0x23   : > { %209 = vmatpush.msrb.mxu0 %v63_v48  ;;  %6133 = vmatpush.msrb.mxu2 %v63_v48  ;;  %v4774_v48 = vld [vmem:[%s10997_s3 + $0x4c0] sm:$0xff] (%p28_p0) }
  0x24   : > { %232 = vmatpush.msrb.mxu1 %v64_v49  ;;  %6142 = vmatpush.msrb.mxu3 %v64_v49  ;;  %v4725_v49 = vld [vmem:[%s10997_s3 + $0x338] sm:$0xff] (%p28_p0) }
  0x25   : > { %4701 = vmatmul.msk.f32.gmra.mxu0 %vm99_vm0, %v6299_v1  ;;  %4703 = vmatmul.msk.f32.gmra.mxu1 %vm99_vm0, %v6299_v1 }
  0x26   : > { %4705 = vmatmul.msk.f32.gmra.mxu2 %vm99_vm0, %v6299_v1  ;;  %4707 = vmatmul.msk.f32.gmra.mxu3 %vm99_vm0, %v6299_v1 }
  0x27   : > { %210 = vmatpush.msrb.mxu0 %v57_v50  ;;  %6134 = vmatpush.msrb.mxu2 %v57_v50  ;;  %v4741_v50 = vld [vmem:[%s10997_s3 + $0x3b8] sm:$0xff] (%p28_p0) }
  0x28   : > { %233 = vmatpush.msrb.mxu1 %v58_v51  ;;  %6143 = vmatpush.msrb.mxu3 %v58_v51  ;;  %v4757_v51 = vld [vmem:[%s10997_s3 + $0x438] sm:$0xff] (%p28_p0) }
  0x29   : > { %211 = vmatpush.msrb.mxu0 %v51_v52  ;;  %6135 = vmatpush.msrb.mxu2 %v51_v52  ;;  %v4773_v52 = vld [vmem:[%s10997_s3 + $0x4b8] sm:$0xff] (%p28_p0) }
  0x2a   : > { %234 = vmatpush.msrb.mxu1 %v52_v53  ;;  %6144 = vmatpush.msrb.mxu3 %v52_v53  ;;  %v4724_v53 = vld [vmem:[%s10997_s3 + $0x330] sm:$0xff] (%p28_p0) }
  0x2b   : > { %212 = vmatpush.msrb.mxu0 %v45_v54  ;;  %6136 = vmatpush.msrb.mxu2 %v45_v54  ;;  %v4740_v54 = vld [vmem:[%s10997_s3 + $0x3b0] sm:$0xff] (%p28_p0) }
  0x2c   : > { %235 = vmatpush.msrb.mxu1 %v46_v55  ;;  %6145 = vmatpush.msrb.mxu3 %v46_v55  ;;  %v4756_v55 = vld [vmem:[%s10997_s3 + $0x430] sm:$0xff] (%p28_p0) }
  0x2d   : > { %213 = vmatpush.msrb.mxu0 %v39_v56  ;;  %6137 = vmatpush.msrb.mxu2 %v39_v56  ;;  %v4772_v56 = vld [vmem:[%s10997_s3 + $0x4b0] sm:$0xff] (%p28_p0) }
  0x2e   : > { %236 = vmatpush.msrb.mxu1 %v40_v57  ;;  %6146 = vmatpush.msrb.mxu3 %v40_v57  ;;  %v4723_v57 = vld [vmem:[%s10997_s3 + $0x328] sm:$0xff] (%p28_p0) }
  0x2f   : > { %4708 = vmatmul.msk.f32.vlgmr.msrb.gmra.mxu0 %vm99_vm0, %v6294_v0  ;;  %4709 = vmatmul.msk.f32.vlgmr.msrb.gmra.mxu2 %vm99_vm0, %v6299_v1 }
  0x30   : > { %4710 = vmatmul.msk.f32.vlgmr.msrb.gmra.mxu1 %vm99_vm0, %v6294_v0  ;;  %4711 = vmatmul.msk.f32.vlgmr.msrb.gmra.mxu3 %vm99_vm0, %v6299_v1  ;;  %v4728_v0 = vld [vmem:[%s10997_s3 + $0x350] sm:$0xff] (%p28_p0) }
  0x31   : > { %96 = vperm.xlu0 %6163, %v6309_v3   ;;  %553 = vmatpush.msra.mxu0 (%p28_p0), %v4729_v37  ;;  %v4744_v1 = vld [vmem:[%s10997_s3 + $0x3d0] sm:$0xff] (%p28_p0)  ;;  %v4793_v37 = vld [vmem:[%s10997_s3 + $0x558] sm:$0xff] (%p28_p0) }
  0x32   :  { %573 = vmatpush.msra.mxu1 (%p28_p0), %v4745_v38  ;;  %593 = vmatpush.msra.mxu2 (%p28_p0), %v4761_v39  ;;  %v4776_v3 = vld [vmem:[%s10997_s3 + $0x4d0] sm:$0xff] (%p28_p0)  ;;  %v4805_v38 = vld [vmem:[%s10997_s3 + $0x5b8] sm:$0x1] (%p28_p0) }
  0x33   :  { %613 = vmatpush.msra.mxu3 (%p28_p0), %v4777_v40  ;;  %554 = vmatpush.msra.mxu0 (%p28_p0), %v4728_v0  ;;  %v324_v39 = vld [vmem:[%s10997_s3 + $0x78] sm:$0xff] (%p28_p0)  ;;  %v4792_v0 = vld [vmem:[%s10997_s3 + $0x550] sm:$0xff] (%p28_p0) }
  0x34   :  { %574 = vmatpush.msra.mxu1 (%p28_p0), %v4744_v1  ;;  %594 = vmatpush.msra.mxu2 (%p28_p0), %v4760_v2  ;;  %v340_v40 = vld [vmem:[%s10997_s3 + $0xf8] sm:$0xff] (%p28_p0)  ;;  %v4804_v1 = vld [vmem:[%s10997_s3 + $0x5b0] sm:$0xff] (%p28_p0) }
  0x35   :  { %614 = vmatpush.msra.mxu3 (%p28_p0), %v4776_v3  ;;  %555 = vmatpush.msra.mxu0 (%p28_p0), %v4727_v41  ;;  %v323_v2 = vld [vmem:[%s10997_s3 + $0x70] sm:$0xff] (%p28_p0)  ;;  %v4791_v41 = vld [vmem:[%s10997_s3 + $0x548] sm:$0xff] (%p28_p0) }
  0x36   :  { %575 = vmatpush.msra.mxu1 (%p28_p0), %v4743_v42  ;;  %595 = vmatpush.msra.mxu2 (%p28_p0), %v4759_v43  ;;  %v339_v3 = vld [vmem:[%s10997_s3 + $0xf0] sm:$0xff] (%p28_p0)  ;;  %v4803_v42 = vld [vmem:[%s10997_s3 + $0x5a8] sm:$0xff] (%p28_p0) }
  0x37   :  { %615 = vmatpush.msra.mxu3 (%p28_p0), %v4775_v44  ;;  %556 = vmatpush.msra.mxu0 (%p28_p0), %v4726_v45  ;;  %v322_v43 = vld [vmem:[%s10997_s3 + $0x68] sm:$0xff] (%p28_p0)  ;;  %v4790_v45 = vld [vmem:[%s10997_s3 + $0x540] sm:$0xff] (%p28_p0) }
  0x38   :  { %576 = vmatpush.msra.mxu1 (%p28_p0), %v4742_v46  ;;  %596 = vmatpush.msra.mxu2 (%p28_p0), %v4758_v47  ;;  %v338_v44 = vld [vmem:[%s10997_s3 + $0xe8] sm:$0xff] (%p28_p0)  ;;  %v4802_v46 = vld [vmem:[%s10997_s3 + $0x5a0] sm:$0xff] (%p28_p0) }
  0x39   :  { %616 = vmatpush.msra.mxu3 (%p28_p0), %v4774_v48  ;;  %557 = vmatpush.msra.mxu0 (%p28_p0), %v4725_v49  ;;  %v321_v47 = vld [vmem:[%s10997_s3 + $0x60] sm:$0xff] (%p28_p0)  ;;  %v4789_v49 = vld [vmem:[%s10997_s3 + $0x538] sm:$0xff] (%p28_p0) }
  0x3a   :  { %577 = vmatpush.msra.mxu1 (%p28_p0), %v4741_v50  ;;  %597 = vmatpush.msra.mxu2 (%p28_p0), %v4757_v51  ;;  %v337_v48 = vld [vmem:[%s10997_s3 + $0xe0] sm:$0xff] (%p28_p0)  ;;  %v4801_v50 = vld [vmem:[%s10997_s3 + $0x598] sm:$0xff] (%p28_p0) }
  0x3b   :  { %617 = vmatpush.msra.mxu3 (%p28_p0), %v4773_v52  ;;  %558 = vmatpush.msra.mxu0 (%p28_p0), %v4724_v53  ;;  %v320_v51 = vld [vmem:[%s10997_s3 + $0x58] sm:$0xff] (%p28_p0) }
  0x3c   :  { %578 = vmatpush.msra.mxu1 (%p28_p0), %v4740_v54  ;;  %598 = vmatpush.msra.mxu2 (%p28_p0), %v4756_v55  ;;  %v336_v52 = vld [vmem:[%s10997_s3 + $0xd8] sm:$0xff] (%p28_p0)  ;;  %v4788_v54 = vld [vmem:[%s10997_s3 + $0x530] sm:$0xff] (%p28_p0) }
  0x3d   :  { %618 = vmatpush.msra.mxu3 (%p28_p0), %v4772_v56  ;;  %559 = vmatpush.msra.mxu0 (%p28_p0), %v4723_v57  ;;  %v4800_v55 = vld [vmem:[%s10997_s3 + $0x590] sm:$0xff] (%p28_p0) }
  0x3e   :  { %579 = vmatpush.msra.mxu1 (%p28_p0), %v4739_v58  ;;  %v319_v58 = vld [vmem:[%s10997_s3 + $0x50] sm:$0xff] (%p28_p0) }
  0x77   : > { %v92_v4 = vpop.permute.xlu0 %91 }
  0x98   : > { %v123_v59 = vpop.f32.mrf.mxu0  ;;  %v146_v60 = vpop.f32.mrf.mxu1 }
  0x99   : > { %v124_v5 = vadd.f32 %v123_v59, %v92_v4  ;;  %v147_v6 = vadd.f32 %v146_v60, %v92_v4  ;;  %v4755_v59 = vld [vmem:[%s10997_s3 + $0x428] sm:$0xff] (%p28_p0) }
  0x9a   :  { %v4771_v60 = vld [vmem:[%s10997_s3 + $0x4a8] sm:$0xff] (%p28_p0)  ;;  %599 = vmatpush.msra.mxu2 (%p28_p0), %v4755_v59  ;;  %v335_v59 = vld [vmem:[%s10997_s3 + $0xd0] sm:$0xff] (%p28_p0) }
  0x9b   : > { %247 = vst [vmem:[%s6403_s9] sm:$0xff] %v124_v5  ;;  %v260_v10 = vmax.f32 %v124_v5, 0.0  ;;  %v261_v11 = vmax.f32 %v147_v6, 0.0  ;;  %619 = vmatpush.msra.mxu3 (%p28_p0), %v4771_v60  ;;  %v4721_v5 = vld [vmem:[%s10997_s3 + $0x318] sm:$0xff] (%p28_p0) }
  0x9c   : > { %248 = vst [vmem:[%s6403_s9 + $0x8] sm:$0xff] %v147_v6  ;;  %v4737_v6 = vld [vmem:[%s10997_s3 + $0x398] sm:$0xff] (%p28_p0) }
  0x9d   : > { %274 = vst [vmem:[%s6407_s10] sm:$0xff] %v260_v10  ;;  %v4736_v10 = vld [vmem:[%s10997_s3 + $0x390] sm:$0xff] (%p28_p0) }
  0x9e   : > { %275 = vst [vmem:[%s6407_s10 + $0x8] sm:$0xff] %v261_v11  ;;  %v4752_v11 = vld [vmem:[%s10997_s3 + $0x410] sm:$0xff] (%p28_p0) }
  0x9f   : > { %v169_v61 = vpop.f32.mrf.mxu2  ;;  %v192_v62 = vpop.f32.mrf.mxu3 }
  0xa0   : > { %v170_v7 = vadd.f32 %v169_v61, %v92_v4  ;;  %v193_v9 = vadd.f32 %v192_v62, %v92_v4  ;;  %v4722_v61 = vld [vmem:[%s10997_s3 + $0x320] sm:$0xff] (%p28_p0) }
  0xa1   :  { %v4738_v62 = vld [vmem:[%s10997_s3 + $0x3a0] sm:$0xff] (%p28_p0)  ;;  %560 = vmatpush.msra.mxu0 (%p28_p0), %v4722_v61 }
  0xa2   : > { %v126_v63 = vpop.f32.mrf.mxu0  ;;  %v149_v8 = vpop.f32.mrf.mxu1  ;;  %v262_v12 = vmax.f32 %v170_v7, 0.0  ;;  %v263_v13 = vmax.f32 %v193_v9, 0.0  ;;  %249 = vst [vmem:[%s6403_s9 + $0x10] sm:$0xff] %v170_v7  ;;  %580 = vmatpush.msra.mxu1 (%p28_p0), %v4738_v62  ;;  %v4753_v7 = vld [vmem:[%s10997_s3 + $0x418] sm:$0xff] (%p28_p0) }
  0xa3   : > { %v97_v16 = vpop.permute.xlu0 %96  ;;  %250 = vst [vmem:[%s6403_s9 + $0x18] sm:$0xff] %v193_v9  ;;  %v4720_v9 = vld [vmem:[%s10997_s3 + $0x310] sm:$0xff] (%p28_p0)  ;;  %561 = vmatpush.msra.mxu0 (%p28_p0), %v4721_v5 }
  0xa4   : > { %276 = vst [vmem:[%s6407_s10 + $0x10] sm:$0xff] %v262_v12  ;;  %v127_v17 = vadd.f32 %v126_v63, %v97_v16  ;;  %v150_v18 = vadd.f32 %v149_v8, %v97_v16  ;;  %v4754_v63 = vld [vmem:[%s10997_s3 + $0x420] sm:$0xff] (%p28_p0)  ;;  %v4769_v8 = vld [vmem:[%s10997_s3 + $0x498] sm:$0xff] (%p28_p0)  ;;  %581 = vmatpush.msra.mxu1 (%p28_p0), %v4737_v6  ;;  %v4768_v12 = vld [vmem:[%s10997_s3 + $0x490] sm:$0xff] (%p28_p0) }
  0xa5   : > { %277 = vst [vmem:[%s6407_s10 + $0x18] sm:$0xff] %v263_v13  ;;  %600 = vmatpush.msra.mxu2 (%p28_p0), %v4754_v63  ;;  %v4719_v13 = vld [vmem:[%s10997_s3 + $0x308] sm:$0xff] (%p28_p0)  ;;  %562 = vmatpush.msra.mxu0 (%p28_p0), %v4720_v9 }
  0xa6   : > { %254 = vst [vmem:[%s6403_s9 + $0x30] sm:$0xff] %v127_v17  ;;  %v266_v22 = vmax.f32 %v127_v17, 0.0  ;;  %v267_v23 = vmax.f32 %v150_v18, 0.0  ;;  %582 = vmatpush.msra.mxu1 (%p28_p0), %v4736_v10  ;;  %v4718_v17 = vld [vmem:[%s10997_s3 + $0x300] sm:$0xff] (%p28_p0)  ;;  %v4787_v63 = vld [vmem:[%s10997_s3 + $0x528] sm:$0xff] (%p28_p0) }
  0xa7   : > { %255 = vst [vmem:[%s6403_s9 + $0x38] sm:$0xff] %v150_v18  ;;  %601 = vmatpush.msra.mxu2 (%p28_p0), %v4753_v7  ;;  %v4734_v18 = vld [vmem:[%s10997_s3 + $0x380] sm:$0xff] (%p28_p0)  ;;  %563 = vmatpush.msra.mxu0 (%p28_p0), %v4719_v13 }
  0xa8   : > { %280 = vst [vmem:[%s6407_s10 + $0x30] sm:$0xff] %v266_v22  ;;  %v4733_v22 = vld [vmem:[%s10997_s3 + $0x378] sm:$0xff] (%p28_p0) }
  0xa9   : > { %v172_v14 = vpop.f32.mrf.mxu2  ;;  %v195_v15 = vpop.f32.mrf.mxu3  ;;  %281 = vst [vmem:[%s6407_s10 + $0x38] sm:$0xff] %v267_v23  ;;  %602 = vmatpush.msra.mxu2 (%p28_p0), %v4752_v11  ;;  %564 = vmatpush.msra.mxu0 (%p28_p0), %v4718_v17  ;;  %v4749_v23 = vld [vmem:[%s10997_s3 + $0x3f8] sm:$0xff] (%p28_p0) }
  0xaa   : > { %v173_v19 = vadd.f32 %v172_v14, %v97_v16  ;;  %v196_v21 = vadd.f32 %v195_v15, %v97_v16  ;;  %v4735_v14 = vld [vmem:[%s10997_s3 + $0x388] sm:$0xff] (%p28_p0) }
  0xab   :  { %v4751_v15 = vld [vmem:[%s10997_s3 + $0x408] sm:$0xff] (%p28_p0)  ;;  %583 = vmatpush.msra.mxu1 (%p28_p0), %v4735_v14 }
  0xac   : > { %v215_v20 = vpop.f32.mrf.mxu0  ;;  %v268_v25 = vmax.f32 %v173_v19, 0.0  ;;  %v269_v27 = vmax.f32 %v196_v21, 0.0  ;;  %256 = vst [vmem:[%s6403_s9 + $0x40] sm:$0xff] %v173_v19  ;;  %v4750_v19 = vld [vmem:[%s10997_s3 + $0x400] sm:$0xff] (%p28_p0)  ;;  %603 = vmatpush.msra.mxu2 (%p28_p0), %v4751_v15  ;;  %v334_v15 = vld [vmem:[%s10997_s3 + $0xc8] sm:$0xff] (%p28_p0) }
  0xad   : > { %v238_v24 = vpop.f32.mrf.mxu1  ;;  %v216_v26 = vadd.f32 %v215_v20, %v92_v4  ;;  %257 = vst [vmem:[%s6403_s9 + $0x48] sm:$0xff] %v196_v21  ;;  %v4766_v20 = vld [vmem:[%s10997_s3 + $0x480] sm:$0xff] (%p28_p0)  ;;  %v4717_v21 = vld [vmem:[%s10997_s3 + $0x2f8] sm:$0xff] (%p28_p0)  ;;  %584 = vmatpush.msra.mxu1 (%p28_p0), %v4734_v18 }
  0xae   : > { %v239_v28 = vadd.f32 %v238_v24, %v92_v4  ;;  %282 = vst [vmem:[%s6407_s10 + $0x40] sm:$0xff] %v268_v25  ;;  %v4770_v4 = vld [vmem:[%s10997_s3 + $0x4a0] sm:$0xff] (%p28_p0)  ;;  %v4765_v24 = vld [vmem:[%s10997_s3 + $0x478] sm:$0xff] (%p28_p0)  ;;  %604 = vmatpush.msra.mxu2 (%p28_p0), %v4750_v19  ;;  %v4716_v25 = vld [vmem:[%s10997_s3 + $0x2f0] sm:$0xff] (%p28_p0)  ;;  %565 = vmatpush.msra.mxu0 (%p28_p0), %v4717_v21 }
  0xaf   : > { %v264_v29 = vmax.f32 %v216_v26, 0.0  ;;  %283 = vst [vmem:[%s6407_s10 + $0x48] sm:$0xff] %v269_v27  ;;  %620 = vmatpush.msra.mxu3 (%p28_p0), %v4770_v4  ;;  %585 = vmatpush.msra.mxu1 (%p28_p0), %v4733_v22  ;;  %v4748_v27 = vld [vmem:[%s10997_s3 + $0x3f0] sm:$0xff] (%p28_p0)  ;;  %v4799_v4 = vld [vmem:[%s10997_s3 + $0x588] sm:$0xff] (%p28_p0)  ;;  %v4786_v18 = vld [vmem:[%s10997_s3 + $0x520] sm:$0xff] (%p28_p0) }
  0xb0   : > { %v265_v33 = vmax.f32 %v239_v28, 0.0  ;;  %251 = vst [vmem:[%s6403_s9 + $0x20] sm:$0xff] %v216_v26  ;;  %v4732_v26 = vld [vmem:[%s10997_s3 + $0x370] sm:$0xff] (%p28_p0)  ;;  %605 = vmatpush.msra.mxu2 (%p28_p0), %v4749_v23  ;;  %566 = vmatpush.msra.mxu0 (%p28_p0), %v4716_v25  ;;  %v4798_v19 = vld [vmem:[%s10997_s3 + $0x580] sm:$0xff] (%p28_p0)  ;;  %v4785_v23 = vld [vmem:[%s10997_s3 + $0x518] sm:$0xff] (%p28_p0) }
  0xb1   : > { %278 = vst [vmem:[%s6407_s10 + $0x20] sm:$0xff] %v264_v29  ;;  %621 = vmatpush.msra.mxu3 (%p28_p0), %v4769_v8  ;;  %v4715_v29 = vld [vmem:[%s10997_s3 + $0x2e8] sm:$0xff] (%p28_p0)  ;;  %586 = vmatpush.msra.mxu1 (%p28_p0), %v4732_v26  ;;  %v317_v21 = vld [vmem:[%s10997_s3 + $0x40] sm:$0xff] (%p28_p0)  ;;  %v316_v25 = vld [vmem:[%s10997_s3 + $0x38] sm:$0xff] (%p28_p0) }
  0xb2   : > { %v218_v30 = vpop.f32.mrf.mxu2  ;;  %253 = vst.msk [vmem:[%s6403_s9 + $0x28] sm:$0xff] %vm252_vm1, %v239_v28  ;;  %v4764_v28 = vld [vmem:[%s10997_s3 + $0x470] sm:$0xff] (%p28_p0)  ;;  %606 = vmatpush.msra.mxu2 (%p28_p0), %v4748_v27  ;;  %567 = vmatpush.msra.mxu0 (%p28_p0), %v4715_v29  ;;  %v318_v8 = vld [vmem:[%s10997_s3 + $0x48] sm:$0xff] (%p28_p0)  ;;  %v333_v22 = vld [vmem:[%s10997_s3 + $0xc0] sm:$0xff] (%p28_p0) }
  0xb3   : > { %v219_v31 = vadd.f32 %v218_v30, %v97_v16  ;;  %v241_v32 = vpop.f32.mrf.mxu3  ;;  %279 = vst.msk [vmem:[%s6407_s10 + $0x28] sm:$0xff] %vm252_vm1, %v265_v33  ;;  %622 = vmatpush.msra.mxu3 (%p28_p0), %v4768_v12  ;;  %v4731_v30 = vld [vmem:[%s10997_s3 + $0x368] sm:$0xff] (%p28_p0)  ;;  %v4714_v33 = vld [vmem:[%s10997_s3 + $0x2e0] sm:$0xff] (%p28_p0)  ;;  %v332_v26 = vld [vmem:[%s10997_s3 + $0xb8] sm:$0xff] (%p28_p0) }
  0xb4   : > { %v242_v34 = vadd.f32 %v241_v32, %v97_v16  ;;  %30 = sbr.rel (!%p28_p0) target bundleno = 3 (0x3), region = 252  ;;  %v4767_v16 = vld [vmem:[%s10997_s3 + $0x488] sm:$0xff] (%p28_p0)  ;;  %587 = vmatpush.msra.mxu1 (%p28_p0), %v4731_v30  ;;  %568 = vmatpush.msra.mxu0 (%p28_p0), %v4714_v33  ;;  %v4784_v27 = vld [vmem:[%s10997_s3 + $0x510] sm:$0xff] (%p28_p0) }
  0xb5   : > { %v270_v35 = vmax.f32 %v219_v31, 0.0  ;;  %258 = vst [vmem:[%s6403_s9 + $0x50] sm:$0xff] %v219_v31  ;;  %623 = vmatpush.msra.mxu3 (%p28_p0), %v4767_v16  ;;  %v4747_v31 = vld [vmem:[%s10997_s3 + $0x3e8] sm:$0xff] (%p28_p0)  ;;  %v315_v29 = vld [vmem:[%s10997_s3 + $0x30] sm:$0xff] (%p28_p0) }
  0xb6   : > { %v271_v36 = vmax.f32 %v242_v34, 0.0  ;;  %259 = vst.msk [vmem:[%s6403_s9 + $0x58] sm:$0xff] %vm252_vm1, %v242_v34  ;;  %v4763_v32 = vld [vmem:[%s10997_s3 + $0x468] sm:$0xff] (%p28_p0)  ;;  %v4730_v34 = vld [vmem:[%s10997_s3 + $0x360] sm:$0xff] (%p28_p0)  ;;  %607 = vmatpush.msra.mxu2 (%p28_p0), %v4747_v31  ;;  %633 = vmatpush.msrb.mxu0 (%p28_p0), %v4793_v37  ;;  %v331_v30 = vld [vmem:[%s10997_s3 + $0xb0] sm:$0xff] (%p28_p0) }
  0xb7   : > { %284 = vst [vmem:[%s6407_s10 + $0x50] sm:$0xff] %v270_v35  ;;  %624 = vmatpush.msra.mxu3 (%p28_p0), %v4766_v20  ;;  %v4746_v35 = vld [vmem:[%s10997_s3 + $0x3e0] sm:$0xff] (%p28_p0)  ;;  %588 = vmatpush.msra.mxu1 (%p28_p0), %v4730_v34  ;;  %v4783_v31 = vld [vmem:[%s10997_s3 + $0x508] sm:$0xff] (%p28_p0) }
  0xb8   : > { %285 = vst.msk [vmem:[%s6407_s10 + $0x58] sm:$0xff] %vm252_vm1, %v271_v36  ;;  %v4762_v36 = vld [vmem:[%s10997_s3 + $0x460] sm:$0xff] (%p28_p0)  ;;  %608 = vmatpush.msra.mxu2 (%p28_p0), %v4746_v35  ;;  %634 = vmatpush.msrb.mxu0 (%p28_p0), %v4792_v0  ;;  %v314_v33 = vld [vmem:[%s10997_s3 + $0x28] sm:$0xff] (%p28_p0) }
  0xb9   :  { %625 = vmatpush.msra.mxu3 %v4765_v24  ;;  %4806 = vmatpush.msk.msrb.mxu1 %vm549_vm2, %v4805_v38  ;;  %v4797_v24 = vld [vmem:[%s10997_s3 + $0x578] sm:$0xff]  ;;  %v330_v34 = vld [vmem:[%s10997_s3 + $0xa8] sm:$0xff]  ;;  %v4782_v35 = vld [vmem:[%s10997_s3 + $0x500] sm:$0xff] }
  0xba   :  { %706 = vmatpush.msrb.mxu2 %v324_v39  ;;  %635 = vmatpush.msrb.mxu0 %v4791_v41  ;;  %v313_v39 = vld [vmem:[%s10997_s3 + $0x20] sm:$0xff] }
  0xbb   :  { %626 = vmatpush.msra.mxu3 %v4764_v28  ;;  %658 = vmatpush.msrb.mxu1 %v4804_v1  ;;  %v4796_v28 = vld [vmem:[%s10997_s3 + $0x570] sm:$0xff] }
  0xbc   :  { %707 = vmatpush.msrb.mxu2 %v323_v2  ;;  %636 = vmatpush.msrb.mxu0 %v4790_v45  ;;  %v4781_v2 = vld [vmem:[%s10997_s3 + $0x4f8] sm:$0xff] }
  0xbd   :  { %627 = vmatpush.msra.mxu3 %v4763_v32  ;;  %659 = vmatpush.msrb.mxu1 %v4803_v42  ;;  %v4795_v32 = vld [vmem:[%s10997_s3 + $0x568] sm:$0xff]  ;;  %v356_v42 = vld [vmem:[%s10997_s3 + $0x178] sm:$0xff] }
  0xbe   :  { %708 = vmatpush.msrb.mxu2 %v322_v43  ;;  %637 = vmatpush.msrb.mxu0 %v4789_v49  ;;  %v312_v43 = vld [vmem:[%s10997_s3 + $0x18] sm:$0xff] }
  0xbf   :  { %628 = vmatpush.msra.mxu3 %v4762_v36  ;;  %v402_v53 = vld [vmem:[#allocation4 + $0x1] ss:$8 sm:$0xf]  ;;  %660 = vmatpush.msrb.mxu1 %v4802_v46  ;;  %v286_v37 = vld [vmem:[#allocation4] ss:$8 sm:$0xf] }
  0xc0   :  { %v403_v56 = vld [vmem:[#allocation4 + $0x1] ss:$8 sm:$0x30]  ;;  %709 = vmatpush.msrb.mxu2 %v321_v47  ;;  %638 = vmatpush.msrb.mxu0 %v4788_v54  ;;  %v4794_v36 = vld [vmem:[%s10997_s3 + $0x560] sm:$0xff]  ;;  %v328_v46 = vld [vmem:[%s10997_s3 + $0x98] sm:$0xff] }
  0xc1   :  { %726 = vmatpush.msrb.mxu3 %v340_v40  ;;  %v406_v57 = vld [vmem:[#allocation4 + $0x61] ss:$8 sm:$0xf]  ;;  %v404_v60 = vor.u32 %v403_v56, %v402_v53  ;;  %661 = vmatpush.msrb.mxu1 %v4801_v50  ;;  %v287_v38 = vld [vmem:[#allocation4] ss:$8 sm:$0x30] }
  0xc2   :  { %v407_v61 = vld [vmem:[#allocation4 + $0x61] ss:$8 sm:$0x30]  ;;  %710 = vmatpush.msrb.mxu2 %v320_v51  ;;  %639 = vmatpush.msrb.mxu0 %v4787_v63  ;;  %v329_v40 = vld [vmem:[%s10997_s3 + $0xa0] sm:$0xff]  ;;  %v288_v47 = vor.u32 %v287_v38, %v286_v37 }
  0xc3   :  { %727 = vmatpush.msrb.mxu3 %v339_v3  ;;  %v410_v62 = vld [vmem:[#allocation4 + $0xc1] ss:$8 sm:$0xf]  ;;  %v408_v5 = vor.u32 %v407_v61, %v406_v57  ;;  %662 = vmatpush.msrb.mxu1 %v4800_v55  ;;  %524 = vst [vmem:[#allocation1] ss:$9 sm:$0xff] %v404_v60 }
  0xc4   :  { %v411_v6 = vld [vmem:[#allocation4 + $0xc1] ss:$8 sm:$0x30]  ;;  %711 = vmatpush.msrb.mxu2 %v319_v58  ;;  %640 = vmatpush.msrb.mxu0 %v4786_v18  ;;  %v290_v0 = vld [vmem:[#allocation4 + $0x60] ss:$8 sm:$0xf] }
  0xc5   :  { %728 = vmatpush.msrb.mxu3 %v338_v44  ;;  %v414_v7 = vld [vmem:[#allocation4 + $0x121] ss:$8 sm:$0xf]  ;;  %v412_v9 = vor.u32 %v411_v6, %v410_v62  ;;  %526 = vst [vmem:[#allocation1 + $0x1] ss:$9 sm:$0xff] %v408_v5  ;;  %663 = vmatpush.msrb.mxu1 %v4799_v4 }
  0xc6   :  { %v415_v10 = vld [vmem:[#allocation4 + $0x121] ss:$8 sm:$0x30]  ;;  %712 = vmatpush.msrb.mxu2 %v318_v8  ;;  %641 = vmatpush.msrb.mxu0 %v4785_v23  ;;  %v291_v1 = vld [vmem:[#allocation4 + $0x60] ss:$8 sm:$0x30] }
  0xc7   :  { %729 = vmatpush.msrb.mxu3 %v337_v48  ;;  %v418_v11 = vld [vmem:[#allocation4 + $0x181] ss:$8 sm:$0xf]  ;;  %v416_v12 = vor.u32 %v415_v10, %v414_v7  ;;  %528 = vst [vmem:[#allocation1 + $0x2] ss:$9 sm:$0xff] %v412_v9  ;;  %664 = vmatpush.msrb.mxu1 %v4798_v19  ;;  %v292_v55 = vor.u32 %v291_v1, %v290_v0 }
  0xc8   :  { %v419_v13 = vld [vmem:[#allocation4 + $0x181] ss:$8 sm:$0x30]  ;;  %713 = vmatpush.msrb.mxu2 %v317_v21  ;;  %642 = vmatpush.msrb.mxu0 %v4784_v27  ;;  %v294_v3 = vld [vmem:[#allocation4 + $0xc0] ss:$8 sm:$0xf] }
  0xc9   :  { %730 = vmatpush.msrb.mxu3 %v336_v52  ;;  %v422_v14 = vld [vmem:[#allocation4 + $0x1e1] ss:$8 sm:$0xf]  ;;  %v420_v16 = vor.u32 %v419_v13, %v418_v11  ;;  %530 = vst [vmem:[#allocation1 + $0x3] ss:$9 sm:$0xff] %v416_v12  ;;  %665 = vmatpush.msrb.mxu1 %v4797_v24 }
  0xca   :  { %v423_v17 = vld [vmem:[#allocation4 + $0x1e1] ss:$8 sm:$0x30]  ;;  %714 = vmatpush.msrb.mxu2 %v316_v25  ;;  %v295_v41 = vld [vmem:[#allocation4 + $0xc0] ss:$8 sm:$0x30]  ;;  %643 = vmatpush.msrb.mxu0 %v4783_v31 }
  0xcb   :  { %731 = vmatpush.msrb.mxu3 %v335_v59  ;;  %v424_v20 = vor.u32 %v423_v17, %v422_v14  ;;  %532 = vst [vmem:[#allocation1 + $0x4] ss:$9 sm:$0xff] %v420_v16  ;;  %666 = vmatpush.msrb.mxu1 %v4796_v28  ;;  %v298_v44 = vld [vmem:[#allocation4 + $0x120] ss:$8 sm:$0xf]  ;;  %v296_v59 = vor.u32 %v295_v41, %v294_v3 }
  0xcc   :  { %715 = vmatpush.msrb.mxu2 %v315_v29  ;;  %v299_v45 = vld [vmem:[#allocation4 + $0x120] ss:$8 sm:$0x30]  ;;  %644 = vmatpush.msrb.mxu0 %v4782_v35  ;;  %v353_v11 = vld [vmem:[%s10997_s3 + $0x160] sm:$0xff]  ;;  %v372_v16 = vld [vmem:[%s10997_s3 + $0x1f8] sm:$0xff] }
  0xcd   :  { %732 = vmatpush.msrb.mxu3 %v334_v15  ;;  %534 = vst [vmem:[#allocation1 + $0x5] ss:$9 sm:$0xff] %v424_v20  ;;  %667 = vmatpush.msrb.mxu1 %v4795_v32  ;;  %v302_v48 = vld [vmem:[#allocation4 + $0x180] ss:$8 sm:$0xf]  ;;  %v300_v60 = vor.u32 %v299_v45, %v298_v44 }
  0xce   :  { %716 = vmatpush.msrb.mxu2 %v314_v33  ;;  %v303_v49 = vld [vmem:[#allocation4 + $0x180] ss:$8 sm:$0x30]  ;;  %645 = vmatpush.msrb.mxu0 %v4781_v2  ;;  %v4778_v12 = vld [vmem:[%s10997_s3 + $0x4e0] sm:$0xff]  ;;  %v352_v15 = vld [vmem:[%s10997_s3 + $0x158] sm:$0xff] }
  0xcf   :  { %733 = vmatpush.msrb.mxu3 %v333_v22  ;;  %668 = vmatpush.msrb.mxu1 %v4794_v36  ;;  %v355_v53 = vld [vmem:[%s10997_s3 + $0x170] sm:$0xff]  ;;  %v304_v5 = vor.u32 %v303_v49, %v302_v48  ;;  %v354_v7 = vld [vmem:[%s10997_s3 + $0x168] sm:$0xff]  ;;  %v309_v13 = vld [vmem:[%s10997_s3] sm:$0xff] }
  0xd0   :  { %v4780_v54 = vld [vmem:[%s10997_s3 + $0x4f0] sm:$0xff]  ;;  %717 = vmatpush.msrb.mxu2 %v313_v39  ;;  %v4779_v8 = vld [vmem:[%s10997_s3 + $0x4e8] sm:$0xff]  ;;  %v325_v14 = vld [vmem:[%s10997_s3 + $0x80] sm:$0xff] }
  0xd1   :  { %734 = vmatpush.msrb.mxu3 %v332_v26  ;;  %v306_v61 = vld [vmem:[#allocation4 + $0x1e0] ss:$8 sm:$0xf]  ;;  %646 = vmatpush.msrb.mxu0 %v4780_v54  ;;  %4660 = dma.vmem_to_hbm [thread:$0]  %s4653_s13, 9216, %s4655_s16, [#allocation5], %s6250_s17, %s6250_s17, %s6251_s18  }
  0xd2   :  { %v307_v62 = vld [vmem:[#allocation4 + $0x1e0] ss:$8 sm:$0x30]  ;;  %718 = vmatpush.msrb.mxu2 %v312_v43  ;;  %v388_v17 = vld [vmem:[%s10997_s3 + $0x278] sm:$0xff]  ;;  %v349_v29 = vld [vmem:[%s10997_s3 + $0x140] sm:$0xff] }
  0xd3   :  { %735 = vmatpush.msrb.mxu3 %v331_v30  ;;  %v311_v63 = vld [vmem:[%s10997_s3 + $0x10] sm:$0xff]  ;;  %v308_v6 = vor.u32 %v307_v62, %v306_v61  ;;  %v310_v9 = vld [vmem:[%s10997_s3 + $0x8] sm:$0xff]  ;;  %647 = vmatpush.msrb.mxu0 %v4779_v8  ;;  %v400_v18 = vld [vmem:[%s10997_s3 + $0x2d8] sm:$0x1] }
  0xd4   :  { %v536_v50 = vld [vmem:[#allocation1 + $0x9] sm:$0xff]  ;;  %v537_v56 = vld [vmem:[#allocation1 + $0x12] sm:$0xff]  ;;  %v535_v57 = vld [vmem:[#allocation1] sm:$0xff]  ;;  %719 = vmatpush.msrb.mxu2 %v311_v63 }
  0xd5   :  { %736 = vmatpush.msrb.mxu3 %v330_v34  ;;  %v6787_v51 = vld [vmem:[#allocation1 + $0x24] sm:$0xff]  ;;  %v6789_v52 = vld [vmem:[#allocation1 + $0x2d] sm:$0xff]  ;;  %v538_v58 = vld [vmem:[#allocation1 + $0x1b] sm:$0xff]  ;;  %589 = vmatmul.f32.vlgmr.msra.gmra.mxu1 %v536_v50 }
  0xd6   :  { %746 = vmatpush.msra.mxu1 %v356_v42  ;;  %v327_v4 = vld [vmem:[%s10997_s3 + $0x90] sm:$0xff]  ;;  %679 = vst [vmem:[#allocation1] ss:$9 sm:$0xff] %v288_v47  ;;  %609 = vmatmul.f32.vlgmr.msra.gmra.mxu2 %v537_v56  ;;  %v326_v10 = vld [vmem:[%s10997_s3 + $0x88] sm:$0xff]  ;;  %v369_v30 = vld [vmem:[%s10997_s3 + $0x1e0] sm:$0xff] }
  0xd7   :  { %737 = vmatpush.msrb.mxu3 %v329_v40  ;;  %681 = vst [vmem:[#allocation1 + $0x1] ss:$9 sm:$0xff] %v292_v55  ;;  %569 = vmatmul.f32.vlgmr.msra.gmra.mxu0 %v535_v57  ;;  %v351_v19 = vld [vmem:[%s10997_s3 + $0x150] sm:$0xff]  ;;  %v350_v23 = vld [vmem:[%s10997_s3 + $0x148] sm:$0xff]  ;;  %v385_v31 = vld [vmem:[%s10997_s3 + $0x260] sm:$0xff] }
  0xd8   :  { %747 = vmatpush.msra.mxu1 %v355_v53  ;;  %683 = vst [vmem:[#allocation1 + $0x2] ss:$9 sm:$0xff] %v296_v59  ;;  %629 = vmatmul.f32.vlgmr.msra.gmra.mxu3 %v538_v58  ;;  %v371_v20 = vld [vmem:[%s10997_s3 + $0x1f0] sm:$0xff]  ;;  %v370_v24 = vld [vmem:[%s10997_s3 + $0x1e8] sm:$0xff]  ;;  %v397_v32 = vld [vmem:[%s10997_s3 + $0x2c0] sm:$0xff] }
  0xd9   :  { %738 = vmatpush.msrb.mxu3 %v328_v46  ;;  %685 = vst [vmem:[#allocation1 + $0x3] ss:$9 sm:$0xff] %v300_v60  ;;  %720 = vmatpush.msrb.mxu2 %v310_v9  ;;  %v387_v21 = vld [vmem:[%s10997_s3 + $0x270] sm:$0xff]  ;;  %v386_v27 = vld [vmem:[%s10997_s3 + $0x268] sm:$0xff]  ;;  %v348_v33 = vld [vmem:[%s10997_s3 + $0x138] sm:$0xff] }
  0xda   :  { %687 = vst [vmem:[#allocation1 + $0x4] ss:$9 sm:$0xff] %v304_v5  ;;  %748 = vmatpush.msra.mxu1 %v354_v7  ;;  %648 = vmatpush.msrb.mxu0 %v4778_v12  ;;  %v399_v22 = vld [vmem:[%s10997_s3 + $0x2d0] sm:$0xff]  ;;  %v398_v28 = vld [vmem:[%s10997_s3 + $0x2c8] sm:$0xff]  ;;  %v368_v34 = vld [vmem:[%s10997_s3 + $0x1d8] sm:$0xff] }
  0xdb   :  { %739 = vmatpush.msrb.mxu3 %v327_v4  ;;  %689 = vst [vmem:[#allocation1 + $0x5] ss:$9 sm:$0xff] %v308_v6  ;;  %721 = vmatpush.msrb.mxu2 %v309_v13  ;;  %v384_v35 = vld [vmem:[%s10997_s3 + $0x258] sm:$0xff]  ;;  %v347_v37 = vld [vmem:[%s10997_s3 + $0x130] sm:$0xff]  ;;  %v346_v0 = vld [vmem:[%s10997_s3 + $0x128] sm:$0xff] }
  0xdc   :  { %749 = vmatpush.msra.mxu1 %v353_v11  ;;  %766 = vmatpush.msra.mxu0 %v372_v16  ;;  %v396_v36 = vld [vmem:[%s10997_s3 + $0x2b8] sm:$0xff]  ;;  %v367_v38 = vld [vmem:[%s10997_s3 + $0x1d0] sm:$0xff]  ;;  %v366_v1 = vld [vmem:[%s10997_s3 + $0x1c8] sm:$0xff] }
  0xdd   :  { %740 = vmatpush.msrb.mxu3 %v326_v10  ;;  %786 = vmatpush.msra.mxu2 %v388_v17  ;;  %v383_v39 = vld [vmem:[%s10997_s3 + $0x250] sm:$0xff]  ;;  %v382_v2 = vld [vmem:[%s10997_s3 + $0x248] sm:$0xff]  ;;  %v345_v41 = vld [vmem:[%s10997_s3 + $0x120] sm:$0xff] }
  0xde   :  { %750 = vmatpush.msra.mxu1 %v352_v15  ;;  %767 = vmatpush.msra.mxu0 %v371_v20  ;;  %v395_v40 = vld [vmem:[%s10997_s3 + $0x2b0] sm:$0xff]  ;;  %v394_v3 = vld [vmem:[%s10997_s3 + $0x2a8] sm:$0xff]  ;;  %v365_v42 = vld [vmem:[%s10997_s3 + $0x1c0] sm:$0xff] }
  0xdf   :  { %741 = vmatpush.msrb.mxu3 %v325_v14  ;;  %787 = vmatpush.msra.mxu2 %v387_v21  ;;  %v381_v43 = vld [vmem:[%s10997_s3 + $0x240] sm:$0xff]  ;;  %v344_v45 = vld [vmem:[%s10997_s3 + $0x118] sm:$0xff]  ;;  %v343_v49 = vld [vmem:[%s10997_s3 + $0x110] sm:$0xff] }
  0xe0   :  { %751 = vmatpush.msra.mxu1 %v351_v19  ;;  %649 = vmatmul.f32.vlgmr.msrb.gmra.mxu0 %v6787_v51  ;;  %v393_v44 = vld [vmem:[%s10997_s3 + $0x2a0] sm:$0xff]  ;;  %v364_v46 = vld [vmem:[%s10997_s3 + $0x1b8] sm:$0xff]  ;;  %v363_v50 = vld [vmem:[%s10997_s3 + $0x1b0] sm:$0xff] }
  0xe1   :  { %4808 = vmatpush.msk.msra.mxu3 %vm549_vm2, %v400_v18  ;;  %768 = vmatpush.msra.mxu0 %v370_v24  ;;  %v380_v47 = vld [vmem:[%s10997_s3 + $0x238] sm:$0xff]  ;;  %v379_v51 = vld [vmem:[%s10997_s3 + $0x230] sm:$0xff]  ;;  %v342_v53 = vld [vmem:[%s10997_s3 + $0x108] sm:$0xff] }
  0xe2   :  { %v690_v25 = vld [vmem:[#allocation1] sm:$0xff]  ;;  %v691_v26 = vld [vmem:[#allocation1 + $0x9] sm:$0xff]  ;;  %752 = vmatpush.msra.mxu1 %v350_v23  ;;  %788 = vmatpush.msra.mxu2 %v386_v27  ;;  %v392_v48 = vld [vmem:[%s10997_s3 + $0x298] sm:$0xff] }
  0xe3   :  { %811 = vmatpush.msra.mxu3 %v399_v22  ;;  %722 = vmatmul.f32.vlgmr.msrb.gmra.mxu2 %v690_v25  ;;  %v362_v54 = vld [vmem:[%s10997_s3 + $0x1a8] sm:$0xff]  ;;  %v341_v57 = vld [vmem:[%s10997_s3 + $0x100] sm:$0xff]  ;;  %v692_v61 = vld [vmem:[#allocation1 + $0x12] sm:$0xff] }
  0xe4   :  { %742 = vmatmul.f32.vlgmr.msrb.gmra.mxu3 %v691_v26  ;;  %4807 = vmatmul.msk.f32.vlgmr.msrb.gmra.mxu1 %vm252_vm1, %v6789_v52  ;;  %v391_v52 = vld [vmem:[%s10997_s3 + $0x290] sm:$0xff]  ;;  %v378_v55 = vld [vmem:[%s10997_s3 + $0x228] sm:$0xff]  ;;  %v361_v58 = vld [vmem:[%s10997_s3 + $0x1a0] sm:$0xff] }
  0xe5   :  { %812 = vmatpush.msra.mxu3 %v398_v28  ;;  %753 = vmatpush.msra.mxu1 %v349_v29  ;;  %v390_v56 = vld [vmem:[%s10997_s3 + $0x288] sm:$0xff]  ;;  %v377_v59 = vld [vmem:[%s10997_s3 + $0x220] sm:$0xff]  ;;  %v4841_v62 = vld [vmem:[%s10997_s3 + $0x6b8] sm:$0xff] }
  0xe6   :  { %769 = vmatpush.msra.mxu0 %v369_v30  ;;  %789 = vmatpush.msra.mxu2 %v385_v31  ;;  %v389_v60 = vld [vmem:[%s10997_s3 + $0x280] sm:$0xff]  ;;  %v4825_v63 = vld [vmem:[%s10997_s3 + $0x638] sm:$0xff]  ;;  %v4840_v6 = vld [vmem:[%s10997_s3 + $0x6b0] sm:$0xff] }
  0xe7   :  { %813 = vmatpush.msra.mxu3 %v397_v32  ;;  %754 = vmatpush.msra.mxu1 %v348_v33  ;;  %v360_v4 = vld [vmem:[%s10997_s3 + $0x198] sm:$0xff]  ;;  %v4824_v7 = vld [vmem:[%s10997_s3 + $0x630] sm:$0xff]  ;;  %v4839_v10 = vld [vmem:[%s10997_s3 + $0x6a8] sm:$0xff] }
  0xe8   :  { %770 = vmatpush.msra.mxu0 %v368_v34  ;;  %790 = vmatpush.msra.mxu2 %v384_v35  ;;  %v376_v5 = vld [vmem:[%s10997_s3 + $0x218] sm:$0xff]  ;;  %v359_v8 = vld [vmem:[%s10997_s3 + $0x190] sm:$0xff]  ;;  %v4823_v11 = vld [vmem:[%s10997_s3 + $0x628] sm:$0xff] }
  0xe9   :  { %814 = vmatpush.msra.mxu3 %v396_v36  ;;  %755 = vmatpush.msra.mxu1 %v347_v37  ;;  %v375_v9 = vld [vmem:[%s10997_s3 + $0x210] sm:$0xff]  ;;  %v358_v12 = vld [vmem:[%s10997_s3 + $0x188] sm:$0xff]  ;;  %v4838_v14 = vld [vmem:[%s10997_s3 + $0x6a0] sm:$0xff] }
  0xea   :  { %771 = vmatpush.msra.mxu0 %v367_v38  ;;  %791 = vmatpush.msra.mxu2 %v383_v39  ;;  %v374_v13 = vld [vmem:[%s10997_s3 + $0x208] sm:$0xff]  ;;  %v4822_v15 = vld [vmem:[%s10997_s3 + $0x620] sm:$0xff]  ;;  %v4821_v20 = vld [vmem:[%s10997_s3 + $0x618] sm:$0xff] }
  0xeb   :  { %815 = vmatpush.msra.mxu3 %v395_v40  ;;  %756 = vmatpush.msra.mxu1 %v346_v0  ;;  %v357_v16 = vld [vmem:[%s10997_s3 + $0x180] sm:$0xff]  ;;  %v4837_v21 = vld [vmem:[%s10997_s3 + $0x698] sm:$0xff]  ;;  %v695_v24 = vld [vmem:[#allocation1 + $0x2d] sm:$0xff] }
  0xec   :  { %772 = vmatpush.msra.mxu0 %v366_v1  ;;  %792 = vmatpush.msra.mxu2 %v382_v2  ;;  %v373_v17 = vld [vmem:[%s10997_s3 + $0x200] sm:$0xff]  ;;  %v4857_v22 = vld [vmem:[%s10997_s3 + $0x738] sm:$0xff]  ;;  %v4820_v25 = vld [vmem:[%s10997_s3 + $0x610] sm:$0xff] }
  0xed   :  { %816 = vmatpush.msra.mxu3 %v394_v3  ;;  %757 = vmatpush.msra.mxu1 %v345_v41  ;;  %v693_v18 = vld [vmem:[#allocation1 + $0x1b] sm:$0xff]  ;;  %v694_v19 = vld [vmem:[#allocation1 + $0x24] sm:$0xff]  ;;  %v4836_v26 = vld [vmem:[%s10997_s3 + $0x690] sm:$0xff] }
  0xee   :  { %773 = vmatpush.msra.mxu0 %v365_v42  ;;  %793 = vmatpush.msra.mxu2 %v381_v43  ;;  %v4873_v23 = vld [vmem:[%s10997_s3 + $0x7b8] sm:$0xff]  ;;  %v4856_v27 = vld [vmem:[%s10997_s3 + $0x730] sm:$0xff]  ;;  %v4819_v29 = vld [vmem:[%s10997_s3 + $0x608] sm:$0xff] }
  0xef   :  { %817 = vmatpush.msra.mxu3 %v393_v44  ;;  %758 = vmatpush.msra.mxu1 %v344_v45  ;;  %v4872_v28 = vld [vmem:[%s10997_s3 + $0x7b0] sm:$0xff]  ;;  %v4835_v30 = vld [vmem:[%s10997_s3 + $0x688] sm:$0xff]  ;;  %v4818_v34 = vld [vmem:[%s10997_s3 + $0x600] sm:$0xff] }
  0xf0   :  { %774 = vmatpush.msra.mxu0 %v364_v46  ;;  %794 = vmatpush.msra.mxu2 %v380_v47  ;;  %v827_v31 = vld [vmem:[#allocation4 + $0x2] ss:$8 sm:$0xf] }
  0xf1   :  { %818 = vmatpush.msra.mxu3 %v392_v48  ;;  %759 = vmatpush.msra.mxu1 %v343_v49  ;;  %v4855_v32 = vld [vmem:[%s10997_s3 + $0x728] sm:$0xff]  ;;  %v4834_v35 = vld [vmem:[%s10997_s3 + $0x680] sm:$0xff]  ;;  %v4817_v39 = vld [vmem:[%s10997_s3 + $0x5f8] sm:$0xff] }
  0xf2   :  { %775 = vmatpush.msra.mxu0 %v363_v50  ;;  %795 = vmatpush.msra.mxu2 %v379_v51  ;;  %v4871_v33 = vld [vmem:[%s10997_s3 + $0x7a8] sm:$0xff]  ;;  %v4854_v37 = vld [vmem:[%s10997_s3 + $0x720] sm:$0xff]  ;;  %v4833_v0 = vld [vmem:[%s10997_s3 + $0x678] sm:$0xff] }
  0xf3   :  { %819 = vmatpush.msra.mxu3 %v391_v52  ;;  %760 = vmatpush.msra.mxu1 %v342_v53  ;;  %v828_v36 = vld [vmem:[#allocation4 + $0x2] ss:$8 sm:$0x30]  ;;  %v4870_v38 = vld [vmem:[%s10997_s3 + $0x7a0] sm:$0xff]  ;;  %v4853_v1 = vld [vmem:[%s10997_s3 + $0x718] sm:$0xff] }
  0xf4   :  { %776 = vmatpush.msra.mxu0 %v362_v54  ;;  %796 = vmatpush.msra.mxu2 %v378_v55  ;;  %v829_v40 = vor.u32 %v828_v36, %v827_v31  ;;  %v831_v2 = vld [vmem:[#allocation4 + $0x62] ss:$8 sm:$0xf] }
  0xf5   :  { %820 = vmatpush.msra.mxu3 %v390_v56  ;;  %761 = vmatpush.msra.mxu1 %v341_v57  ;;  %v4869_v3 = vld [vmem:[%s10997_s3 + $0x798] sm:$0xff]  ;;  %v4816_v41 = vld [vmem:[%s10997_s3 + $0x5f0] sm:$0xff]  ;;  %v4815_v46 = vld [vmem:[%s10997_s3 + $0x5e8] sm:$0xff] }
  0xf6   :  { %777 = vmatpush.msra.mxu0 %v361_v58  ;;  %797 = vmatpush.msra.mxu2 %v377_v59  ;;  %v4832_v42 = vld [vmem:[%s10997_s3 + $0x670] sm:$0xff]  ;;  %949 = vst [vmem:[#allocation1] ss:$9 sm:$0xff] %v829_v40  ;;  %v4831_v47 = vld [vmem:[%s10997_s3 + $0x668] sm:$0xff]  ;;  %v4814_v51 = vld [vmem:[%s10997_s3 + $0x5e0] sm:$0xff] }
  0xf7   :  { %821 = vmatpush.msra.mxu3 %v389_v60  ;;  %762 = vmatmul.f32.vlgmr.msra.gmra.mxu1 %v692_v61  ;;  %v4852_v43 = vld [vmem:[%s10997_s3 + $0x710] sm:$0xff]  ;;  %v4851_v48 = vld [vmem:[%s10997_s3 + $0x708] sm:$0xff]  ;;  %v4830_v53 = vld [vmem:[%s10997_s3 + $0x660] sm:$0xff] }
  0xf8   :  { %976 = vmatpush.msrb.mxu1 %v4825_v63  ;;  %778 = vmatpush.msra.mxu0 %v360_v4  ;;  %v4868_v44 = vld [vmem:[%s10997_s3 + $0x790] sm:$0xff]  ;;  %v4867_v50 = vld [vmem:[%s10997_s3 + $0x788] sm:$0xff]  ;;  %v4850_v54 = vld [vmem:[%s10997_s3 + $0x700] sm:$0xff] }
  0xf9   :  { %996 = vmatpush.msrb.mxu3 %v4841_v62  ;;  %798 = vmatpush.msra.mxu2 %v376_v5  ;;  %v832_v45 = vld [vmem:[#allocation4 + $0x62] ss:$8 sm:$0x30]  ;;  %v4866_v55 = vld [vmem:[%s10997_s3 + $0x780] sm:$0xff]  ;;  %v4813_v56 = vld [vmem:[%s10997_s3 + $0x5d8] sm:$0xff] }
  0xfa   :  { %977 = vmatpush.msrb.mxu1 %v4824_v7  ;;  %779 = vmatpush.msra.mxu0 %v359_v8  ;;  %v833_v49 = vor.u32 %v832_v45, %v831_v2  ;;  %v835_v52 = vld [vmem:[#allocation4 + $0xc2] ss:$8 sm:$0xf] }
  0xfb   :  { %997 = vmatpush.msrb.mxu3 %v4840_v6  ;;  %799 = vmatpush.msra.mxu2 %v375_v9  ;;  %v4829_v57 = vld [vmem:[%s10997_s3 + $0x658] sm:$0xff]  ;;  %v836_v58 = vld [vmem:[#allocation4 + $0xc2] ss:$8 sm:$0x30]  ;;  %v4898_v36 = vld [vmem:[%s10997_s3 + $0x880] sm:$0xff] }
  0xfc   :  { %978 = vmatpush.msrb.mxu1 %v4823_v11  ;;  %780 = vmatpush.msra.mxu0 %v358_v12  ;;  %951 = vst [vmem:[#allocation1 + $0x1] ss:$9 sm:$0xff] %v833_v49  ;;  %v839_v59 = vld [vmem:[#allocation4 + $0x122] ss:$8 sm:$0xf]  ;;  %v837_v61 = vor.u32 %v836_v58, %v835_v52 }
  0xfd   :  { %998 = vmatpush.msrb.mxu3 %v4839_v10  ;;  %800 = vmatpush.msra.mxu2 %v374_v13  ;;  %v4849_v60 = vld [vmem:[%s10997_s3 + $0x6f8] sm:$0xff]  ;;  %v840_v62 = vld [vmem:[#allocation4 + $0x122] ss:$8 sm:$0x30]  ;;  %v4916_v49 = vld [vmem:[%s10997_s3 + $0x900] sm:$0xff] }
  0xfe   :  { %979 = vmatpush.msrb.mxu1 %v4822_v15  ;;  %781 = vmatpush.msra.mxu0 %v357_v16  ;;  %v843_v63 = vld [vmem:[#allocation4 + $0x182] ss:$8 sm:$0xf]  ;;  %v841_v4 = vor.u32 %v840_v62, %v839_v59  ;;  %953 = vst [vmem:[#allocation1 + $0x2] ss:$9 sm:$0xff] %v837_v61 }
  0xff   :  { %999 = vmatpush.msrb.mxu3 %v4838_v14  ;;  %801 = vmatpush.msra.mxu2 %v373_v17  ;;  %v844_v5 = vld [vmem:[#allocation4 + $0x182] ss:$8 sm:$0x30]  ;;  %v4865_v7 = vld [vmem:[%s10997_s3 + $0x778] sm:$0xff] }
 0x100   :  { %782 = vmatmul.f32.vlgmr.msra.gmra.mxu0 %v693_v18  ;;  %802 = vmatmul.f32.vlgmr.msra.gmra.mxu2 %v694_v19  ;;  %v847_v6 = vld [vmem:[#allocation4 + $0x1e2] ss:$8 sm:$0xf]  ;;  %v845_v8 = vor.u32 %v844_v5, %v843_v63  ;;  %955 = vst [vmem:[#allocation1 + $0x3] ss:$9 sm:$0xff] %v841_v4 }
 0x101   :  { %980 = vmatpush.msrb.mxu1 %v4821_v20  ;;  %1000 = vmatpush.msrb.mxu3 %v4837_v21  ;;  %v848_v9 = vld [vmem:[#allocation4 + $0x1e2] ss:$8 sm:$0x30]  ;;  %v4810_v19 = vld [vmem:[%s10997_s3 + $0x5c0] sm:$0xff]  ;;  %v4897_v40 = vld [vmem:[%s10997_s3 + $0x878] sm:$0xff] }
 0x102   :  { %1016 = vmatpush.msrb.mxu0 %v4857_v22  ;;  %1036 = vmatpush.msrb.mxu2 %v4873_v23  ;;  %v4812_v10 = vld [vmem:[%s10997_s3 + $0x5d0] sm:$0xff]  ;;  %v849_v12 = vor.u32 %v848_v9, %v847_v6  ;;  %957 = vst [vmem:[#allocation1 + $0x4] ss:$9 sm:$0xff] %v845_v8  ;;  %v4811_v15 = vld [vmem:[%s10997_s3 + $0x5c8] sm:$0xff]  ;;  %v4826_v20 = vld [vmem:[%s10997_s3 + $0x640] sm:$0xff] }
 0x103   :  { %4809 = vmatmul.msk.f32.vlgmr.msra.gmra.mxu3 %vm252_vm1, %v695_v24  ;;  %981 = vmatpush.msrb.mxu1 %v4820_v25  ;;  %v4828_v11 = vld [vmem:[%s10997_s3 + $0x650] sm:$0xff]  ;;  %v4827_v16 = vld [vmem:[%s10997_s3 + $0x648] sm:$0xff]  ;;  %v4846_v21 = vld [vmem:[%s10997_s3 + $0x6e0] sm:$0xff] }
 0x104   :  { %1001 = vmatpush.msrb.mxu3 %v4836_v26  ;;  %1017 = vmatpush.msrb.mxu0 %v4856_v27  ;;  %v4848_v13 = vld [vmem:[%s10997_s3 + $0x6f0] sm:$0xff]  ;;  %959 = vst [vmem:[#allocation1 + $0x5] ss:$9 sm:$0xff] %v849_v12  ;;  %v4847_v17 = vld [vmem:[%s10997_s3 + $0x6e8] sm:$0xff]  ;;  %v4862_v22 = vld [vmem:[%s10997_s3 + $0x760] sm:$0xff] }
 0x105   :  { %1037 = vmatpush.msrb.mxu2 %v4872_v28  ;;  %982 = vmatpush.msrb.mxu1 %v4819_v29  ;;  %v4864_v14 = vld [vmem:[%s10997_s3 + $0x770] sm:$0xff]  ;;  %v4863_v18 = vld [vmem:[%s10997_s3 + $0x768] sm:$0xff]  ;;  %v4889_v23 = vld [vmem:[%s10997_s3 + $0x838] sm:$0xff] }
 0x106   :  { %1002 = vmatpush.msrb.mxu3 %v4835_v30  ;;  %1018 = vmatpush.msrb.mxu0 %v4855_v32  ;;  %v4901_v24 = vld [vmem:[%s10997_s3 + $0x898] sm:$0x1]  ;;  %v4888_v27 = vld [vmem:[%s10997_s3 + $0x830] sm:$0xff]  ;;  %v4887_v31 = vld [vmem:[%s10997_s3 + $0x828] sm:$0xff] }
 0x107   :  { %1038 = vmatpush.msrb.mxu2 %v4871_v33  ;;  %983 = vmatpush.msrb.mxu1 %v4818_v34  ;;  %v4845_v25 = vld [vmem:[%s10997_s3 + $0x6d8] sm:$0xff]  ;;  %v4900_v28 = vld [vmem:[%s10997_s3 + $0x890] sm:$0xff]  ;;  %v4899_v32 = vld [vmem:[%s10997_s3 + $0x888] sm:$0xff] }
 0x108   :  { %1003 = vmatpush.msrb.mxu3 %v4834_v35  ;;  %1019 = vmatpush.msrb.mxu0 %v4854_v37  ;;  %v4861_v26 = vld [vmem:[%s10997_s3 + $0x758] sm:$0xff]  ;;  %v4844_v29 = vld [vmem:[%s10997_s3 + $0x6d0] sm:$0xff]  ;;  %v4843_v33 = vld [vmem:[%s10997_s3 + $0x6c8] sm:$0xff] }
 0x109   :  { %1039 = vmatpush.msrb.mxu2 %v4870_v38  ;;  %984 = vmatpush.msrb.mxu1 %v4817_v39  ;;  %v4860_v30 = vld [vmem:[%s10997_s3 + $0x750] sm:$0xff]  ;;  %v4859_v34 = vld [vmem:[%s10997_s3 + $0x748] sm:$0xff]  ;;  %v4886_v35 = vld [vmem:[%s10997_s3 + $0x820] sm:$0xff] }
 0x10a   :  { %1004 = vmatpush.msrb.mxu3 %v4833_v0  ;;  %1020 = vmatpush.msrb.mxu0 %v4853_v1  ;;  %v4842_v37 = vld [vmem:[%s10997_s3 + $0x6c0] sm:$0xff]  ;;  %v4885_v39 = vld [vmem:[%s10997_s3 + $0x818] sm:$0xff]  ;;  %v4884_v2 = vld [vmem:[%s10997_s3 + $0x810] sm:$0xff] }
 0x10b   :  { %1040 = vmatpush.msrb.mxu2 %v4869_v3  ;;  %985 = vmatpush.msrb.mxu1 %v4816_v41  ;;  %v4858_v38 = vld [vmem:[%s10997_s3 + $0x740] sm:$0xff]  ;;  %v4919_v0 = vld [vmem:[%s10997_s3 + $0x918] sm:$0xff]  ;;  %v4896_v3 = vld [vmem:[%s10997_s3 + $0x870] sm:$0xff] }
 0x10c   :  { %1005 = vmatpush.msrb.mxu3 %v4832_v42  ;;  %1021 = vmatpush.msrb.mxu0 %v4852_v43  ;;  %v4935_v1 = vld [vmem:[%s10997_s3 + $0x998] sm:$0xff]  ;;  %v4918_v41 = vld [vmem:[%s10997_s3 + $0x910] sm:$0xff]  ;;  %v4883_v43 = vld [vmem:[%s10997_s3 + $0x808] sm:$0xff] }
 0x10d   :  { %1041 = vmatpush.msrb.mxu2 %v4868_v44  ;;  %986 = vmatpush.msrb.mxu1 %v4815_v46  ;;  %v4934_v42 = vld [vmem:[%s10997_s3 + $0x990] sm:$0xff]  ;;  %v4895_v44 = vld [vmem:[%s10997_s3 + $0x868] sm:$0xff]  ;;  %v4893_v52 = vld [vmem:[%s10997_s3 + $0x858] sm:$0xff] }
 0x10e   :  { %1006 = vmatpush.msrb.mxu3 %v4831_v47  ;;  %1022 = vmatpush.msrb.mxu0 %v4851_v48  ;;  %v4917_v45 = vld [vmem:[%s10997_s3 + $0x908] sm:$0xff]  ;;  %v4882_v47 = vld [vmem:[%s10997_s3 + $0x800] sm:$0xff]  ;;  %v4930_v58 = vld [vmem:[%s10997_s3 + $0x970] sm:$0xff] }
 0x10f   :  { %1042 = vmatpush.msrb.mxu2 %v4867_v50  ;;  %987 = vmatpush.msrb.mxu1 %v4814_v51  ;;  %v4933_v46 = vld [vmem:[%s10997_s3 + $0x988] sm:$0xff]  ;;  %v4894_v48 = vld [vmem:[%s10997_s3 + $0x860] sm:$0xff]  ;;  %v4881_v51 = vld [vmem:[%s10997_s3 + $0x7f8] sm:$0xff] }
 0x110   :  { %1007 = vmatpush.msrb.mxu3 %v4830_v53  ;;  %1023 = vmatpush.msrb.mxu0 %v4850_v54  ;;  %v4932_v50 = vld [vmem:[%s10997_s3 + $0x980] sm:$0xff]  ;;  %v4915_v53 = vld [vmem:[%s10997_s3 + $0x8f8] sm:$0xff]  ;;  %v961_v59 = vld [vmem:[#allocation1 + $0x9] sm:$0xff] }
 0x111   :  { %1043 = vmatpush.msrb.mxu2 %v4866_v55  ;;  %988 = vmatpush.msrb.mxu1 %v4813_v56  ;;  %v4931_v54 = vld [vmem:[%s10997_s3 + $0x978] sm:$0xff]  ;;  %v4880_v55 = vld [vmem:[%s10997_s3 + $0x7f0] sm:$0xff]  ;;  %v4891_v61 = vld [vmem:[%s10997_s3 + $0x848] sm:$0xff] }
 0x112   :  { %1008 = vmatpush.msrb.mxu3 %v4829_v57  ;;  %1024 = vmatpush.msrb.mxu0 %v4849_v60  ;;  %v4892_v56 = vld [vmem:[%s10997_s3 + $0x850] sm:$0xff]  ;;  %v4879_v60 = vld [vmem:[%s10997_s3 + $0x7e8] sm:$0xff]  ;;  %v4878_v4 = vld [vmem:[%s10997_s3 + $0x7e0] sm:$0xff] }
 0x113   :  { %1044 = vmatpush.msrb.mxu2 %v4865_v7  ;;  %989 = vmatpush.msrb.mxu1 %v4812_v10  ;;  %v4914_v57 = vld [vmem:[%s10997_s3 + $0x8f0] sm:$0xff]  ;;  %v4913_v62 = vld [vmem:[%s10997_s3 + $0x8e8] sm:$0xff]  ;;  %v4890_v5 = vld [vmem:[%s10997_s3 + $0x840] sm:$0xff] }
 0x114   :  { %1009 = vmatpush.msrb.mxu3 %v4828_v11  ;;  %1025 = vmatpush.msrb.mxu0 %v4848_v13  ;;  %v4929_v63 = vld [vmem:[%s10997_s3 + $0x968] sm:$0xff]  ;;  %v4912_v6 = vld [vmem:[%s10997_s3 + $0x8e0] sm:$0xff]  ;;  %v4951_v10 = vld [vmem:[%s10997_s3 + $0xa18] sm:$0xff] }
 0x115   :  { %1045 = vmatpush.msrb.mxu2 %v4864_v14  ;;  %990 = vmatpush.msrb.mxu1 %v4811_v15  ;;  %v4928_v7 = vld [vmem:[%s10997_s3 + $0x960] sm:$0xff]  ;;  %v4877_v11 = vld [vmem:[%s10997_s3 + $0x7d8] sm:$0xff]  ;;  %v1099_v14 = vld [vmem:[#allocation4 + $0x3] ss:$8 sm:$0x30] }
 0x116   :  { %1010 = vmatpush.msrb.mxu3 %v4827_v16  ;;  %1026 = vmatpush.msrb.mxu0 %v4847_v17  ;;  %v1098_v8 = vld [vmem:[#allocation4 + $0x3] ss:$8 sm:$0xf] }
 0x117   :  { %1046 = vmatpush.msrb.mxu2 %v4863_v18  ;;  %991 = vmatpush.msrb.mxu1 %v4810_v19  ;;  %v960_v9 = vld [vmem:[#allocation1] sm:$0xff]  ;;  %v4911_v13 = vld [vmem:[%s10997_s3 + $0x8d8] sm:$0xff]  ;;  %v4950_v16 = vld [vmem:[%s10997_s3 + $0xa10] sm:$0xff]  ;;  %v1100_v18 = vor.u32 %v1099_v14, %v1098_v8 }
 0x118   :  { %1011 = vmatpush.msrb.mxu3 %v4826_v20  ;;  %1027 = vmatpush.msrb.mxu0 %v4846_v21  ;;  %v963_v12 = vld [vmem:[#allocation1 + $0x1b] sm:$0xff]  ;;  %v962_v17 = vld [vmem:[#allocation1 + $0x12] sm:$0xff]  ;;  %v964_v20 = vld [vmem:[#allocation1 + $0x24] sm:$0xff] }
 0x119   :  { %1047 = vmatpush.msrb.mxu2 %v4862_v22  ;;  %1056 = vmatpush.msra.mxu1 %v4889_v23  ;;  %v4927_v15 = vld [vmem:[%s10997_s3 + $0x958] sm:$0xff]  ;;  %v965_v19 = vld [vmem:[#allocation1 + $0x2d] sm:$0xff]  ;;  %v4992_v14 = vld [vmem:[%s10997_s3 + $0xb60] sm:$0xff] }
 0x11a   :  { %4902 = vmatpush.msk.msra.mxu3 %vm549_vm2, %v4901_v24  ;;  %1028 = vmatpush.msrb.mxu0 %v4845_v25  ;;  %v1102_v21 = vld [vmem:[#allocation4 + $0x63] ss:$8 sm:$0xf]  ;;  %1220 = vst [vmem:[#allocation1] ss:$9 sm:$0xff] %v1100_v18 }
 0x11b   :  { %1048 = vmatpush.msrb.mxu2 %v4861_v26  ;;  %1057 = vmatpush.msra.mxu1 %v4888_v27  ;;  %v4876_v22 = vld [vmem:[%s10997_s3 + $0x7d0] sm:$0xff]  ;;  %v4949_v26 = vld [vmem:[%s10997_s3 + $0xa08] sm:$0xff]  ;;  %v4991_v18 = vld [vmem:[%s10997_s3 + $0xb58] sm:$0xff] }
 0x11c   :  { %1081 = vmatpush.msra.mxu3 %v4900_v28  ;;  %1029 = vmatpush.msrb.mxu0 %v4844_v29  ;;  %v4910_v23 = vld [vmem:[%s10997_s3 + $0x8d0] sm:$0xff]  ;;  %v4875_v27 = vld [vmem:[%s10997_s3 + $0x7c8] sm:$0xff] }
 0x11d   :  { %1049 = vmatpush.msrb.mxu2 %v4860_v30  ;;  %1058 = vmatpush.msra.mxu1 %v4887_v31  ;;  %v4926_v24 = vld [vmem:[%s10997_s3 + $0x950] sm:$0xff]  ;;  %v4909_v28 = vld [vmem:[%s10997_s3 + $0x8c8] sm:$0xff]  ;;  %v4948_v31 = vld [vmem:[%s10997_s3 + $0xa00] sm:$0xff] }
 0x11e   :  { %1082 = vmatpush.msra.mxu3 %v4899_v32  ;;  %1030 = vmatpush.msrb.mxu0 %v4843_v33  ;;  %v1103_v25 = vld [vmem:[#allocation4 + $0x63] ss:$8 sm:$0x30]  ;;  %v4874_v33 = vld [vmem:[%s10997_s3 + $0x7c0] sm:$0xff] }
 0x11f   :  { %1050 = vmatpush.msrb.mxu2 %v4859_v34  ;;  %1059 = vmatpush.msra.mxu1 %v4886_v35  ;;  %v1104_v29 = vor.u32 %v1103_v25, %v1102_v21  ;;  %v4925_v30 = vld [vmem:[%s10997_s3 + $0x948] sm:$0xff]  ;;  %v4908_v34 = vld [vmem:[%s10997_s3 + $0x8c0] sm:$0xff]  ;;  %v4978_v21 = vld [vmem:[%s10997_s3 + $0xaf0] sm:$0xff] }
 0x120   :  { %1083 = vmatpush.msra.mxu3 %v4898_v36  ;;  %1031 = vmatpush.msrb.mxu0 %v4842_v37  ;;  %v1106_v32 = vld [vmem:[#allocation4 + $0xc3] ss:$8 sm:$0xf] }
 0x121   :  { %1051 = vmatpush.msrb.mxu2 %v4858_v38  ;;  %1060 = vmatpush.msra.mxu1 %v4885_v39  ;;  %v4924_v35 = vld [vmem:[%s10997_s3 + $0x940] sm:$0xff]  ;;  %1222 = vst [vmem:[#allocation1 + $0x1] ss:$9 sm:$0xff] %v1104_v29  ;;  %v4947_v36 = vld [vmem:[%s10997_s3 + $0x9f8] sm:$0xff]  ;;  %v4961_v8 = vld [vmem:[%s10997_s3 + $0xa68] sm:$0xff] }
 0x122   :  { %1084 = vmatpush.msra.mxu3 %v4897_v40  ;;  %1247 = vmatpush.msra.mxu0 %v4919_v0  ;;  %v4967_v37 = vld [vmem:[%s10997_s3 + $0xa98] sm:$0xff]  ;;  %v1107_v38 = vld [vmem:[#allocation4 + $0xc3] ss:$8 sm:$0x30]  ;;  %v4976_v29 = vld [vmem:[%s10997_s3 + $0xae0] sm:$0xff] }
 0x123   :  { %1267 = vmatpush.msra.mxu2 %v4935_v1  ;;  %1061 = vmatpush.msra.mxu1 %v4884_v2  ;;  %v1110_v39 = vld [vmem:[#allocation4 + $0x123] ss:$8 sm:$0xf]  ;;  %v1108_v0 = vor.u32 %v1107_v38, %v1106_v32 }
 0x124   :  { %1085 = vmatpush.msra.mxu3 %v4896_v3  ;;  %1248 = vmatpush.msra.mxu0 %v4918_v41  ;;  %v4907_v40 = vld [vmem:[%s10997_s3 + $0x8b8] sm:$0xff]  ;;  %v1111_v1 = vld [vmem:[#allocation4 + $0x123] ss:$8 sm:$0x30] }
 0x125   :  { %1268 = vmatpush.msra.mxu2 %v4934_v42  ;;  %1062 = vmatpush.msra.mxu1 %v4883_v43  ;;  %v1114_v2 = vld [vmem:[#allocation4 + $0x183] ss:$8 sm:$0xf]  ;;  %v1112_v3 = vor.u32 %v1111_v1, %v1110_v39  ;;  %1224 = vst [vmem:[#allocation1 + $0x2] ss:$9 sm:$0xff] %v1108_v0 }
 0x126   :  { %1086 = vmatpush.msra.mxu3 %v4895_v44  ;;  %1249 = vmatpush.msra.mxu0 %v4917_v45  ;;  %v1115_v41 = vld [vmem:[#allocation4 + $0x183] ss:$8 sm:$0x30]  ;;  %v4923_v43 = vld [vmem:[%s10997_s3 + $0x938] sm:$0xff] }
 0x127   :  { %1269 = vmatpush.msra.mxu2 %v4933_v46  ;;  %1063 = vmatpush.msra.mxu1 %v4882_v47  ;;  %v1118_v42 = vld [vmem:[#allocation4 + $0x1e3] ss:$8 sm:$0xf]  ;;  %v1116_v44 = vor.u32 %v1115_v41, %v1114_v2  ;;  %1226 = vst [vmem:[#allocation1 + $0x3] ss:$9 sm:$0xff] %v1112_v3 }
 0x128   :  { %1087 = vmatpush.msra.mxu3 %v4894_v48  ;;  %1250 = vmatpush.msra.mxu0 %v4916_v49  ;;  %v1119_v45 = vld [vmem:[#allocation4 + $0x1e3] ss:$8 sm:$0x30]  ;;  %v4955_v32 = vld [vmem:[%s10997_s3 + $0xa38] sm:$0xff] }
 0x129   :  { %1270 = vmatpush.msra.mxu2 %v4932_v50  ;;  %1064 = vmatpush.msra.mxu1 %v4881_v51  ;;  %v4946_v46 = vld [vmem:[%s10997_s3 + $0x9f0] sm:$0xff]  ;;  %v1120_v48 = vor.u32 %v1119_v45, %v1118_v42  ;;  %1228 = vst [vmem:[#allocation1 + $0x4] ss:$9 sm:$0xff] %v1116_v44  ;;  %v4945_v51 = vld [vmem:[%s10997_s3 + $0x9e8] sm:$0xff]  ;;  %v5102_v44 = vld [vmem:[%s10997_s3 + $0xec0] sm:$0xff] }
 0x12a   :  { %1088 = vmatpush.msra.mxu3 %v4893_v52  ;;  %1251 = vmatpush.msra.mxu0 %v4915_v53  ;;  %v4966_v47 = vld [vmem:[%s10997_s3 + $0xa90] sm:$0xff]  ;;  %v4965_v52 = vld [vmem:[%s10997_s3 + $0xa88] sm:$0xff]  ;;  %v4952_v45 = vld [vmem:[%s10997_s3 + $0xa20] sm:$0xff] }
 0x12b   :  { %1271 = vmatpush.msra.mxu2 %v4931_v54  ;;  %1065 = vmatpush.msra.mxu1 %v4880_v55  ;;  %v4906_v49 = vld [vmem:[%s10997_s3 + $0x8b0] sm:$0xff]  ;;  %1230 = vst [vmem:[#allocation1 + $0x5] ss:$9 sm:$0xff] %v1120_v48  ;;  %v4905_v53 = vld [vmem:[%s10997_s3 + $0x8a8] sm:$0xff]  ;;  %v4944_v55 = vld [vmem:[%s10997_s3 + $0x9e0] sm:$0xff] }
 0x12c   :  { %1089 = vmatpush.msra.mxu3 %v4892_v56  ;;  %1252 = vmatpush.msra.mxu0 %v4914_v57  ;;  %v4922_v50 = vld [vmem:[%s10997_s3 + $0x930] sm:$0xff]  ;;  %v4921_v54 = vld [vmem:[%s10997_s3 + $0x928] sm:$0xff]  ;;  %v4964_v56 = vld [vmem:[%s10997_s3 + $0xa80] sm:$0xff] }
 0x12d   :  { %1272 = vmatpush.msra.mxu2 %v4930_v58  ;;  %1012 = vmatmul.f32.vlgmr.msrb.gmra.mxu3 %v961_v59  ;;  %v4904_v57 = vld [vmem:[%s10997_s3 + $0x8a0] sm:$0xff]  ;;  %v4943_v59 = vld [vmem:[%s10997_s3 + $0x9d8] sm:$0xff]  ;;  %v4977_v25 = vld [vmem:[%s10997_s3 + $0xae8] sm:$0xff] }
 0x12e   :  { %1066 = vmatpush.msra.mxu1 %v4879_v60  ;;  %1090 = vmatpush.msra.mxu3 %v4891_v61  ;;  %v4920_v58 = vld [vmem:[%s10997_s3 + $0x920] sm:$0xff]  ;;  %v4963_v60 = vld [vmem:[%s10997_s3 + $0xa78] sm:$0xff]  ;;  %v4974_v38 = vld [vmem:[%s10997_s3 + $0xad0] sm:$0xff] }
 0x12f   :  { %1253 = vmatpush.msra.mxu0 %v4913_v62  ;;  %1273 = vmatpush.msra.mxu2 %v4929_v63  ;;  %v4983_v61 = vld [vmem:[%s10997_s3 + $0xb18] sm:$0xff]  ;;  %v4942_v63 = vld [vmem:[%s10997_s3 + $0x9d0] sm:$0xff]  ;;  %v5103_v0 = vld [vmem:[%s10997_s3 + $0xec8] sm:$0xff] }
 0x130   :  { %1067 = vmatpush.msra.mxu1 %v4878_v4  ;;  %1091 = vmatpush.msra.mxu3 %v4890_v5  ;;  %v4995_v62 = vld [vmem:[%s10997_s3 + $0xb78] sm:$0x1]  ;;  %v4962_v4 = vld [vmem:[%s10997_s3 + $0xa70] sm:$0xff]  ;;  %v4953_v2 = vld [vmem:[%s10997_s3 + $0xa28] sm:$0xff] }
 0x131   :  { %1254 = vmatpush.msra.mxu0 %v4912_v6  ;;  %1274 = vmatpush.msra.mxu2 %v4928_v7  ;;  %v4982_v5 = vld [vmem:[%s10997_s3 + $0xb10] sm:$0xff]  ;;  %v4941_v7 = vld [vmem:[%s10997_s3 + $0x9c8] sm:$0xff]  ;;  %v4984_v48 = vld [vmem:[%s10997_s3 + $0xb20] sm:$0xff] }
 0x132   :  { %992 = vmatmul.f32.vlgmr.msrb.gmra.mxu1 %v960_v9  ;;  %1052 = vmatmul.f32.vlgmr.msrb.gmra.mxu2 %v963_v12  ;;  %v4994_v6 = vld [vmem:[%s10997_s3 + $0xb70] sm:$0xff]  ;;  %v4981_v9 = vld [vmem:[%s10997_s3 + $0xb08] sm:$0xff]  ;;  %v4960_v12 = vld [vmem:[%s10997_s3 + $0xa60] sm:$0xff] }
 0x133   :  { %1287 = vmatpush.msrb.mxu3 %v4951_v10  ;;  %1068 = vmatpush.msra.mxu1 %v4877_v11  ;;  %v4993_v10 = vld [vmem:[%s10997_s3 + $0xb68] sm:$0xff]  ;;  %v4940_v11 = vld [vmem:[%s10997_s3 + $0x9c0] sm:$0xff]  ;;  %v4986_v39 = vld [vmem:[%s10997_s3 + $0xb30] sm:$0xff] }
 0x134   :  { %1255 = vmatpush.msra.mxu0 %v4911_v13  ;;  %1275 = vmatpush.msra.mxu2 %v4927_v15  ;;  %v4980_v13 = vld [vmem:[%s10997_s3 + $0xb00] sm:$0xff]  ;;  %v4939_v15 = vld [vmem:[%s10997_s3 + $0x9b8] sm:$0xff]  ;;  %v4973_v3 = vld [vmem:[%s10997_s3 + $0xac8] sm:$0xff] }
 0x135   :  { %1288 = vmatpush.msrb.mxu3 %v4950_v16  ;;  %1069 = vmatpush.msra.mxu1 %v4876_v22  ;;  %v4959_v16 = vld [vmem:[%s10997_s3 + $0xa58] sm:$0xff]  ;;  %v4990_v22 = vld [vmem:[%s10997_s3 + $0xb50] sm:$0xff]  ;;  %v4985_v42 = vld [vmem:[%s10997_s3 + $0xb28] sm:$0xff] }
 0x136   :  { %1256 = vmatpush.msra.mxu0 %v4910_v23  ;;  %1276 = vmatpush.msra.mxu2 %v4926_v24  ;;  %v4937_v23 = vld [vmem:[%s10997_s3 + $0x9a8] sm:$0xff] }
 0x137   :  { %1032 = vmatmul.f32.vlgmr.msrb.gmra.mxu0 %v962_v17  ;;  %4903 = vmatmul.msk.f32.vlgmr.msra.gmra.mxu3 %vm252_vm1, %v965_v19  ;;  %v4979_v17 = vld [vmem:[%s10997_s3 + $0xaf8] sm:$0xff]  ;;  %v4938_v19 = vld [vmem:[%s10997_s3 + $0x9b0] sm:$0xff]  ;;  %v4957_v24 = vld [vmem:[%s10997_s3 + $0xa48] sm:$0xff] }
 0x138   :  { %1070 = vmatpush.msra.mxu1 %v4875_v27  ;;  %1289 = vmatpush.msrb.mxu3 %v4949_v26  ;;  %v4989_v26 = vld [vmem:[%s10997_s3 + $0xb48] sm:$0xff]  ;;  %v4936_v27 = vld [vmem:[%s10997_s3 + $0x9a0] sm:$0xff] }
 0x139   :  { %1257 = vmatpush.msra.mxu0 %v4909_v28  ;;  %1277 = vmatpush.msra.mxu2 %v4925_v30  ;;  %v4956_v28 = vld [vmem:[%s10997_s3 + $0xa40] sm:$0xff] }
 0x13a   :  { %1071 = vmatpush.msra.mxu1 %v4874_v33  ;;  %1290 = vmatpush.msrb.mxu3 %v4948_v31  ;;  %v4988_v30 = vld [vmem:[%s10997_s3 + $0xb40] sm:$0xff]  ;;  %v5105_v31 = vld [vmem:[%s10997_s3 + $0xed8] sm:$0xff] }
 0x13b   :  { %1258 = vmatpush.msra.mxu0 %v4908_v34  ;;  %1278 = vmatpush.msra.mxu2 %v4924_v35  ;;  %v4975_v33 = vld [vmem:[%s10997_s3 + $0xad8] sm:$0xff]  ;;  %v5104_v35 = vld [vmem:[%s10997_s3 + $0xed0] sm:$0xff] }
 0x13c   :  { %1072 = vmatmul.f32.vlgmr.msra.gmra.mxu1 %v964_v20  ;;  %1291 = vmatpush.msrb.mxu3 %v4947_v36  ;;  %v4958_v20 = vld [vmem:[%s10997_s3 + $0xa50] sm:$0xff]  ;;  %v4987_v34 = vld [vmem:[%s10997_s3 + $0xb38] sm:$0xff] }
 0x13d   :  { %1307 = vmatpush.msrb.mxu1 %v4967_v37  ;;  %1259 = vmatpush.msra.mxu0 %v4907_v40  ;;  %v4954_v36 = vld [vmem:[%s10997_s3 + $0xa30] sm:$0xff] }
 0x13e   :  { %1279 = vmatpush.msra.mxu2 %v4923_v43  ;;  %1292 = vmatpush.msrb.mxu3 %v4946_v46  ;;  %v1232_v40 = vld [vmem:[#allocation1 + $0x9] sm:$0xff]  ;;  %v1233_v43 = vld [vmem:[#allocation1 + $0x12] sm:$0xff] }
 0x13f   :  { %1308 = vmatpush.msrb.mxu1 %v4966_v47  ;;  %1260 = vmatpush.msra.mxu0 %v4906_v49  ;;  %v4972_v47 = vld [vmem:[%s10997_s3 + $0xac0] sm:$0xff] }
 0x140   :  { %1280 = vmatpush.msra.mxu2 %v4922_v50  ;;  %1293 = vmatpush.msrb.mxu3 %v4945_v51  ;;  %v1231_v50 = vld [vmem:[#allocation1] sm:$0xff]  ;;  %v5101_v51 = vld [vmem:[%s10997_s3 + $0xeb8] sm:$0xff] }
 0x141   :  { %1309 = vmatpush.msrb.mxu1 %v4965_v52  ;;  %1261 = vmatpush.msra.mxu0 %v4905_v53  ;;  %v5121_v52 = vld [vmem:[%s10997_s3 + $0xf58] sm:$0xff] }
 0x142   :  { %1281 = vmatpush.msra.mxu2 %v4921_v54  ;;  %1294 = vmatpush.msrb.mxu3 %v4944_v55  ;;  %v5137_v53 = vld [vmem:[%s10997_s3 + $0xfd8] sm:$0xff] }
 0x143   :  { %1310 = vmatpush.msrb.mxu1 %v4964_v56  ;;  %1262 = vmatpush.msra.mxu0 %v4904_v57  ;;  %v4971_v55 = vld [vmem:[%s10997_s3 + $0xab8] sm:$0xff]  ;;  %v5100_v56 = vld [vmem:[%s10997_s3 + $0xeb0] sm:$0xff] }
 0x144   :  { %1282 = vmatpush.msra.mxu2 %v4920_v58  ;;  %1295 = vmatpush.msrb.mxu3 %v4943_v59  ;;  %v5120_v58 = vld [vmem:[%s10997_s3 + $0xf50] sm:$0xff] }
 0x145   :  { %1311 = vmatpush.msrb.mxu1 %v4963_v60  ;;  %1327 = vmatpush.msrb.mxu0 %v4983_v61  ;;  %v5136_v59 = vld [vmem:[%s10997_s3 + $0xfd0] sm:$0xff] }
 0x146   :  { %4996 = vmatpush.msk.msrb.mxu2 %vm549_vm2, %v4995_v62  ;;  %1296 = vmatpush.msrb.mxu3 %v4942_v63  ;;  %v4970_v60 = vld [vmem:[%s10997_s3 + $0xab0] sm:$0xff]  ;;  %v5099_v63 = vld [vmem:[%s10997_s3 + $0xea8] sm:$0xff] }
 0x147   :  { %1312 = vmatpush.msrb.mxu1 %v4962_v4  ;;  %1328 = vmatpush.msrb.mxu0 %v4982_v5  ;;  %v1236_v61 = vld [vmem:[#allocation1 + $0x2d] sm:$0xff] }
 0x148   :  { %1352 = vmatpush.msrb.mxu2 %v4994_v6  ;;  %1297 = vmatpush.msrb.mxu3 %v4941_v7  ;;  %v5119_v4 = vld [vmem:[%s10997_s3 + $0xf48] sm:$0xff] }
 0x149   :  { %1313 = vmatpush.msrb.mxu1 %v4961_v8  ;;  %1329 = vmatpush.msrb.mxu0 %v4981_v9  ;;  %v5135_v6 = vld [vmem:[%s10997_s3 + $0xfc8] sm:$0xff]  ;;  %v1234_v8 = vld [vmem:[#allocation1 + $0x1b] sm:$0xff] }
 0x14a   :  { %1353 = vmatpush.msrb.mxu2 %v4993_v10  ;;  %1298 = vmatpush.msrb.mxu3 %v4940_v11  ;;  %v4969_v7 = vld [vmem:[%s10997_s3 + $0xaa8] sm:$0xff]  ;;  %v5098_v9 = vld [vmem:[%s10997_s3 + $0xea0] sm:$0xff] }
 0x14b   :  { %1314 = vmatpush.msrb.mxu1 %v4960_v12  ;;  %1330 = vmatpush.msrb.mxu0 %v4980_v13  ;;  %v5118_v11 = vld [vmem:[%s10997_s3 + $0xf40] sm:$0xff] }
 0x14c   :  { %1354 = vmatpush.msrb.mxu2 %v4992_v14  ;;  %1299 = vmatpush.msrb.mxu3 %v4939_v15  ;;  %v5134_v12 = vld [vmem:[%s10997_s3 + $0xfc0] sm:$0xff]  ;;  %v5097_v15 = vld [vmem:[%s10997_s3 + $0xe98] sm:$0xff] }
 0x14d   :  { %1315 = vmatpush.msrb.mxu1 %v4959_v16  ;;  %1331 = vmatpush.msrb.mxu0 %v4979_v17  ;;  %v4968_v14 = vld [vmem:[%s10997_s3 + $0xaa0] sm:$0xff]  ;;  %v5117_v17 = vld [vmem:[%s10997_s3 + $0xf38] sm:$0xff] }
 0x14e   :  { %1355 = vmatpush.msrb.mxu2 %v4991_v18  ;;  %1300 = vmatpush.msrb.mxu3 %v4938_v19  ;;  %v1235_v16 = vld [vmem:[#allocation1 + $0x24] sm:$0xff]  ;;  %v5133_v19 = vld [vmem:[%s10997_s3 + $0xfb8] sm:$0xff] }
 0x14f   :  { %1316 = vmatpush.msrb.mxu1 %v4958_v20  ;;  %1332 = vmatpush.msrb.mxu0 %v4978_v21  ;;  %v5153_v20 = vld [vmem:[%s10997_s3 + $0x1058] sm:$0xff] }
 0x150   :  { %1356 = vmatpush.msrb.mxu2 %v4990_v22  ;;  %1301 = vmatpush.msrb.mxu3 %v4937_v23  ;;  %v5096_v23 = vld [vmem:[%s10997_s3 + $0xe90] sm:$0xff] }
 0x151   :  { %1317 = vmatpush.msrb.mxu1 %v4957_v24  ;;  %1333 = vmatpush.msrb.mxu0 %v4977_v25  ;;  %v5116_v24 = vld [vmem:[%s10997_s3 + $0xf30] sm:$0xff] }
 0x152   :  { %1357 = vmatpush.msrb.mxu2 %v4989_v26  ;;  %1302 = vmatpush.msrb.mxu3 %v4936_v27  ;;  %v590_v37 = vpop.f32.mrf.mxu1  ;;  %v5132_v25 = vld [vmem:[%s10997_s3 + $0xfb0] sm:$0xff] }
 0x153   :  { %1318 = vmatpush.msrb.mxu1 %v4956_v28  ;;  %1334 = vmatpush.msrb.mxu0 %v4976_v29  ;;  %v5152_v26 = vld [vmem:[%s10997_s3 + $0x1050] sm:$0xff]  ;;  %v5095_v28 = vld [vmem:[%s10997_s3 + $0xe88] sm:$0xff] }
 0x154   :  { %1358 = vmatpush.msrb.mxu2 %v4988_v30  ;;  %1635 = vmatpush.msra.mxu3 %v5105_v31  ;;  %v570_v1 = vpop.f32.mrf.mxu0  ;;  %v5115_v29 = vld [vmem:[%s10997_s3 + $0xf28] sm:$0xff] }
 0x155   :  { %1319 = vmatpush.msrb.mxu1 %v4955_v32  ;;  %1335 = vmatpush.msrb.mxu0 %v4975_v33  ;;  %v591_v41 = vadd.f32 %v590_v37, %v570_v1  ;;  %v5131_v30 = vld [vmem:[%s10997_s3 + $0xfa8] sm:$0xff]  ;;  %v5094_v32 = vld [vmem:[%s10997_s3 + $0xe80] sm:$0xff]  ;;  %v5093_v37 = vld [vmem:[%s10997_s3 + $0xe78] sm:$0xff] }
 0x156   :  { %1359 = vmatpush.msrb.mxu2 %v4987_v34  ;;  %1636 = vmatpush.msra.mxu3 %v5104_v35  ;;  %v5151_v31 = vld [vmem:[%s10997_s3 + $0x1048] sm:$0xff]  ;;  %v5114_v33 = vld [vmem:[%s10997_s3 + $0xf20] sm:$0xff]  ;;  %v5092_v1 = vld [vmem:[%s10997_s3 + $0xe70] sm:$0xff] }
 0x157   :  { %1320 = vmatpush.msrb.mxu1 %v4954_v36  ;;  %1336 = vmatpush.msrb.mxu0 %v4974_v38  ;;  %v1486_v34 = vld [vmem:[#allocation4 + $0x5] ss:$8 sm:$0xf] }
 0x158   :  { %1360 = vmatpush.msrb.mxu2 %v4986_v39  ;;  %1637 = vmatpush.msra.mxu3 %v5103_v0  ;;  %v5130_v35 = vld [vmem:[%s10997_s3 + $0xfa0] sm:$0xff]  ;;  %v5113_v38 = vld [vmem:[%s10997_s3 + $0xf18] sm:$0xff]  ;;  %v1487_v39 = vld [vmem:[#allocation4 + $0x5] ss:$8 sm:$0x30] }
 0x159   :  { %1283 = vmatmul.f32.vlgmr.msra.gmra.mxu2 %v1232_v40  ;;  %v610_v46 = vpop.f32.mrf.mxu2  ;;  %1321 = vmatpush.msrb.mxu1 %v4953_v2  ;;  %v5150_v36 = vld [vmem:[%s10997_s3 + $0x1040] sm:$0xff]  ;;  %v5129_v40 = vld [vmem:[%s10997_s3 + $0xf98] sm:$0xff]  ;;  %v1488_v2 = vor.u32 %v1487_v39, %v1486_v34  ;;  %v5163_v34 = vld [vmem:[%s10997_s3 + $0x10a8] sm:$0xff] }
 0x15a   :  { %1337 = vmatpush.msrb.mxu0 %v4973_v3  ;;  %v611_v49 = vadd.f32 %v610_v46, %v591_v41  ;;  %1361 = vmatpush.msrb.mxu2 %v4985_v42  ;;  %v5149_v0 = vld [vmem:[%s10997_s3 + $0x1038] sm:$0xff]  ;;  %v5112_v3 = vld [vmem:[%s10997_s3 + $0xf10] sm:$0xff]  ;;  %v5127_v46 = vld [vmem:[%s10997_s3 + $0xf88] sm:$0xff] }
 0x15b   :  { %1303 = vmatmul.f32.vlgmr.msrb.gmra.mxu3 %v1233_v43  ;;  %1322 = vmatpush.msrb.mxu1 %v4952_v45  ;;  %v630_v54 = vpop.f32.mrf.mxu3  ;;  %v5128_v41 = vld [vmem:[%s10997_s3 + $0xf90] sm:$0xff]  ;;  %v5111_v45 = vld [vmem:[%s10997_s3 + $0xf08] sm:$0xff]  ;;  %1608 = vst [vmem:[#allocation1] ss:$9 sm:$0xff] %v1488_v2  ;;  %v5178_v39 = vld [vmem:[%s10997_s3 + $0x1120] sm:$0xff] }
 0x15c   :  { %1638 = vmatpush.msra.mxu3 %v5102_v44  ;;  %1338 = vmatpush.msrb.mxu0 %v4972_v47  ;;  %v631_v57 = vadd.f32 %v630_v54, %v611_v49  ;;  %v1490_v42 = vld [vmem:[#allocation4 + $0x65] ss:$8 sm:$0xf] }
 0x15d   :  { %1362 = vmatpush.msrb.mxu2 %v4984_v48  ;;  %1263 = vmatmul.f32.vlgmr.msra.gmra.mxu0 %v1231_v50  ;;  %v650_v62 = vpop.f32.mrf.mxu0  ;;  %v5148_v43 = vld [vmem:[%s10997_s3 + $0x1030] sm:$0xff]  ;;  %v5091_v44 = vld [vmem:[%s10997_s3 + $0xe68] sm:$0xff]  ;;  %v5090_v49 = vld [vmem:[%s10997_s3 + $0xe60] sm:$0xff] }
 0x15e   :  { %1639 = vmatpush.msra.mxu3 %v5101_v51  ;;  %1655 = vmatpush.msra.mxu1 %v5121_v52  ;;  %v651_v5 = vadd.f32 %v650_v62, %v631_v57  ;;  %v5147_v47 = vld [vmem:[%s10997_s3 + $0x1028] sm:$0xff]  ;;  %v5110_v50 = vld [vmem:[%s10997_s3 + $0xf00] sm:$0xff]  ;;  %v5169_v54 = vld [vmem:[%s10997_s3 + $0x10d8] sm:$0xff] }
 0x15f   :  { %1675 = vmatpush.msra.mxu2 %v5137_v53  ;;  %1339 = vmatpush.msrb.mxu0 %v4971_v55  ;;  %v1491_v48 = vld [vmem:[#allocation4 + $0x65] ss:$8 sm:$0x30]  ;;  %v5126_v51 = vld [vmem:[%s10997_s3 + $0xf80] sm:$0xff]  ;;  %v5125_v57 = vld [vmem:[%s10997_s3 + $0xf78] sm:$0xff] }
 0x160   :  { %1640 = vmatpush.msra.mxu3 %v5100_v56  ;;  %1656 = vmatpush.msra.mxu1 %v5120_v58  ;;  %v1492_v52 = vor.u32 %v1491_v48, %v1490_v42  ;;  %v5146_v53 = vld [vmem:[%s10997_s3 + $0x1020] sm:$0xff]  ;;  %v5109_v56 = vld [vmem:[%s10997_s3 + $0xef8] sm:$0xff]  ;;  %v1495_v62 = vld [vmem:[#allocation4 + $0xc5] ss:$8 sm:$0x30] }
 0x161   :  { %1676 = vmatpush.msra.mxu2 %v5136_v59  ;;  %1340 = vmatpush.msrb.mxu0 %v4970_v60  ;;  %v670_v10 = vpop.f32.mrf.mxu1  ;;  %v1494_v55 = vld [vmem:[#allocation4 + $0xc5] ss:$8 sm:$0xf] }
 0x162   :  { %4997 = vmatmul.msk.f32.vlgmr.msrb.gmra.mxu2 %vm252_vm1, %v1236_v61  ;;  %1641 = vmatpush.msra.mxu3 %v5099_v63  ;;  %v671_v13 = vadd.f32 %v670_v10, %v651_v5  ;;  %v5145_v58 = vld [vmem:[%s10997_s3 + $0x1018] sm:$0xff]  ;;  %1610 = vst [vmem:[#allocation1 + $0x1] ss:$9 sm:$0xff] %v1492_v52  ;;  %v5168_v59 = vld [vmem:[%s10997_s3 + $0x10d0] sm:$0xff]  ;;  %v5138_v2 = vld [vmem:[%s10997_s3 + $0xfe0] sm:$0xff] }
 0x163   :  { %1657 = vmatpush.msra.mxu1 %v5119_v4  ;;  %1677 = vmatpush.msra.mxu2 %v5135_v6  ;;  %v5108_v60 = vld [vmem:[%s10997_s3 + $0xef0] sm:$0xff]  ;;  %v1496_v6 = vor.u32 %v1495_v62, %v1494_v55  ;;  %v5161_v42 = vld [vmem:[%s10997_s3 + $0x1098] sm:$0xff] }
 0x164   :  { %1341 = vmatpush.msrb.mxu0 %v4969_v7  ;;  %1323 = vmatmul.f32.vlgmr.msrb.gmra.mxu1 %v1234_v8  ;;  %v1498_v63 = vld [vmem:[#allocation4 + $0x125] ss:$8 sm:$0xf] }
 0x165   :  { %1642 = vmatpush.msra.mxu3 %v5098_v9  ;;  %1658 = vmatpush.msra.mxu1 %v5118_v11  ;;  %v5124_v4 = vld [vmem:[%s10997_s3 + $0xf70] sm:$0xff]  ;;  %1612 = vst [vmem:[#allocation1 + $0x2] ss:$9 sm:$0xff] %v1496_v6  ;;  %v5029_v48 = vld [vmem:[%s10997_s3 + $0xc78] sm:$0xff] }
 0x166   :  { %v723_v18 = vpop.f32.mrf.mxu2  ;;  %1678 = vmatpush.msra.mxu2 %v5134_v12  ;;  %1342 = vmatpush.msrb.mxu0 %v4968_v14  ;;  %v1499_v7 = vld [vmem:[#allocation4 + $0x125] ss:$8 sm:$0x30] }
 0x167   :  { %v724_v21 = vadd.f32 %v723_v18, %v671_v13  ;;  %v743_v22 = vpop.f32.mrf.mxu3  ;;  %1643 = vmatpush.msra.mxu3 %v5097_v15  ;;  %1343 = vmatmul.f32.vlgmr.msrb.gmra.mxu0 %v1235_v16  ;;  %v1502_v8 = vld [vmem:[#allocation4 + $0x185] ss:$8 sm:$0xf]  ;;  %v1500_v9 = vor.u32 %v1499_v7, %v1498_v63 }
 0x168   :  { %1659 = vmatpush.msra.mxu1 %v5117_v17  ;;  %1679 = vmatpush.msra.mxu2 %v5133_v19  ;;  %v1503_v10 = vld [vmem:[#allocation4 + $0x185] ss:$8 sm:$0x30] }
 0x169   :  { %v7628_v27 = vadd.f32 %v743_v22, %v724_v21  ;;  %1695 = vmatpush.msra.mxu0 %v5153_v20  ;;  %1644 = vmatpush.msra.mxu3 %v5096_v23  ;;  %v1506_v11 = vld [vmem:[#allocation4 + $0x1e5] ss:$8 sm:$0xf]  ;;  %v1504_v13 = vor.u32 %v1503_v10, %v1502_v8  ;;  %1614 = vst [vmem:[#allocation1 + $0x3] ss:$9 sm:$0xff] %v1500_v9 }
 0x16a   :  { %1660 = vmatpush.msra.mxu1 %v5116_v24  ;;  %1680 = vmatpush.msra.mxu2 %v5132_v25  ;;  %v5144_v12 = vld [vmem:[%s10997_s3 + $0x1010] sm:$0xff]  ;;  %v5167_v15 = vld [vmem:[%s10997_s3 + $0x10c8] sm:$0xff]  ;;  %v5166_v20 = vld [vmem:[%s10997_s3 + $0x10c0] sm:$0xff] }
 0x16b   :  { %1696 = vmatpush.msra.mxu0 %v5152_v26  ;;  %1645 = vmatpush.msra.mxu3 %v5095_v28  ;;  %v1507_v14 = vld [vmem:[#allocation4 + $0x1e5] ss:$8 sm:$0x30]  ;;  %1616 = vst [vmem:[#allocation1 + $0x4] ss:$9 sm:$0xff] %v1504_v13  ;;  %v5106_v21 = vld [vmem:[%s10997_s3 + $0xee0] sm:$0xff] }
 0x16c   :  { %1661 = vmatpush.msra.mxu1 %v5115_v29  ;;  %1681 = vmatpush.msra.mxu2 %v5131_v30  ;;  %v5107_v16 = vld [vmem:[%s10997_s3 + $0xee8] sm:$0xff]  ;;  %v1508_v17 = vor.u32 %v1507_v14, %v1506_v11  ;;  %v5122_v22 = vld [vmem:[%s10997_s3 + $0xf60] sm:$0xff]  ;;  %v5165_v24 = vld [vmem:[%s10997_s3 + $0x10b8] sm:$0xff] }
 0x16d   :  { %1697 = vmatpush.msra.mxu0 %v5151_v31  ;;  %1646 = vmatpush.msra.mxu3 %v5094_v32  ;;  %v5123_v18 = vld [vmem:[%s10997_s3 + $0xf68] sm:$0xff]  ;;  %v5142_v23 = vld [vmem:[%s10997_s3 + $0x1000] sm:$0xff]  ;;  %v5181_v25 = vld [vmem:[%s10997_s3 + $0x1138] sm:$0x1] }
 0x16e   :  { %1662 = vmatpush.msra.mxu1 %v5114_v33  ;;  %1682 = vmatpush.msra.mxu2 %v5130_v35  ;;  %v5143_v19 = vld [vmem:[%s10997_s3 + $0x1008] sm:$0xff]  ;;  %1618 = vst [vmem:[#allocation1 + $0x5] ss:$9 sm:$0xff] %v1508_v17  ;;  %v5013_v26 = vld [vmem:[%s10997_s3 + $0xbf8] sm:$0xff]  ;;  %v5164_v29 = vld [vmem:[%s10997_s3 + $0x10b0] sm:$0xff] }
 0x16f   :  { %1698 = vmatpush.msra.mxu0 %v5150_v36  ;;  %1647 = vmatpush.msra.mxu3 %v5093_v37  ;;  %v5141_v28 = vld [vmem:[%s10997_s3 + $0xff8] sm:$0xff]  ;;  %v5180_v30 = vld [vmem:[%s10997_s3 + $0x1130] sm:$0xff]  ;;  %v5179_v35 = vld [vmem:[%s10997_s3 + $0x1128] sm:$0xff] }
 0x170   :  { %1663 = vmatpush.msra.mxu1 %v5113_v38  ;;  %1683 = vmatpush.msra.mxu2 %v5129_v40  ;;  %v5012_v32 = vld [vmem:[%s10997_s3 + $0xbf0] sm:$0xff]  ;;  %v5011_v36 = vld [vmem:[%s10997_s3 + $0xbe8] sm:$0xff]  ;;  %v5162_v38 = vld [vmem:[%s10997_s3 + $0x10a0] sm:$0xff] }
 0x171   :  { %1699 = vmatpush.msra.mxu0 %v5149_v0  ;;  %1648 = vmatpush.msra.mxu3 %v5092_v1  ;;  %v5140_v33 = vld [vmem:[%s10997_s3 + $0xff0] sm:$0xff]  ;;  %v5139_v37 = vld [vmem:[%s10997_s3 + $0xfe8] sm:$0xff]  ;;  %v5010_v1 = vld [vmem:[%s10997_s3 + $0xbe0] sm:$0xff] }
 0x172   :  { %1664 = vmatpush.msra.mxu1 %v5112_v3  ;;  %1684 = vmatpush.msra.mxu2 %v5128_v41  ;;  %v1369_v40 = vld [vmem:[#allocation4 + $0x4] ss:$8 sm:$0xf] }
 0x173   :  { %1700 = vmatpush.msra.mxu0 %v5148_v43  ;;  %1649 = vmatpush.msra.mxu3 %v5091_v44  ;;  %v1370_v0 = vld [vmem:[#allocation4 + $0x4] ss:$8 sm:$0x30]  ;;  %v5177_v43 = vld [vmem:[%s10997_s3 + $0x1118] sm:$0xff] }
 0x174   :  { %1665 = vmatpush.msra.mxu1 %v5111_v45  ;;  %1685 = vmatpush.msra.mxu2 %v5127_v46  ;;  %v763_v61 = vpop.f32.mrf.mxu1  ;;  %v1373_v3 = vld [vmem:[#allocation4 + $0x64] ss:$8 sm:$0xf]  ;;  %v1371_v52 = vor.u32 %v1370_v0, %v1369_v40 }
 0x175   :  { %1701 = vmatpush.msra.mxu0 %v5147_v47  ;;  %1650 = vmatpush.msra.mxu3 %v5090_v49  ;;  %v764_v5 = vadd.f32 %v763_v61, %v7628_v27  ;;  %v1374_v41 = vld [vmem:[#allocation4 + $0x64] ss:$8 sm:$0x30]  ;;  %v5009_v47 = vld [vmem:[%s10997_s3 + $0xbd8] sm:$0xff] }
 0x176   :  { %1666 = vmatpush.msra.mxu1 %v5110_v50  ;;  %1686 = vmatpush.msra.mxu2 %v5126_v51  ;;  %v7806_v44 = vld [vmem:[#allocation1 + $0x2d] sm:$0xff]  ;;  %v7816_v50 = vld [vmem:[#allocation1 + $0x24] sm:$0xff]  ;;  %v7818_v51 = vld [vmem:[#allocation1 + $0x1b] sm:$0xff] }
 0x177   :  { %1702 = vmatpush.msra.mxu0 %v5146_v53  ;;  %1715 = vmatpush.msrb.mxu3 %v5169_v54  ;;  %v7808_v45 = vld [vmem:[#allocation1 + $0x12] sm:$0xff]  ;;  %v5159_v13 = vld [vmem:[%s10997_s3 + $0x1088] sm:$0xff] }
 0x178   :  { %1667 = vmatpush.msra.mxu1 %v5109_v56  ;;  %1687 = vmatpush.msra.mxu2 %v5125_v57  ;;  %v1377_v46 = vld [vmem:[#allocation4 + $0xc4] ss:$8 sm:$0xf] }
 0x179   :  { %1703 = vmatpush.msra.mxu0 %v5145_v58  ;;  %1716 = vmatpush.msrb.mxu3 %v5168_v59  ;;  %v1378_v53 = vld [vmem:[#allocation4 + $0xc4] ss:$8 sm:$0x30]  ;;  %v7826_v57 = vld [vmem:[#allocation1] sm:$0xff]  ;;  %v1375_v59 = vor.u32 %v1374_v41, %v1373_v3  ;;  %v5001_v40 = vld [vmem:[%s10997_s3 + $0xb98] sm:$0xff] }
 0x17a   :  { %1668 = vmatpush.msra.mxu1 %v5108_v60  ;;  %1688 = vmatpush.msra.mxu2 %v5124_v4  ;;  %v5160_v54 = vld [vmem:[%s10997_s3 + $0x1090] sm:$0xff]  ;;  %v1379_v63 = vor.u32 %v1378_v53, %v1377_v46  ;;  %v5175_v14 = vld [vmem:[%s10997_s3 + $0x1108] sm:$0xff]  ;;  %v5021_v0 = vld [vmem:[%s10997_s3 + $0xc38] sm:$0xff] }
 0x17b   :  { %1704 = vmatpush.msra.mxu0 %v5144_v12  ;;  %1717 = vmatpush.msrb.mxu3 %v5167_v15  ;;  %v5176_v55 = vld [vmem:[%s10997_s3 + $0x1110] sm:$0xff]  ;;  %v5027_v17 = vld [vmem:[%s10997_s3 + $0xc68] sm:$0xff]  ;;  %v5041_v53 = vld [vmem:[%s10997_s3 + $0xcd8] sm:$0xff] }
 0x17c   :  { %1669 = vmatpush.msra.mxu1 %v5107_v16  ;;  %1689 = vmatpush.msra.mxu2 %v5123_v18  ;;  %v7828_v58 = vld [vmem:[#allocation1 + $0x9] sm:$0xff]  ;;  %v5158_v18 = vld [vmem:[%s10997_s3 + $0x1080] sm:$0xff] }
 0x17d   :  { %1705 = vmatpush.msra.mxu0 %v5143_v19  ;;  %v783_v27 = vpop.f32.mrf.mxu0  ;;  %1718 = vmatpush.msrb.mxu3 %v5166_v20  ;;  %v1381_v60 = vld [vmem:[#allocation4 + $0x124] ss:$8 sm:$0xf]  ;;  %1761 = vst [vmem:[#allocation1] ss:$9 sm:$0xff] %v1371_v52 }
 0x17e   :  { %1670 = vmatpush.msra.mxu1 %v5106_v21  ;;  %v784_v31 = vadd.f32 %v783_v27, %v764_v5  ;;  %1690 = vmatpush.msra.mxu2 %v5122_v22  ;;  %v1382_v61 = vld [vmem:[#allocation4 + $0x124] ss:$8 sm:$0x30]  ;;  %1763 = vst [vmem:[#allocation1 + $0x1] ss:$9 sm:$0xff] %v1375_v59  ;;  %v5174_v19 = vld [vmem:[%s10997_s3 + $0x1100] sm:$0xff] }
 0x17f   :  { %1706 = vmatpush.msra.mxu0 %v5142_v23  ;;  %1719 = vmatpush.msrb.mxu3 %v5165_v24  ;;  %v1385_v4 = vld [vmem:[#allocation4 + $0x184] ss:$8 sm:$0xf]  ;;  %v1383_v7 = vor.u32 %v1382_v61, %v1381_v60  ;;  %1765 = vst [vmem:[#allocation1 + $0x2] ss:$9 sm:$0xff] %v1379_v63 }
 0x180   :  { %5182 = vmatpush.msk.msrb.mxu1 %vm549_vm2, %v5181_v25  ;;  %1788 = vmatpush.msrb.mxu2 %v5013_v26  ;;  %v1386_v5 = vld [vmem:[#allocation4 + $0x184] ss:$8 sm:$0x30]  ;;  %v5006_v20 = vld [vmem:[%s10997_s3 + $0xbc0] sm:$0xff]  ;;  %v5157_v22 = vld [vmem:[%s10997_s3 + $0x1078] sm:$0xff] }
 0x181   :  { %1707 = vmatpush.msra.mxu0 %v5141_v28  ;;  %1720 = vmatpush.msrb.mxu3 %v5164_v29  ;;  %v1389_v8 = vld [vmem:[#allocation4 + $0x1e4] ss:$8 sm:$0xf]  ;;  %v1387_v12 = vor.u32 %v1386_v5, %v1385_v4  ;;  %1767 = vst [vmem:[#allocation1 + $0x3] ss:$9 sm:$0xff] %v1383_v7 }
 0x182   :  { %1740 = vmatpush.msrb.mxu1 %v5180_v30  ;;  %1789 = vmatpush.msrb.mxu2 %v5012_v32  ;;  %v1390_v9 = vld [vmem:[#allocation4 + $0x1e4] ss:$8 sm:$0x30]  ;;  %v5026_v21 = vld [vmem:[%s10997_s3 + $0xc60] sm:$0xff]  ;;  %v5173_v23 = vld [vmem:[%s10997_s3 + $0x10f8] sm:$0xff] }
 0x183   :  { %1708 = vmatpush.msra.mxu0 %v5140_v33  ;;  %1721 = vmatpush.msrb.mxu3 %v5163_v34  ;;  %v803_v49 = vpop.f32.mrf.mxu2  ;;  %v5008_v10 = vld [vmem:[%s10997_s3 + $0xbd0] sm:$0xff]  ;;  %v1391_v15 = vor.u32 %v1390_v9, %v1389_v8  ;;  %v5007_v16 = vld [vmem:[%s10997_s3 + $0xbc8] sm:$0xff]  ;;  %1769 = vst [vmem:[#allocation1 + $0x4] ss:$9 sm:$0xff] %v1387_v12  ;;  %v5005_v24 = vld [vmem:[%s10997_s3 + $0xbb8] sm:$0xff] }
 0x184   :  { %1741 = vmatpush.msrb.mxu1 %v5179_v35  ;;  %1790 = vmatpush.msrb.mxu2 %v5011_v36  ;;  %v804_v56 = vadd.f32 %v803_v49, %v784_v31  ;;  %v5028_v11 = vld [vmem:[%s10997_s3 + $0xc70] sm:$0xff]  ;;  %v5025_v25 = vld [vmem:[%s10997_s3 + $0xc58] sm:$0xff]  ;;  %v5155_v30 = vld [vmem:[%s10997_s3 + $0x1068] sm:$0xff] }
 0x185   :  { %1709 = vmatpush.msra.mxu0 %v5139_v37  ;;  %1722 = vmatpush.msrb.mxu3 %v5162_v38  ;;  %1771 = vst [vmem:[#allocation1 + $0x5] ss:$9 sm:$0xff] %v1391_v15  ;;  %v5156_v26 = vld [vmem:[%s10997_s3 + $0x1070] sm:$0xff]  ;;  %v5171_v31 = vld [vmem:[%s10997_s3 + $0x10e8] sm:$0xff]  ;;  %v5170_v34 = vld [vmem:[%s10997_s3 + $0x10e0] sm:$0xff] }
 0x186   :  { %1742 = vmatpush.msrb.mxu1 %v5178_v39  ;;  %v823_v62 = vpop.f32.mrf.mxu3  ;;  %1791 = vmatpush.msrb.mxu2 %v5010_v1  ;;  %v5172_v27 = vld [vmem:[%s10997_s3 + $0x10f0] sm:$0xff]  ;;  %v5003_v32 = vld [vmem:[%s10997_s3 + $0xba8] sm:$0xff]  ;;  %v5154_v35 = vld [vmem:[%s10997_s3 + $0x1060] sm:$0xff] }
 0x187   :  { %1710 = vmatpush.msra.mxu0 %v5138_v2  ;;  %v7830_v6 = vadd.f32 %v823_v62, %v804_v56  ;;  %1723 = vmatpush.msrb.mxu3 %v5161_v42  ;;  %v5004_v28 = vld [vmem:[%s10997_s3 + $0xbb0] sm:$0xff]  ;;  %v5023_v33 = vld [vmem:[%s10997_s3 + $0xc48] sm:$0xff]  ;;  %v5002_v36 = vld [vmem:[%s10997_s3 + $0xba0] sm:$0xff] }
 0x188   :  { %1743 = vmatpush.msrb.mxu1 %v5177_v43  ;;  %1792 = vmatpush.msrb.mxu2 %v5009_v47  ;;  %v5024_v29 = vld [vmem:[%s10997_s3 + $0xc50] sm:$0xff]  ;;  %v5022_v37 = vld [vmem:[%s10997_s3 + $0xc40] sm:$0xff]  ;;  %v5045_v38 = vld [vmem:[%s10997_s3 + $0xcf8] sm:$0xff] }
 0x189   :  { %1808 = vmatpush.msrb.mxu0 %v5029_v48  ;;  %1724 = vmatpush.msrb.mxu3 %v5160_v54  ;;  %v5061_v39 = vld [vmem:[%s10997_s3 + $0xd78] sm:$0xff]  ;;  %v5044_v1 = vld [vmem:[%s10997_s3 + $0xcf0] sm:$0xff]  ;;  %v5043_v42 = vld [vmem:[%s10997_s3 + $0xce8] sm:$0xff] }
 0x18a   :  { %1744 = vmatpush.msrb.mxu1 %v5176_v55  ;;  %1793 = vmatpush.msrb.mxu2 %v5008_v10  ;;  %v5060_v2 = vld [vmem:[%s10997_s3 + $0xd70] sm:$0xff]  ;;  %v5059_v43 = vld [vmem:[%s10997_s3 + $0xd68] sm:$0xff]  ;;  %v5058_v48 = vld [vmem:[%s10997_s3 + $0xd60] sm:$0xff] }
 0x18b   :  { %1809 = vmatpush.msrb.mxu0 %v5028_v11  ;;  %1725 = vmatpush.msrb.mxu3 %v5159_v13  ;;  %v5000_v3 = vld [vmem:[%s10997_s3 + $0xb90] sm:$0xff]  ;;  %v4999_v46 = vld [vmem:[%s10997_s3 + $0xb88] sm:$0xff]  ;;  %v4998_v49 = vld [vmem:[%s10997_s3 + $0xb80] sm:$0xff] }
 0x18c   :  { %1745 = vmatpush.msrb.mxu1 %v5175_v14  ;;  %1794 = vmatpush.msrb.mxu2 %v5007_v16  ;;  %v5020_v41 = vld [vmem:[%s10997_s3 + $0xc30] sm:$0xff]  ;;  %v5019_v47 = vld [vmem:[%s10997_s3 + $0xc28] sm:$0xff]  ;;  %v5018_v52 = vld [vmem:[%s10997_s3 + $0xc20] sm:$0xff] }
 0x18d   :  { %1810 = vmatpush.msrb.mxu0 %v5027_v17  ;;  %1726 = vmatpush.msrb.mxu3 %v5158_v18  ;;  %v5057_v54 = vld [vmem:[%s10997_s3 + $0xd58] sm:$0xff]  ;;  %v5076_v59 = vld [vmem:[%s10997_s3 + $0xdf0] sm:$0xff]  ;;  %v5039_v61 = vld [vmem:[%s10997_s3 + $0xcc8] sm:$0xff] }
 0x18e   :  { %1746 = vmatpush.msrb.mxu1 %v5174_v19  ;;  %1795 = vmatpush.msrb.mxu2 %v5006_v20  ;;  %v5077_v55 = vld [vmem:[%s10997_s3 + $0xdf8] sm:$0xff]  ;;  %v5016_v60 = vld [vmem:[%s10997_s3 + $0xc10] sm:$0xff]  ;;  %v5055_v62 = vld [vmem:[%s10997_s3 + $0xd48] sm:$0xff] }
 0x18f   :  { %1811 = vmatpush.msrb.mxu0 %v5026_v21  ;;  %1727 = vmatpush.msrb.mxu3 %v5157_v22  ;;  %v5017_v56 = vld [vmem:[%s10997_s3 + $0xc18] sm:$0xff]  ;;  %v5075_v63 = vld [vmem:[%s10997_s3 + $0xde8] sm:$0xff]  ;;  %v5038_v5 = vld [vmem:[%s10997_s3 + $0xcc0] sm:$0xff] }
 0x190   :  { %1747 = vmatpush.msrb.mxu1 %v5173_v23  ;;  %1796 = vmatpush.msrb.mxu2 %v5005_v24  ;;  %v5015_v4 = vld [vmem:[%s10997_s3 + $0xc08] sm:$0xff]  ;;  %v5074_v7 = vld [vmem:[%s10997_s3 + $0xde0] sm:$0xff]  ;;  %v5053_v9 = vld [vmem:[%s10997_s3 + $0xd38] sm:$0xff] }
 0x191   :  { %1812 = vmatpush.msrb.mxu0 %v5025_v25  ;;  %1728 = vmatpush.msrb.mxu3 %v5156_v26  ;;  %v5014_v8 = vld [vmem:[%s10997_s3 + $0xc00] sm:$0xff]  ;;  %v5037_v10 = vld [vmem:[%s10997_s3 + $0xcb8] sm:$0xff]  ;;  %v5052_v13 = vld [vmem:[%s10997_s3 + $0xd30] sm:$0xff] }
 0x192   :  { %1748 = vmatpush.msrb.mxu1 %v5172_v27  ;;  %1797 = vmatpush.msrb.mxu2 %v5004_v28  ;;  %v5073_v11 = vld [vmem:[%s10997_s3 + $0xdd8] sm:$0xff]  ;;  %v5036_v14 = vld [vmem:[%s10997_s3 + $0xcb0] sm:$0xff]  ;;  %v5035_v17 = vld [vmem:[%s10997_s3 + $0xca8] sm:$0xff] }
 0x193   :  { %1813 = vmatpush.msrb.mxu0 %v5024_v29  ;;  %1729 = vmatpush.msrb.mxu3 %v5155_v30  ;;  %v5089_v12 = vld [vmem:[%s10997_s3 + $0xe58] sm:$0x1]  ;;  %v5072_v15 = vld [vmem:[%s10997_s3 + $0xdd0] sm:$0xff]  ;;  %v5051_v18 = vld [vmem:[%s10997_s3 + $0xd28] sm:$0xff] }
 0x194   :  { %1749 = vmatpush.msrb.mxu1 %v5171_v31  ;;  %1798 = vmatpush.msrb.mxu2 %v5003_v32  ;;  %v5088_v16 = vld [vmem:[%s10997_s3 + $0xe50] sm:$0xff]  ;;  %v5071_v19 = vld [vmem:[%s10997_s3 + $0xdc8] sm:$0xff]  ;;  %v5034_v21 = vld [vmem:[%s10997_s3 + $0xca0] sm:$0xff] }
 0x195   :  { %1814 = vmatpush.msrb.mxu0 %v5023_v33  ;;  %1651 = vmatmul.f32.vlgmr.msra.gmra.mxu3 %v7826_v57  ;;  %v5040_v57 = vld [vmem:[%s10997_s3 + $0xcd0] sm:$0xff]  ;;  %v5087_v20 = vld [vmem:[%s10997_s3 + $0xe48] sm:$0xff]  ;;  %v5050_v22 = vld [vmem:[%s10997_s3 + $0xd20] sm:$0xff] }
 0x196   :  { %1750 = vmatpush.msrb.mxu1 %v5170_v34  ;;  %1730 = vmatpush.msrb.mxu3 %v5154_v35  ;;  %v5070_v24 = vld [vmem:[%s10997_s3 + $0xdc0] sm:$0xff]  ;;  %v5033_v26 = vld [vmem:[%s10997_s3 + $0xc98] sm:$0xff]  ;;  %v5032_v32 = vld [vmem:[%s10997_s3 + $0xc90] sm:$0xff] }
 0x197   :  { %1799 = vmatpush.msrb.mxu2 %v5002_v36  ;;  %1815 = vmatpush.msrb.mxu0 %v5022_v37  ;;  %v5086_v25 = vld [vmem:[%s10997_s3 + $0xe40] sm:$0xff]  ;;  %v5049_v27 = vld [vmem:[%s10997_s3 + $0xd18] sm:$0xff]  ;;  %v5048_v33 = vld [vmem:[%s10997_s3 + $0xd10] sm:$0xff] }
 0x198   :  { %1671 = vmatmul.f32.vlgmr.msra.gmra.mxu1 %v7828_v58  ;;  %1848 = vmatpush.msra.mxu3 %v5061_v39  ;;  %v5056_v58 = vld [vmem:[%s10997_s3 + $0xd50] sm:$0xff]  ;;  %v5069_v29 = vld [vmem:[%s10997_s3 + $0xdb8] sm:$0xff]  ;;  %v5031_v37 = vld [vmem:[%s10997_s3 + $0xc88] sm:$0xff] }
 0x199   :  { %1828 = vmatpush.msra.mxu1 %v5045_v38  ;;  %1800 = vmatpush.msrb.mxu2 %v5001_v40  ;;  %v5085_v30 = vld [vmem:[%s10997_s3 + $0xe38] sm:$0xff]  ;;  %v5068_v34 = vld [vmem:[%s10997_s3 + $0xdb0] sm:$0xff]  ;;  %v5047_v38 = vld [vmem:[%s10997_s3 + $0xd08] sm:$0xff] }
 0x19a   :  { %1816 = vmatpush.msrb.mxu0 %v5021_v0  ;;  %1691 = vmatmul.f32.vlgmr.msra.gmra.mxu2 %v7808_v45  ;;  %v5042_v45 = vld [vmem:[%s10997_s3 + $0xce0] sm:$0xff]  ;;  %v5084_v35 = vld [vmem:[%s10997_s3 + $0xe30] sm:$0xff]  ;;  %v5067_v40 = vld [vmem:[%s10997_s3 + $0xda8] sm:$0xff] }
 0x19b   :  { %1829 = vmatpush.msra.mxu1 %v5044_v1  ;;  %1849 = vmatpush.msra.mxu3 %v5060_v2  ;;  %v5083_v0 = vld [vmem:[%s10997_s3 + $0xe28] sm:$0xff]  ;;  %v5030_v2 = vld [vmem:[%s10997_s3 + $0xc80] sm:$0xff] }
 0x19c   :  { %1801 = vmatpush.msrb.mxu2 %v5000_v3  ;;  %1817 = vmatpush.msrb.mxu0 %v5020_v41  ;;  %v5046_v3 = vld [vmem:[%s10997_s3 + $0xd00] sm:$0xff] }
 0x19d   :  { %1830 = vmatpush.msra.mxu1 %v5043_v42  ;;  %1850 = vmatpush.msra.mxu3 %v5059_v43  ;;  %v5066_v42 = vld [vmem:[%s10997_s3 + $0xda0] sm:$0xff] }
 0x19e   :  { %1802 = vmatpush.msrb.mxu2 %v4999_v46  ;;  %1818 = vmatpush.msrb.mxu0 %v5019_v47  ;;  %v5082_v43 = vld [vmem:[%s10997_s3 + $0xe20] sm:$0xff]  ;;  %v1774_v46 = vld [vmem:[#allocation1 + $0x12] sm:$0xff] }
 0x19f   :  { %1731 = vmatmul.f32.vlgmr.msrb.gmra.mxu3 %v7816_v50  ;;  %1831 = vmatpush.msra.mxu1 %v5042_v45  ;;  %v1772_v50 = vld [vmem:[#allocation1] sm:$0xff] }
 0x1a0   :  { %1851 = vmatpush.msra.mxu3 %v5058_v48  ;;  %1803 = vmatpush.msrb.mxu2 %v4998_v49  ;;  %v1775_v47 = vld [vmem:[#allocation1 + $0x1b] sm:$0xff] }
 0x1a1   :  { %1819 = vmatpush.msrb.mxu0 %v5018_v52  ;;  %1832 = vmatpush.msra.mxu1 %v5041_v53  ;;  %v5201_v48 = vld [vmem:[%s10997_s3 + $0x11b8] sm:$0xff] }
 0x1a2   :  { %1852 = vmatpush.msra.mxu3 %v5057_v54  ;;  %1868 = vmatpush.msra.mxu2 %v5077_v55  ;;  %v5217_v49 = vld [vmem:[%s10997_s3 + $0x1238] sm:$0xff] }
 0x1a3   :  { %1820 = vmatpush.msrb.mxu0 %v5017_v56  ;;  %1804 = vmatmul.f32.vlgmr.msrb.gmra.mxu2 %v1772_v50  ;;  %v5065_v53 = vld [vmem:[%s10997_s3 + $0xd98] sm:$0xff]  ;;  %v5200_v56 = vld [vmem:[%s10997_s3 + $0x11b0] sm:$0xff] }
 0x1a4   :  { %1711 = vmatmul.f32.vlgmr.msra.gmra.mxu0 %v7818_v51  ;;  %1833 = vmatpush.msra.mxu1 %v5040_v57  ;;  %v5054_v51 = vld [vmem:[%s10997_s3 + $0xd40] sm:$0xff]  ;;  %v5081_v54 = vld [vmem:[%s10997_s3 + $0xe18] sm:$0xff]  ;;  %v5216_v50 = vld [vmem:[%s10997_s3 + $0x1230] sm:$0xff] }
 0x1a5   :  { %1853 = vmatpush.msra.mxu3 %v5056_v58  ;;  %1869 = vmatpush.msra.mxu2 %v5076_v59  ;;  %v5064_v58 = vld [vmem:[%s10997_s3 + $0xd90] sm:$0xff] }
 0x1a6   :  { %1821 = vmatpush.msrb.mxu0 %v5016_v60  ;;  %1834 = vmatpush.msra.mxu1 %v5039_v61  ;;  %v5080_v59 = vld [vmem:[%s10997_s3 + $0xe10] sm:$0xff]  ;;  %v5199_v60 = vld [vmem:[%s10997_s3 + $0x11a8] sm:$0xff] }
 0x1a7   :  { %1854 = vmatpush.msra.mxu3 %v5055_v62  ;;  %1870 = vmatpush.msra.mxu2 %v5075_v63  ;;  %v5215_v61 = vld [vmem:[%s10997_s3 + $0x1228] sm:$0xff] }
 0x1a8   :  { %1822 = vmatpush.msrb.mxu0 %v5015_v4  ;;  %5183 = vmatmul.msk.f32.vlgmr.msrb.gmra.mxu1 %vm252_vm1, %v7806_v44  ;;  %v1773_v44 = vld [vmem:[#allocation1 + $0x9] sm:$0xff] }
 0x1a9   :  { %1855 = vmatpush.msra.mxu3 %v5054_v51  ;;  %1835 = vmatpush.msra.mxu1 %v5038_v5  ;;  %v5063_v63 = vld [vmem:[%s10997_s3 + $0xd88] sm:$0xff]  ;;  %v5198_v51 = vld [vmem:[%s10997_s3 + $0x11a0] sm:$0xff] }
 0x1aa   :  { %1871 = vmatpush.msra.mxu2 %v5074_v7  ;;  %1823 = vmatpush.msrb.mxu0 %v5014_v8  ;;  %v5079_v4 = vld [vmem:[%s10997_s3 + $0xe08] sm:$0xff]  ;;  %v5062_v5 = vld [vmem:[%s10997_s3 + $0xd80] sm:$0xff] }
 0x1ab   :  { %1856 = vmatpush.msra.mxu3 %v5053_v9  ;;  %1836 = vmatpush.msra.mxu1 %v5037_v10  ;;  %v5078_v7 = vld [vmem:[%s10997_s3 + $0xe00] sm:$0xff]  ;;  %v5197_v9 = vld [vmem:[%s10997_s3 + $0x1198] sm:$0xff] }
 0x1ac   :  { %1872 = vmatpush.msra.mxu2 %v5073_v11  ;;  %5184 = vmatpush.msk.msra.mxu0 %vm549_vm2, %v5089_v12  ;;  %v1776_v8 = vld [vmem:[#allocation1 + $0x24] sm:$0xff]  ;;  %v5213_v10 = vld [vmem:[%s10997_s3 + $0x1218] sm:$0xff] }
 0x1ad   :  { %1857 = vmatpush.msra.mxu3 %v5052_v13  ;;  %1824 = vmatmul.f32.vlgmr.msrb.gmra.mxu0 %v1773_v44  ;;  %v5233_v11 = vld [vmem:[%s10997_s3 + $0x12b8] sm:$0xff]  ;;  %v5196_v13 = vld [vmem:[%s10997_s3 + $0x1190] sm:$0xff] }
 0x1ae   :  { %1837 = vmatpush.msra.mxu1 %v5036_v14  ;;  %1873 = vmatpush.msra.mxu2 %v5072_v15  ;;  %v5249_v12 = vld [vmem:[%s10997_s3 + $0x1338] sm:$0xff]  ;;  %v5212_v44 = vld [vmem:[%s10997_s3 + $0x1210] sm:$0xff] }
 0x1af   :  { %1893 = vmatpush.msra.mxu0 %v5088_v16  ;;  %v993_v23 = vpop.f32.mrf.mxu1  ;;  %1858 = vmatpush.msra.mxu3 %v5051_v18  ;;  %v5232_v14 = vld [vmem:[%s10997_s3 + $0x12b0] sm:$0xff]  ;;  %v5195_v16 = vld [vmem:[%s10997_s3 + $0x1188] sm:$0xff] }
 0x1b0   :  { %1838 = vmatpush.msra.mxu1 %v5035_v17  ;;  %1874 = vmatpush.msra.mxu2 %v5071_v19  ;;  %v1013_v28 = vpop.f32.mrf.mxu3  ;;  %v5248_v15 = vld [vmem:[%s10997_s3 + $0x1330] sm:$0xff]  ;;  %v5211_v17 = vld [vmem:[%s10997_s3 + $0x1208] sm:$0xff] }
 0x1b1   :  { %1894 = vmatpush.msra.mxu0 %v5087_v20  ;;  %1859 = vmatpush.msra.mxu3 %v5050_v22  ;;  %v1014_v31 = vadd.f32 %v1013_v28, %v993_v23  ;;  %v5231_v18 = vld [vmem:[%s10997_s3 + $0x12a8] sm:$0xff]  ;;  %v5210_v22 = vld [vmem:[%s10997_s3 + $0x1200] sm:$0xff] }
 0x1b2   :  { %1839 = vmatpush.msra.mxu1 %v5034_v21  ;;  %1875 = vmatpush.msra.mxu2 %v5070_v24  ;;  %v1909_v19 = vld [vmem:[#allocation4 + $0x6] ss:$8 sm:$0xf] }
 0x1b3   :  { %1895 = vmatpush.msra.mxu0 %v5086_v25  ;;  %1860 = vmatpush.msra.mxu3 %v5049_v27  ;;  %v5247_v20 = vld [vmem:[%s10997_s3 + $0x1328] sm:$0xff]  ;;  %v5194_v21 = vld [vmem:[%s10997_s3 + $0x1180] sm:$0xff]  ;;  %v5193_v27 = vld [vmem:[%s10997_s3 + $0x1178] sm:$0xff] }
 0x1b4   :  { %1840 = vmatpush.msra.mxu1 %v5033_v26  ;;  %v1033_v36 = vpop.f32.mrf.mxu0  ;;  %1876 = vmatpush.msra.mxu2 %v5069_v29  ;;  %v5230_v23 = vld [vmem:[%s10997_s3 + $0x12a0] sm:$0xff]  ;;  %v1910_v24 = vld [vmem:[#allocation4 + $0x6] ss:$8 sm:$0x30]  ;;  %v5209_v29 = vld [vmem:[%s10997_s3 + $0x11f8] sm:$0xff] }
 0x1b5   :  { %1896 = vmatpush.msra.mxu0 %v5085_v30  ;;  %v1034_v39 = vadd.f32 %v1033_v36, %v1014_v31  ;;  %1861 = vmatpush.msra.mxu3 %v5048_v33  ;;  %v1053_v1 = vpop.f32.mrf.mxu2  ;;  %v5246_v25 = vld [vmem:[%s10997_s3 + $0x1320] sm:$0xff]  ;;  %v1777_v26 = vld [vmem:[#allocation1 + $0x2d] sm:$0xff]  ;;  %v1911_v28 = vor.u32 %v1910_v24, %v1909_v19  ;;  %v5229_v30 = vld [vmem:[%s10997_s3 + $0x1298] sm:$0xff] }
 0x1b6   :  { %1841 = vmatpush.msra.mxu1 %v5032_v32  ;;  %1877 = vmatpush.msra.mxu2 %v5068_v34  ;;  %v1913_v31 = vld [vmem:[#allocation4 + $0x66] ss:$8 sm:$0xf] }
 0x1b7   :  { %1897 = vmatpush.msra.mxu0 %v5084_v35  ;;  %v1054_v41 = vadd.f32 %v1053_v1, %v1034_v39  ;;  %1862 = vmatpush.msra.mxu3 %v5047_v38  ;;  %v5245_v32 = vld [vmem:[%s10997_s3 + $0x1318] sm:$0xff]  ;;  %v5192_v33 = vld [vmem:[%s10997_s3 + $0x1170] sm:$0xff]  ;;  %2031 = vst [vmem:[#allocation1] ss:$9 sm:$0xff] %v1911_v28  ;;  %v5191_v38 = vld [vmem:[%s10997_s3 + $0x1168] sm:$0xff] }
 0x1b8   :  { %1842 = vmatpush.msra.mxu1 %v5031_v37  ;;  %1878 = vmatpush.msra.mxu2 %v5067_v40  ;;  %v5208_v34 = vld [vmem:[%s10997_s3 + $0x11f0] sm:$0xff]  ;;  %v5207_v39 = vld [vmem:[%s10997_s3 + $0x11e8] sm:$0xff] }
 0x1b9   :  { %1898 = vmatpush.msra.mxu0 %v5083_v0  ;;  %v1073_v45 = vpop.f32.mrf.mxu1  ;;  %1863 = vmatpush.msra.mxu3 %v5046_v3  ;;  %v5228_v35 = vld [vmem:[%s10997_s3 + $0x1290] sm:$0xff]  ;;  %v5227_v40 = vld [vmem:[%s10997_s3 + $0x1288] sm:$0xff] }
 0x1ba   :  { %1843 = vmatpush.msra.mxu1 %v5030_v2  ;;  %v1074_v52 = vadd.f32 %v1073_v45, %v1054_v41  ;;  %1879 = vmatpush.msra.mxu2 %v5066_v42  ;;  %v1093_v55 = vpop.f32.mrf.mxu3  ;;  %v5244_v36 = vld [vmem:[%s10997_s3 + $0x1310] sm:$0xff]  ;;  %v5243_v1 = vld [vmem:[%s10997_s3 + $0x1308] sm:$0xff]  ;;  %v5190_v2 = vld [vmem:[%s10997_s3 + $0x1160] sm:$0xff] }
 0x1bb   :  { %1899 = vmatpush.msra.mxu0 %v5082_v43  ;;  %1844 = vmatmul.f32.vlgmr.msra.gmra.mxu1 %v1774_v46  ;;  %v1914_v37 = vld [vmem:[#allocation4 + $0x66] ss:$8 sm:$0x30]  ;;  %v5206_v41 = vld [vmem:[%s10997_s3 + $0x11e0] sm:$0xff]  ;;  %v5189_v46 = vld [vmem:[%s10997_s3 + $0x1158] sm:$0xff] }
 0x1bc   :  { %1864 = vmatmul.f32.vlgmr.msra.gmra.mxu3 %v1775_v47  ;;  %v1094_v57 = vadd.f32 %v1093_v55, %v1074_v52  ;;  %2058 = vmatpush.msrb.mxu1 %v5201_v48  ;;  %v1915_v0 = vor.u32 %v1914_v37, %v1913_v31  ;;  %v1917_v3 = vld [vmem:[#allocation4 + $0xc6] ss:$8 sm:$0xf] }
 0x1bd   :  { %2078 = vmatpush.msrb.mxu3 %v5217_v49  ;;  %1880 = vmatpush.msra.mxu2 %v5065_v53  ;;  %v5226_v42 = vld [vmem:[%s10997_s3 + $0x1280] sm:$0xff]  ;;  %v5205_v47 = vld [vmem:[%s10997_s3 + $0x11d8] sm:$0xff]  ;;  %v1918_v45 = vld [vmem:[#allocation4 + $0xc6] ss:$8 sm:$0x30] }
 0x1be   :  { %1900 = vmatpush.msra.mxu0 %v5081_v54  ;;  %v8141_v62 = vadd.f32 %v1094_v57, %v7830_v6  ;;  %2059 = vmatpush.msrb.mxu1 %v5200_v56  ;;  %v5214_v6 = vld [vmem:[%s10997_s3 + $0x1220] sm:$0xff]  ;;  %2033 = vst [vmem:[#allocation1 + $0x1] ss:$9 sm:$0xff] %v1915_v0  ;;  %v5225_v49 = vld [vmem:[%s10997_s3 + $0x1278] sm:$0xff]  ;;  %v1919_v52 = vor.u32 %v1918_v45, %v1917_v3  ;;  %v5276_v19 = vld [vmem:[%s10997_s3 + $0x1410] sm:$0xff] }
 0x1bf   :  { %2079 = vmatpush.msrb.mxu3 %v5216_v50  ;;  %1881 = vmatpush.msra.mxu2 %v5064_v58  ;;  %v5242_v43 = vld [vmem:[%s10997_s3 + $0x1300] sm:$0xff]  ;;  %v1922_v53 = vld [vmem:[#allocation4 + $0x126] ss:$8 sm:$0x30]  ;;  %v5241_v57 = vld [vmem:[%s10997_s3 + $0x12f8] sm:$0xff] }
 0x1c0   :  { %1901 = vmatpush.msra.mxu0 %v5080_v59  ;;  %2060 = vmatpush.msrb.mxu1 %v5199_v60  ;;  %v1921_v48 = vld [vmem:[#allocation4 + $0x126] ss:$8 sm:$0xf]  ;;  %2035 = vst [vmem:[#allocation1 + $0x2] ss:$9 sm:$0xff] %v1919_v52 }
 0x1c1   :  { %2080 = vmatpush.msrb.mxu3 %v5215_v61  ;;  %1882 = vmatpush.msra.mxu2 %v5063_v63  ;;  %v1925_v54 = vld [vmem:[#allocation4 + $0x186] ss:$8 sm:$0xf]  ;;  %v1923_v55 = vor.u32 %v1922_v53, %v1921_v48 }
 0x1c2   :  { %1902 = vmatpush.msra.mxu0 %v5079_v4  ;;  %2061 = vmatpush.msrb.mxu1 %v5198_v51  ;;  %v1926_v56 = vld [vmem:[#allocation4 + $0x186] ss:$8 sm:$0x30]  ;;  %v5218_v31 = vld [vmem:[%s10997_s3 + $0x1240] sm:$0xff]  ;;  %v5295_v37 = vld [vmem:[%s10997_s3 + $0x1498] sm:$0xff] }
 0x1c3   :  { %2081 = vmatpush.msrb.mxu3 %v5214_v6  ;;  %1883 = vmatpush.msra.mxu2 %v5062_v5  ;;  %v1929_v50 = vld [vmem:[#allocation4 + $0x1e6] ss:$8 sm:$0xf]  ;;  %v1927_v58 = vor.u32 %v1926_v56, %v1925_v54  ;;  %2037 = vst [vmem:[#allocation1 + $0x3] ss:$9 sm:$0xff] %v1923_v55 }
 0x1c4   :  { %1903 = vmatpush.msra.mxu0 %v5078_v7  ;;  %1884 = vmatmul.f32.vlgmr.msra.gmra.mxu2 %v1776_v8  ;;  %v1930_v59 = vld [vmem:[#allocation4 + $0x1e6] ss:$8 sm:$0x30]  ;;  %v5258_v48 = vld [vmem:[%s10997_s3 + $0x1380] sm:$0xff]  ;;  %v5257_v55 = vld [vmem:[%s10997_s3 + $0x1378] sm:$0xff] }
 0x1c5   :  { %2062 = vmatpush.msrb.mxu1 %v5197_v9  ;;  %2082 = vmatpush.msrb.mxu3 %v5213_v10  ;;  %v5188_v60 = vld [vmem:[%s10997_s3 + $0x1150] sm:$0xff]  ;;  %v1931_v63 = vor.u32 %v1930_v59, %v1929_v50  ;;  %2039 = vst [vmem:[#allocation1 + $0x4] ss:$9 sm:$0xff] %v1927_v58  ;;  %v5187_v6 = vld [vmem:[%s10997_s3 + $0x1148] sm:$0xff]  ;;  %v5186_v9 = vld [vmem:[%s10997_s3 + $0x1140] sm:$0xff] }
 0x1c6   :  { %2098 = vmatpush.msrb.mxu0 %v5233_v11  ;;  %2118 = vmatpush.msrb.mxu2 %v5249_v12  ;;  %v5204_v61 = vld [vmem:[%s10997_s3 + $0x11d0] sm:$0xff]  ;;  %v5203_v5 = vld [vmem:[%s10997_s3 + $0x11c8] sm:$0xff]  ;;  %v5202_v10 = vld [vmem:[%s10997_s3 + $0x11c0] sm:$0xff] }
 0x1c7   :  { %2063 = vmatpush.msrb.mxu1 %v5196_v13  ;;  %2083 = vmatpush.msrb.mxu3 %v5212_v44  ;;  %v5224_v4 = vld [vmem:[%s10997_s3 + $0x1270] sm:$0xff]  ;;  %2041 = vst [vmem:[#allocation1 + $0x5] ss:$9 sm:$0xff] %v1931_v63  ;;  %v5223_v7 = vld [vmem:[%s10997_s3 + $0x1268] sm:$0xff]  ;;  %v5222_v11 = vld [vmem:[%s10997_s3 + $0x1260] sm:$0xff] }
 0x1c8   :  { %2099 = vmatpush.msrb.mxu0 %v5232_v14  ;;  %2119 = vmatpush.msrb.mxu2 %v5248_v15  ;;  %v5240_v51 = vld [vmem:[%s10997_s3 + $0x12f0] sm:$0xff]  ;;  %v5239_v8 = vld [vmem:[%s10997_s3 + $0x12e8] sm:$0xff]  ;;  %v5238_v12 = vld [vmem:[%s10997_s3 + $0x12e0] sm:$0xff] }
 0x1c9   :  { %2064 = vmatpush.msrb.mxu1 %v5195_v16  ;;  %2084 = vmatpush.msrb.mxu3 %v5211_v17  ;;  %v5265_v13 = vld [vmem:[%s10997_s3 + $0x13b8] sm:$0xff]  ;;  %v5263_v24 = vld [vmem:[%s10997_s3 + $0x13a8] sm:$0xff]  ;;  %v5310_v3 = vld [vmem:[%s10997_s3 + $0x1510] sm:$0xff] }
 0x1ca   :  { %2100 = vmatpush.msrb.mxu0 %v5231_v18  ;;  %2120 = vmatpush.msrb.mxu2 %v5247_v20  ;;  %v5277_v44 = vld [vmem:[%s10997_s3 + $0x1418] sm:$0x1]  ;;  %v5264_v18 = vld [vmem:[%s10997_s3 + $0x13b0] sm:$0xff]  ;;  %v5235_v28 = vld [vmem:[%s10997_s3 + $0x12c8] sm:$0xff] }
 0x1cb   :  { %2065 = vmatpush.msrb.mxu1 %v5194_v21  ;;  %2085 = vmatpush.msrb.mxu3 %v5210_v22  ;;  %v5221_v15 = vld [vmem:[%s10997_s3 + $0x1258] sm:$0xff]  ;;  %v5220_v21 = vld [vmem:[%s10997_s3 + $0x1250] sm:$0xff]  ;;  %v5292_v52 = vld [vmem:[%s10997_s3 + $0x1480] sm:$0xff] }
 0x1cc   :  { %2101 = vmatpush.msrb.mxu0 %v5230_v23  ;;  %2121 = vmatpush.msrb.mxu2 %v5246_v25  ;;  %v5237_v16 = vld [vmem:[%s10997_s3 + $0x12d8] sm:$0xff]  ;;  %v5236_v22 = vld [vmem:[%s10997_s3 + $0x12d0] sm:$0xff]  ;;  %v5275_v25 = vld [vmem:[%s10997_s3 + $0x1408] sm:$0xff] }
 0x1cd   :  { %5185 = vmatmul.msk.f32.vlgmr.msra.gmra.mxu0 %vm252_vm1, %v1777_v26  ;;  %2066 = vmatpush.msrb.mxu1 %v5193_v27  ;;  %v5219_v27 = vld [vmem:[%s10997_s3 + $0x1248] sm:$0xff]  ;;  %v5308_v53 = vld [vmem:[%s10997_s3 + $0x1500] sm:$0xff]  ;;  %v5269_v56 = vld [vmem:[%s10997_s3 + $0x13d8] sm:$0xff] }
 0x1ce   :  { %2086 = vmatpush.msrb.mxu3 %v5209_v29  ;;  %2102 = vmatpush.msrb.mxu0 %v5229_v30  ;;  %v5262_v29 = vld [vmem:[%s10997_s3 + $0x13a0] sm:$0xff]  ;;  %v5291_v50 = vld [vmem:[%s10997_s3 + $0x1478] sm:$0xff]  ;;  %v5268_v58 = vld [vmem:[%s10997_s3 + $0x13d0] sm:$0xff] }
 0x1cf   :  { %2122 = vmatpush.msrb.mxu2 %v5245_v32  ;;  %2067 = vmatpush.msrb.mxu1 %v5192_v33  ;;  %v5274_v30 = vld [vmem:[%s10997_s3 + $0x1400] sm:$0xff]  ;;  %v5290_v59 = vld [vmem:[%s10997_s3 + $0x1470] sm:$0xff]  ;;  %v5255_v63 = vld [vmem:[%s10997_s3 + $0x1368] sm:$0xff] }
 0x1d0   :  { %2087 = vmatpush.msrb.mxu3 %v5208_v34  ;;  %2103 = vmatpush.msrb.mxu0 %v5228_v35  ;;  %v5234_v32 = vld [vmem:[%s10997_s3 + $0x12c0] sm:$0xff]  ;;  %v5261_v34 = vld [vmem:[%s10997_s3 + $0x1398] sm:$0xff] }
 0x1d1   :  { %2123 = vmatpush.msrb.mxu2 %v5244_v36  ;;  %2068 = vmatpush.msrb.mxu1 %v5191_v38  ;;  %v5273_v35 = vld [vmem:[%s10997_s3 + $0x13f8] sm:$0xff] }
 0x1d2   :  { %2088 = vmatpush.msrb.mxu3 %v5207_v39  ;;  %2104 = vmatpush.msrb.mxu0 %v5227_v40  ;;  %v5311_v38 = vld [vmem:[%s10997_s3 + $0x1518] sm:$0xff]  ;;  %v5260_v39 = vld [vmem:[%s10997_s3 + $0x1390] sm:$0xff] }
 0x1d3   :  { %2124 = vmatpush.msrb.mxu2 %v5243_v1  ;;  %2069 = vmatpush.msrb.mxu1 %v5190_v2  ;;  %v5272_v40 = vld [vmem:[%s10997_s3 + $0x13f0] sm:$0xff] }
 0x1d4   :  { %2089 = vmatpush.msrb.mxu3 %v5206_v41  ;;  %2105 = vmatpush.msrb.mxu0 %v5226_v42  ;;  %v5294_v2 = vld [vmem:[%s10997_s3 + $0x1490] sm:$0xff]  ;;  %v5259_v42 = vld [vmem:[%s10997_s3 + $0x1388] sm:$0xff] }
 0x1d5   :  { %2125 = vmatpush.msrb.mxu2 %v5242_v43  ;;  %2070 = vmatpush.msrb.mxu1 %v5189_v46  ;;  %v5271_v43 = vld [vmem:[%s10997_s3 + $0x13e8] sm:$0xff] }
 0x1d6   :  { %2090 = vmatpush.msrb.mxu3 %v5205_v47  ;;  %2106 = vmatpush.msrb.mxu0 %v5225_v49  ;;  %v5293_v46 = vld [vmem:[%s10997_s3 + $0x1488] sm:$0xff]  ;;  %v5270_v49 = vld [vmem:[%s10997_s3 + $0x13e0] sm:$0xff] }
 0x1d7   :  { %2126 = vmatpush.msrb.mxu2 %v5241_v57  ;;  %2071 = vmatpush.msrb.mxu1 %v5188_v60  ;;  %v5309_v47 = vld [vmem:[%s10997_s3 + $0x1508] sm:$0xff]  ;;  %v5256_v57 = vld [vmem:[%s10997_s3 + $0x1370] sm:$0xff] }
 0x1d8   :  { %2091 = vmatpush.msrb.mxu3 %v5204_v61  ;;  %2107 = vmatpush.msrb.mxu0 %v5224_v4  ;;  %v5306_v60 = vld [vmem:[%s10997_s3 + $0x14f0] sm:$0xff]  ;;  %v5267_v4 = vld [vmem:[%s10997_s3 + $0x13c8] sm:$0xff] }
 0x1d9   :  { %2127 = vmatpush.msrb.mxu2 %v5240_v51  ;;  %2072 = vmatpush.msrb.mxu1 %v5187_v6  ;;  %v2043_v61 = vld [vmem:[#allocation1 + $0x9] sm:$0xff] }
 0x1da   :  { %2092 = vmatpush.msrb.mxu3 %v5203_v5  ;;  %2108 = vmatpush.msrb.mxu0 %v5223_v7  ;;  %v1264_v14 = vpop.f32.mrf.mxu0  ;;  %v5289_v51 = vld [vmem:[%s10997_s3 + $0x1468] sm:$0xff]  ;;  %v5254_v5 = vld [vmem:[%s10997_s3 + $0x1360] sm:$0xff] }
 0x1db   :  { %2128 = vmatpush.msrb.mxu2 %v5239_v8  ;;  %2073 = vmatpush.msrb.mxu1 %v5186_v9  ;;  %v5305_v6 = vld [vmem:[%s10997_s3 + $0x14e8] sm:$0xff]  ;;  %v5266_v7 = vld [vmem:[%s10997_s3 + $0x13c0] sm:$0xff] }
 0x1dc   :  { %2093 = vmatpush.msrb.mxu3 %v5202_v10  ;;  %v1284_v17 = vpop.f32.mrf.mxu2  ;;  %2109 = vmatpush.msrb.mxu0 %v5222_v11  ;;  %v5288_v8 = vld [vmem:[%s10997_s3 + $0x1460] sm:$0xff] }
 0x1dd   :  { %2129 = vmatpush.msrb.mxu2 %v5238_v12  ;;  %v1285_v20 = vadd.f32 %v1284_v17, %v1264_v14  ;;  %2138 = vmatpush.msra.mxu1 %v5265_v13  ;;  %v5304_v9 = vld [vmem:[%s10997_s3 + $0x14e0] sm:$0xff]  ;;  %v5327_v12 = vld [vmem:[%s10997_s3 + $0x1598] sm:$0xff]  ;;  %v5326_v17 = vld [vmem:[%s10997_s3 + $0x1590] sm:$0xff] }
 0x1de   :  { %5278 = vmatpush.msk.msra.mxu3 %vm549_vm2, %v5277_v44  ;;  %v1304_v23 = vpop.f32.mrf.mxu3  ;;  %2110 = vmatpush.msrb.mxu0 %v5221_v15  ;;  %v2180_v10 = vld [vmem:[#allocation4 + $0x7] ss:$8 sm:$0xf] }
 0x1df   :  { %2130 = vmatpush.msrb.mxu2 %v5237_v16  ;;  %v1305_v26 = vadd.f32 %v1304_v23, %v1285_v20  ;;  %2139 = vmatpush.msra.mxu1 %v5264_v18  ;;  %v2042_v11 = vld [vmem:[#allocation1] sm:$0xff]  ;;  %v5253_v13 = vld [vmem:[%s10997_s3 + $0x1358] sm:$0xff]  ;;  %v2181_v15 = vld [vmem:[#allocation4 + $0x7] ss:$8 sm:$0x30] }
 0x1e0   :  { %2163 = vmatpush.msra.mxu3 %v5276_v19  ;;  %2111 = vmatpush.msrb.mxu0 %v5220_v21  ;;  %v2045_v44 = vld [vmem:[#allocation1 + $0x1b] sm:$0xff]  ;;  %v2044_v18 = vld [vmem:[#allocation1 + $0x12] sm:$0xff]  ;;  %v2182_v19 = vor.u32 %v2181_v15, %v2180_v10  ;;  %v2046_v21 = vld [vmem:[#allocation1 + $0x24] sm:$0xff] }
 0x1e1   :  { %2131 = vmatpush.msrb.mxu2 %v5236_v22  ;;  %2140 = vmatpush.msra.mxu1 %v5263_v24  ;;  %v1324_v33 = vpop.f32.mrf.mxu1  ;;  %v5287_v14 = vld [vmem:[%s10997_s3 + $0x1458] sm:$0xff]  ;;  %v2047_v20 = vld [vmem:[#allocation1 + $0x2d] sm:$0xff]  ;;  %v5356_v15 = vld [vmem:[%s10997_s3 + $0x1680] sm:$0xff] }
 0x1e2   :  { %2164 = vmatpush.msra.mxu3 %v5275_v25  ;;  %2112 = vmatpush.msrb.mxu0 %v5219_v27  ;;  %v1325_v36 = vadd.f32 %v1324_v33, %v1305_v26  ;;  %v5303_v16 = vld [vmem:[%s10997_s3 + $0x14d8] sm:$0xff]  ;;  %v5252_v23 = vld [vmem:[%s10997_s3 + $0x1350] sm:$0xff]  ;;  %2302 = vst [vmem:[#allocation1] ss:$9 sm:$0xff] %v2182_v19  ;;  %v5325_v27 = vld [vmem:[%s10997_s3 + $0x1588] sm:$0xff] }
 0x1e3   :  { %2132 = vmatpush.msrb.mxu2 %v5235_v28  ;;  %2141 = vmatpush.msra.mxu1 %v5262_v29  ;;  %v2184_v22 = vld [vmem:[#allocation4 + $0x67] ss:$8 sm:$0xf] }
 0x1e4   :  { %2165 = vmatpush.msra.mxu3 %v5274_v30  ;;  %2113 = vmatpush.msrb.mxu0 %v5218_v31  ;;  %v1344_v0 = vpop.f32.mrf.mxu0  ;;  %v5286_v24 = vld [vmem:[%s10997_s3 + $0x1450] sm:$0xff]  ;;  %v5251_v28 = vld [vmem:[%s10997_s3 + $0x1348] sm:$0xff]  ;;  %v5355_v19 = vld [vmem:[%s10997_s3 + $0x1678] sm:$0xff] }
 0x1e5   :  { %2133 = vmatpush.msrb.mxu2 %v5234_v32  ;;  %v1364_v1 = vpop.f32.mrf.mxu2  ;;  %2142 = vmatpush.msra.mxu1 %v5261_v34  ;;  %v1345_v41 = vadd.f32 %v1344_v0, %v1325_v36  ;;  %v5302_v25 = vld [vmem:[%s10997_s3 + $0x14d0] sm:$0xff]  ;;  %v5285_v29 = vld [vmem:[%s10997_s3 + $0x1448] sm:$0xff]  ;;  %v5324_v32 = vld [vmem:[%s10997_s3 + $0x1580] sm:$0xff] }
 0x1e6   :  { %2166 = vmatpush.msra.mxu3 %v5273_v35  ;;  %2329 = vmatpush.msra.mxu0 %v5295_v37  ;;  %v2185_v26 = vld [vmem:[#allocation4 + $0x67] ss:$8 sm:$0x30]  ;;  %v5250_v34 = vld [vmem:[%s10997_s3 + $0x1340] sm:$0xff]  ;;  %v5323_v37 = vld [vmem:[%s10997_s3 + $0x1578] sm:$0xff] }
 0x1e7   :  { %2349 = vmatpush.msra.mxu2 %v5311_v38  ;;  %2143 = vmatpush.msra.mxu1 %v5260_v39  ;;  %v1365_v45 = vadd.f32 %v1364_v1, %v1345_v41  ;;  %v2186_v30 = vor.u32 %v2185_v26, %v2184_v22  ;;  %v5301_v31 = vld [vmem:[%s10997_s3 + $0x14c8] sm:$0xff]  ;;  %v5284_v35 = vld [vmem:[%s10997_s3 + $0x1440] sm:$0xff]  ;;  %v5343_v38 = vld [vmem:[%s10997_s3 + $0x1618] sm:$0xff] }
 0x1e8   :  { %2167 = vmatpush.msra.mxu3 %v5272_v40  ;;  %2330 = vmatpush.msra.mxu0 %v5294_v2  ;;  %v2188_v33 = vld [vmem:[#allocation4 + $0xc7] ss:$8 sm:$0xf] }
 0x1e9   :  { %2350 = vmatpush.msra.mxu2 %v5310_v3  ;;  %2144 = vmatpush.msra.mxu1 %v5259_v42  ;;  %v8404_v54 = vadd.f32 %v1365_v45, %v8141_v62  ;;  %v5307_v62 = vld [vmem:[%s10997_s3 + $0x14f8] sm:$0xff]  ;;  %v5300_v36 = vld [vmem:[%s10997_s3 + $0x14c0] sm:$0xff]  ;;  %2304 = vst [vmem:[#allocation1 + $0x1] ss:$9 sm:$0xff] %v2186_v30  ;;  %v5317_v10 = vld [vmem:[%s10997_s3 + $0x1548] sm:$0xff] }
 0x1ea   :  { %2168 = vmatpush.msra.mxu3 %v5271_v43  ;;  %2331 = vmatpush.msra.mxu0 %v5293_v46  ;;  %v2189_v39 = vld [vmem:[#allocation4 + $0xc7] ss:$8 sm:$0x30]  ;;  %v5283_v0 = vld [vmem:[%s10997_s3 + $0x1438] sm:$0xff]  ;;  %v5332_v30 = vld [vmem:[%s10997_s3 + $0x15c0] sm:$0xff] }
 0x1eb   :  { %2351 = vmatpush.msra.mxu2 %v5309_v47  ;;  %2145 = vmatpush.msra.mxu1 %v5258_v48  ;;  %v2192_v40 = vld [vmem:[#allocation4 + $0x127] ss:$8 sm:$0xf]  ;;  %v2190_v1 = vor.u32 %v2189_v39, %v2188_v33 }
 0x1ec   :  { %2169 = vmatpush.msra.mxu3 %v5270_v49  ;;  %2332 = vmatpush.msra.mxu0 %v5292_v52  ;;  %v2193_v2 = vld [vmem:[#allocation4 + $0x127] ss:$8 sm:$0x30]  ;;  %v5299_v46 = vld [vmem:[%s10997_s3 + $0x14b8] sm:$0xff] }
 0x1ed   :  { %2352 = vmatpush.msra.mxu2 %v5308_v53  ;;  %2146 = vmatpush.msra.mxu1 %v5257_v55  ;;  %v2196_v3 = vld [vmem:[#allocation4 + $0x187] ss:$8 sm:$0xf]  ;;  %v2194_v41 = vor.u32 %v2193_v2, %v2192_v40  ;;  %2306 = vst [vmem:[#allocation1 + $0x2] ss:$9 sm:$0xff] %v2190_v1 }
 0x1ee   :  { %2170 = vmatpush.msra.mxu3 %v5269_v56  ;;  %2333 = vmatpush.msra.mxu0 %v5291_v50  ;;  %v2197_v42 = vld [vmem:[#allocation4 + $0x187] ss:$8 sm:$0x30]  ;;  %v5481_v33 = vld [vmem:[%s10997_s3 + $0x1a58] sm:$0xff] }
 0x1ef   :  { %2353 = vmatpush.msra.mxu2 %v5307_v62  ;;  %2147 = vmatpush.msra.mxu1 %v5256_v57  ;;  %v2200_v43 = vld [vmem:[#allocation4 + $0x1e7] ss:$8 sm:$0xf]  ;;  %v2198_v47 = vor.u32 %v2197_v42, %v2196_v3  ;;  %2308 = vst [vmem:[#allocation1 + $0x3] ss:$9 sm:$0xff] %v2194_v41 }
 0x1f0   :  { %2171 = vmatpush.msra.mxu3 %v5268_v58  ;;  %2334 = vmatpush.msra.mxu0 %v5290_v59  ;;  %v2201_v45 = vld [vmem:[#allocation4 + $0x1e7] ss:$8 sm:$0x30]  ;;  %v5320_v58 = vld [vmem:[%s10997_s3 + $0x1560] sm:$0xff] }
 0x1f1   :  { %2354 = vmatpush.msra.mxu2 %v5306_v60  ;;  %2094 = vmatmul.f32.vlgmr.msrb.gmra.mxu3 %v2043_v61  ;;  %v5322_v48 = vld [vmem:[%s10997_s3 + $0x1570] sm:$0xff]  ;;  %v2202_v52 = vor.u32 %v2201_v45, %v2200_v43  ;;  %2310 = vst [vmem:[#allocation1 + $0x4] ss:$9 sm:$0xff] %v2198_v47  ;;  %v5321_v56 = vld [vmem:[%s10997_s3 + $0x1568] sm:$0xff]  ;;  %v5340_v59 = vld [vmem:[%s10997_s3 + $0x1600] sm:$0xff] }
 0x1f2   :  { %2148 = vmatpush.msra.mxu1 %v5255_v63  ;;  %2172 = vmatpush.msra.mxu3 %v5267_v4  ;;  %v5342_v49 = vld [vmem:[%s10997_s3 + $0x1610] sm:$0xff]  ;;  %v5341_v50 = vld [vmem:[%s10997_s3 + $0x1608] sm:$0xff]  ;;  %v5280_v60 = vld [vmem:[%s10997_s3 + $0x1420] sm:$0xff] }
 0x1f3   :  { %2335 = vmatpush.msra.mxu0 %v5289_v51  ;;  %2355 = vmatpush.msra.mxu2 %v5305_v6  ;;  %v5282_v53 = vld [vmem:[%s10997_s3 + $0x1430] sm:$0xff]  ;;  %2312 = vst [vmem:[#allocation1 + $0x5] ss:$9 sm:$0xff] %v2202_v52  ;;  %v5281_v62 = vld [vmem:[%s10997_s3 + $0x1428] sm:$0xff]  ;;  %v5296_v61 = vld [vmem:[%s10997_s3 + $0x14a0] sm:$0xff] }
 0x1f4   :  { %2149 = vmatpush.msra.mxu1 %v5254_v5  ;;  %2173 = vmatpush.msra.mxu3 %v5266_v7  ;;  %v5298_v55 = vld [vmem:[%s10997_s3 + $0x14b0] sm:$0xff]  ;;  %v5297_v57 = vld [vmem:[%s10997_s3 + $0x14a8] sm:$0xff]  ;;  %v5319_v63 = vld [vmem:[%s10997_s3 + $0x1558] sm:$0xff] }
 0x1f5   :  { %2336 = vmatpush.msra.mxu0 %v5288_v8  ;;  %2356 = vmatpush.msra.mxu2 %v5304_v9  ;;  %v5339_v4 = vld [vmem:[%s10997_s3 + $0x15f8] sm:$0xff]  ;;  %v5318_v5 = vld [vmem:[%s10997_s3 + $0x1550] sm:$0xff]  ;;  %v5333_v26 = vld [vmem:[%s10997_s3 + $0x15c8] sm:$0xff] }
 0x1f6   :  { %2074 = vmatmul.f32.vlgmr.msrb.gmra.mxu1 %v2042_v11  ;;  %2134 = vmatmul.f32.vlgmr.msrb.gmra.mxu2 %v2045_v44  ;;  %v5359_v51 = vld [vmem:[%s10997_s3 + $0x1698] sm:$0xff]  ;;  %v5338_v7 = vld [vmem:[%s10997_s3 + $0x15f0] sm:$0xff]  ;;  %v5337_v11 = vld [vmem:[%s10997_s3 + $0x15e8] sm:$0xff] }
 0x1f7   :  { %2369 = vmatpush.msrb.mxu3 %v5327_v12  ;;  %2150 = vmatpush.msra.mxu1 %v5253_v13  ;;  %v5371_v6 = vld [vmem:[%s10997_s3 + $0x16f8] sm:$0x1]  ;;  %v5358_v8 = vld [vmem:[%s10997_s3 + $0x1690] sm:$0xff]  ;;  %v5357_v12 = vld [vmem:[%s10997_s3 + $0x1688] sm:$0xff] }
 0x1f8   :  { %2337 = vmatpush.msra.mxu0 %v5287_v14  ;;  %2357 = vmatpush.msra.mxu2 %v5303_v16  ;;  %v5370_v9 = vld [vmem:[%s10997_s3 + $0x16f0] sm:$0xff]  ;;  %v5369_v13 = vld [vmem:[%s10997_s3 + $0x16e8] sm:$0xff]  ;;  %v5316_v44 = vld [vmem:[%s10997_s3 + $0x1540] sm:$0xff] }
 0x1f9   :  { %2370 = vmatpush.msrb.mxu3 %v5326_v17  ;;  %2151 = vmatpush.msra.mxu1 %v5252_v23  ;;  %v5336_v14 = vld [vmem:[%s10997_s3 + $0x15e0] sm:$0xff]  ;;  %v5315_v17 = vld [vmem:[%s10997_s3 + $0x1538] sm:$0xff]  ;;  %v5334_v22 = vld [vmem:[%s10997_s3 + $0x15d0] sm:$0xff] }
 0x1fa   :  { %2338 = vmatpush.msra.mxu0 %v5286_v24  ;;  %2358 = vmatpush.msra.mxu2 %v5302_v25  ;;  %v5368_v16 = vld [vmem:[%s10997_s3 + $0x16e0] sm:$0xff]  ;;  %v5354_v23 = vld [vmem:[%s10997_s3 + $0x1670] sm:$0xff]  ;;  %v5313_v25 = vld [vmem:[%s10997_s3 + $0x1528] sm:$0xff] }
 0x1fb   :  { %2114 = vmatmul.f32.vlgmr.msrb.gmra.mxu0 %v2044_v18  ;;  %5279 = vmatmul.msk.f32.vlgmr.msra.gmra.mxu3 %vm252_vm1, %v2047_v20  ;;  %v5335_v18 = vld [vmem:[%s10997_s3 + $0x15d8] sm:$0xff]  ;;  %v5366_v24 = vld [vmem:[%s10997_s3 + $0x16d0] sm:$0xff]  ;;  %v5479_v3 = vld [vmem:[%s10997_s3 + $0x1a48] sm:$0xff] }
 0x1fc   :  { %2152 = vmatpush.msra.mxu1 %v5251_v28  ;;  %2371 = vmatpush.msrb.mxu3 %v5325_v27  ;;  %v5367_v20 = vld [vmem:[%s10997_s3 + $0x16d8] sm:$0xff]  ;;  %v5353_v27 = vld [vmem:[%s10997_s3 + $0x1668] sm:$0xff]  ;;  %v5330_v39 = vld [vmem:[%s10997_s3 + $0x15b0] sm:$0xff] }
 0x1fd   :  { %2339 = vmatpush.msra.mxu0 %v5285_v29  ;;  %2359 = vmatpush.msra.mxu2 %v5301_v31  ;;  %v5365_v28 = vld [vmem:[%s10997_s3 + $0x16c8] sm:$0xff]  ;;  %v5312_v29 = vld [vmem:[%s10997_s3 + $0x1520] sm:$0xff]  ;;  %v5350_v40 = vld [vmem:[%s10997_s3 + $0x1650] sm:$0xff] }
 0x1fe   :  { %2153 = vmatpush.msra.mxu1 %v5250_v34  ;;  %2372 = vmatpush.msrb.mxu3 %v5324_v32  ;;  %v5352_v31 = vld [vmem:[%s10997_s3 + $0x1660] sm:$0xff]  ;;  %v5331_v34 = vld [vmem:[%s10997_s3 + $0x15b8] sm:$0xff]  ;;  %v2314_v2 = vld [vmem:[#allocation1 + $0x9] sm:$0xff] }
 0x1ff   :  { %2340 = vmatpush.msra.mxu0 %v5284_v35  ;;  %2360 = vmatpush.msra.mxu2 %v5300_v36  ;;  %v5364_v32 = vld [vmem:[%s10997_s3 + $0x16c0] sm:$0xff]  ;;  %v5351_v35 = vld [vmem:[%s10997_s3 + $0x1658] sm:$0xff]  ;;  %v5329_v42 = vld [vmem:[%s10997_s3 + $0x15a8] sm:$0xff] }
 0x200   :  { %2154 = vmatmul.f32.vlgmr.msra.gmra.mxu1 %v2046_v21  ;;  %2373 = vmatpush.msrb.mxu3 %v5323_v37  ;;  %v5314_v21 = vld [vmem:[%s10997_s3 + $0x1530] sm:$0xff]  ;;  %v5363_v36 = vld [vmem:[%s10997_s3 + $0x16b8] sm:$0xff]  ;;  %v5349_v43 = vld [vmem:[%s10997_s3 + $0x1648] sm:$0xff] }
 0x201   :  { %2389 = vmatpush.msrb.mxu1 %v5343_v38  ;;  %2341 = vmatpush.msra.mxu0 %v5283_v0  ;;  %v5480_v38 = vld [vmem:[%s10997_s3 + $0x1a50] sm:$0xff]  ;;  %v5478_v45 = vld [vmem:[%s10997_s3 + $0x1a40] sm:$0xff] }
 0x202   :  { %2361 = vmatpush.msra.mxu2 %v5299_v46  ;;  %2374 = vmatpush.msrb.mxu3 %v5322_v48  ;;  %v5362_v0 = vld [vmem:[%s10997_s3 + $0x16b0] sm:$0xff]  ;;  %v5361_v46 = vld [vmem:[%s10997_s3 + $0x16a8] sm:$0xff]  ;;  %v5328_v48 = vld [vmem:[%s10997_s3 + $0x15a0] sm:$0xff] }
 0x203   :  { %2390 = vmatpush.msrb.mxu1 %v5342_v49  ;;  %2342 = vmatpush.msra.mxu0 %v5282_v53  ;;  %v2315_v47 = vld [vmem:[#allocation1 + $0x12] sm:$0xff]  ;;  %v5348_v49 = vld [vmem:[%s10997_s3 + $0x1640] sm:$0xff] }
 0x204   :  { %2362 = vmatpush.msra.mxu2 %v5298_v55  ;;  %2375 = vmatpush.msrb.mxu3 %v5321_v56  ;;  %v5360_v52 = vld [vmem:[%s10997_s3 + $0x16a0] sm:$0xff]  ;;  %v5477_v56 = vld [vmem:[%s10997_s3 + $0x1a38] sm:$0xff] }
 0x205   :  { %2391 = vmatpush.msrb.mxu1 %v5341_v50  ;;  %2343 = vmatpush.msra.mxu0 %v5281_v62  ;;  %v2313_v55 = vld [vmem:[#allocation1] sm:$0xff]  ;;  %v5497_v62 = vld [vmem:[%s10997_s3 + $0x1ad8] sm:$0xff] }
 0x206   :  { %2363 = vmatpush.msra.mxu2 %v5297_v57  ;;  %2376 = vmatpush.msrb.mxu3 %v5320_v58  ;;  %v5513_v57 = vld [vmem:[%s10997_s3 + $0x1b58] sm:$0xff] }
 0x207   :  { %2392 = vmatpush.msrb.mxu1 %v5340_v59  ;;  %2344 = vmatpush.msra.mxu0 %v5280_v60  ;;  %v5347_v58 = vld [vmem:[%s10997_s3 + $0x1638] sm:$0xff]  ;;  %v5476_v59 = vld [vmem:[%s10997_s3 + $0x1a30] sm:$0xff] }
 0x208   :  { %2364 = vmatpush.msra.mxu2 %v5296_v61  ;;  %2377 = vmatpush.msrb.mxu3 %v5319_v63  ;;  %v5496_v61 = vld [vmem:[%s10997_s3 + $0x1ad0] sm:$0xff] }
 0x209   :  { %2393 = vmatpush.msrb.mxu1 %v5339_v4  ;;  %2409 = vmatpush.msrb.mxu0 %v5359_v51  ;;  %v5512_v63 = vld [vmem:[%s10997_s3 + $0x1b50] sm:$0xff] }
 0x20a   :  { %5372 = vmatpush.msk.msrb.mxu2 %vm549_vm2, %v5371_v6  ;;  %2378 = vmatpush.msrb.mxu3 %v5318_v5  ;;  %v5346_v6 = vld [vmem:[%s10997_s3 + $0x1630] sm:$0xff] }
 0x20b   :  { %2394 = vmatpush.msrb.mxu1 %v5338_v7  ;;  %2410 = vmatpush.msrb.mxu0 %v5358_v8  ;;  %v2318_v5 = vld [vmem:[#allocation1 + $0x2d] sm:$0xff] }
 0x20c   :  { %2434 = vmatpush.msrb.mxu2 %v5370_v9  ;;  %2379 = vmatpush.msrb.mxu3 %v5317_v10  ;;  %v5475_v7 = vld [vmem:[%s10997_s3 + $0x1a28] sm:$0xff] }
 0x20d   :  { %2395 = vmatpush.msrb.mxu1 %v5337_v11  ;;  %2411 = vmatpush.msrb.mxu0 %v5357_v12  ;;  %v5495_v8 = vld [vmem:[%s10997_s3 + $0x1ac8] sm:$0xff]  ;;  %v2316_v12 = vld [vmem:[#allocation1 + $0x1b] sm:$0xff] }
 0x20e   :  { %2435 = vmatpush.msrb.mxu2 %v5369_v13  ;;  %2380 = vmatpush.msrb.mxu3 %v5316_v44  ;;  %v5511_v10 = vld [vmem:[%s10997_s3 + $0x1b48] sm:$0xff]  ;;  %v5474_v13 = vld [vmem:[%s10997_s3 + $0x1a20] sm:$0xff] }
 0x20f   :  { %2396 = vmatpush.msrb.mxu1 %v5336_v14  ;;  %2412 = vmatpush.msrb.mxu0 %v5356_v15  ;;  %v5345_v11 = vld [vmem:[%s10997_s3 + $0x1628] sm:$0xff]  ;;  %v5494_v14 = vld [vmem:[%s10997_s3 + $0x1ac0] sm:$0xff] }
 0x210   :  { %2436 = vmatpush.msrb.mxu2 %v5368_v16  ;;  %2381 = vmatpush.msrb.mxu3 %v5315_v17  ;;  %v5510_v15 = vld [vmem:[%s10997_s3 + $0x1b40] sm:$0xff] }
 0x211   :  { %2397 = vmatpush.msrb.mxu1 %v5335_v18  ;;  %2413 = vmatpush.msrb.mxu0 %v5355_v19  ;;  %v5344_v18 = vld [vmem:[%s10997_s3 + $0x1620] sm:$0xff]  ;;  %v5473_v19 = vld [vmem:[%s10997_s3 + $0x1a18] sm:$0xff] }
 0x212   :  { %2437 = vmatpush.msrb.mxu2 %v5367_v20  ;;  %2382 = vmatpush.msrb.mxu3 %v5314_v21  ;;  %v2317_v20 = vld [vmem:[#allocation1 + $0x24] sm:$0xff]  ;;  %v5493_v21 = vld [vmem:[%s10997_s3 + $0x1ab8] sm:$0xff] }
 0x213   :  { %2398 = vmatpush.msrb.mxu1 %v5334_v22  ;;  %2414 = vmatpush.msrb.mxu0 %v5354_v23  ;;  %v5509_v23 = vld [vmem:[%s10997_s3 + $0x1b38] sm:$0xff] }
 0x214   :  { %2438 = vmatpush.msrb.mxu2 %v5366_v24  ;;  %2383 = vmatpush.msrb.mxu3 %v5313_v25  ;;  %v5529_v24 = vld [vmem:[%s10997_s3 + $0x1bd8] sm:$0xff]  ;;  %v5472_v25 = vld [vmem:[%s10997_s3 + $0x1a10] sm:$0xff] }
 0x215   :  { %2399 = vmatpush.msrb.mxu1 %v5333_v26  ;;  %2415 = vmatpush.msrb.mxu0 %v5353_v27  ;;  %v1672_v37 = vpop.f32.mrf.mxu1  ;;  %v5492_v26 = vld [vmem:[%s10997_s3 + $0x1ab0] sm:$0xff] }
 0x216   :  { %2439 = vmatpush.msrb.mxu2 %v5365_v28  ;;  %2384 = vmatpush.msrb.mxu3 %v5312_v29  ;;  %v5508_v28 = vld [vmem:[%s10997_s3 + $0x1b30] sm:$0xff] }
 0x217   :  { %2400 = vmatpush.msrb.mxu1 %v5332_v30  ;;  %2416 = vmatpush.msrb.mxu0 %v5352_v31  ;;  %v5528_v29 = vld [vmem:[%s10997_s3 + $0x1bd0] sm:$0xff]  ;;  %v5471_v31 = vld [vmem:[%s10997_s3 + $0x1a08] sm:$0xff] }
 0x218   :  { %2440 = vmatpush.msrb.mxu2 %v5364_v32  ;;  %2717 = vmatpush.msra.mxu3 %v5481_v33  ;;  %v1652_v1 = vpop.f32.mrf.mxu3  ;;  %v5491_v32 = vld [vmem:[%s10997_s3 + $0x1aa8] sm:$0xff] }
 0x219   :  { %2401 = vmatpush.msrb.mxu1 %v5331_v34  ;;  %2417 = vmatpush.msrb.mxu0 %v5351_v35  ;;  %v1673_v41 = vadd.f32 %v1672_v37, %v1652_v1  ;;  %v5507_v33 = vld [vmem:[%s10997_s3 + $0x1b28] sm:$0xff]  ;;  %v5470_v35 = vld [vmem:[%s10997_s3 + $0x1a00] sm:$0xff] }
 0x21a   :  { %2441 = vmatpush.msrb.mxu2 %v5363_v36  ;;  %2718 = vmatpush.msra.mxu3 %v5480_v38  ;;  %v5527_v34 = vld [vmem:[%s10997_s3 + $0x1bc8] sm:$0xff]  ;;  %v5490_v36 = vld [vmem:[%s10997_s3 + $0x1aa0] sm:$0xff] }
 0x21b   :  { %2402 = vmatpush.msrb.mxu1 %v5330_v39  ;;  %2418 = vmatpush.msrb.mxu0 %v5350_v40  ;;  %v2568_v37 = vld [vmem:[#allocation4 + $0x31] ss:$8 sm:$0xf] }
 0x21c   :  { %2442 = vmatpush.msrb.mxu2 %v5362_v0  ;;  %2719 = vmatpush.msra.mxu3 %v5479_v3  ;;  %v5506_v38 = vld [vmem:[%s10997_s3 + $0x1b20] sm:$0xff]  ;;  %v5469_v40 = vld [vmem:[%s10997_s3 + $0x19f8] sm:$0xff] }
 0x21d   :  { %2365 = vmatmul.f32.vlgmr.msra.gmra.mxu2 %v2314_v2  ;;  %2403 = vmatpush.msrb.mxu1 %v5329_v42  ;;  %v1692_v53 = vpop.f32.mrf.mxu2  ;;  %v5526_v39 = vld [vmem:[%s10997_s3 + $0x1bc0] sm:$0xff]  ;;  %v5489_v0 = vld [vmem:[%s10997_s3 + $0x1a98] sm:$0xff] }
 0x21e   :  { %2419 = vmatpush.msrb.mxu0 %v5349_v43  ;;  %2443 = vmatpush.msrb.mxu2 %v5361_v46  ;;  %v1693_v50 = vadd.f32 %v1692_v53, %v1673_v41  ;;  %v2569_v1 = vld [vmem:[#allocation4 + $0x31] ss:$8 sm:$0x30]  ;;  %v5468_v41 = vld [vmem:[%s10997_s3 + $0x19f0] sm:$0xff]  ;;  %v5523_v53 = vld [vmem:[%s10997_s3 + $0x1ba8] sm:$0xff] }
 0x21f   :  { %2385 = vmatmul.f32.vlgmr.msrb.gmra.mxu3 %v2315_v47  ;;  %2404 = vmatpush.msrb.mxu1 %v5328_v48  ;;  %v5505_v2 = vld [vmem:[%s10997_s3 + $0x1b18] sm:$0xff]  ;;  %v2570_v42 = vor.u32 %v2569_v1, %v2568_v37  ;;  %v5488_v43 = vld [vmem:[%s10997_s3 + $0x1a90] sm:$0xff]  ;;  %v5467_v48 = vld [vmem:[%s10997_s3 + $0x19e8] sm:$0xff] }
 0x220   :  { %2720 = vmatpush.msra.mxu3 %v5478_v45  ;;  %2420 = vmatpush.msrb.mxu0 %v5348_v49  ;;  %v5525_v3 = vld [vmem:[%s10997_s3 + $0x1bb8] sm:$0xff]  ;;  %v5504_v46 = vld [vmem:[%s10997_s3 + $0x1b10] sm:$0xff]  ;;  %v5487_v49 = vld [vmem:[%s10997_s3 + $0x1a88] sm:$0xff] }
 0x221   :  { %2444 = vmatpush.msrb.mxu2 %v5360_v52  ;;  %v1712_v60 = vpop.f32.mrf.mxu0  ;;  %2345 = vmatmul.f32.vlgmr.msra.gmra.mxu0 %v2313_v55  ;;  %v2572_v47 = vld [vmem:[#allocation4 + $0x91] ss:$8 sm:$0xf]  ;;  %2690 = vst [vmem:[#allocation1] ss:$9 sm:$0xff] %v2570_v42 }
 0x222   :  { %2721 = vmatpush.msra.mxu3 %v5477_v56  ;;  %v1713_v4 = vadd.f32 %v1712_v60, %v1693_v50  ;;  %v1732_v51 = vpop.f32.mrf.mxu3  ;;  %2737 = vmatpush.msra.mxu1 %v5497_v62  ;;  %v5524_v45 = vld [vmem:[%s10997_s3 + $0x1bb0] sm:$0xff]  ;;  %v5503_v52 = vld [vmem:[%s10997_s3 + $0x1b08] sm:$0xff]  ;;  %v2573_v55 = vld [vmem:[#allocation4 + $0x91] ss:$8 sm:$0x30] }
 0x223   :  { %2757 = vmatpush.msra.mxu2 %v5513_v57  ;;  %2421 = vmatpush.msrb.mxu0 %v5347_v58  ;;  %v5466_v56 = vld [vmem:[%s10997_s3 + $0x19e0] sm:$0xff]  ;;  %v2574_v57 = vor.u32 %v2573_v55, %v2572_v47  ;;  %v5516_v37 = vld [vmem:[%s10997_s3 + $0x1b70] sm:$0xff]  ;;  %v5385_v55 = vld [vmem:[%s10997_s3 + $0x1758] sm:$0xff] }
 0x224   :  { %2722 = vmatpush.msra.mxu3 %v5476_v59  ;;  %v1733_v9 = vadd.f32 %v1732_v51, %v1713_v4  ;;  %2738 = vmatpush.msra.mxu1 %v5496_v61  ;;  %v5486_v50 = vld [vmem:[%s10997_s3 + $0x1a80] sm:$0xff]  ;;  %v5545_v59 = vld [vmem:[%s10997_s3 + $0x1c58] sm:$0xff]  ;;  %v5544_v51 = vld [vmem:[%s10997_s3 + $0x1c50] sm:$0xff] }
 0x225   :  { %2758 = vmatpush.msra.mxu2 %v5512_v63  ;;  %2422 = vmatpush.msrb.mxu0 %v5346_v6  ;;  %v1752_v44 = vpop.f32.mrf.mxu1  ;;  %v5502_v62 = vld [vmem:[%s10997_s3 + $0x1b00] sm:$0xff]  ;;  %v5485_v61 = vld [vmem:[%s10997_s3 + $0x1a78] sm:$0xff]  ;;  %2692 = vst [vmem:[#allocation1 + $0x1] ss:$9 sm:$0xff] %v2574_v57  ;;  %v5484_v6 = vld [vmem:[%s10997_s3 + $0x1a70] sm:$0xff] }
 0x226   :  { %5373 = vmatmul.msk.f32.vlgmr.msrb.gmra.mxu2 %vm252_vm1, %v2318_v5  ;;  %2723 = vmatpush.msra.mxu3 %v5475_v7  ;;  %v1753_v16 = vadd.f32 %v1752_v44, %v1733_v9  ;;  %v1805_v17 = vpop.f32.mrf.mxu2  ;;  %v5522_v58 = vld [vmem:[%s10997_s3 + $0x1ba0] sm:$0xff]  ;;  %v5501_v63 = vld [vmem:[%s10997_s3 + $0x1af8] sm:$0xff]  ;;  %v5500_v9 = vld [vmem:[%s10997_s3 + $0x1af0] sm:$0xff] }
 0x227   :  { %2739 = vmatpush.msra.mxu1 %v5495_v8  ;;  %2759 = vmatpush.msra.mxu2 %v5511_v10  ;;  %v2576_v60 = vld [vmem:[#allocation4 + $0xf1] ss:$8 sm:$0xf]  ;;  %v2456_v47 = vld [vmem:[#allocation4 + $0x90] ss:$8 sm:$0x30] }
 0x228   :  { %2423 = vmatpush.msrb.mxu0 %v5345_v11  ;;  %2405 = vmatmul.f32.vlgmr.msrb.gmra.mxu1 %v2316_v12  ;;  %v1806_v22 = vadd.f32 %v1805_v17, %v1753_v16  ;;  %v5521_v4 = vld [vmem:[%s10997_s3 + $0x1b98] sm:$0xff]  ;;  %v5520_v16 = vld [vmem:[%s10997_s3 + $0x1b90] sm:$0xff]  ;;  %v5538_v1 = vld [vmem:[%s10997_s3 + $0x1c20] sm:$0xff] }
 0x229   :  { %2724 = vmatpush.msra.mxu3 %v5474_v13  ;;  %2740 = vmatpush.msra.mxu1 %v5494_v14  ;;  %v2577_v7 = vld [vmem:[#allocation4 + $0xf1] ss:$8 sm:$0x30] }
 0x22a   :  { %2760 = vmatpush.msra.mxu2 %v5510_v15  ;;  %2424 = vmatpush.msrb.mxu0 %v5344_v18  ;;  %v1825_v27 = vpop.f32.mrf.mxu0  ;;  %v2580_v8 = vld [vmem:[#allocation4 + $0x151] ss:$8 sm:$0xf]  ;;  %v2578_v11 = vor.u32 %v2577_v7, %v2576_v60  ;;  %v2464_v7 = vld [vmem:[#allocation4 + $0x150] ss:$8 sm:$0x30] }
 0x22b   :  { %2725 = vmatpush.msra.mxu3 %v5473_v19  ;;  %2425 = vmatmul.f32.vlgmr.msrb.gmra.mxu0 %v2317_v20  ;;  %v8769_v30 = vadd.f32 %v1825_v27, %v1806_v22  ;;  %v2581_v12 = vld [vmem:[#allocation4 + $0x151] ss:$8 sm:$0x30]  ;;  %v5543_v19 = vld [vmem:[%s10997_s3 + $0x1c48] sm:$0xff]  ;;  %v5536_v60 = vld [vmem:[%s10997_s3 + $0x1c10] sm:$0xff] }
 0x22c   :  { %2741 = vmatpush.msra.mxu1 %v5493_v21  ;;  %2761 = vmatpush.msra.mxu2 %v5509_v23  ;;  %v2584_v13 = vld [vmem:[#allocation4 + $0x1b1] ss:$8 sm:$0xf]  ;;  %v2582_v44 = vor.u32 %v2581_v12, %v2580_v8  ;;  %2694 = vst [vmem:[#allocation1 + $0x2] ss:$9 sm:$0xff] %v2578_v11 }
 0x22d   :  { %2777 = vmatpush.msra.mxu0 %v5529_v24  ;;  %2726 = vmatpush.msra.mxu3 %v5472_v25  ;;  %v2585_v14 = vld [vmem:[#allocation4 + $0x1b1] ss:$8 sm:$0x30]  ;;  %v5483_v20 = vld [vmem:[%s10997_s3 + $0x1a68] sm:$0xff] }
 0x22e   :  { %2742 = vmatpush.msra.mxu1 %v5492_v26  ;;  %2762 = vmatpush.msra.mxu2 %v5508_v28  ;;  %v2588_v15 = vld [vmem:[#allocation4 + $0x211] ss:$8 sm:$0xf]  ;;  %v2586_v17 = vor.u32 %v2585_v14, %v2584_v13  ;;  %2696 = vst [vmem:[#allocation1 + $0x3] ss:$9 sm:$0xff] %v2582_v44 }
 0x22f   :  { %2778 = vmatpush.msra.mxu0 %v5528_v29  ;;  %2727 = vmatpush.msra.mxu3 %v5471_v31  ;;  %v2589_v18 = vld [vmem:[#allocation4 + $0x211] ss:$8 sm:$0x30]  ;;  %v5499_v22 = vld [vmem:[%s10997_s3 + $0x1ae8] sm:$0xff]  ;;  %v5557_v31 = vld [vmem:[%s10997_s3 + $0x1cb8] sm:$0x1] }
 0x230   :  { %2743 = vmatpush.msra.mxu1 %v5491_v32  ;;  %2763 = vmatpush.msra.mxu2 %v5507_v33  ;;  %v2590_v21 = vor.u32 %v2589_v18, %v2588_v15  ;;  %v5519_v23 = vld [vmem:[%s10997_s3 + $0x1b88] sm:$0xff]  ;;  %2698 = vst [vmem:[#allocation1 + $0x4] ss:$9 sm:$0xff] %v2586_v17  ;;  %v5542_v24 = vld [vmem:[%s10997_s3 + $0x1c40] sm:$0xff]  ;;  %v5389_v32 = vld [vmem:[%s10997_s3 + $0x1778] sm:$0xff] }
 0x231   :  { %2779 = vmatpush.msra.mxu0 %v5527_v34  ;;  %2728 = vmatpush.msra.mxu3 %v5470_v35  ;;  %v5482_v25 = vld [vmem:[%s10997_s3 + $0x1a60] sm:$0xff]  ;;  %v5517_v33 = vld [vmem:[%s10997_s3 + $0x1b78] sm:$0xff]  ;;  %v5540_v34 = vld [vmem:[%s10997_s3 + $0x1c30] sm:$0xff] }
 0x232   :  { %2744 = vmatpush.msra.mxu1 %v5490_v36  ;;  %2764 = vmatpush.msra.mxu2 %v5506_v38  ;;  %2700 = vst [vmem:[#allocation1 + $0x5] ss:$9 sm:$0xff] %v2590_v21  ;;  %v5498_v27 = vld [vmem:[%s10997_s3 + $0x1ae0] sm:$0xff]  ;;  %v5556_v35 = vld [vmem:[%s10997_s3 + $0x1cb0] sm:$0xff]  ;;  %v5539_v38 = vld [vmem:[%s10997_s3 + $0x1c28] sm:$0xff] }
 0x233   :  { %2780 = vmatpush.msra.mxu0 %v5526_v39  ;;  %2729 = vmatpush.msra.mxu3 %v5469_v40  ;;  %v5518_v28 = vld [vmem:[%s10997_s3 + $0x1b80] sm:$0xff]  ;;  %v5388_v36 = vld [vmem:[%s10997_s3 + $0x1770] sm:$0xff]  ;;  %v5555_v39 = vld [vmem:[%s10997_s3 + $0x1ca8] sm:$0xff] }
 0x234   :  { %2745 = vmatpush.msra.mxu1 %v5489_v0  ;;  %2765 = vmatpush.msra.mxu2 %v5505_v2  ;;  %v5387_v40 = vld [vmem:[%s10997_s3 + $0x1768] sm:$0xff]  ;;  %v5554_v2 = vld [vmem:[%s10997_s3 + $0x1ca0] sm:$0xff]  ;;  %v5384_v15 = vld [vmem:[%s10997_s3 + $0x1750] sm:$0xff] }
 0x235   :  { %2781 = vmatpush.msra.mxu0 %v5525_v3  ;;  %2730 = vmatpush.msra.mxu3 %v5468_v41  ;;  %v5515_v0 = vld [vmem:[%s10997_s3 + $0x1b68] sm:$0xff]  ;;  %v2452_v41 = vld [vmem:[#allocation4 + $0x30] ss:$8 sm:$0x30] }
 0x236   :  { %2746 = vmatpush.msra.mxu1 %v5488_v43  ;;  %2766 = vmatpush.msra.mxu2 %v5504_v46  ;;  %v2451_v3 = vld [vmem:[#allocation4 + $0x30] ss:$8 sm:$0xf] }
 0x237   :  { %2782 = vmatpush.msra.mxu0 %v5524_v45  ;;  %2731 = vmatpush.msra.mxu3 %v5467_v48  ;;  %v5386_v42 = vld [vmem:[%s10997_s3 + $0x1760] sm:$0xff]  ;;  %v5537_v45 = vld [vmem:[%s10997_s3 + $0x1c18] sm:$0xff]  ;;  %v5535_v18 = vld [vmem:[%s10997_s3 + $0x1c08] sm:$0xff] }
 0x238   :  { %2747 = vmatpush.msra.mxu1 %v5487_v49  ;;  %2767 = vmatpush.msra.mxu2 %v5503_v52  ;;  %v1845_v5 = vpop.f32.mrf.mxu1  ;;  %v5514_v43 = vld [vmem:[%s10997_s3 + $0x1b60] sm:$0xff]  ;;  %v5553_v48 = vld [vmem:[%s10997_s3 + $0x1c98] sm:$0xff]  ;;  %v5383_v21 = vld [vmem:[%s10997_s3 + $0x1748] sm:$0xff] }
 0x239   :  { %2783 = vmatpush.msra.mxu0 %v5523_v53  ;;  %2732 = vmatpush.msra.mxu3 %v5466_v56  ;;  %v1846_v10 = vadd.f32 %v1845_v5, %v8769_v30  ;;  %v5541_v30 = vld [vmem:[%s10997_s3 + $0x1c38] sm:$0xff]  ;;  %v8947_v49 = vld [vmem:[#allocation1 + $0x2d] sm:$0xff] }
 0x23a   :  { %2748 = vmatpush.msra.mxu1 %v5486_v50  ;;  %2768 = vmatpush.msra.mxu2 %v5502_v62  ;;  %v2455_v46 = vld [vmem:[#allocation4 + $0x90] ss:$8 sm:$0xf] }
 0x23b   :  { %2784 = vmatpush.msra.mxu0 %v5522_v58  ;;  %2797 = vmatpush.msrb.mxu3 %v5545_v59  ;;  %v8949_v52 = vld [vmem:[#allocation1 + $0x12] sm:$0xff]  ;;  %v8957_v62 = vld [vmem:[#allocation1 + $0x24] sm:$0xff]  ;;  %v8959_v57 = vld [vmem:[#allocation1 + $0x1b] sm:$0xff]  ;;  %v2453_v58 = vor.u32 %v2452_v41, %v2451_v3 }
 0x23c   :  { %2749 = vmatpush.msra.mxu1 %v5485_v61  ;;  %2769 = vmatpush.msra.mxu2 %v5501_v63  ;;  %v2459_v53 = vld [vmem:[#allocation4 + $0xf0] ss:$8 sm:$0xf] }
 0x23d   :  { %2785 = vmatpush.msra.mxu0 %v5521_v4  ;;  %2798 = vmatpush.msrb.mxu3 %v5544_v51  ;;  %v5405_v56 = vld [vmem:[%s10997_s3 + $0x17f8] sm:$0xff]  ;;  %v5552_v61 = vld [vmem:[%s10997_s3 + $0x1c90] sm:$0xff]  ;;  %v8967_v4 = vld [vmem:[#allocation1] sm:$0xff] }
 0x23e   :  { %2750 = vmatpush.msra.mxu1 %v5484_v6  ;;  %2770 = vmatpush.msra.mxu2 %v5500_v9  ;;  %v2460_v59 = vld [vmem:[#allocation4 + $0xf0] ss:$8 sm:$0x30]  ;;  %v8969_v51 = vld [vmem:[#allocation1 + $0x9] sm:$0xff]  ;;  %v2457_v6 = vor.u32 %v2456_v47, %v2455_v46 }
 0x23f   :  { %2786 = vmatpush.msra.mxu0 %v5520_v16  ;;  %v1865_v26 = vpop.f32.mrf.mxu3  ;;  %2799 = vmatpush.msrb.mxu3 %v5543_v19  ;;  %v2463_v5 = vld [vmem:[#allocation4 + $0x150] ss:$8 sm:$0xf]  ;;  %v2461_v9 = vor.u32 %v2460_v59, %v2459_v53  ;;  %2843 = vst [vmem:[#allocation1] ss:$9 sm:$0xff] %v2453_v58 }
 0x240   :  { %2751 = vmatpush.msra.mxu1 %v5483_v20  ;;  %v1866_v29 = vadd.f32 %v1865_v26, %v1846_v10  ;;  %2771 = vmatpush.msra.mxu2 %v5499_v22  ;;  %v2467_v10 = vld [vmem:[#allocation4 + $0x1b0] ss:$8 sm:$0xf]  ;;  %v2465_v13 = vor.u32 %v2464_v7, %v2463_v5  ;;  %2845 = vst [vmem:[#allocation1 + $0x1] ss:$9 sm:$0xff] %v2457_v6 }
 0x241   :  { %2787 = vmatpush.msra.mxu0 %v5519_v23  ;;  %2800 = vmatpush.msrb.mxu3 %v5542_v24  ;;  %v2468_v11 = vld [vmem:[#allocation4 + $0x1b0] ss:$8 sm:$0x30]  ;;  %v5404_v16 = vld [vmem:[%s10997_s3 + $0x17f0] sm:$0xff]  ;;  %v5551_v19 = vld [vmem:[%s10997_s3 + $0x1c88] sm:$0xff] }
 0x242   :  { %2752 = vmatpush.msra.mxu1 %v5482_v25  ;;  %2772 = vmatpush.msra.mxu2 %v5498_v27  ;;  %v2471_v44 = vld [vmem:[#allocation4 + $0x210] ss:$8 sm:$0xf]  ;;  %v2469_v17 = vor.u32 %v2468_v11, %v2467_v10  ;;  %2847 = vst [vmem:[#allocation1 + $0x2] ss:$9 sm:$0xff] %v2461_v9 }
 0x243   :  { %2788 = vmatpush.msra.mxu0 %v5518_v28  ;;  %2801 = vmatpush.msrb.mxu3 %v5541_v30  ;;  %v2472_v14 = vld [vmem:[#allocation4 + $0x210] ss:$8 sm:$0x30]  ;;  %v5403_v22 = vld [vmem:[%s10997_s3 + $0x17e8] sm:$0xff]  ;;  %2849 = vst [vmem:[#allocation1 + $0x3] ss:$9 sm:$0xff] %v2465_v13 }
 0x244   :  { %5558 = vmatpush.msk.msrb.mxu1 %vm549_vm2, %v5557_v31  ;;  %2870 = vmatpush.msrb.mxu2 %v5389_v32  ;;  %v2473_v20 = vor.u32 %v2472_v14, %v2471_v44  ;;  %v5534_v23 = vld [vmem:[%s10997_s3 + $0x1c00] sm:$0xff]  ;;  %2851 = vst [vmem:[#allocation1 + $0x4] ss:$9 sm:$0xff] %v2469_v17  ;;  %v5533_v27 = vld [vmem:[%s10997_s3 + $0x1bf8] sm:$0xff]  ;;  %v5532_v31 = vld [vmem:[%s10997_s3 + $0x1bf0] sm:$0xff] }
 0x245   :  { %2789 = vmatpush.msra.mxu0 %v5517_v33  ;;  %2802 = vmatpush.msrb.mxu3 %v5540_v34  ;;  %v5550_v24 = vld [vmem:[%s10997_s3 + $0x1c80] sm:$0xff]  ;;  %v5549_v28 = vld [vmem:[%s10997_s3 + $0x1c78] sm:$0xff]  ;;  %v5548_v32 = vld [vmem:[%s10997_s3 + $0x1c70] sm:$0xff] }
 0x246   :  { %2822 = vmatpush.msrb.mxu1 %v5556_v35  ;;  %2871 = vmatpush.msrb.mxu2 %v5388_v36  ;;  %v5382_v25 = vld [vmem:[%s10997_s3 + $0x1740] sm:$0xff]  ;;  %2853 = vst [vmem:[#allocation1 + $0x5] ss:$9 sm:$0xff] %v2473_v20  ;;  %v5401_v30 = vld [vmem:[%s10997_s3 + $0x17d8] sm:$0xff]  ;;  %v5380_v33 = vld [vmem:[%s10997_s3 + $0x1730] sm:$0xff] }
 0x247   :  { %2790 = vmatpush.msra.mxu0 %v5516_v37  ;;  %2803 = vmatpush.msrb.mxu3 %v5539_v38  ;;  %v1885_v50 = vpop.f32.mrf.mxu2  ;;  %v5402_v26 = vld [vmem:[%s10997_s3 + $0x17e0] sm:$0xff]  ;;  %v5400_v34 = vld [vmem:[%s10997_s3 + $0x17d0] sm:$0xff]  ;;  %v5531_v35 = vld [vmem:[%s10997_s3 + $0x1be8] sm:$0xff] }
 0x248   :  { %2823 = vmatpush.msrb.mxu1 %v5555_v39  ;;  %2872 = vmatpush.msrb.mxu2 %v5387_v40  ;;  %v1886_v63 = vadd.f32 %v1885_v50, %v1866_v29  ;;  %v5381_v29 = vld [vmem:[%s10997_s3 + $0x1738] sm:$0xff]  ;;  %v5547_v36 = vld [vmem:[%s10997_s3 + $0x1c68] sm:$0xff]  ;;  %v5546_v39 = vld [vmem:[%s10997_s3 + $0x1c60] sm:$0xff] }
 0x249   :  { %2791 = vmatpush.msra.mxu0 %v5515_v0  ;;  %2804 = vmatpush.msrb.mxu3 %v5538_v1  ;;  %v5379_v37 = vld [vmem:[%s10997_s3 + $0x1728] sm:$0xff]  ;;  %v5530_v40 = vld [vmem:[%s10997_s3 + $0x1be0] sm:$0xff]  ;;  %v5437_v3 = vld [vmem:[%s10997_s3 + $0x18f8] sm:$0xff] }
 0x24a   :  { %2824 = vmatpush.msrb.mxu1 %v5554_v2  ;;  %v1905_v8 = vpop.f32.mrf.mxu0  ;;  %2873 = vmatpush.msrb.mxu2 %v5386_v42  ;;  %v5399_v38 = vld [vmem:[%s10997_s3 + $0x17c8] sm:$0xff]  ;;  %v5378_v0 = vld [vmem:[%s10997_s3 + $0x1720] sm:$0xff]  ;;  %v5421_v2 = vld [vmem:[%s10997_s3 + $0x1878] sm:$0xff] }
 0x24b   :  { %2792 = vmatpush.msra.mxu0 %v5514_v43  ;;  %v8971_v12 = vadd.f32 %v1905_v8, %v1886_v63  ;;  %2805 = vmatpush.msrb.mxu3 %v5537_v45  ;;  %v5398_v1 = vld [vmem:[%s10997_s3 + $0x17c0] sm:$0xff]  ;;  %v5377_v41 = vld [vmem:[%s10997_s3 + $0x1718] sm:$0xff]  ;;  %v5420_v43 = vld [vmem:[%s10997_s3 + $0x1870] sm:$0xff] }
 0x24c   :  { %2825 = vmatpush.msrb.mxu1 %v5553_v48  ;;  %2874 = vmatpush.msrb.mxu2 %v5385_v55  ;;  %v5397_v42 = vld [vmem:[%s10997_s3 + $0x17b8] sm:$0xff]  ;;  %v5436_v46 = vld [vmem:[%s10997_s3 + $0x18f0] sm:$0xff]  ;;  %v5419_v48 = vld [vmem:[%s10997_s3 + $0x1868] sm:$0xff] }
 0x24d   :  { %2890 = vmatpush.msrb.mxu0 %v5405_v56  ;;  %2806 = vmatpush.msrb.mxu3 %v5536_v60  ;;  %v5376_v47 = vld [vmem:[%s10997_s3 + $0x1710] sm:$0xff]  ;;  %v5435_v53 = vld [vmem:[%s10997_s3 + $0x18e8] sm:$0xff]  ;;  %v5434_v50 = vld [vmem:[%s10997_s3 + $0x18e0] sm:$0xff] }
 0x24e   :  { %2826 = vmatpush.msrb.mxu1 %v5552_v61  ;;  %2875 = vmatpush.msrb.mxu2 %v5384_v15  ;;  %v5396_v45 = vld [vmem:[%s10997_s3 + $0x17b0] sm:$0xff]  ;;  %v5375_v55 = vld [vmem:[%s10997_s3 + $0x1708] sm:$0xff]  ;;  %v5374_v58 = vld [vmem:[%s10997_s3 + $0x1700] sm:$0xff] }
 0x24f   :  { %2891 = vmatpush.msrb.mxu0 %v5404_v16  ;;  %2807 = vmatpush.msrb.mxu3 %v5535_v18  ;;  %v5395_v56 = vld [vmem:[%s10997_s3 + $0x17a8] sm:$0xff]  ;;  %v5394_v59 = vld [vmem:[%s10997_s3 + $0x17a0] sm:$0xff]  ;;  %v5417_v60 = vld [vmem:[%s10997_s3 + $0x1858] sm:$0xff] }
 0x250   :  { %2827 = vmatpush.msrb.mxu1 %v5551_v19  ;;  %2876 = vmatpush.msrb.mxu2 %v5383_v21  ;;  %v5433_v61 = vld [vmem:[%s10997_s3 + $0x18d8] sm:$0xff]  ;;  %v5432_v6 = vld [vmem:[%s10997_s3 + $0x18d0] sm:$0xff]  ;;  %v5415_v8 = vld [vmem:[%s10997_s3 + $0x1848] sm:$0xff] }
 0x251   :  { %2892 = vmatpush.msrb.mxu0 %v5403_v22  ;;  %2808 = vmatpush.msrb.mxu3 %v5534_v23  ;;  %v5453_v63 = vld [vmem:[%s10997_s3 + $0x1978] sm:$0xff]  ;;  %v5452_v5 = vld [vmem:[%s10997_s3 + $0x1970] sm:$0xff]  ;;  %v5431_v9 = vld [vmem:[%s10997_s3 + $0x18c8] sm:$0xff] }
 0x252   :  { %2828 = vmatpush.msrb.mxu1 %v5550_v24  ;;  %2877 = vmatpush.msrb.mxu2 %v5382_v25  ;;  %v5392_v7 = vld [vmem:[%s10997_s3 + $0x1790] sm:$0xff]  ;;  %v5451_v10 = vld [vmem:[%s10997_s3 + $0x1968] sm:$0xff]  ;;  %v5414_v13 = vld [vmem:[%s10997_s3 + $0x1840] sm:$0xff] }
 0x253   :  { %2893 = vmatpush.msrb.mxu0 %v5402_v26  ;;  %2809 = vmatpush.msrb.mxu3 %v5533_v27  ;;  %v5391_v11 = vld [vmem:[%s10997_s3 + $0x1788] sm:$0xff]  ;;  %v5450_v44 = vld [vmem:[%s10997_s3 + $0x1960] sm:$0xff]  ;;  %v5429_v15 = vld [vmem:[%s10997_s3 + $0x18b8] sm:$0xff] }
 0x254   :  { %2829 = vmatpush.msrb.mxu1 %v5549_v28  ;;  %2878 = vmatpush.msrb.mxu2 %v5381_v29  ;;  %v5390_v14 = vld [vmem:[%s10997_s3 + $0x1780] sm:$0xff]  ;;  %v5413_v16 = vld [vmem:[%s10997_s3 + $0x1838] sm:$0xff]  ;;  %v5428_v19 = vld [vmem:[%s10997_s3 + $0x18b0] sm:$0xff] }
 0x255   :  { %2894 = vmatpush.msrb.mxu0 %v5401_v30  ;;  %2810 = vmatpush.msrb.mxu3 %v5532_v31  ;;  %v5449_v17 = vld [vmem:[%s10997_s3 + $0x1958] sm:$0xff]  ;;  %v5412_v20 = vld [vmem:[%s10997_s3 + $0x1830] sm:$0xff]  ;;  %v5411_v23 = vld [vmem:[%s10997_s3 + $0x1828] sm:$0xff] }
 0x256   :  { %2830 = vmatpush.msrb.mxu1 %v5548_v32  ;;  %2879 = vmatpush.msrb.mxu2 %v5380_v33  ;;  %v5465_v18 = vld [vmem:[%s10997_s3 + $0x19d8] sm:$0x1]  ;;  %v5448_v21 = vld [vmem:[%s10997_s3 + $0x1950] sm:$0xff]  ;;  %v5427_v24 = vld [vmem:[%s10997_s3 + $0x18a8] sm:$0xff] }
 0x257   :  { %2895 = vmatpush.msrb.mxu0 %v5400_v34  ;;  %2811 = vmatpush.msrb.mxu3 %v5531_v35  ;;  %v5464_v22 = vld [vmem:[%s10997_s3 + $0x19d0] sm:$0xff]  ;;  %v5447_v25 = vld [vmem:[%s10997_s3 + $0x1948] sm:$0xff]  ;;  %v5410_v27 = vld [vmem:[%s10997_s3 + $0x1820] sm:$0xff] }
 0x258   :  { %2831 = vmatpush.msrb.mxu1 %v5547_v36  ;;  %2880 = vmatpush.msrb.mxu2 %v5379_v37  ;;  %v5463_v26 = vld [vmem:[%s10997_s3 + $0x19c8] sm:$0xff]  ;;  %v5426_v28 = vld [vmem:[%s10997_s3 + $0x18a0] sm:$0xff]  ;;  %v5409_v32 = vld [vmem:[%s10997_s3 + $0x1818] sm:$0xff] }
 0x259   :  { %2896 = vmatpush.msrb.mxu0 %v5399_v38  ;;  %2733 = vmatmul.f32.vlgmr.msra.gmra.mxu3 %v8967_v4  ;;  %v5393_v4 = vld [vmem:[%s10997_s3 + $0x1798] sm:$0xff]  ;;  %v5446_v30 = vld [vmem:[%s10997_s3 + $0x1940] sm:$0xff]  ;;  %v5408_v38 = vld [vmem:[%s10997_s3 + $0x1810] sm:$0xff] }
 0x25a   :  { %2832 = vmatpush.msrb.mxu1 %v5546_v39  ;;  %2812 = vmatpush.msrb.mxu3 %v5530_v40  ;;  %v5462_v31 = vld [vmem:[%s10997_s3 + $0x19c0] sm:$0xff]  ;;  %v5425_v33 = vld [vmem:[%s10997_s3 + $0x1898] sm:$0xff]  ;;  %v5424_v39 = vld [vmem:[%s10997_s3 + $0x1890] sm:$0xff] }
 0x25b   :  { %2881 = vmatpush.msrb.mxu2 %v5378_v0  ;;  %2897 = vmatpush.msrb.mxu0 %v5398_v1  ;;  %v5445_v35 = vld [vmem:[%s10997_s3 + $0x1938] sm:$0xff]  ;;  %v5444_v40 = vld [vmem:[%s10997_s3 + $0x1930] sm:$0xff] }
 0x25c   :  { %2753 = vmatmul.f32.vlgmr.msra.gmra.mxu1 %v8969_v51  ;;  %2930 = vmatpush.msra.mxu3 %v5437_v3  ;;  %v5416_v51 = vld [vmem:[%s10997_s3 + $0x1850] sm:$0xff]  ;;  %v5461_v36 = vld [vmem:[%s10997_s3 + $0x19b8] sm:$0xff]  ;;  %v5423_v3 = vld [vmem:[%s10997_s3 + $0x1888] sm:$0xff] }
 0x25d   :  { %2910 = vmatpush.msra.mxu1 %v5421_v2  ;;  %2882 = vmatpush.msrb.mxu2 %v5377_v41  ;;  %v5460_v0 = vld [vmem:[%s10997_s3 + $0x19b0] sm:$0xff]  ;;  %v5407_v2 = vld [vmem:[%s10997_s3 + $0x1808] sm:$0xff] }
 0x25e   :  { %2898 = vmatpush.msrb.mxu0 %v5397_v42  ;;  %2773 = vmatmul.f32.vlgmr.msra.gmra.mxu2 %v8949_v52  ;;  %v5418_v52 = vld [vmem:[%s10997_s3 + $0x1860] sm:$0xff]  ;;  %v5443_v42 = vld [vmem:[%s10997_s3 + $0x1928] sm:$0xff] }
 0x25f   :  { %2911 = vmatpush.msra.mxu1 %v5420_v43  ;;  %2931 = vmatpush.msra.mxu3 %v5436_v46  ;;  %v5459_v43 = vld [vmem:[%s10997_s3 + $0x19a8] sm:$0xff] }
 0x260   :  { %2883 = vmatpush.msrb.mxu2 %v5376_v47  ;;  %2899 = vmatpush.msrb.mxu0 %v5396_v45  ;;  %v5406_v47 = vld [vmem:[%s10997_s3 + $0x1800] sm:$0xff] }
 0x261   :  { %2912 = vmatpush.msra.mxu1 %v5419_v48  ;;  %2932 = vmatpush.msra.mxu3 %v5435_v53  ;;  %v5422_v45 = vld [vmem:[%s10997_s3 + $0x1880] sm:$0xff] }
 0x262   :  { %2884 = vmatpush.msrb.mxu2 %v5375_v55  ;;  %2900 = vmatpush.msrb.mxu0 %v5395_v56  ;;  %v5442_v53 = vld [vmem:[%s10997_s3 + $0x1920] sm:$0xff]  ;;  %v2856_v56 = vld [vmem:[#allocation1 + $0x12] sm:$0xff] }
 0x263   :  { %2813 = vmatmul.f32.vlgmr.msrb.gmra.mxu3 %v8957_v62  ;;  %2913 = vmatpush.msra.mxu1 %v5418_v52  ;;  %v2854_v62 = vld [vmem:[#allocation1] sm:$0xff] }
 0x264   :  { %2933 = vmatpush.msra.mxu3 %v5434_v50  ;;  %2885 = vmatpush.msrb.mxu2 %v5374_v58  ;;  %v5458_v55 = vld [vmem:[%s10997_s3 + $0x19a0] sm:$0xff]  ;;  %v5577_v58 = vld [vmem:[%s10997_s3 + $0x1d38] sm:$0xff] }
 0x265   :  { %2901 = vmatpush.msrb.mxu0 %v5394_v59  ;;  %2914 = vmatpush.msra.mxu1 %v5417_v60  ;;  %v2857_v52 = vld [vmem:[#allocation1 + $0x1b] sm:$0xff] }
 0x266   :  { %2934 = vmatpush.msra.mxu3 %v5433_v61  ;;  %2950 = vmatpush.msra.mxu2 %v5453_v63  ;;  %v5593_v59 = vld [vmem:[%s10997_s3 + $0x1db8] sm:$0xff] }
 0x267   :  { %2902 = vmatpush.msrb.mxu0 %v5393_v4  ;;  %2886 = vmatmul.f32.vlgmr.msrb.gmra.mxu2 %v2854_v62  ;;  %v5441_v61 = vld [vmem:[%s10997_s3 + $0x1918] sm:$0xff]  ;;  %v5576_v62 = vld [vmem:[%s10997_s3 + $0x1d30] sm:$0xff] }
 0x268   :  { %2793 = vmatmul.f32.vlgmr.msra.gmra.mxu0 %v8959_v57  ;;  %2915 = vmatpush.msra.mxu1 %v5416_v51  ;;  %v5430_v57 = vld [vmem:[%s10997_s3 + $0x18c0] sm:$0xff]  ;;  %v5457_v63 = vld [vmem:[%s10997_s3 + $0x1998] sm:$0xff]  ;;  %v5592_v51 = vld [vmem:[%s10997_s3 + $0x1db0] sm:$0xff] }
 0x269   :  { %2935 = vmatpush.msra.mxu3 %v5432_v6  ;;  %2951 = vmatpush.msra.mxu2 %v5452_v5  ;;  %v5440_v5 = vld [vmem:[%s10997_s3 + $0x1910] sm:$0xff] }
 0x26a   :  { %2903 = vmatpush.msrb.mxu0 %v5392_v7  ;;  %2916 = vmatpush.msra.mxu1 %v5415_v8  ;;  %v5456_v7 = vld [vmem:[%s10997_s3 + $0x1990] sm:$0xff]  ;;  %v5575_v8 = vld [vmem:[%s10997_s3 + $0x1d28] sm:$0xff] }
 0x26b   :  { %2936 = vmatpush.msra.mxu3 %v5431_v9  ;;  %2952 = vmatpush.msra.mxu2 %v5451_v10  ;;  %v5591_v9 = vld [vmem:[%s10997_s3 + $0x1da8] sm:$0xff] }
 0x26c   :  { %2904 = vmatpush.msrb.mxu0 %v5391_v11  ;;  %5559 = vmatmul.msk.f32.vlgmr.msrb.gmra.mxu1 %vm252_vm1, %v8947_v49  ;;  %v2855_v49 = vld [vmem:[#allocation1 + $0x9] sm:$0xff] }
 0x26d   :  { %2937 = vmatpush.msra.mxu3 %v5430_v57  ;;  %2917 = vmatpush.msra.mxu1 %v5414_v13  ;;  %v5439_v11 = vld [vmem:[%s10997_s3 + $0x1908] sm:$0xff]  ;;  %v5574_v13 = vld [vmem:[%s10997_s3 + $0x1d20] sm:$0xff] }
 0x26e   :  { %2953 = vmatpush.msra.mxu2 %v5450_v44  ;;  %2905 = vmatpush.msrb.mxu0 %v5390_v14  ;;  %v5455_v57 = vld [vmem:[%s10997_s3 + $0x1988] sm:$0xff]  ;;  %v5438_v44 = vld [vmem:[%s10997_s3 + $0x1900] sm:$0xff] }
 0x26f   :  { %2938 = vmatpush.msra.mxu3 %v5429_v15  ;;  %2918 = vmatpush.msra.mxu1 %v5413_v16  ;;  %v5454_v14 = vld [vmem:[%s10997_s3 + $0x1980] sm:$0xff]  ;;  %v5573_v16 = vld [vmem:[%s10997_s3 + $0x1d18] sm:$0xff] }
 0x270   :  { %2954 = vmatpush.msra.mxu2 %v5449_v17  ;;  %5560 = vmatpush.msk.msra.mxu0 %vm549_vm2, %v5465_v18  ;;  %v2858_v15 = vld [vmem:[#allocation1 + $0x24] sm:$0xff]  ;;  %v5589_v17 = vld [vmem:[%s10997_s3 + $0x1d98] sm:$0xff] }
 0x271   :  { %2939 = vmatpush.msra.mxu3 %v5428_v19  ;;  %2906 = vmatmul.f32.vlgmr.msrb.gmra.mxu0 %v2855_v49  ;;  %v5609_v18 = vld [vmem:[%s10997_s3 + $0x1e38] sm:$0xff]  ;;  %v5572_v49 = vld [vmem:[%s10997_s3 + $0x1d10] sm:$0xff] }
 0x272   :  { %2919 = vmatpush.msra.mxu1 %v5412_v20  ;;  %2955 = vmatpush.msra.mxu2 %v5448_v21  ;;  %v5625_v19 = vld [vmem:[%s10997_s3 + $0x1eb8] sm:$0xff]  ;;  %v5588_v20 = vld [vmem:[%s10997_s3 + $0x1d90] sm:$0xff] }
 0x273   :  { %2975 = vmatpush.msra.mxu0 %v5464_v22  ;;  %v2075_v29 = vpop.f32.mrf.mxu1  ;;  %2940 = vmatpush.msra.mxu3 %v5427_v24  ;;  %v5608_v21 = vld [vmem:[%s10997_s3 + $0x1e30] sm:$0xff]  ;;  %v5587_v24 = vld [vmem:[%s10997_s3 + $0x1d88] sm:$0xff] }
 0x274   :  { %2920 = vmatpush.msra.mxu1 %v5411_v23  ;;  %2956 = vmatpush.msra.mxu2 %v5447_v25  ;;  %v2095_v34 = vpop.f32.mrf.mxu3  ;;  %v5624_v22 = vld [vmem:[%s10997_s3 + $0x1eb0] sm:$0xff]  ;;  %v5571_v23 = vld [vmem:[%s10997_s3 + $0x1d08] sm:$0xff] }
 0x275   :  { %2976 = vmatpush.msra.mxu0 %v5463_v26  ;;  %2941 = vmatpush.msra.mxu3 %v5426_v28  ;;  %v2096_v37 = vadd.f32 %v2095_v34, %v2075_v29  ;;  %v5607_v25 = vld [vmem:[%s10997_s3 + $0x1e28] sm:$0xff]  ;;  %v5570_v28 = vld [vmem:[%s10997_s3 + $0x1d00] sm:$0xff]  ;;  %v5569_v34 = vld [vmem:[%s10997_s3 + $0x1cf8] sm:$0xff] }
 0x276   :  { %2921 = vmatpush.msra.mxu1 %v5410_v27  ;;  %2957 = vmatpush.msra.mxu2 %v5446_v30  ;;  %v2991_v26 = vld [vmem:[#allocation4 + $0x32] ss:$8 sm:$0xf] }
 0x277   :  { %2977 = vmatpush.msra.mxu0 %v5462_v31  ;;  %2942 = vmatpush.msra.mxu3 %v5425_v33  ;;  %v5623_v27 = vld [vmem:[%s10997_s3 + $0x1ea8] sm:$0xff]  ;;  %v5586_v29 = vld [vmem:[%s10997_s3 + $0x1d80] sm:$0xff] }
 0x278   :  { %2922 = vmatpush.msra.mxu1 %v5409_v32  ;;  %v2115_v1 = vpop.f32.mrf.mxu0  ;;  %2958 = vmatpush.msra.mxu2 %v5445_v35  ;;  %v5606_v30 = vld [vmem:[%s10997_s3 + $0x1e20] sm:$0xff]  ;;  %v2859_v33 = vld [vmem:[#allocation1 + $0x2d] sm:$0xff] }
 0x279   :  { %2978 = vmatpush.msra.mxu0 %v5461_v36  ;;  %v2116_v41 = vadd.f32 %v2115_v1, %v2096_v37  ;;  %2943 = vmatpush.msra.mxu3 %v5424_v39  ;;  %v2135_v46 = vpop.f32.mrf.mxu2  ;;  %v2992_v31 = vld [vmem:[#allocation4 + $0x32] ss:$8 sm:$0x30]  ;;  %v5604_v1 = vld [vmem:[%s10997_s3 + $0x1e10] sm:$0xff] }
 0x27a   :  { %2923 = vmatpush.msra.mxu1 %v5408_v38  ;;  %2959 = vmatpush.msra.mxu2 %v5444_v40  ;;  %v5622_v32 = vld [vmem:[%s10997_s3 + $0x1ea0] sm:$0xff]  ;;  %v2993_v35 = vor.u32 %v2992_v31, %v2991_v26  ;;  %v5585_v36 = vld [vmem:[%s10997_s3 + $0x1d78] sm:$0xff]  ;;  %v5568_v40 = vld [vmem:[%s10997_s3 + $0x1cf0] sm:$0xff] }
 0x27b   :  { %2979 = vmatpush.msra.mxu0 %v5460_v0  ;;  %v2136_v48 = vadd.f32 %v2135_v46, %v2116_v41  ;;  %2944 = vmatpush.msra.mxu3 %v5423_v3  ;;  %v5605_v37 = vld [vmem:[%s10997_s3 + $0x1e18] sm:$0xff]  ;;  %v5584_v0 = vld [vmem:[%s10997_s3 + $0x1d70] sm:$0xff]  ;;  %v5567_v41 = vld [vmem:[%s10997_s3 + $0x1ce8] sm:$0xff] }
 0x27c   :  { %2924 = vmatpush.msra.mxu1 %v5407_v2  ;;  %2960 = vmatpush.msra.mxu2 %v5443_v42  ;;  %v2995_v38 = vld [vmem:[#allocation4 + $0x92] ss:$8 sm:$0xf]  ;;  %3113 = vst [vmem:[#allocation1] ss:$9 sm:$0xff] %v2993_v35 }
 0x27d   :  { %2980 = vmatpush.msra.mxu0 %v5459_v43  ;;  %v2155_v50 = vpop.f32.mrf.mxu1  ;;  %2945 = vmatpush.msra.mxu3 %v5422_v45  ;;  %v5621_v39 = vld [vmem:[%s10997_s3 + $0x1e98] sm:$0xff]  ;;  %v5620_v2 = vld [vmem:[%s10997_s3 + $0x1e90] sm:$0xff]  ;;  %v5583_v42 = vld [vmem:[%s10997_s3 + $0x1d68] sm:$0xff] }
 0x27e   :  { %2925 = vmatpush.msra.mxu1 %v5406_v47  ;;  %v2156_v60 = vadd.f32 %v2155_v50, %v2136_v48  ;;  %2961 = vmatpush.msra.mxu2 %v5442_v53  ;;  %v2175_v4 = vpop.f32.mrf.mxu3  ;;  %v2996_v3 = vld [vmem:[#allocation4 + $0x92] ss:$8 sm:$0x30]  ;;  %v5603_v43 = vld [vmem:[%s10997_s3 + $0x1e08] sm:$0xff]  ;;  %v5640_v26 = vld [vmem:[%s10997_s3 + $0x1f30] sm:$0xff] }
 0x27f   :  { %2981 = vmatpush.msra.mxu0 %v5458_v55  ;;  %2926 = vmatmul.f32.vlgmr.msra.gmra.mxu1 %v2856_v56  ;;  %v2997_v46 = vor.u32 %v2996_v3, %v2995_v38  ;;  %v5619_v47 = vld [vmem:[%s10997_s3 + $0x1e88] sm:$0xff]  ;;  %v5566_v45 = vld [vmem:[%s10997_s3 + $0x1ce0] sm:$0xff]  ;;  %v5581_v50 = vld [vmem:[%s10997_s3 + $0x1d58] sm:$0xff] }
 0x280   :  { %2946 = vmatmul.f32.vlgmr.msra.gmra.mxu3 %v2857_v52  ;;  %v2176_v6 = vadd.f32 %v2175_v4, %v2156_v60  ;;  %3140 = vmatpush.msrb.mxu1 %v5577_v58  ;;  %v2999_v48 = vld [vmem:[#allocation4 + $0xf2] ss:$8 sm:$0xf] }
 0x281   :  { %3160 = vmatpush.msrb.mxu3 %v5593_v59  ;;  %2962 = vmatpush.msra.mxu2 %v5441_v61  ;;  %v5582_v53 = vld [vmem:[%s10997_s3 + $0x1d60] sm:$0xff]  ;;  %3115 = vst [vmem:[#allocation1 + $0x1] ss:$9 sm:$0xff] %v2997_v46  ;;  %v5565_v52 = vld [vmem:[%s10997_s3 + $0x1cd8] sm:$0xff]  ;;  %v5595_v35 = vld [vmem:[%s10997_s3 + $0x1dc8] sm:$0xff] }
 0x282   :  { %2982 = vmatpush.msra.mxu0 %v5457_v63  ;;  %v9282_v10 = vadd.f32 %v2176_v6, %v8971_v12  ;;  %3141 = vmatpush.msrb.mxu1 %v5576_v62  ;;  %v5590_v12 = vld [vmem:[%s10997_s3 + $0x1da0] sm:$0xff]  ;;  %v5601_v60 = vld [vmem:[%s10997_s3 + $0x1df8] sm:$0xff]  ;;  %v5648_v46 = vld [vmem:[%s10997_s3 + $0x1f70] sm:$0xff] }
 0x283   :  { %3161 = vmatpush.msrb.mxu3 %v5592_v51  ;;  %2963 = vmatpush.msra.mxu2 %v5440_v5  ;;  %v5602_v55 = vld [vmem:[%s10997_s3 + $0x1e00] sm:$0xff]  ;;  %v5617_v5 = vld [vmem:[%s10997_s3 + $0x1e78] sm:$0xff] }
 0x284   :  { %2983 = vmatpush.msra.mxu0 %v5456_v7  ;;  %3142 = vmatpush.msrb.mxu1 %v5575_v8  ;;  %v5618_v56 = vld [vmem:[%s10997_s3 + $0x1e80] sm:$0xff] }
 0x285   :  { %3162 = vmatpush.msrb.mxu3 %v5591_v9  ;;  %2964 = vmatpush.msra.mxu2 %v5439_v11  ;;  %v3000_v58 = vld [vmem:[#allocation4 + $0xf2] ss:$8 sm:$0x30]  ;;  %v5564_v9 = vld [vmem:[%s10997_s3 + $0x1cd0] sm:$0xff] }
 0x286   :  { %2984 = vmatpush.msra.mxu0 %v5455_v57  ;;  %3143 = vmatpush.msrb.mxu1 %v5574_v13  ;;  %v3003_v59 = vld [vmem:[#allocation4 + $0x152] ss:$8 sm:$0xf]  ;;  %v3001_v61 = vor.u32 %v3000_v58, %v2999_v48 }
 0x287   :  { %3163 = vmatpush.msrb.mxu3 %v5590_v12  ;;  %2965 = vmatpush.msra.mxu2 %v5438_v44  ;;  %v3004_v63 = vld [vmem:[#allocation4 + $0x152] ss:$8 sm:$0x30]  ;;  %v5580_v11 = vld [vmem:[%s10997_s3 + $0x1d50] sm:$0xff]  ;;  %v5563_v44 = vld [vmem:[%s10997_s3 + $0x1cc8] sm:$0xff] }
 0x288   :  { %2985 = vmatpush.msra.mxu0 %v5454_v14  ;;  %2966 = vmatmul.f32.vlgmr.msra.gmra.mxu2 %v2858_v15  ;;  %v3007_v4 = vld [vmem:[#allocation4 + $0x1b2] ss:$8 sm:$0xf]  ;;  %v3005_v62 = vor.u32 %v3004_v63, %v3003_v59  ;;  %3117 = vst [vmem:[#allocation1 + $0x2] ss:$9 sm:$0xff] %v3001_v61 }
 0x289   :  { %3144 = vmatpush.msrb.mxu1 %v5573_v16  ;;  %3164 = vmatpush.msrb.mxu3 %v5589_v17  ;;  %v3008_v51 = vld [vmem:[#allocation4 + $0x1b2] ss:$8 sm:$0x30]  ;;  %v5600_v13 = vld [vmem:[%s10997_s3 + $0x1df0] sm:$0xff]  ;;  %v5579_v14 = vld [vmem:[%s10997_s3 + $0x1d48] sm:$0xff] }
 0x28a   :  { %3180 = vmatpush.msrb.mxu0 %v5609_v18  ;;  %3200 = vmatpush.msrb.mxu2 %v5625_v19  ;;  %v3011_v6 = vld [vmem:[#allocation4 + $0x212] ss:$8 sm:$0xf]  ;;  %v3009_v7 = vor.u32 %v3008_v51, %v3007_v4  ;;  %3119 = vst [vmem:[#allocation1 + $0x3] ss:$9 sm:$0xff] %v3005_v62 }
 0x28b   :  { %3145 = vmatpush.msrb.mxu1 %v5572_v49  ;;  %3165 = vmatpush.msrb.mxu3 %v5588_v20  ;;  %v3012_v8 = vld [vmem:[#allocation4 + $0x212] ss:$8 sm:$0x30]  ;;  %v5616_v12 = vld [vmem:[%s10997_s3 + $0x1e70] sm:$0xff]  ;;  %v5599_v15 = vld [vmem:[%s10997_s3 + $0x1de8] sm:$0xff] }
 0x28c   :  { %3181 = vmatpush.msrb.mxu0 %v5608_v21  ;;  %3201 = vmatpush.msrb.mxu2 %v5624_v22  ;;  %v3013_v57 = vor.u32 %v3012_v8, %v3011_v6  ;;  %3121 = vst [vmem:[#allocation1 + $0x4] ss:$9 sm:$0xff] %v3009_v7  ;;  %v5615_v16 = vld [vmem:[%s10997_s3 + $0x1e68] sm:$0xff]  ;;  %v5562_v17 = vld [vmem:[%s10997_s3 + $0x1cc0] sm:$0xff]  ;;  %v5641_v20 = vld [vmem:[%s10997_s3 + $0x1f38] sm:$0xff] }
 0x28d   :  { %3146 = vmatpush.msrb.mxu1 %v5571_v23  ;;  %3166 = vmatpush.msrb.mxu3 %v5587_v24  ;;  %v5578_v18 = vld [vmem:[%s10997_s3 + $0x1d40] sm:$0xff]  ;;  %v5653_v21 = vld [vmem:[%s10997_s3 + $0x1f98] sm:$0x1]  ;;  %v5670_v48 = vld [vmem:[%s10997_s3 + $0x2010] sm:$0xff] }
 0x28e   :  { %3182 = vmatpush.msrb.mxu0 %v5607_v25  ;;  %3202 = vmatpush.msrb.mxu2 %v5623_v27  ;;  %3123 = vst [vmem:[#allocation1 + $0x5] ss:$9 sm:$0xff] %v3013_v57  ;;  %v5598_v19 = vld [vmem:[%s10997_s3 + $0x1de0] sm:$0xff]  ;;  %v5597_v23 = vld [vmem:[%s10997_s3 + $0x1dd8] sm:$0xff]  ;;  %v5652_v27 = vld [vmem:[%s10997_s3 + $0x1f90] sm:$0xff] }
 0x28f   :  { %3147 = vmatpush.msrb.mxu1 %v5570_v28  ;;  %3167 = vmatpush.msrb.mxu3 %v5586_v29  ;;  %v5614_v49 = vld [vmem:[%s10997_s3 + $0x1e60] sm:$0xff]  ;;  %v5613_v24 = vld [vmem:[%s10997_s3 + $0x1e58] sm:$0xff]  ;;  %v5596_v29 = vld [vmem:[%s10997_s3 + $0x1dd0] sm:$0xff] }
 0x290   :  { %3183 = vmatpush.msrb.mxu0 %v5606_v30  ;;  %3203 = vmatpush.msrb.mxu2 %v5622_v32  ;;  %v5612_v30 = vld [vmem:[%s10997_s3 + $0x1e50] sm:$0xff]  ;;  %v5639_v32 = vld [vmem:[%s10997_s3 + $0x1f28] sm:$0xff]  ;;  %v5650_v38 = vld [vmem:[%s10997_s3 + $0x1f80] sm:$0xff] }
 0x291   :  { %5561 = vmatmul.msk.f32.vlgmr.msra.gmra.mxu0 %vm252_vm1, %v2859_v33  ;;  %3148 = vmatpush.msrb.mxu1 %v5569_v34  ;;  %v5651_v33 = vld [vmem:[%s10997_s3 + $0x1f88] sm:$0xff]  ;;  %v5646_v61 = vld [vmem:[%s10997_s3 + $0x1f60] sm:$0xff]  ;;  %v5633_v51 = vld [vmem:[%s10997_s3 + $0x1ef8] sm:$0xff] }
 0x292   :  { %3168 = vmatpush.msrb.mxu3 %v5585_v36  ;;  %3184 = vmatpush.msrb.mxu0 %v5605_v37  ;;  %v5611_v36 = vld [vmem:[%s10997_s3 + $0x1e48] sm:$0xff]  ;;  %v5638_v37 = vld [vmem:[%s10997_s3 + $0x1f20] sm:$0xff]  ;;  %v5645_v6 = vld [vmem:[%s10997_s3 + $0x1f58] sm:$0xff] }
 0x293   :  { %3204 = vmatpush.msrb.mxu2 %v5621_v39  ;;  %3149 = vmatpush.msrb.mxu1 %v5568_v40  ;;  %v5594_v39 = vld [vmem:[%s10997_s3 + $0x1dc0] sm:$0xff]  ;;  %v5685_v58 = vld [vmem:[%s10997_s3 + $0x2088] sm:$0xff]  ;;  %v5632_v8 = vld [vmem:[%s10997_s3 + $0x1ef0] sm:$0xff] }
 0x294   :  { %3169 = vmatpush.msrb.mxu3 %v5584_v0  ;;  %3185 = vmatpush.msrb.mxu0 %v5604_v1  ;;  %v5610_v40 = vld [vmem:[%s10997_s3 + $0x1e40] sm:$0xff]  ;;  %v5637_v1 = vld [vmem:[%s10997_s3 + $0x1f18] sm:$0xff] }
 0x295   :  { %3205 = vmatpush.msrb.mxu2 %v5620_v2  ;;  %3150 = vmatpush.msrb.mxu1 %v5567_v41  ;;  %v5649_v2 = vld [vmem:[%s10997_s3 + $0x1f78] sm:$0xff]  ;;  %v5668_v63 = vld [vmem:[%s10997_s3 + $0x2000] sm:$0xff]  ;;  %v3125_v57 = vld [vmem:[#allocation1 + $0x9] sm:$0xff] }
 0x296   :  { %3170 = vmatpush.msrb.mxu3 %v5583_v42  ;;  %3186 = vmatpush.msrb.mxu0 %v5603_v43  ;;  %v5671_v41 = vld [vmem:[%s10997_s3 + $0x2018] sm:$0xff]  ;;  %v5636_v43 = vld [vmem:[%s10997_s3 + $0x1f10] sm:$0xff]  ;;  %v5684_v4 = vld [vmem:[%s10997_s3 + $0x2080] sm:$0xff] }
 0x297   :  { %3206 = vmatpush.msrb.mxu2 %v5619_v47  ;;  %3151 = vmatpush.msrb.mxu1 %v5566_v45  ;;  %v5687_v42 = vld [vmem:[%s10997_s3 + $0x2098] sm:$0xff] }
 0x298   :  { %3171 = vmatpush.msrb.mxu3 %v5582_v53  ;;  %3187 = vmatpush.msrb.mxu0 %v5602_v55  ;;  %v5686_v53 = vld [vmem:[%s10997_s3 + $0x2090] sm:$0xff] }
 0x299   :  { %3207 = vmatpush.msrb.mxu2 %v5618_v56  ;;  %3152 = vmatpush.msrb.mxu1 %v5565_v52  ;;  %v5635_v56 = vld [vmem:[%s10997_s3 + $0x1f08] sm:$0xff] }
 0x29a   :  { %3172 = vmatpush.msrb.mxu3 %v5581_v50  ;;  %3188 = vmatpush.msrb.mxu0 %v5601_v60  ;;  %v5647_v52 = vld [vmem:[%s10997_s3 + $0x1f68] sm:$0xff]  ;;  %v5634_v60 = vld [vmem:[%s10997_s3 + $0x1f00] sm:$0xff] }
 0x29b   :  { %3208 = vmatpush.msrb.mxu2 %v5617_v5  ;;  %3153 = vmatpush.msrb.mxu1 %v5564_v9  ;;  %v5669_v50 = vld [vmem:[%s10997_s3 + $0x2008] sm:$0xff]  ;;  %v5667_v5 = vld [vmem:[%s10997_s3 + $0x1ff8] sm:$0xff]  ;;  %v5644_v9 = vld [vmem:[%s10997_s3 + $0x1f50] sm:$0xff] }
 0x29c   :  { %3173 = vmatpush.msrb.mxu3 %v5580_v11  ;;  %3189 = vmatpush.msrb.mxu0 %v5600_v13  ;;  %v5666_v11 = vld [vmem:[%s10997_s3 + $0x1ff0] sm:$0xff]  ;;  %v5631_v13 = vld [vmem:[%s10997_s3 + $0x1ee8] sm:$0xff] }
 0x29d   :  { %3209 = vmatpush.msrb.mxu2 %v5616_v12  ;;  %3154 = vmatpush.msrb.mxu1 %v5563_v44  ;;  %v5643_v12 = vld [vmem:[%s10997_s3 + $0x1f48] sm:$0xff] }
 0x29e   :  { %3174 = vmatpush.msrb.mxu3 %v5579_v14  ;;  %3190 = vmatpush.msrb.mxu0 %v5599_v15  ;;  %v2346_v22 = vpop.f32.mrf.mxu0  ;;  %v5665_v44 = vld [vmem:[%s10997_s3 + $0x1fe8] sm:$0xff]  ;;  %v5630_v15 = vld [vmem:[%s10997_s3 + $0x1ee0] sm:$0xff] }
 0x29f   :  { %3210 = vmatpush.msrb.mxu2 %v5615_v16  ;;  %3155 = vmatpush.msrb.mxu1 %v5562_v17  ;;  %v5681_v14 = vld [vmem:[%s10997_s3 + $0x2068] sm:$0xff]  ;;  %v5642_v16 = vld [vmem:[%s10997_s3 + $0x1f40] sm:$0xff] }
 0x2a0   :  { %3175 = vmatpush.msrb.mxu3 %v5578_v18  ;;  %v2366_v25 = vpop.f32.mrf.mxu2  ;;  %3191 = vmatpush.msrb.mxu0 %v5598_v19  ;;  %v5664_v17 = vld [vmem:[%s10997_s3 + $0x1fe0] sm:$0xff] }
 0x2a1   :  { %3211 = vmatpush.msrb.mxu2 %v5614_v49  ;;  %v2367_v28 = vadd.f32 %v2366_v25, %v2346_v22  ;;  %3220 = vmatpush.msra.mxu1 %v5641_v20  ;;  %v5680_v18 = vld [vmem:[%s10997_s3 + $0x2060] sm:$0xff]  ;;  %v5703_v20 = vld [vmem:[%s10997_s3 + $0x2118] sm:$0xff] }
 0x2a2   :  { %5654 = vmatpush.msk.msra.mxu3 %vm549_vm2, %v5653_v21  ;;  %v2386_v31 = vpop.f32.mrf.mxu3  ;;  %3192 = vmatpush.msrb.mxu0 %v5597_v23  ;;  %v3262_v19 = vld [vmem:[#allocation4 + $0x33] ss:$8 sm:$0xf] }
 0x2a3   :  { %3212 = vmatpush.msrb.mxu2 %v5613_v24  ;;  %v2387_v34 = vadd.f32 %v2386_v31, %v2367_v28  ;;  %3221 = vmatpush.msra.mxu1 %v5640_v26  ;;  %v3124_v49 = vld [vmem:[#allocation1] sm:$0xff]  ;;  %v5629_v21 = vld [vmem:[%s10997_s3 + $0x1ed8] sm:$0xff]  ;;  %v5702_v26 = vld [vmem:[%s10997_s3 + $0x2110] sm:$0xff] }
 0x2a4   :  { %3245 = vmatpush.msra.mxu3 %v5652_v27  ;;  %3193 = vmatpush.msrb.mxu0 %v5596_v29  ;;  %v3127_v22 = vld [vmem:[#allocation1 + $0x1b] sm:$0xff]  ;;  %v3126_v27 = vld [vmem:[#allocation1 + $0x12] sm:$0xff] }
 0x2a5   :  { %3213 = vmatpush.msrb.mxu2 %v5612_v30  ;;  %3222 = vmatpush.msra.mxu1 %v5639_v32  ;;  %v2406_v0 = vpop.f32.mrf.mxu1  ;;  %v5663_v23 = vld [vmem:[%s10997_s3 + $0x1fd8] sm:$0xff]  ;;  %v3129_v29 = vld [vmem:[#allocation1 + $0x2d] sm:$0xff]  ;;  %v3128_v30 = vld [vmem:[#allocation1 + $0x24] sm:$0xff] }
 0x2a6   :  { %3246 = vmatpush.msra.mxu3 %v5651_v33  ;;  %3194 = vmatpush.msrb.mxu0 %v5595_v35  ;;  %v2407_v3 = vadd.f32 %v2406_v0, %v2387_v34  ;;  %v3263_v24 = vld [vmem:[#allocation4 + $0x33] ss:$8 sm:$0x30]  ;;  %v5628_v32 = vld [vmem:[%s10997_s3 + $0x1ed0] sm:$0xff] }
 0x2a7   :  { %3214 = vmatpush.msrb.mxu2 %v5611_v36  ;;  %3223 = vmatpush.msra.mxu1 %v5638_v37  ;;  %v5679_v25 = vld [vmem:[%s10997_s3 + $0x2058] sm:$0xff]  ;;  %v3264_v28 = vor.u32 %v3263_v24, %v3262_v19  ;;  %v5662_v33 = vld [vmem:[%s10997_s3 + $0x1fd0] sm:$0xff]  ;;  %v5701_v36 = vld [vmem:[%s10997_s3 + $0x2108] sm:$0xff] }
 0x2a8   :  { %3247 = vmatpush.msra.mxu3 %v5650_v38  ;;  %3195 = vmatpush.msrb.mxu0 %v5594_v39  ;;  %v2426_v47 = vpop.f32.mrf.mxu0  ;;  %v3266_v31 = vld [vmem:[#allocation4 + $0x93] ss:$8 sm:$0xf] }
 0x2a9   :  { %3215 = vmatpush.msrb.mxu2 %v5610_v40  ;;  %v2446_v45 = vpop.f32.mrf.mxu2  ;;  %3224 = vmatpush.msra.mxu1 %v5637_v1  ;;  %v2427_v55 = vadd.f32 %v2426_v47, %v2407_v3  ;;  %3384 = vst [vmem:[#allocation1] ss:$9 sm:$0xff] %v3264_v28  ;;  %v5678_v34 = vld [vmem:[%s10997_s3 + $0x2050] sm:$0xff]  ;;  %v3267_v35 = vld [vmem:[#allocation4 + $0x93] ss:$8 sm:$0x30] }
 0x2aa   :  { %3248 = vmatpush.msra.mxu3 %v5649_v2  ;;  %3411 = vmatpush.msra.mxu0 %v5671_v41  ;;  %v5627_v37 = vld [vmem:[%s10997_s3 + $0x1ec8] sm:$0xff]  ;;  %v3268_v39 = vor.u32 %v3267_v35, %v3266_v31  ;;  %v5700_v0 = vld [vmem:[%s10997_s3 + $0x2100] sm:$0xff]  ;;  %v5731_v28 = vld [vmem:[%s10997_s3 + $0x21f8] sm:$0xff] }
 0x2ab   :  { %3431 = vmatpush.msra.mxu2 %v5687_v42  ;;  %3225 = vmatpush.msra.mxu1 %v5636_v43  ;;  %v2447_v59 = vadd.f32 %v2446_v45, %v2427_v55  ;;  %v5661_v38 = vld [vmem:[%s10997_s3 + $0x1fc8] sm:$0xff]  ;;  %v5626_v2 = vld [vmem:[%s10997_s3 + $0x1ec0] sm:$0xff]  ;;  %v5699_v42 = vld [vmem:[%s10997_s3 + $0x20f8] sm:$0xff] }
 0x2ac   :  { %3249 = vmatpush.msra.mxu3 %v5648_v46  ;;  %3412 = vmatpush.msra.mxu0 %v5670_v48  ;;  %v5677_v40 = vld [vmem:[%s10997_s3 + $0x2048] sm:$0xff]  ;;  %v5660_v3 = vld [vmem:[%s10997_s3 + $0x1fc0] sm:$0xff]  ;;  %3386 = vst [vmem:[#allocation1 + $0x1] ss:$9 sm:$0xff] %v3268_v39  ;;  %v5719_v43 = vld [vmem:[%s10997_s3 + $0x2198] sm:$0xff] }
 0x2ad   :  { %3432 = vmatpush.msra.mxu2 %v5686_v53  ;;  %3226 = vmatpush.msra.mxu1 %v5635_v56  ;;  %v2449_v62 = vadd.f32 %v2447_v59, %v9282_v10  ;;  %v5683_v10 = vld [vmem:[%s10997_s3 + $0x2078] sm:$0xff]  ;;  %v5676_v41 = vld [vmem:[%s10997_s3 + $0x2040] sm:$0xff]  ;;  %v5693_v19 = vld [vmem:[%s10997_s3 + $0x20c8] sm:$0xff] }
 0x2ae   :  { %3250 = vmatpush.msra.mxu3 %v5647_v52  ;;  %3413 = vmatpush.msra.mxu0 %v5669_v50  ;;  %v3270_v1 = vld [vmem:[#allocation4 + $0xf3] ss:$8 sm:$0xf] }
 0x2af   :  { %3433 = vmatpush.msra.mxu2 %v5685_v58  ;;  %3227 = vmatpush.msra.mxu1 %v5634_v60  ;;  %v9558_v7 = vadd.f32 %v2449_v62, %v8404_v54  ;;  %v5682_v54 = vld [vmem:[%s10997_s3 + $0x2070] sm:$0xff]  ;;  %v3271_v46 = vld [vmem:[#allocation4 + $0xf3] ss:$8 sm:$0x30]  ;;  %v5709_v35 = vld [vmem:[%s10997_s3 + $0x2148] sm:$0xff] }
 0x2b0   :  { %3251 = vmatpush.msra.mxu3 %v5646_v61  ;;  %3414 = vmatpush.msra.mxu0 %v5668_v63  ;;  %v3274_v47 = vld [vmem:[#allocation4 + $0x153] ss:$8 sm:$0xf]  ;;  %v3272_v48 = vor.u32 %v3271_v46, %v3270_v1 }
 0x2b1   :  { %3434 = vmatpush.msra.mxu2 %v5684_v4  ;;  %3228 = vmatpush.msra.mxu1 %v5633_v51  ;;  %v5659_v45 = vld [vmem:[%s10997_s3 + $0x1fb8] sm:$0xff]  ;;  %v5698_v61 = vld [vmem:[%s10997_s3 + $0x20f0] sm:$0xff]  ;;  %v5732_v24 = vld [vmem:[%s10997_s3 + $0x2200] sm:$0xff] }
 0x2b2   :  { %3252 = vmatpush.msra.mxu3 %v5645_v6  ;;  %3415 = vmatpush.msra.mxu0 %v5667_v5  ;;  %v3275_v53 = vld [vmem:[#allocation4 + $0x153] ss:$8 sm:$0x30]  ;;  %3388 = vst [vmem:[#allocation1 + $0x2] ss:$9 sm:$0xff] %v3272_v48  ;;  %v5718_v63 = vld [vmem:[%s10997_s3 + $0x2190] sm:$0xff] }
 0x2b3   :  { %3435 = vmatpush.msra.mxu2 %v5683_v10  ;;  %3229 = vmatpush.msra.mxu1 %v5632_v8  ;;  %v3278_v55 = vld [vmem:[#allocation4 + $0x1b3] ss:$8 sm:$0xf]  ;;  %v3276_v56 = vor.u32 %v3275_v53, %v3274_v47 }
 0x2b4   :  { %3253 = vmatpush.msra.mxu3 %v5644_v9  ;;  %3416 = vmatpush.msra.mxu0 %v5666_v11  ;;  %v3279_v52 = vld [vmem:[#allocation4 + $0x1b3] ss:$8 sm:$0x30]  ;;  %v5658_v62 = vld [vmem:[%s10997_s3 + $0x1fb0] sm:$0xff]  ;;  %v5697_v6 = vld [vmem:[%s10997_s3 + $0x20e8] sm:$0xff] }
 0x2b5   :  { %3436 = vmatpush.msra.mxu2 %v5682_v54  ;;  %3176 = vmatmul.f32.vlgmr.msrb.gmra.mxu3 %v3125_v57  ;;  %v3282_v50 = vld [vmem:[#allocation4 + $0x213] ss:$8 sm:$0xf]  ;;  %v3280_v59 = vor.u32 %v3279_v52, %v3278_v55  ;;  %3390 = vst [vmem:[#allocation1 + $0x3] ss:$9 sm:$0xff] %v3276_v56 }
 0x2b6   :  { %3230 = vmatpush.msra.mxu1 %v5631_v13  ;;  %3254 = vmatpush.msra.mxu3 %v5643_v12  ;;  %v5675_v58 = vld [vmem:[%s10997_s3 + $0x2038] sm:$0xff]  ;;  %v5674_v51 = vld [vmem:[%s10997_s3 + $0x2030] sm:$0xff]  ;;  %v5717_v5 = vld [vmem:[%s10997_s3 + $0x2188] sm:$0xff] }
 0x2b7   :  { %3417 = vmatpush.msra.mxu0 %v5665_v44  ;;  %3437 = vmatpush.msra.mxu2 %v5681_v14  ;;  %v3283_v60 = vld [vmem:[#allocation4 + $0x213] ss:$8 sm:$0x30]  ;;  %3392 = vst [vmem:[#allocation1 + $0x4] ss:$9 sm:$0xff] %v3280_v59  ;;  %v5657_v10 = vld [vmem:[%s10997_s3 + $0x1fa8] sm:$0xff] }
 0x2b8   :  { %3231 = vmatpush.msra.mxu1 %v5630_v15  ;;  %3255 = vmatpush.msra.mxu3 %v5642_v16  ;;  %v3284_v4 = vor.u32 %v3283_v60, %v3282_v50  ;;  %v5673_v8 = vld [vmem:[%s10997_s3 + $0x2028] sm:$0xff]  ;;  %v5696_v9 = vld [vmem:[%s10997_s3 + $0x20e0] sm:$0xff]  ;;  %v5695_v13 = vld [vmem:[%s10997_s3 + $0x20d8] sm:$0xff] }
 0x2b9   :  { %3418 = vmatpush.msra.mxu0 %v5664_v17  ;;  %3438 = vmatpush.msra.mxu2 %v5680_v18  ;;  %v5716_v11 = vld [vmem:[%s10997_s3 + $0x2180] sm:$0xff]  ;;  %v5715_v12 = vld [vmem:[%s10997_s3 + $0x2178] sm:$0xff]  ;;  %v5694_v15 = vld [vmem:[%s10997_s3 + $0x20d0] sm:$0xff] }
 0x2ba   :  { %3156 = vmatmul.f32.vlgmr.msrb.gmra.mxu1 %v3124_v49  ;;  %3216 = vmatmul.f32.vlgmr.msrb.gmra.mxu2 %v3127_v22  ;;  %3394 = vst [vmem:[#allocation1 + $0x5] ss:$9 sm:$0xff] %v3284_v4  ;;  %v5656_v54 = vld [vmem:[%s10997_s3 + $0x1fa0] sm:$0xff]  ;;  %v5735_v44 = vld [vmem:[%s10997_s3 + $0x2218] sm:$0xff]  ;;  %v5714_v16 = vld [vmem:[%s10997_s3 + $0x2170] sm:$0xff] }
 0x2bb   :  { %3451 = vmatpush.msrb.mxu3 %v5703_v20  ;;  %3232 = vmatpush.msra.mxu1 %v5629_v21  ;;  %v5672_v57 = vld [vmem:[%s10997_s3 + $0x2020] sm:$0xff]  ;;  %v5747_v14 = vld [vmem:[%s10997_s3 + $0x2278] sm:$0x1]  ;;  %v5734_v17 = vld [vmem:[%s10997_s3 + $0x2210] sm:$0xff] }
 0x2bc   :  { %3419 = vmatpush.msra.mxu0 %v5663_v23  ;;  %3439 = vmatpush.msra.mxu2 %v5679_v25  ;;  %v5746_v18 = vld [vmem:[%s10997_s3 + $0x2270] sm:$0xff]  ;;  %v5713_v49 = vld [vmem:[%s10997_s3 + $0x2168] sm:$0xff]  ;;  %v5692_v22 = vld [vmem:[%s10997_s3 + $0x20c0] sm:$0xff] }
 0x2bd   :  { %3452 = vmatpush.msrb.mxu3 %v5702_v26  ;;  %3233 = vmatpush.msra.mxu1 %v5628_v32  ;;  %v5733_v20 = vld [vmem:[%s10997_s3 + $0x2208] sm:$0xff]  ;;  %v5712_v23 = vld [vmem:[%s10997_s3 + $0x2160] sm:$0xff]  ;;  %v5691_v26 = vld [vmem:[%s10997_s3 + $0x20b8] sm:$0xff] }
 0x2be   :  { %3420 = vmatpush.msra.mxu0 %v5662_v33  ;;  %3440 = vmatpush.msra.mxu2 %v5678_v34  ;;  %v5745_v21 = vld [vmem:[%s10997_s3 + $0x2268] sm:$0xff]  ;;  %v5744_v25 = vld [vmem:[%s10997_s3 + $0x2260] sm:$0xff]  ;;  %v5710_v31 = vld [vmem:[%s10997_s3 + $0x2150] sm:$0xff] }
 0x2bf   :  { %3196 = vmatmul.f32.vlgmr.msrb.gmra.mxu0 %v3126_v27  ;;  %5655 = vmatmul.msk.f32.vlgmr.msra.gmra.mxu3 %vm252_vm1, %v3129_v29  ;;  %v5711_v27 = vld [vmem:[%s10997_s3 + $0x2158] sm:$0xff]  ;;  %v5730_v32 = vld [vmem:[%s10997_s3 + $0x21f0] sm:$0xff]  ;;  %v5689_v34 = vld [vmem:[%s10997_s3 + $0x20a8] sm:$0xff] }
 0x2c0   :  { %3234 = vmatpush.msra.mxu1 %v5627_v37  ;;  %3453 = vmatpush.msrb.mxu3 %v5701_v36  ;;  %v5743_v29 = vld [vmem:[%s10997_s3 + $0x2258] sm:$0xff]  ;;  %v5742_v33 = vld [vmem:[%s10997_s3 + $0x2250] sm:$0xff]  ;;  %v5729_v36 = vld [vmem:[%s10997_s3 + $0x21e8] sm:$0xff] }
 0x2c1   :  { %3421 = vmatpush.msra.mxu0 %v5661_v38  ;;  %3441 = vmatpush.msra.mxu2 %v5677_v40  ;;  %v5741_v37 = vld [vmem:[%s10997_s3 + $0x2248] sm:$0xff]  ;;  %v5688_v38 = vld [vmem:[%s10997_s3 + $0x20a0] sm:$0xff]  ;;  %v5857_v1 = vld [vmem:[%s10997_s3 + $0x25d8] sm:$0xff] }
 0x2c2   :  { %3235 = vmatpush.msra.mxu1 %v5626_v2  ;;  %3454 = vmatpush.msrb.mxu3 %v5700_v0  ;;  %v5708_v39 = vld [vmem:[%s10997_s3 + $0x2140] sm:$0xff]  ;;  %v5707_v2 = vld [vmem:[%s10997_s3 + $0x2138] sm:$0xff]  ;;  %v5706_v46 = vld [vmem:[%s10997_s3 + $0x2130] sm:$0xff] }
 0x2c3   :  { %3422 = vmatpush.msra.mxu0 %v5660_v3  ;;  %3442 = vmatpush.msra.mxu2 %v5676_v41  ;;  %v5728_v40 = vld [vmem:[%s10997_s3 + $0x21e0] sm:$0xff]  ;;  %v5727_v3 = vld [vmem:[%s10997_s3 + $0x21d8] sm:$0xff]  ;;  %v5726_v47 = vld [vmem:[%s10997_s3 + $0x21d0] sm:$0xff] }
 0x2c4   :  { %3236 = vmatmul.f32.vlgmr.msra.gmra.mxu1 %v3128_v30  ;;  %3455 = vmatpush.msrb.mxu3 %v5699_v42  ;;  %v5690_v30 = vld [vmem:[%s10997_s3 + $0x20b0] sm:$0xff]  ;;  %v5740_v0 = vld [vmem:[%s10997_s3 + $0x2240] sm:$0xff]  ;;  %v5739_v41 = vld [vmem:[%s10997_s3 + $0x2238] sm:$0xff] }
 0x2c5   :  { %3471 = vmatpush.msrb.mxu1 %v5719_v43  ;;  %3423 = vmatpush.msra.mxu0 %v5659_v45  ;;  %v5856_v43 = vld [vmem:[%s10997_s3 + $0x25d0] sm:$0xff]  ;;  %v5855_v55 = vld [vmem:[%s10997_s3 + $0x25c8] sm:$0xff]  ;;  %v5854_v60 = vld [vmem:[%s10997_s3 + $0x25c0] sm:$0xff] }
 0x2c6   :  { %3443 = vmatpush.msra.mxu2 %v5675_v58  ;;  %3456 = vmatpush.msrb.mxu3 %v5698_v61  ;;  %v5738_v45 = vld [vmem:[%s10997_s3 + $0x2230] sm:$0xff]  ;;  %v5705_v52 = vld [vmem:[%s10997_s3 + $0x2128] sm:$0xff]  ;;  %v5704_v61 = vld [vmem:[%s10997_s3 + $0x2120] sm:$0xff] }
 0x2c7   :  { %3472 = vmatpush.msrb.mxu1 %v5718_v63  ;;  %3424 = vmatpush.msra.mxu0 %v5658_v62  ;;  %v3396_v53 = vld [vmem:[#allocation1 + $0x9] sm:$0xff]  ;;  %v3397_v59 = vld [vmem:[#allocation1 + $0x12] sm:$0xff]  ;;  %v5724_v63 = vld [vmem:[%s10997_s3 + $0x21c0] sm:$0xff] }
 0x2c8   :  { %3444 = vmatpush.msra.mxu2 %v5674_v51  ;;  %3457 = vmatpush.msrb.mxu3 %v5697_v6  ;;  %v5725_v50 = vld [vmem:[%s10997_s3 + $0x21c8] sm:$0xff]  ;;  %v5736_v4 = vld [vmem:[%s10997_s3 + $0x2220] sm:$0xff]  ;;  %v5853_v6 = vld [vmem:[%s10997_s3 + $0x25b8] sm:$0xff] }
 0x2c9   :  { %3473 = vmatpush.msrb.mxu1 %v5717_v5  ;;  %3425 = vmatpush.msra.mxu0 %v5657_v10  ;;  %v5737_v58 = vld [vmem:[%s10997_s3 + $0x2228] sm:$0xff]  ;;  %v3395_v51 = vld [vmem:[#allocation1] sm:$0xff]  ;;  %v5873_v10 = vld [vmem:[%s10997_s3 + $0x2658] sm:$0xff] }
 0x2ca   :  { %3445 = vmatpush.msra.mxu2 %v5673_v8  ;;  %3458 = vmatpush.msrb.mxu3 %v5696_v9  ;;  %v5889_v8 = vld [vmem:[%s10997_s3 + $0x26d8] sm:$0xff] }
 0x2cb   :  { %3474 = vmatpush.msrb.mxu1 %v5716_v11  ;;  %3426 = vmatpush.msra.mxu0 %v5656_v54  ;;  %v5723_v9 = vld [vmem:[%s10997_s3 + $0x21b8] sm:$0xff]  ;;  %v5852_v11 = vld [vmem:[%s10997_s3 + $0x25b0] sm:$0xff] }
 0x2cc   :  { %3446 = vmatpush.msra.mxu2 %v5672_v57  ;;  %3459 = vmatpush.msrb.mxu3 %v5695_v13  ;;  %v5872_v57 = vld [vmem:[%s10997_s3 + $0x2650] sm:$0xff] }
 0x2cd   :  { %3475 = vmatpush.msrb.mxu1 %v5715_v12  ;;  %3491 = vmatpush.msrb.mxu0 %v5735_v44  ;;  %v5888_v13 = vld [vmem:[%s10997_s3 + $0x26d0] sm:$0xff] }
 0x2ce   :  { %5748 = vmatpush.msk.msrb.mxu2 %vm549_vm2, %v5747_v14  ;;  %3460 = vmatpush.msrb.mxu3 %v5694_v15  ;;  %v5722_v14 = vld [vmem:[%s10997_s3 + $0x21b0] sm:$0xff] }
 0x2cf   :  { %3476 = vmatpush.msrb.mxu1 %v5714_v16  ;;  %3492 = vmatpush.msrb.mxu0 %v5734_v17  ;;  %v3400_v15 = vld [vmem:[#allocation1 + $0x2d] sm:$0xff] }
 0x2d0   :  { %3516 = vmatpush.msrb.mxu2 %v5746_v18  ;;  %3461 = vmatpush.msrb.mxu3 %v5693_v19  ;;  %v5851_v16 = vld [vmem:[%s10997_s3 + $0x25a8] sm:$0xff] }
 0x2d1   :  { %3477 = vmatpush.msrb.mxu1 %v5713_v49  ;;  %3493 = vmatpush.msrb.mxu0 %v5733_v20  ;;  %v5871_v17 = vld [vmem:[%s10997_s3 + $0x2648] sm:$0xff]  ;;  %v3398_v20 = vld [vmem:[#allocation1 + $0x1b] sm:$0xff] }
 0x2d2   :  { %3517 = vmatpush.msrb.mxu2 %v5745_v21  ;;  %3462 = vmatpush.msrb.mxu3 %v5692_v22  ;;  %v5887_v19 = vld [vmem:[%s10997_s3 + $0x26c8] sm:$0xff]  ;;  %v5850_v21 = vld [vmem:[%s10997_s3 + $0x25a0] sm:$0xff] }
 0x2d3   :  { %3478 = vmatpush.msrb.mxu1 %v5712_v23  ;;  %3494 = vmatpush.msrb.mxu0 %v5732_v24  ;;  %v5721_v49 = vld [vmem:[%s10997_s3 + $0x21a8] sm:$0xff]  ;;  %v5870_v23 = vld [vmem:[%s10997_s3 + $0x2640] sm:$0xff] }
 0x2d4   :  { %3518 = vmatpush.msrb.mxu2 %v5744_v25  ;;  %3463 = vmatpush.msrb.mxu3 %v5691_v26  ;;  %v5886_v24 = vld [vmem:[%s10997_s3 + $0x26c0] sm:$0xff] }
 0x2d5   :  { %3479 = vmatpush.msrb.mxu1 %v5711_v27  ;;  %3495 = vmatpush.msrb.mxu0 %v5731_v28  ;;  %v5720_v27 = vld [vmem:[%s10997_s3 + $0x21a0] sm:$0xff]  ;;  %v5849_v28 = vld [vmem:[%s10997_s3 + $0x2598] sm:$0xff] }
 0x2d6   :  { %3519 = vmatpush.msrb.mxu2 %v5743_v29  ;;  %3464 = vmatpush.msrb.mxu3 %v5690_v30  ;;  %v3399_v29 = vld [vmem:[#allocation1 + $0x24] sm:$0xff]  ;;  %v5869_v30 = vld [vmem:[%s10997_s3 + $0x2638] sm:$0xff] }
 0x2d7   :  { %3480 = vmatpush.msrb.mxu1 %v5710_v31  ;;  %3496 = vmatpush.msrb.mxu0 %v5730_v32  ;;  %v5885_v32 = vld [vmem:[%s10997_s3 + $0x26b8] sm:$0xff] }
 0x2d8   :  { %3520 = vmatpush.msrb.mxu2 %v5742_v33  ;;  %3465 = vmatpush.msrb.mxu3 %v5689_v34  ;;  %v5905_v33 = vld [vmem:[%s10997_s3 + $0x2758] sm:$0xff]  ;;  %v5848_v34 = vld [vmem:[%s10997_s3 + $0x2590] sm:$0xff] }
 0x2d9   :  { %3481 = vmatpush.msrb.mxu1 %v5709_v35  ;;  %3497 = vmatpush.msrb.mxu0 %v5729_v36  ;;  %v2754_v42 = vpop.f32.mrf.mxu1  ;;  %v5868_v35 = vld [vmem:[%s10997_s3 + $0x2630] sm:$0xff] }
 0x2da   :  { %3521 = vmatpush.msrb.mxu2 %v5741_v37  ;;  %3466 = vmatpush.msrb.mxu3 %v5688_v38  ;;  %v5884_v37 = vld [vmem:[%s10997_s3 + $0x26b0] sm:$0xff] }
 0x2db   :  { %3482 = vmatpush.msrb.mxu1 %v5708_v39  ;;  %3498 = vmatpush.msrb.mxu0 %v5728_v40  ;;  %v5904_v38 = vld [vmem:[%s10997_s3 + $0x2750] sm:$0xff]  ;;  %v5847_v40 = vld [vmem:[%s10997_s3 + $0x2588] sm:$0xff] }
 0x2dc   :  { %3522 = vmatpush.msrb.mxu2 %v5740_v0  ;;  %3799 = vmatpush.msra.mxu3 %v5857_v1  ;;  %v2734_v48 = vpop.f32.mrf.mxu3  ;;  %v5867_v0 = vld [vmem:[%s10997_s3 + $0x2628] sm:$0xff] }
 0x2dd   :  { %3483 = vmatpush.msrb.mxu1 %v5707_v2  ;;  %3499 = vmatpush.msrb.mxu0 %v5727_v3  ;;  %v2755_v56 = vadd.f32 %v2754_v42, %v2734_v48  ;;  %v5883_v1 = vld [vmem:[%s10997_s3 + $0x26a8] sm:$0xff]  ;;  %v5846_v3 = vld [vmem:[%s10997_s3 + $0x2580] sm:$0xff] }
 0x2de   :  { %3523 = vmatpush.msrb.mxu2 %v5739_v41  ;;  %3800 = vmatpush.msra.mxu3 %v5856_v43  ;;  %v5903_v2 = vld [vmem:[%s10997_s3 + $0x2748] sm:$0xff]  ;;  %v5866_v41 = vld [vmem:[%s10997_s3 + $0x2620] sm:$0xff] }
 0x2df   :  { %3484 = vmatpush.msrb.mxu1 %v5706_v46  ;;  %3500 = vmatpush.msrb.mxu0 %v5726_v47  ;;  %v3650_v42 = vld [vmem:[#allocation4 + $0x35] ss:$8 sm:$0xf] }
 0x2e0   :  { %3524 = vmatpush.msrb.mxu2 %v5738_v45  ;;  %3801 = vmatpush.msra.mxu3 %v5855_v55  ;;  %v5882_v43 = vld [vmem:[%s10997_s3 + $0x26a0] sm:$0xff]  ;;  %v5845_v47 = vld [vmem:[%s10997_s3 + $0x2578] sm:$0xff] }
 0x2e1   :  { %3447 = vmatmul.f32.vlgmr.msra.gmra.mxu2 %v3396_v53  ;;  %3485 = vmatpush.msrb.mxu1 %v5705_v52  ;;  %v2774_v62 = vpop.f32.mrf.mxu2  ;;  %v5902_v46 = vld [vmem:[%s10997_s3 + $0x2740] sm:$0xff]  ;;  %v5865_v45 = vld [vmem:[%s10997_s3 + $0x2618] sm:$0xff] }
 0x2e2   :  { %3501 = vmatpush.msrb.mxu0 %v5725_v50  ;;  %3525 = vmatpush.msrb.mxu2 %v5737_v58  ;;  %v2775_v5 = vadd.f32 %v2774_v62, %v2755_v56  ;;  %v3651_v48 = vld [vmem:[#allocation4 + $0x35] ss:$8 sm:$0x30]  ;;  %v5844_v56 = vld [vmem:[%s10997_s3 + $0x2570] sm:$0xff]  ;;  %v5899_v62 = vld [vmem:[%s10997_s3 + $0x2728] sm:$0xff] }
 0x2e3   :  { %3467 = vmatmul.f32.vlgmr.msrb.gmra.mxu3 %v3397_v59  ;;  %3486 = vmatpush.msrb.mxu1 %v5704_v61  ;;  %v5881_v53 = vld [vmem:[%s10997_s3 + $0x2698] sm:$0xff]  ;;  %v3652_v52 = vor.u32 %v3651_v48, %v3650_v42  ;;  %v5864_v50 = vld [vmem:[%s10997_s3 + $0x2610] sm:$0xff]  ;;  %v5843_v61 = vld [vmem:[%s10997_s3 + $0x2568] sm:$0xff] }
 0x2e4   :  { %3802 = vmatpush.msra.mxu3 %v5854_v60  ;;  %3502 = vmatpush.msrb.mxu0 %v5724_v63  ;;  %v5901_v55 = vld [vmem:[%s10997_s3 + $0x2738] sm:$0xff]  ;;  %v5880_v58 = vld [vmem:[%s10997_s3 + $0x2690] sm:$0xff]  ;;  %v5863_v63 = vld [vmem:[%s10997_s3 + $0x2608] sm:$0xff] }
 0x2e5   :  { %3526 = vmatpush.msrb.mxu2 %v5736_v4  ;;  %v2794_v54 = vpop.f32.mrf.mxu0  ;;  %3427 = vmatmul.f32.vlgmr.msra.gmra.mxu0 %v3395_v51  ;;  %v3654_v59 = vld [vmem:[#allocation4 + $0x95] ss:$8 sm:$0xf]  ;;  %3772 = vst [vmem:[#allocation1] ss:$9 sm:$0xff] %v3652_v52 }
 0x2e6   :  { %3803 = vmatpush.msra.mxu3 %v5853_v6  ;;  %v2795_v12 = vadd.f32 %v2794_v54, %v2775_v5  ;;  %v2814_v44 = vpop.f32.mrf.mxu3  ;;  %3819 = vmatpush.msra.mxu1 %v5873_v10  ;;  %v5900_v60 = vld [vmem:[%s10997_s3 + $0x2730] sm:$0xff]  ;;  %v5879_v4 = vld [vmem:[%s10997_s3 + $0x2688] sm:$0xff]  ;;  %v3655_v51 = vld [vmem:[#allocation4 + $0x95] ss:$8 sm:$0x30] }
 0x2e7   :  { %3839 = vmatpush.msra.mxu2 %v5889_v8  ;;  %3503 = vmatpush.msrb.mxu0 %v5723_v9  ;;  %v5842_v6 = vld [vmem:[%s10997_s3 + $0x2560] sm:$0xff]  ;;  %v3656_v8 = vor.u32 %v3655_v51, %v3654_v59  ;;  %v5892_v42 = vld [vmem:[%s10997_s3 + $0x26f0] sm:$0xff]  ;;  %v5761_v51 = vld [vmem:[%s10997_s3 + $0x22d8] sm:$0xff] }
 0x2e8   :  { %3804 = vmatpush.msra.mxu3 %v5852_v11  ;;  %v2815_v18 = vadd.f32 %v2814_v44, %v2795_v12  ;;  %3820 = vmatpush.msra.mxu1 %v5872_v57  ;;  %v5862_v5 = vld [vmem:[%s10997_s3 + $0x2600] sm:$0xff]  ;;  %v5921_v11 = vld [vmem:[%s10997_s3 + $0x27d8] sm:$0xff]  ;;  %v5920_v44 = vld [vmem:[%s10997_s3 + $0x27d0] sm:$0xff] }
 0x2e9   :  { %3840 = vmatpush.msra.mxu2 %v5888_v13  ;;  %3504 = vmatpush.msrb.mxu0 %v5722_v14  ;;  %v2834_v22 = vpop.f32.mrf.mxu1  ;;  %v5878_v10 = vld [vmem:[%s10997_s3 + $0x2680] sm:$0xff]  ;;  %v5861_v57 = vld [vmem:[%s10997_s3 + $0x25f8] sm:$0xff]  ;;  %3774 = vst [vmem:[#allocation1 + $0x1] ss:$9 sm:$0xff] %v3656_v8  ;;  %v5860_v14 = vld [vmem:[%s10997_s3 + $0x25f0] sm:$0xff] }
 0x2ea   :  { %5749 = vmatmul.msk.f32.vlgmr.msrb.gmra.mxu2 %vm252_vm1, %v3400_v15  ;;  %3805 = vmatpush.msra.mxu3 %v5851_v16  ;;  %v2835_v25 = vadd.f32 %v2834_v22, %v2815_v18  ;;  %v2887_v26 = vpop.f32.mrf.mxu2  ;;  %v5898_v9 = vld [vmem:[%s10997_s3 + $0x2720] sm:$0xff]  ;;  %v5877_v13 = vld [vmem:[%s10997_s3 + $0x2678] sm:$0xff]  ;;  %v5876_v18 = vld [vmem:[%s10997_s3 + $0x2670] sm:$0xff] }
 0x2eb   :  { %3821 = vmatpush.msra.mxu1 %v5871_v17  ;;  %3841 = vmatpush.msra.mxu2 %v5887_v19  ;;  %v3658_v54 = vld [vmem:[#allocation4 + $0xf5] ss:$8 sm:$0xf]  ;;  %v3538_v59 = vld [vmem:[#allocation4 + $0x94] ss:$8 sm:$0x30] }
 0x2ec   :  { %3505 = vmatpush.msrb.mxu0 %v5721_v49  ;;  %3487 = vmatmul.f32.vlgmr.msrb.gmra.mxu1 %v3398_v20  ;;  %v2888_v31 = vadd.f32 %v2887_v26, %v2835_v25  ;;  %v5897_v12 = vld [vmem:[%s10997_s3 + $0x2718] sm:$0xff]  ;;  %v5896_v25 = vld [vmem:[%s10997_s3 + $0x2710] sm:$0xff]  ;;  %v5914_v48 = vld [vmem:[%s10997_s3 + $0x27a0] sm:$0xff] }
 0x2ed   :  { %3806 = vmatpush.msra.mxu3 %v5850_v21  ;;  %3822 = vmatpush.msra.mxu1 %v5870_v23  ;;  %v3659_v16 = vld [vmem:[#allocation4 + $0xf5] ss:$8 sm:$0x30] }
 0x2ee   :  { %3842 = vmatpush.msra.mxu2 %v5886_v24  ;;  %3506 = vmatpush.msrb.mxu0 %v5720_v27  ;;  %v2907_v36 = vpop.f32.mrf.mxu0  ;;  %v3662_v17 = vld [vmem:[#allocation4 + $0x155] ss:$8 sm:$0xf]  ;;  %v3660_v49 = vor.u32 %v3659_v16, %v3658_v54  ;;  %v3546_v16 = vld [vmem:[#allocation4 + $0x154] ss:$8 sm:$0x30] }
 0x2ef   :  { %3807 = vmatpush.msra.mxu3 %v5849_v28  ;;  %3507 = vmatmul.f32.vlgmr.msrb.gmra.mxu0 %v3399_v29  ;;  %v9911_v39 = vadd.f32 %v2907_v36, %v2888_v31  ;;  %v3663_v20 = vld [vmem:[#allocation4 + $0x155] ss:$8 sm:$0x30]  ;;  %v5919_v28 = vld [vmem:[%s10997_s3 + $0x27c8] sm:$0xff]  ;;  %v5912_v54 = vld [vmem:[%s10997_s3 + $0x2790] sm:$0xff] }
 0x2f0   :  { %3823 = vmatpush.msra.mxu1 %v5869_v30  ;;  %3843 = vmatpush.msra.mxu2 %v5885_v32  ;;  %v3666_v21 = vld [vmem:[#allocation4 + $0x1b5] ss:$8 sm:$0xf]  ;;  %v3664_v22 = vor.u32 %v3663_v20, %v3662_v17  ;;  %3776 = vst [vmem:[#allocation1 + $0x2] ss:$9 sm:$0xff] %v3660_v49 }
 0x2f1   :  { %3859 = vmatpush.msra.mxu0 %v5905_v33  ;;  %3808 = vmatpush.msra.mxu3 %v5848_v34  ;;  %v3667_v23 = vld [vmem:[#allocation4 + $0x1b5] ss:$8 sm:$0x30]  ;;  %v5859_v29 = vld [vmem:[%s10997_s3 + $0x25e8] sm:$0xff] }
 0x2f2   :  { %3824 = vmatpush.msra.mxu1 %v5868_v35  ;;  %3844 = vmatpush.msra.mxu2 %v5884_v37  ;;  %v3670_v24 = vld [vmem:[#allocation4 + $0x215] ss:$8 sm:$0xf]  ;;  %v3668_v26 = vor.u32 %v3667_v23, %v3666_v21  ;;  %3778 = vst [vmem:[#allocation1 + $0x3] ss:$9 sm:$0xff] %v3664_v22 }
 0x2f3   :  { %3860 = vmatpush.msra.mxu0 %v5904_v38  ;;  %3809 = vmatpush.msra.mxu3 %v5847_v40  ;;  %v3671_v27 = vld [vmem:[#allocation4 + $0x215] ss:$8 sm:$0x30]  ;;  %v5875_v31 = vld [vmem:[%s10997_s3 + $0x2668] sm:$0xff]  ;;  %v5933_v40 = vld [vmem:[%s10997_s3 + $0x2838] sm:$0x1] }
 0x2f4   :  { %3825 = vmatpush.msra.mxu1 %v5867_v0  ;;  %3845 = vmatpush.msra.mxu2 %v5883_v1  ;;  %v3672_v30 = vor.u32 %v3671_v27, %v3670_v24  ;;  %v5895_v32 = vld [vmem:[%s10997_s3 + $0x2708] sm:$0xff]  ;;  %3780 = vst [vmem:[#allocation1 + $0x4] ss:$9 sm:$0xff] %v3668_v26  ;;  %v5918_v33 = vld [vmem:[%s10997_s3 + $0x27c0] sm:$0xff]  ;;  %v5765_v0 = vld [vmem:[%s10997_s3 + $0x22f8] sm:$0xff] }
 0x2f5   :  { %3861 = vmatpush.msra.mxu0 %v5903_v2  ;;  %3810 = vmatpush.msra.mxu3 %v5846_v3  ;;  %v5858_v34 = vld [vmem:[%s10997_s3 + $0x25e0] sm:$0xff]  ;;  %v5893_v1 = vld [vmem:[%s10997_s3 + $0x26f8] sm:$0xff]  ;;  %v5916_v2 = vld [vmem:[%s10997_s3 + $0x27b0] sm:$0xff] }
 0x2f6   :  { %3826 = vmatpush.msra.mxu1 %v5866_v41  ;;  %3846 = vmatpush.msra.mxu2 %v5882_v43  ;;  %3782 = vst [vmem:[#allocation1 + $0x5] ss:$9 sm:$0xff] %v3672_v30  ;;  %v5874_v36 = vld [vmem:[%s10997_s3 + $0x2660] sm:$0xff]  ;;  %v5932_v3 = vld [vmem:[%s10997_s3 + $0x2830] sm:$0xff]  ;;  %v5915_v43 = vld [vmem:[%s10997_s3 + $0x27a8] sm:$0xff] }
 0x2f7   :  { %3862 = vmatpush.msra.mxu0 %v5902_v46  ;;  %3811 = vmatpush.msra.mxu3 %v5845_v47  ;;  %v5894_v37 = vld [vmem:[%s10997_s3 + $0x2700] sm:$0xff]  ;;  %v5764_v41 = vld [vmem:[%s10997_s3 + $0x22f0] sm:$0xff]  ;;  %v5931_v46 = vld [vmem:[%s10997_s3 + $0x2828] sm:$0xff] }
 0x2f8   :  { %3827 = vmatpush.msra.mxu1 %v5865_v45  ;;  %3847 = vmatpush.msra.mxu2 %v5881_v53  ;;  %v5763_v47 = vld [vmem:[%s10997_s3 + $0x22e8] sm:$0xff]  ;;  %v5930_v53 = vld [vmem:[%s10997_s3 + $0x2820] sm:$0xff]  ;;  %v5760_v24 = vld [vmem:[%s10997_s3 + $0x22d0] sm:$0xff] }
 0x2f9   :  { %3863 = vmatpush.msra.mxu0 %v5901_v55  ;;  %3812 = vmatpush.msra.mxu3 %v5844_v56  ;;  %v5891_v45 = vld [vmem:[%s10997_s3 + $0x26e8] sm:$0xff]  ;;  %v3534_v56 = vld [vmem:[#allocation4 + $0x34] ss:$8 sm:$0x30] }
 0x2fa   :  { %3828 = vmatpush.msra.mxu1 %v5864_v50  ;;  %3848 = vmatpush.msra.mxu2 %v5880_v58  ;;  %v3533_v55 = vld [vmem:[#allocation4 + $0x34] ss:$8 sm:$0xf] }
 0x2fb   :  { %3864 = vmatpush.msra.mxu0 %v5900_v60  ;;  %3813 = vmatpush.msra.mxu3 %v5843_v61  ;;  %v5762_v52 = vld [vmem:[%s10997_s3 + $0x22e0] sm:$0xff]  ;;  %v5913_v60 = vld [vmem:[%s10997_s3 + $0x2798] sm:$0xff]  ;;  %v5911_v27 = vld [vmem:[%s10997_s3 + $0x2788] sm:$0xff] }
 0x2fc   :  { %3829 = vmatpush.msra.mxu1 %v5863_v63  ;;  %3849 = vmatpush.msra.mxu2 %v5879_v4  ;;  %v2927_v15 = vpop.f32.mrf.mxu1  ;;  %v5890_v50 = vld [vmem:[%s10997_s3 + $0x26e0] sm:$0xff]  ;;  %v5929_v61 = vld [vmem:[%s10997_s3 + $0x2818] sm:$0xff]  ;;  %v5759_v30 = vld [vmem:[%s10997_s3 + $0x22c8] sm:$0xff] }
 0x2fd   :  { %3865 = vmatpush.msra.mxu0 %v5899_v62  ;;  %3814 = vmatpush.msra.mxu3 %v5842_v6  ;;  %v2928_v19 = vadd.f32 %v2927_v15, %v9911_v39  ;;  %v5917_v39 = vld [vmem:[%s10997_s3 + $0x27b8] sm:$0xff]  ;;  %v10089_v63 = vld [vmem:[#allocation1 + $0x2d] sm:$0xff] }
 0x2fe   :  { %3830 = vmatpush.msra.mxu1 %v5862_v5  ;;  %3850 = vmatpush.msra.mxu2 %v5878_v10  ;;  %v3537_v58 = vld [vmem:[#allocation4 + $0x94] ss:$8 sm:$0xf] }
 0x2ff   :  { %3866 = vmatpush.msra.mxu0 %v5898_v9  ;;  %3879 = vmatpush.msrb.mxu3 %v5921_v11  ;;  %v10091_v4 = vld [vmem:[#allocation1 + $0x12] sm:$0xff]  ;;  %v10099_v10 = vld [vmem:[#allocation1 + $0x24] sm:$0xff]  ;;  %v10101_v8 = vld [vmem:[#allocation1 + $0x1b] sm:$0xff]  ;;  %v3535_v9 = vor.u32 %v3534_v56, %v3533_v55 }
 0x300   :  { %3831 = vmatpush.msra.mxu1 %v5861_v57  ;;  %3851 = vmatpush.msra.mxu2 %v5877_v13  ;;  %v3541_v62 = vld [vmem:[#allocation4 + $0xf4] ss:$8 sm:$0xf] }
 0x301   :  { %3867 = vmatpush.msra.mxu0 %v5897_v12  ;;  %3880 = vmatpush.msrb.mxu3 %v5920_v44  ;;  %v5781_v6 = vld [vmem:[%s10997_s3 + $0x2378] sm:$0xff]  ;;  %v5928_v57 = vld [vmem:[%s10997_s3 + $0x2810] sm:$0xff]  ;;  %v10109_v12 = vld [vmem:[#allocation1] sm:$0xff] }
 0x302   :  { %3832 = vmatpush.msra.mxu1 %v5860_v14  ;;  %3852 = vmatpush.msra.mxu2 %v5876_v18  ;;  %v3542_v11 = vld [vmem:[#allocation4 + $0xf4] ss:$8 sm:$0x30]  ;;  %v10111_v44 = vld [vmem:[#allocation1 + $0x9] sm:$0xff]  ;;  %v3539_v14 = vor.u32 %v3538_v59, %v3537_v58 }
 0x303   :  { %3868 = vmatpush.msra.mxu0 %v5896_v25  ;;  %v2947_v35 = vpop.f32.mrf.mxu3  ;;  %3881 = vmatpush.msrb.mxu3 %v5919_v28  ;;  %v3545_v15 = vld [vmem:[#allocation4 + $0x154] ss:$8 sm:$0xf]  ;;  %v3543_v18 = vor.u32 %v3542_v11, %v3541_v62  ;;  %3925 = vst [vmem:[#allocation1] ss:$9 sm:$0xff] %v3535_v9 }
 0x304   :  { %3833 = vmatpush.msra.mxu1 %v5859_v29  ;;  %v2948_v38 = vadd.f32 %v2947_v35, %v2928_v19  ;;  %3853 = vmatpush.msra.mxu2 %v5875_v31  ;;  %v3549_v19 = vld [vmem:[#allocation4 + $0x1b4] ss:$8 sm:$0xf]  ;;  %v3547_v21 = vor.u32 %v3546_v16, %v3545_v15  ;;  %3927 = vst [vmem:[#allocation1 + $0x1] ss:$9 sm:$0xff] %v3539_v14 }
 0x305   :  { %3869 = vmatpush.msra.mxu0 %v5895_v32  ;;  %3882 = vmatpush.msrb.mxu3 %v5918_v33  ;;  %v3550_v49 = vld [vmem:[#allocation4 + $0x1b4] ss:$8 sm:$0x30]  ;;  %v5780_v25 = vld [vmem:[%s10997_s3 + $0x2370] sm:$0xff]  ;;  %v5927_v28 = vld [vmem:[%s10997_s3 + $0x2808] sm:$0xff] }
 0x306   :  { %3834 = vmatpush.msra.mxu1 %v5858_v34  ;;  %3854 = vmatpush.msra.mxu2 %v5874_v36  ;;  %v3553_v22 = vld [vmem:[#allocation4 + $0x214] ss:$8 sm:$0xf]  ;;  %v3551_v26 = vor.u32 %v3550_v49, %v3549_v19  ;;  %3929 = vst [vmem:[#allocation1 + $0x2] ss:$9 sm:$0xff] %v3543_v18 }
 0x307   :  { %3870 = vmatpush.msra.mxu0 %v5894_v37  ;;  %3883 = vmatpush.msrb.mxu3 %v5917_v39  ;;  %v3554_v23 = vld [vmem:[#allocation4 + $0x214] ss:$8 sm:$0x30]  ;;  %v5779_v31 = vld [vmem:[%s10997_s3 + $0x2368] sm:$0xff]  ;;  %3931 = vst [vmem:[#allocation1 + $0x3] ss:$9 sm:$0xff] %v3547_v21 }
 0x308   :  { %5934 = vmatpush.msk.msrb.mxu1 %vm549_vm2, %v5933_v40  ;;  %3952 = vmatpush.msrb.mxu2 %v5765_v0  ;;  %v3555_v29 = vor.u32 %v3554_v23, %v3553_v22  ;;  %v5910_v32 = vld [vmem:[%s10997_s3 + $0x2780] sm:$0xff]  ;;  %3933 = vst [vmem:[#allocation1 + $0x4] ss:$9 sm:$0xff] %v3551_v26  ;;  %v5909_v36 = vld [vmem:[%s10997_s3 + $0x2778] sm:$0xff]  ;;  %v5908_v40 = vld [vmem:[%s10997_s3 + $0x2770] sm:$0xff] }
 0x309   :  { %3871 = vmatpush.msra.mxu0 %v5893_v1  ;;  %3884 = vmatpush.msrb.mxu3 %v5916_v2  ;;  %v5926_v33 = vld [vmem:[%s10997_s3 + $0x2800] sm:$0xff]  ;;  %v5925_v37 = vld [vmem:[%s10997_s3 + $0x27f8] sm:$0xff]  ;;  %v5924_v0 = vld [vmem:[%s10997_s3 + $0x27f0] sm:$0xff] }
 0x30a   :  { %3904 = vmatpush.msrb.mxu1 %v5932_v3  ;;  %3953 = vmatpush.msrb.mxu2 %v5764_v41  ;;  %v5758_v34 = vld [vmem:[%s10997_s3 + $0x22c0] sm:$0xff]  ;;  %3935 = vst [vmem:[#allocation1 + $0x5] ss:$9 sm:$0xff] %v3555_v29  ;;  %v5777_v39 = vld [vmem:[%s10997_s3 + $0x2358] sm:$0xff]  ;;  %v5756_v1 = vld [vmem:[%s10997_s3 + $0x22b0] sm:$0xff] }
 0x30b   :  { %3872 = vmatpush.msra.mxu0 %v5892_v42  ;;  %3885 = vmatpush.msrb.mxu3 %v5915_v43  ;;  %v2967_v5 = vpop.f32.mrf.mxu2  ;;  %v5778_v35 = vld [vmem:[%s10997_s3 + $0x2360] sm:$0xff]  ;;  %v5776_v2 = vld [vmem:[%s10997_s3 + $0x2350] sm:$0xff]  ;;  %v5907_v3 = vld [vmem:[%s10997_s3 + $0x2768] sm:$0xff] }
 0x30c   :  { %3905 = vmatpush.msrb.mxu1 %v5931_v46  ;;  %3954 = vmatpush.msrb.mxu2 %v5763_v47  ;;  %v2968_v13 = vadd.f32 %v2967_v5, %v2948_v38  ;;  %v5757_v38 = vld [vmem:[%s10997_s3 + $0x22b8] sm:$0xff]  ;;  %v5923_v41 = vld [vmem:[%s10997_s3 + $0x27e8] sm:$0xff]  ;;  %v5922_v46 = vld [vmem:[%s10997_s3 + $0x27e0] sm:$0xff] }
 0x30d   :  { %3873 = vmatpush.msra.mxu0 %v5891_v45  ;;  %3886 = vmatpush.msrb.mxu3 %v5914_v48  ;;  %v5755_v42 = vld [vmem:[%s10997_s3 + $0x22a8] sm:$0xff]  ;;  %v5906_v47 = vld [vmem:[%s10997_s3 + $0x2760] sm:$0xff]  ;;  %v5813_v55 = vld [vmem:[%s10997_s3 + $0x2478] sm:$0xff] }
 0x30e   :  { %3906 = vmatpush.msrb.mxu1 %v5930_v53  ;;  %v2987_v17 = vpop.f32.mrf.mxu0  ;;  %3955 = vmatpush.msrb.mxu2 %v5762_v52  ;;  %v5775_v43 = vld [vmem:[%s10997_s3 + $0x2348] sm:$0xff]  ;;  %v5754_v45 = vld [vmem:[%s10997_s3 + $0x22a0] sm:$0xff]  ;;  %v5797_v53 = vld [vmem:[%s10997_s3 + $0x23f8] sm:$0xff] }
 0x30f   :  { %3874 = vmatpush.msra.mxu0 %v5890_v50  ;;  %v10113_v20 = vadd.f32 %v2987_v17, %v2968_v13  ;;  %3887 = vmatpush.msrb.mxu3 %v5913_v60  ;;  %v5774_v48 = vld [vmem:[%s10997_s3 + $0x2340] sm:$0xff]  ;;  %v5753_v56 = vld [vmem:[%s10997_s3 + $0x2298] sm:$0xff]  ;;  %v5796_v50 = vld [vmem:[%s10997_s3 + $0x23f0] sm:$0xff] }
 0x310   :  { %3907 = vmatpush.msrb.mxu1 %v5929_v61  ;;  %3956 = vmatpush.msrb.mxu2 %v5761_v51  ;;  %v5773_v52 = vld [vmem:[%s10997_s3 + $0x2338] sm:$0xff]  ;;  %v5812_v58 = vld [vmem:[%s10997_s3 + $0x2470] sm:$0xff]  ;;  %v5795_v61 = vld [vmem:[%s10997_s3 + $0x23e8] sm:$0xff] }
 0x311   :  { %3972 = vmatpush.msrb.mxu0 %v5781_v6  ;;  %3888 = vmatpush.msrb.mxu3 %v5912_v54  ;;  %v5752_v59 = vld [vmem:[%s10997_s3 + $0x2290] sm:$0xff]  ;;  %v5811_v62 = vld [vmem:[%s10997_s3 + $0x2468] sm:$0xff]  ;;  %v5810_v5 = vld [vmem:[%s10997_s3 + $0x2460] sm:$0xff] }
 0x312   :  { %3908 = vmatpush.msrb.mxu1 %v5928_v57  ;;  %3957 = vmatpush.msrb.mxu2 %v5760_v24  ;;  %v5772_v60 = vld [vmem:[%s10997_s3 + $0x2330] sm:$0xff]  ;;  %v5751_v51 = vld [vmem:[%s10997_s3 + $0x2288] sm:$0xff]  ;;  %v5750_v9 = vld [vmem:[%s10997_s3 + $0x2280] sm:$0xff] }
 0x313   :  { %3973 = vmatpush.msrb.mxu0 %v5780_v25  ;;  %3889 = vmatpush.msrb.mxu3 %v5911_v27  ;;  %v5771_v6 = vld [vmem:[%s10997_s3 + $0x2328] sm:$0xff]  ;;  %v5770_v11 = vld [vmem:[%s10997_s3 + $0x2320] sm:$0xff]  ;;  %v5793_v54 = vld [vmem:[%s10997_s3 + $0x23d8] sm:$0xff] }
 0x314   :  { %3909 = vmatpush.msrb.mxu1 %v5927_v28  ;;  %3958 = vmatpush.msrb.mxu2 %v5759_v30  ;;  %v5809_v57 = vld [vmem:[%s10997_s3 + $0x2458] sm:$0xff]  ;;  %v5808_v14 = vld [vmem:[%s10997_s3 + $0x2450] sm:$0xff]  ;;  %v5791_v17 = vld [vmem:[%s10997_s3 + $0x23c8] sm:$0xff] }
 0x315   :  { %3974 = vmatpush.msrb.mxu0 %v5779_v31  ;;  %3890 = vmatpush.msrb.mxu3 %v5910_v32  ;;  %v5829_v13 = vld [vmem:[%s10997_s3 + $0x24f8] sm:$0xff]  ;;  %v5828_v15 = vld [vmem:[%s10997_s3 + $0x24f0] sm:$0xff]  ;;  %v5807_v18 = vld [vmem:[%s10997_s3 + $0x2448] sm:$0xff] }
 0x316   :  { %3910 = vmatpush.msrb.mxu1 %v5926_v33  ;;  %3959 = vmatpush.msrb.mxu2 %v5758_v34  ;;  %v5768_v16 = vld [vmem:[%s10997_s3 + $0x2310] sm:$0xff]  ;;  %v5827_v19 = vld [vmem:[%s10997_s3 + $0x24e8] sm:$0xff]  ;;  %v5790_v21 = vld [vmem:[%s10997_s3 + $0x23c0] sm:$0xff] }
 0x317   :  { %3975 = vmatpush.msrb.mxu0 %v5778_v35  ;;  %3891 = vmatpush.msrb.mxu3 %v5909_v36  ;;  %v5767_v49 = vld [vmem:[%s10997_s3 + $0x2308] sm:$0xff]  ;;  %v5826_v22 = vld [vmem:[%s10997_s3 + $0x24e0] sm:$0xff]  ;;  %v5805_v24 = vld [vmem:[%s10997_s3 + $0x2438] sm:$0xff] }
 0x318   :  { %3911 = vmatpush.msrb.mxu1 %v5925_v37  ;;  %3960 = vmatpush.msrb.mxu2 %v5757_v38  ;;  %v5766_v23 = vld [vmem:[%s10997_s3 + $0x2300] sm:$0xff]  ;;  %v5789_v25 = vld [vmem:[%s10997_s3 + $0x23b8] sm:$0xff]  ;;  %v5804_v28 = vld [vmem:[%s10997_s3 + $0x2430] sm:$0xff] }
 0x319   :  { %3976 = vmatpush.msrb.mxu0 %v5777_v39  ;;  %3892 = vmatpush.msrb.mxu3 %v5908_v40  ;;  %v5825_v26 = vld [vmem:[%s10997_s3 + $0x24d8] sm:$0xff]  ;;  %v5788_v29 = vld [vmem:[%s10997_s3 + $0x23b0] sm:$0xff]  ;;  %v5787_v32 = vld [vmem:[%s10997_s3 + $0x23a8] sm:$0xff] }
 0x31a   :  { %3912 = vmatpush.msrb.mxu1 %v5924_v0  ;;  %3961 = vmatpush.msrb.mxu2 %v5756_v1  ;;  %v5841_v27 = vld [vmem:[%s10997_s3 + $0x2558] sm:$0x1]  ;;  %v5824_v30 = vld [vmem:[%s10997_s3 + $0x24d0] sm:$0xff]  ;;  %v5803_v33 = vld [vmem:[%s10997_s3 + $0x2428] sm:$0xff] }
 0x31b   :  { %3977 = vmatpush.msrb.mxu0 %v5776_v2  ;;  %3893 = vmatpush.msrb.mxu3 %v5907_v3  ;;  %v5840_v31 = vld [vmem:[%s10997_s3 + $0x2550] sm:$0xff]  ;;  %v5823_v34 = vld [vmem:[%s10997_s3 + $0x24c8] sm:$0xff]  ;;  %v5786_v36 = vld [vmem:[%s10997_s3 + $0x23a0] sm:$0xff] }
 0x31c   :  { %3913 = vmatpush.msrb.mxu1 %v5923_v41  ;;  %3962 = vmatpush.msrb.mxu2 %v5755_v42  ;;  %v5839_v35 = vld [vmem:[%s10997_s3 + $0x2548] sm:$0xff]  ;;  %v5802_v37 = vld [vmem:[%s10997_s3 + $0x2420] sm:$0xff]  ;;  %v5785_v40 = vld [vmem:[%s10997_s3 + $0x2398] sm:$0xff] }
 0x31d   :  { %3978 = vmatpush.msrb.mxu0 %v5775_v43  ;;  %3815 = vmatmul.f32.vlgmr.msra.gmra.mxu3 %v10109_v12  ;;  %v5769_v12 = vld [vmem:[%s10997_s3 + $0x2318] sm:$0xff]  ;;  %v5822_v38 = vld [vmem:[%s10997_s3 + $0x24c0] sm:$0xff]  ;;  %v5784_v3 = vld [vmem:[%s10997_s3 + $0x2390] sm:$0xff] }
 0x31e   :  { %3914 = vmatpush.msrb.mxu1 %v5922_v46  ;;  %3894 = vmatpush.msrb.mxu3 %v5906_v47  ;;  %v5838_v39 = vld [vmem:[%s10997_s3 + $0x2540] sm:$0xff]  ;;  %v5801_v0 = vld [vmem:[%s10997_s3 + $0x2418] sm:$0xff]  ;;  %v5800_v41 = vld [vmem:[%s10997_s3 + $0x2410] sm:$0xff] }
 0x31f   :  { %3963 = vmatpush.msrb.mxu2 %v5754_v45  ;;  %3979 = vmatpush.msrb.mxu0 %v5774_v48  ;;  %v5821_v1 = vld [vmem:[%s10997_s3 + $0x24b8] sm:$0xff]  ;;  %v5820_v42 = vld [vmem:[%s10997_s3 + $0x24b0] sm:$0xff]  ;;  %v5783_v46 = vld [vmem:[%s10997_s3 + $0x2388] sm:$0xff] }
 0x320   :  { %3835 = vmatmul.f32.vlgmr.msra.gmra.mxu1 %v10111_v44  ;;  %4012 = vmatpush.msra.mxu3 %v5813_v55  ;;  %v5792_v44 = vld [vmem:[%s10997_s3 + $0x23d0] sm:$0xff]  ;;  %v5837_v2 = vld [vmem:[%s10997_s3 + $0x2538] sm:$0xff]  ;;  %v5799_v47 = vld [vmem:[%s10997_s3 + $0x2408] sm:$0xff] }
 0x321   :  { %3992 = vmatpush.msra.mxu1 %v5797_v53  ;;  %3964 = vmatpush.msrb.mxu2 %v5753_v56  ;;  %v5836_v43 = vld [vmem:[%s10997_s3 + $0x2530] sm:$0xff]  ;;  %v5819_v45 = vld [vmem:[%s10997_s3 + $0x24a8] sm:$0xff]  ;;  %v5782_v53 = vld [vmem:[%s10997_s3 + $0x2380] sm:$0xff] }
 0x322   :  { %3980 = vmatpush.msrb.mxu0 %v5773_v52  ;;  %3855 = vmatmul.f32.vlgmr.msra.gmra.mxu2 %v10091_v4  ;;  %v5794_v4 = vld [vmem:[%s10997_s3 + $0x23e0] sm:$0xff]  ;;  %v5835_v48 = vld [vmem:[%s10997_s3 + $0x2528] sm:$0xff] }
 0x323   :  { %3993 = vmatpush.msra.mxu1 %v5796_v50  ;;  %4013 = vmatpush.msra.mxu3 %v5812_v58  ;;  %v5798_v55 = vld [vmem:[%s10997_s3 + $0x2400] sm:$0xff]  ;;  %v3938_v50 = vld [vmem:[#allocation1 + $0x12] sm:$0xff] }
 0x324   :  { %3965 = vmatpush.msrb.mxu2 %v5752_v59  ;;  %3981 = vmatpush.msrb.mxu0 %v5772_v60  ;;  %v5818_v56 = vld [vmem:[%s10997_s3 + $0x24a0] sm:$0xff]  ;;  %v5953_v59 = vld [vmem:[%s10997_s3 + $0x28b8] sm:$0xff] }
 0x325   :  { %3994 = vmatpush.msra.mxu1 %v5795_v61  ;;  %4014 = vmatpush.msra.mxu3 %v5811_v62  ;;  %v5834_v52 = vld [vmem:[%s10997_s3 + $0x2520] sm:$0xff]  ;;  %v5817_v60 = vld [vmem:[%s10997_s3 + $0x2498] sm:$0xff] }
 0x326   :  { %3966 = vmatpush.msrb.mxu2 %v5751_v51  ;;  %3982 = vmatpush.msrb.mxu0 %v5771_v6  ;;  %v3939_v58 = vld [vmem:[#allocation1 + $0x1b] sm:$0xff]  ;;  %v5952_v51 = vld [vmem:[%s10997_s3 + $0x28b0] sm:$0xff] }
 0x327   :  { %3895 = vmatmul.f32.vlgmr.msrb.gmra.mxu3 %v10099_v10  ;;  %3995 = vmatpush.msra.mxu1 %v5794_v4  ;;  %v3936_v10 = vld [vmem:[#allocation1] sm:$0xff]  ;;  %v5833_v61 = vld [vmem:[%s10997_s3 + $0x2518] sm:$0xff]  ;;  %v5816_v6 = vld [vmem:[%s10997_s3 + $0x2490] sm:$0xff] }
 0x328   :  { %4015 = vmatpush.msra.mxu3 %v5810_v5  ;;  %3967 = vmatpush.msrb.mxu2 %v5750_v9  ;;  %v5969_v62 = vld [vmem:[%s10997_s3 + $0x2938] sm:$0xff]  ;;  %v5832_v4 = vld [vmem:[%s10997_s3 + $0x2510] sm:$0xff]  ;;  %v5951_v9 = vld [vmem:[%s10997_s3 + $0x28a8] sm:$0xff] }
 0x329   :  { %3983 = vmatpush.msrb.mxu0 %v5770_v11  ;;  %3996 = vmatpush.msra.mxu1 %v5793_v54  ;;  %v5968_v5 = vld [vmem:[%s10997_s3 + $0x2930] sm:$0xff]  ;;  %v5815_v11 = vld [vmem:[%s10997_s3 + $0x2488] sm:$0xff] }
 0x32a   :  { %4016 = vmatpush.msra.mxu3 %v5809_v57  ;;  %4032 = vmatpush.msra.mxu2 %v5829_v13  ;;  %v5831_v54 = vld [vmem:[%s10997_s3 + $0x2508] sm:$0xff]  ;;  %v5950_v13 = vld [vmem:[%s10997_s3 + $0x28a0] sm:$0xff] }
 0x32b   :  { %3984 = vmatpush.msrb.mxu0 %v5769_v12  ;;  %3968 = vmatmul.f32.vlgmr.msrb.gmra.mxu2 %v3936_v10  ;;  %v5967_v57 = vld [vmem:[%s10997_s3 + $0x2928] sm:$0xff]  ;;  %v5814_v12 = vld [vmem:[%s10997_s3 + $0x2480] sm:$0xff] }
 0x32c   :  { %3875 = vmatmul.f32.vlgmr.msra.gmra.mxu0 %v10101_v8  ;;  %3997 = vmatpush.msra.mxu1 %v5792_v44  ;;  %v5806_v8 = vld [vmem:[%s10997_s3 + $0x2440] sm:$0xff] }
 0x32d   :  { %4017 = vmatpush.msra.mxu3 %v5808_v14  ;;  %4033 = vmatpush.msra.mxu2 %v5828_v15  ;;  %v5830_v10 = vld [vmem:[%s10997_s3 + $0x2500] sm:$0xff]  ;;  %v5949_v14 = vld [vmem:[%s10997_s3 + $0x2898] sm:$0xff] }
 0x32e   :  { %3985 = vmatpush.msrb.mxu0 %v5768_v16  ;;  %3998 = vmatpush.msra.mxu1 %v5791_v17  ;;  %v3940_v44 = vld [vmem:[#allocation1 + $0x24] sm:$0xff]  ;;  %v5985_v15 = vld [vmem:[%s10997_s3 + $0x29b8] sm:$0xff] }
 0x32f   :  { %4018 = vmatpush.msra.mxu3 %v5807_v18  ;;  %4034 = vmatpush.msra.mxu2 %v5827_v19  ;;  %v5966_v16 = vld [vmem:[%s10997_s3 + $0x2920] sm:$0xff]  ;;  %v6001_v17 = vld [vmem:[%s10997_s3 + $0x2a38] sm:$0xff]  ;;  %v5948_v18 = vld [vmem:[%s10997_s3 + $0x2890] sm:$0xff] }
 0x330   :  { %3986 = vmatpush.msrb.mxu0 %v5767_v49  ;;  %5935 = vmatmul.msk.f32.vlgmr.msrb.gmra.mxu1 %vm252_vm1, %v10089_v63  ;;  %v3937_v63 = vld [vmem:[#allocation1 + $0x9] sm:$0xff]  ;;  %v5965_v49 = vld [vmem:[%s10997_s3 + $0x2918] sm:$0xff] }
 0x331   :  { %4019 = vmatpush.msra.mxu3 %v5806_v8  ;;  %3999 = vmatpush.msra.mxu1 %v5790_v21  ;;  %v5984_v19 = vld [vmem:[%s10997_s3 + $0x29b0] sm:$0xff] }
 0x332   :  { %4035 = vmatpush.msra.mxu2 %v5826_v22  ;;  %3987 = vmatpush.msrb.mxu0 %v5766_v23  ;;  %v6000_v8 = vld [vmem:[%s10997_s3 + $0x2a30] sm:$0xff]  ;;  %v5947_v22 = vld [vmem:[%s10997_s3 + $0x2888] sm:$0xff] }
 0x333   :  { %4020 = vmatpush.msra.mxu3 %v5805_v24  ;;  %4000 = vmatpush.msra.mxu1 %v5789_v25  ;;  %v4073_v21 = vld [vmem:[#allocation4 + $0x36] ss:$8 sm:$0xf] }
 0x334   :  { %4036 = vmatpush.msra.mxu2 %v5825_v26  ;;  %5936 = vmatpush.msk.msra.mxu0 %vm549_vm2, %v5841_v27  ;;  %v5983_v23 = vld [vmem:[%s10997_s3 + $0x29a8] sm:$0xff]  ;;  %v4074_v24 = vld [vmem:[#allocation4 + $0x36] ss:$8 sm:$0x30]  ;;  %v5964_v25 = vld [vmem:[%s10997_s3 + $0x2910] sm:$0xff] }
 0x335   :  { %4021 = vmatpush.msra.mxu3 %v5804_v28  ;;  %3988 = vmatmul.f32.vlgmr.msrb.gmra.mxu0 %v3937_v63  ;;  %v3941_v26 = vld [vmem:[#allocation1 + $0x2d] sm:$0xff]  ;;  %v4075_v27 = vor.u32 %v4074_v24, %v4073_v21  ;;  %v5946_v63 = vld [vmem:[%s10997_s3 + $0x2880] sm:$0xff]  ;;  %v6029_v24 = vld [vmem:[%s10997_s3 + $0x2b18] sm:$0x1] }
 0x336   :  { %4001 = vmatpush.msra.mxu1 %v5788_v29  ;;  %4037 = vmatpush.msra.mxu2 %v5824_v30  ;;  %v4077_v28 = vld [vmem:[#allocation4 + $0x96] ss:$8 sm:$0xf] }
 0x337   :  { %4057 = vmatpush.msra.mxu0 %v5840_v31  ;;  %4022 = vmatpush.msra.mxu3 %v5803_v33  ;;  %v5982_v29 = vld [vmem:[%s10997_s3 + $0x29a0] sm:$0xff]  ;;  %v5963_v30 = vld [vmem:[%s10997_s3 + $0x2908] sm:$0xff]  ;;  %4195 = vst [vmem:[#allocation1] ss:$9 sm:$0xff] %v4075_v27  ;;  %v5945_v33 = vld [vmem:[%s10997_s3 + $0x2878] sm:$0xff] }
 0x338   :  { %4002 = vmatpush.msra.mxu1 %v5787_v32  ;;  %4038 = vmatpush.msra.mxu2 %v5823_v34  ;;  %v5999_v31 = vld [vmem:[%s10997_s3 + $0x2a28] sm:$0xff]  ;;  %v4078_v32 = vld [vmem:[#allocation4 + $0x96] ss:$8 sm:$0x30]  ;;  %v5972_v21 = vld [vmem:[%s10997_s3 + $0x2950] sm:$0xff] }
 0x339   :  { %4058 = vmatpush.msra.mxu0 %v5839_v35  ;;  %4023 = vmatpush.msra.mxu3 %v5802_v37  ;;  %v5981_v34 = vld [vmem:[%s10997_s3 + $0x2998] sm:$0xff]  ;;  %v5944_v35 = vld [vmem:[%s10997_s3 + $0x2870] sm:$0xff]  ;;  %v5962_v37 = vld [vmem:[%s10997_s3 + $0x2900] sm:$0xff] }
 0x33a   :  { %4003 = vmatpush.msra.mxu1 %v5786_v36  ;;  %4039 = vmatpush.msra.mxu2 %v5822_v38  ;;  %v4079_v36 = vor.u32 %v4078_v32, %v4077_v28  ;;  %v5998_v38 = vld [vmem:[%s10997_s3 + $0x2a20] sm:$0xff]  ;;  %v6028_v28 = vld [vmem:[%s10997_s3 + $0x2b10] sm:$0xff]  ;;  %v6047_v32 = vld [vmem:[%s10997_s3 + $0x2b98] sm:$0xff] }
 0x33b   :  { %4059 = vmatpush.msra.mxu0 %v5838_v39  ;;  %4024 = vmatpush.msra.mxu3 %v5801_v0  ;;  %v4081_v39 = vld [vmem:[#allocation4 + $0xf6] ss:$8 sm:$0xf] }
 0x33c   :  { %4004 = vmatpush.msra.mxu1 %v5785_v40  ;;  %4040 = vmatpush.msra.mxu2 %v5821_v1  ;;  %v5980_v40 = vld [vmem:[%s10997_s3 + $0x2990] sm:$0xff]  ;;  %v5943_v0 = vld [vmem:[%s10997_s3 + $0x2868] sm:$0xff]  ;;  %v5961_v1 = vld [vmem:[%s10997_s3 + $0x28f8] sm:$0xff]  ;;  %4197 = vst [vmem:[#allocation1 + $0x1] ss:$9 sm:$0xff] %v4079_v36 }
 0x33d   :  { %4060 = vmatpush.msra.mxu0 %v5837_v2  ;;  %4025 = vmatpush.msra.mxu3 %v5800_v41  ;;  %v5979_v2 = vld [vmem:[%s10997_s3 + $0x2988] sm:$0xff]  ;;  %v4082_v41 = vld [vmem:[#allocation4 + $0xf6] ss:$8 sm:$0x30]  ;;  %v6046_v36 = vld [vmem:[%s10997_s3 + $0x2b90] sm:$0xff] }
 0x33e   :  { %4005 = vmatpush.msra.mxu1 %v5784_v3  ;;  %4041 = vmatpush.msra.mxu2 %v5820_v42  ;;  %v5997_v3 = vld [vmem:[%s10997_s3 + $0x2a18] sm:$0xff]  ;;  %v5942_v42 = vld [vmem:[%s10997_s3 + $0x2860] sm:$0xff] }
 0x33f   :  { %4061 = vmatpush.msra.mxu0 %v5836_v43  ;;  %4026 = vmatpush.msra.mxu3 %v5799_v47  ;;  %v5960_v43 = vld [vmem:[%s10997_s3 + $0x28f0] sm:$0xff]  ;;  %v6014_v27 = vld [vmem:[%s10997_s3 + $0x2aa0] sm:$0xff] }
 0x340   :  { %4006 = vmatpush.msra.mxu1 %v5783_v46  ;;  %4042 = vmatpush.msra.mxu2 %v5819_v45  ;;  %v5978_v46 = vld [vmem:[%s10997_s3 + $0x2980] sm:$0xff]  ;;  %v5996_v47 = vld [vmem:[%s10997_s3 + $0x2a10] sm:$0xff]  ;;  %v4083_v45 = vor.u32 %v4082_v41, %v4081_v39  ;;  %v6025_v39 = vld [vmem:[%s10997_s3 + $0x2af8] sm:$0xff] }
 0x341   :  { %4062 = vmatpush.msra.mxu0 %v5835_v48  ;;  %4027 = vmatpush.msra.mxu3 %v5798_v55  ;;  %v5959_v48 = vld [vmem:[%s10997_s3 + $0x28e8] sm:$0xff]  ;;  %v6062_v41 = vld [vmem:[%s10997_s3 + $0x2c10] sm:$0xff] }
 0x342   :  { %4007 = vmatpush.msra.mxu1 %v5782_v53  ;;  %4043 = vmatpush.msra.mxu2 %v5818_v56  ;;  %v5995_v53 = vld [vmem:[%s10997_s3 + $0x2a08] sm:$0xff]  ;;  %v4086_v56 = vld [vmem:[#allocation4 + $0x156] ss:$8 sm:$0x30]  ;;  %4199 = vst [vmem:[#allocation1 + $0x2] ss:$9 sm:$0xff] %v4083_v45 }
 0x343   :  { %4063 = vmatpush.msra.mxu0 %v5834_v52  ;;  %4008 = vmatmul.f32.vlgmr.msra.gmra.mxu1 %v3938_v50  ;;  %v4085_v55 = vld [vmem:[#allocation4 + $0x156] ss:$8 sm:$0xf] }
 0x344   :  { %4028 = vmatmul.f32.vlgmr.msra.gmra.mxu3 %v3939_v58  ;;  %4222 = vmatpush.msrb.mxu1 %v5953_v59  ;;  %v4087_v52 = vor.u32 %v4086_v56, %v4085_v55  ;;  %v4089_v50 = vld [vmem:[#allocation4 + $0x1b6] ss:$8 sm:$0xf] }
 0x345   :  { %4044 = vmatpush.msra.mxu2 %v5817_v60  ;;  %4064 = vmatpush.msra.mxu0 %v5833_v61  ;;  %v4090_v58 = vld [vmem:[#allocation4 + $0x1b6] ss:$8 sm:$0x30]  ;;  %v6008_v45 = vld [vmem:[%s10997_s3 + $0x2a70] sm:$0xff]  ;;  %v6007_v56 = vld [vmem:[%s10997_s3 + $0x2a68] sm:$0xff] }
 0x346   :  { %4242 = vmatpush.msrb.mxu3 %v5969_v62  ;;  %4223 = vmatpush.msrb.mxu1 %v5952_v51  ;;  %v4091_v59 = vor.u32 %v4090_v58, %v4089_v50  ;;  %v4093_v60 = vld [vmem:[#allocation4 + $0x216] ss:$8 sm:$0xf]  ;;  %4201 = vst [vmem:[#allocation1 + $0x3] ss:$9 sm:$0xff] %v4087_v52 }
 0x347   :  { %4045 = vmatpush.msra.mxu2 %v5816_v6  ;;  %4065 = vmatpush.msra.mxu0 %v5832_v4  ;;  %v4094_v61 = vld [vmem:[#allocation4 + $0x216] ss:$8 sm:$0x30]  ;;  %v6041_v58 = vld [vmem:[%s10997_s3 + $0x2b68] sm:$0xff] }
 0x348   :  { %4243 = vmatpush.msrb.mxu3 %v5968_v5  ;;  %4224 = vmatpush.msrb.mxu1 %v5951_v9  ;;  %v5941_v62 = vld [vmem:[%s10997_s3 + $0x2858] sm:$0xff]  ;;  %v4095_v6 = vor.u32 %v4094_v61, %v4093_v60  ;;  %v5958_v4 = vld [vmem:[%s10997_s3 + $0x28e0] sm:$0xff]  ;;  %v5940_v9 = vld [vmem:[%s10997_s3 + $0x2850] sm:$0xff]  ;;  %4203 = vst [vmem:[#allocation1 + $0x4] ss:$9 sm:$0xff] %v4091_v59 }
 0x349   :  { %4046 = vmatpush.msra.mxu2 %v5815_v11  ;;  %4066 = vmatpush.msra.mxu0 %v5831_v54  ;;  %v5977_v51 = vld [vmem:[%s10997_s3 + $0x2978] sm:$0xff]  ;;  %v5994_v5 = vld [vmem:[%s10997_s3 + $0x2a00] sm:$0xff]  ;;  %v5976_v11 = vld [vmem:[%s10997_s3 + $0x2970] sm:$0xff] }
 0x34a   :  { %4244 = vmatpush.msrb.mxu3 %v5967_v57  ;;  %4225 = vmatpush.msrb.mxu1 %v5950_v13  ;;  %v5957_v54 = vld [vmem:[%s10997_s3 + $0x28d8] sm:$0xff]  ;;  %4205 = vst [vmem:[#allocation1 + $0x5] ss:$9 sm:$0xff] %v4095_v6  ;;  %v5939_v13 = vld [vmem:[%s10997_s3 + $0x2848] sm:$0xff]  ;;  %v6060_v55 = vld [vmem:[%s10997_s3 + $0x2c00] sm:$0xff] }
 0x34b   :  { %4047 = vmatpush.msra.mxu2 %v5814_v12  ;;  %4067 = vmatpush.msra.mxu0 %v5830_v10  ;;  %v5993_v57 = vld [vmem:[%s10997_s3 + $0x29f8] sm:$0xff]  ;;  %v5975_v12 = vld [vmem:[%s10997_s3 + $0x2968] sm:$0xff]  ;;  %v5956_v10 = vld [vmem:[%s10997_s3 + $0x28d0] sm:$0xff] }
 0x34c   :  { %4048 = vmatmul.f32.vlgmr.msra.gmra.mxu2 %v3940_v44  ;;  %4226 = vmatpush.msrb.mxu1 %v5949_v14  ;;  %v5992_v44 = vld [vmem:[%s10997_s3 + $0x29f0] sm:$0xff]  ;;  %v5938_v14 = vld [vmem:[%s10997_s3 + $0x2840] sm:$0xff]  ;;  %v6021_v52 = vld [vmem:[%s10997_s3 + $0x2ad8] sm:$0xff] }
 0x34d   :  { %4262 = vmatpush.msrb.mxu0 %v5985_v15  ;;  %4245 = vmatpush.msrb.mxu3 %v5966_v16  ;;  %v5974_v15 = vld [vmem:[%s10997_s3 + $0x2960] sm:$0xff]  ;;  %v6017_v16 = vld [vmem:[%s10997_s3 + $0x2ab8] sm:$0xff]  ;;  %v6058_v6 = vld [vmem:[%s10997_s3 + $0x2bf0] sm:$0xff] }
 0x34e   :  { %4282 = vmatpush.msrb.mxu2 %v6001_v17  ;;  %4227 = vmatpush.msrb.mxu1 %v5948_v18  ;;  %v5955_v17 = vld [vmem:[%s10997_s3 + $0x28c8] sm:$0xff]  ;;  %v5973_v18 = vld [vmem:[%s10997_s3 + $0x2958] sm:$0xff]  ;;  %v6006_v61 = vld [vmem:[%s10997_s3 + $0x2a60] sm:$0xff] }
 0x34f   :  { %4263 = vmatpush.msrb.mxu0 %v5984_v19  ;;  %4246 = vmatpush.msrb.mxu3 %v5965_v49  ;;  %v5991_v19 = vld [vmem:[%s10997_s3 + $0x29e8] sm:$0xff]  ;;  %v6016_v49 = vld [vmem:[%s10997_s3 + $0x2ab0] sm:$0xff]  ;;  %v6059_v60 = vld [vmem:[%s10997_s3 + $0x2bf8] sm:$0xff] }
 0x350   :  { %4283 = vmatpush.msrb.mxu2 %v6000_v8  ;;  %4228 = vmatpush.msrb.mxu1 %v5947_v22  ;;  %v5954_v8 = vld [vmem:[%s10997_s3 + $0x28c0] sm:$0xff] }
 0x351   :  { %4264 = vmatpush.msrb.mxu0 %v5983_v23  ;;  %4247 = vmatpush.msrb.mxu3 %v5964_v25  ;;  %v5990_v22 = vld [vmem:[%s10997_s3 + $0x29e0] sm:$0xff]  ;;  %v6015_v23 = vld [vmem:[%s10997_s3 + $0x2aa8] sm:$0xff] }
 0x352   :  { %5937 = vmatmul.msk.f32.vlgmr.msra.gmra.mxu0 %vm252_vm1, %v3941_v26  ;;  %4229 = vmatpush.msrb.mxu1 %v5946_v63  ;;  %v5971_v25 = vld [vmem:[%s10997_s3 + $0x2948] sm:$0xff]  ;;  %v5989_v26 = vld [vmem:[%s10997_s3 + $0x29d8] sm:$0xff]  ;;  %v5970_v63 = vld [vmem:[%s10997_s3 + $0x2940] sm:$0xff] }
 0x353   :  { %4265 = vmatpush.msrb.mxu0 %v5982_v29  ;;  %4248 = vmatpush.msrb.mxu3 %v5963_v30  ;;  %v5988_v29 = vld [vmem:[%s10997_s3 + $0x29d0] sm:$0xff]  ;;  %v6013_v30 = vld [vmem:[%s10997_s3 + $0x2a98] sm:$0xff] }
 0x354   :  { %4284 = vmatpush.msrb.mxu2 %v5999_v31  ;;  %4230 = vmatpush.msrb.mxu1 %v5945_v33  ;;  %v6027_v31 = vld [vmem:[%s10997_s3 + $0x2b08] sm:$0xff] }
 0x355   :  { %4266 = vmatpush.msrb.mxu0 %v5981_v34  ;;  %4249 = vmatpush.msrb.mxu3 %v5962_v37  ;;  %v5987_v33 = vld [vmem:[%s10997_s3 + $0x29c8] sm:$0xff]  ;;  %v6012_v34 = vld [vmem:[%s10997_s3 + $0x2a90] sm:$0xff]  ;;  %v5986_v37 = vld [vmem:[%s10997_s3 + $0x29c0] sm:$0xff] }
 0x356   :  { %4285 = vmatpush.msrb.mxu2 %v5998_v38  ;;  %4231 = vmatpush.msrb.mxu1 %v5944_v35  ;;  %v6026_v35 = vld [vmem:[%s10997_s3 + $0x2b00] sm:$0xff]  ;;  %v6011_v38 = vld [vmem:[%s10997_s3 + $0x2a88] sm:$0xff] }
 0x357   :  { %4267 = vmatpush.msrb.mxu0 %v5980_v40  ;;  %4250 = vmatpush.msrb.mxu3 %v5961_v1  ;;  %v6045_v40 = vld [vmem:[%s10997_s3 + $0x2b88] sm:$0xff]  ;;  %v6010_v1 = vld [vmem:[%s10997_s3 + $0x2a80] sm:$0xff] }
 0x358   :  { %4286 = vmatpush.msrb.mxu2 %v5997_v3  ;;  %4232 = vmatpush.msrb.mxu1 %v5943_v0  ;;  %v6063_v0 = vld [vmem:[%s10997_s3 + $0x2c18] sm:$0xff]  ;;  %v6044_v3 = vld [vmem:[%s10997_s3 + $0x2b80] sm:$0xff]  ;;  %v4207_v50 = vld [vmem:[#allocation1 + $0x9] sm:$0xff] }
 0x359   :  { %4268 = vmatpush.msrb.mxu0 %v5979_v2  ;;  %4251 = vmatpush.msrb.mxu3 %v5960_v43  ;;  %v6024_v2 = vld [vmem:[%s10997_s3 + $0x2af0] sm:$0xff]  ;;  %v6023_v43 = vld [vmem:[%s10997_s3 + $0x2ae8] sm:$0xff] }
 0x35a   :  { %4287 = vmatpush.msrb.mxu2 %v5996_v47  ;;  %4233 = vmatpush.msrb.mxu1 %v5942_v42  ;;  %v6009_v42 = vld [vmem:[%s10997_s3 + $0x2a78] sm:$0xff]  ;;  %v6061_v47 = vld [vmem:[%s10997_s3 + $0x2c08] sm:$0xff] }
 0x35b   :  { %4269 = vmatpush.msrb.mxu0 %v5978_v46  ;;  %4252 = vmatpush.msrb.mxu3 %v5959_v48  ;;  %v6043_v46 = vld [vmem:[%s10997_s3 + $0x2b78] sm:$0xff]  ;;  %v6022_v48 = vld [vmem:[%s10997_s3 + $0x2ae0] sm:$0xff] }
 0x35c   :  { %4288 = vmatpush.msrb.mxu2 %v5995_v53  ;;  %4234 = vmatpush.msrb.mxu1 %v5941_v62  ;;  %v6042_v53 = vld [vmem:[%s10997_s3 + $0x2b70] sm:$0xff] }
 0x35d   :  { %4270 = vmatpush.msrb.mxu0 %v5977_v51  ;;  %4253 = vmatpush.msrb.mxu3 %v5958_v4  ;;  %v4344_v59 = vld [vmem:[#allocation4 + $0x37] ss:$8 sm:$0xf] }
 0x35e   :  { %4289 = vmatpush.msrb.mxu2 %v5994_v5  ;;  %4235 = vmatpush.msrb.mxu1 %v5940_v9  ;;  %v6020_v62 = vld [vmem:[%s10997_s3 + $0x2ad0] sm:$0xff]  ;;  %v6040_v51 = vld [vmem:[%s10997_s3 + $0x2b60] sm:$0xff] }
 0x35f   :  { %4271 = vmatpush.msrb.mxu0 %v5976_v11  ;;  %4254 = vmatpush.msrb.mxu3 %v5957_v54  ;;  %v4345_v4 = vld [vmem:[#allocation4 + $0x37] ss:$8 sm:$0x30]  ;;  %v4208_v11 = vld [vmem:[#allocation1 + $0x12] sm:$0xff] }
 0x360   :  { %4290 = vmatpush.msrb.mxu2 %v5993_v57  ;;  %4236 = vmatpush.msrb.mxu1 %v5939_v13  ;;  %v4206_v5 = vld [vmem:[#allocation1] sm:$0xff]  ;;  %v4346_v54 = vor.u32 %v4345_v4, %v4344_v59  ;;  %v4211_v57 = vld [vmem:[#allocation1 + $0x2d] sm:$0xff]  ;;  %v6071_v4 = vld [vmem:[%s10997_s3 + $0x2c58] sm:$0xff] }
 0x361   :  { %4272 = vmatpush.msrb.mxu0 %v5975_v12  ;;  %4255 = vmatpush.msrb.mxu3 %v5956_v10  ;;  %v4209_v9 = vld [vmem:[#allocation1 + $0x1b] sm:$0xff]  ;;  %v10719_v13 = vld [vmem:[#allocation1 + $0x24] sm:$0xff] }
 0x362   :  { %4291 = vmatpush.msrb.mxu2 %v5992_v44  ;;  %4237 = vmatpush.msrb.mxu1 %v5938_v14  ;;  %v4348_v12 = vld [vmem:[#allocation4 + $0x97] ss:$8 sm:$0xf]  ;;  %4466 = vst [vmem:[#allocation1] ss:$9 sm:$0xff] %v4346_v54 }
 0x363   :  { %4273 = vmatpush.msrb.mxu0 %v5974_v15  ;;  %4256 = vmatpush.msrb.mxu3 %v5955_v17  ;;  %v6005_v10 = vld [vmem:[%s10997_s3 + $0x2a58] sm:$0xff]  ;;  %v6019_v44 = vld [vmem:[%s10997_s3 + $0x2ac8] sm:$0xff]  ;;  %v6004_v17 = vld [vmem:[%s10997_s3 + $0x2a50] sm:$0xff] }
 0x364   :  { %4302 = vmatpush.msra.mxu1 %v6017_v16  ;;  %4292 = vmatpush.msrb.mxu2 %v5991_v19  ;;  %v6039_v14 = vld [vmem:[%s10997_s3 + $0x2b58] sm:$0xff]  ;;  %v6057_v16 = vld [vmem:[%s10997_s3 + $0x2be8] sm:$0xff]  ;;  %v6070_v54 = vld [vmem:[%s10997_s3 + $0x2c50] sm:$0xff] }
 0x365   :  { %4274 = vmatpush.msrb.mxu0 %v5973_v18  ;;  %4257 = vmatpush.msrb.mxu3 %v5954_v8  ;;  %v4349_v15 = vld [vmem:[#allocation4 + $0x97] ss:$8 sm:$0x30]  ;;  %v6049_v59 = vld [vmem:[%s10997_s3 + $0x2ba8] sm:$0xff] }
 0x366   :  { %4303 = vmatpush.msra.mxu1 %v6016_v49  ;;  %4293 = vmatpush.msrb.mxu2 %v5990_v22  ;;  %v6018_v18 = vld [vmem:[%s10997_s3 + $0x2ac0] sm:$0xff]  ;;  %v4350_v19 = vor.u32 %v4349_v15, %v4348_v12  ;;  %v6038_v49 = vld [vmem:[%s10997_s3 + $0x2b50] sm:$0xff]  ;;  %v6079_v22 = vld [vmem:[%s10997_s3 + $0x2c98] sm:$0xff] }
 0x367   :  { %4275 = vmatpush.msrb.mxu0 %v5972_v21  ;;  %6030 = vmatpush.msk.msra.mxu3 %vm549_vm2, %v6029_v24  ;;  %v6056_v8 = vld [vmem:[%s10997_s3 + $0x2be0] sm:$0xff]  ;;  %v6037_v24 = vld [vmem:[%s10997_s3 + $0x2b48] sm:$0xff]  ;;  %v6107_v12 = vld [vmem:[%s10997_s3 + $0x2d78] sm:$0xff] }
 0x368   :  { %4304 = vmatpush.msra.mxu1 %v6015_v23  ;;  %4294 = vmatpush.msrb.mxu2 %v5989_v26  ;;  %v4352_v21 = vld [vmem:[#allocation4 + $0xf7] ss:$8 sm:$0xf]  ;;  %4468 = vst [vmem:[#allocation1 + $0x1] ss:$9 sm:$0xff] %v4350_v19 }
 0x369   :  { %4276 = vmatpush.msrb.mxu0 %v5971_v25  ;;  %4327 = vmatpush.msra.mxu3 %v6028_v28  ;;  %v6003_v23 = vld [vmem:[%s10997_s3 + $0x2a48] sm:$0xff]  ;;  %v6055_v25 = vld [vmem:[%s10997_s3 + $0x2bd8] sm:$0xff]  ;;  %v6002_v26 = vld [vmem:[%s10997_s3 + $0x2a40] sm:$0xff] }
 0x36a   :  { %4305 = vmatpush.msra.mxu1 %v6014_v27  ;;  %4295 = vmatpush.msrb.mxu2 %v5988_v29  ;;  %v4353_v27 = vld [vmem:[#allocation4 + $0xf7] ss:$8 sm:$0x30]  ;;  %v6106_v15 = vld [vmem:[%s10997_s3 + $0x2d70] sm:$0xff]  ;;  %v6105_v19 = vld [vmem:[%s10997_s3 + $0x2d68] sm:$0xff] }
 0x36b   :  { %4277 = vmatpush.msrb.mxu0 %v5970_v63  ;;  %4328 = vmatpush.msra.mxu3 %v6027_v31  ;;  %v4356_v28 = vld [vmem:[#allocation4 + $0x157] ss:$8 sm:$0xf]  ;;  %v4354_v29 = vor.u32 %v4353_v27, %v4352_v21 }
 0x36c   :  { %4306 = vmatpush.msra.mxu1 %v6013_v30  ;;  %4296 = vmatpush.msrb.mxu2 %v5987_v33  ;;  %v6078_v63 = vld [vmem:[%s10997_s3 + $0x2c90] sm:$0xff]  ;;  %v4357_v30 = vld [vmem:[#allocation4 + $0x157] ss:$8 sm:$0x30]  ;;  %v6065_v27 = vld [vmem:[%s10997_s3 + $0x2c28] sm:$0xff] }
 0x36d   :  { %4493 = vmatpush.msra.mxu0 %v6047_v32  ;;  %4329 = vmatpush.msra.mxu3 %v6026_v35  ;;  %v4360_v31 = vld [vmem:[#allocation4 + $0x1b7] ss:$8 sm:$0xf]  ;;  %v4358_v32 = vor.u32 %v4357_v30, %v4356_v28  ;;  %4470 = vst [vmem:[#allocation1 + $0x2] ss:$9 sm:$0xff] %v4354_v29 }
 0x36e   :  { %4307 = vmatpush.msra.mxu1 %v6012_v34  ;;  %4297 = vmatpush.msrb.mxu2 %v5986_v37  ;;  %v4361_v33 = vld [vmem:[#allocation4 + $0x1b7] ss:$8 sm:$0x30]  ;;  %v6086_v21 = vld [vmem:[%s10997_s3 + $0x2cd0] sm:$0xff]  ;;  %v6117_v28 = vld [vmem:[%s10997_s3 + $0x2dc8] sm:$0xff] }
 0x36f   :  { %4494 = vmatpush.msra.mxu0 %v6046_v36  ;;  %4330 = vmatpush.msra.mxu3 %v6025_v39  ;;  %v4364_v34 = vld [vmem:[#allocation4 + $0x217] ss:$8 sm:$0xf]  ;;  %v4362_v36 = vor.u32 %v4361_v33, %v4360_v31  ;;  %4472 = vst [vmem:[#allocation1 + $0x3] ss:$9 sm:$0xff] %v4358_v32 }
 0x370   :  { %4308 = vmatpush.msra.mxu1 %v6011_v38  ;;  %4513 = vmatpush.msra.mxu2 %v6063_v0  ;;  %v6036_v35 = vld [vmem:[%s10997_s3 + $0x2b40] sm:$0xff]  ;;  %v6054_v38 = vld [vmem:[%s10997_s3 + $0x2bd0] sm:$0xff]  ;;  %v6035_v0 = vld [vmem:[%s10997_s3 + $0x2b38] sm:$0xff] }
 0x371   :  { %4495 = vmatpush.msra.mxu0 %v6045_v40  ;;  %4331 = vmatpush.msra.mxu3 %v6024_v2  ;;  %v4365_v37 = vld [vmem:[#allocation4 + $0x217] ss:$8 sm:$0x30]  ;;  %v6077_v40 = vld [vmem:[%s10997_s3 + $0x2c88] sm:$0xff]  ;;  %4474 = vst [vmem:[#allocation1 + $0x4] ss:$9 sm:$0xff] %v4362_v36 }
 0x372   :  { %4309 = vmatpush.msra.mxu1 %v6010_v1  ;;  %4514 = vmatpush.msra.mxu2 %v6062_v41  ;;  %v4366_v39 = vor.u32 %v4365_v37, %v4364_v34  ;;  %v6053_v1 = vld [vmem:[%s10997_s3 + $0x2bc8] sm:$0xff]  ;;  %v6095_v2 = vld [vmem:[%s10997_s3 + $0x2d18] sm:$0xff]  ;;  %v6034_v41 = vld [vmem:[%s10997_s3 + $0x2b30] sm:$0xff] }
 0x373   :  { %4496 = vmatpush.msra.mxu0 %v6044_v3  ;;  %4332 = vmatpush.msra.mxu3 %v6023_v43  ;;  %v6076_v3 = vld [vmem:[%s10997_s3 + $0x2c80] sm:$0xff]  ;;  %v6094_v43 = vld [vmem:[%s10997_s3 + $0x2d10] sm:$0xff]  ;;  %v6083_v34 = vld [vmem:[%s10997_s3 + $0x2cb8] sm:$0xff] }
 0x374   :  { %4310 = vmatpush.msra.mxu1 %v6009_v42  ;;  %4515 = vmatpush.msra.mxu2 %v6061_v47  ;;  %4476 = vst [vmem:[#allocation1 + $0x5] ss:$9 sm:$0xff] %v4366_v39  ;;  %v6052_v42 = vld [vmem:[%s10997_s3 + $0x2bc0] sm:$0xff]  ;;  %v6033_v47 = vld [vmem:[%s10997_s3 + $0x2b28] sm:$0xff]  ;;  %v6102_v31 = vld [vmem:[%s10997_s3 + $0x2d50] sm:$0xff] }
 0x375   :  { %4497 = vmatpush.msra.mxu0 %v6043_v46  ;;  %4333 = vmatpush.msra.mxu3 %v6022_v48  ;;  %v6075_v46 = vld [vmem:[%s10997_s3 + $0x2c78] sm:$0xff]  ;;  %v6093_v48 = vld [vmem:[%s10997_s3 + $0x2d08] sm:$0xff]  ;;  %v6084_v29 = vld [vmem:[%s10997_s3 + $0x2cc0] sm:$0xff] }
 0x376   :  { %4311 = vmatpush.msra.mxu1 %v6008_v45  ;;  %4516 = vmatpush.msra.mxu2 %v6060_v55  ;;  %v6051_v45 = vld [vmem:[%s10997_s3 + $0x2bb8] sm:$0xff]  ;;  %v6032_v55 = vld [vmem:[%s10997_s3 + $0x2b20] sm:$0xff] }
 0x377   :  { %4498 = vmatpush.msra.mxu0 %v6042_v53  ;;  %4258 = vmatmul.f32.vlgmr.msrb.gmra.mxu3 %v4207_v50  ;;  %v6074_v53 = vld [vmem:[%s10997_s3 + $0x2c70] sm:$0xff]  ;;  %v6073_v50 = vld [vmem:[%s10997_s3 + $0x2c68] sm:$0xff]  ;;  %v6064_v30 = vld [vmem:[%s10997_s3 + $0x2c20] sm:$0xff] }
 0x378   :  { %4312 = vmatpush.msra.mxu1 %v6007_v56  ;;  %4334 = vmatpush.msra.mxu3 %v6021_v52  ;;  %v6050_v56 = vld [vmem:[%s10997_s3 + $0x2bb0] sm:$0xff]  ;;  %v6111_v52 = vld [vmem:[%s10997_s3 + $0x2d98] sm:$0xff]  ;;  %v6116_v32 = vld [vmem:[%s10997_s3 + $0x2dc0] sm:$0xff] }
 0x379   :  { %4499 = vmatpush.msra.mxu0 %v6041_v58  ;;  %4517 = vmatpush.msra.mxu2 %v6059_v60  ;;  %v6092_v58 = vld [vmem:[%s10997_s3 + $0x2d00] sm:$0xff]  ;;  %v6110_v60 = vld [vmem:[%s10997_s3 + $0x2d90] sm:$0xff]  ;;  %v6115_v36 = vld [vmem:[%s10997_s3 + $0x2db8] sm:$0xff] }
 0x37a   :  { %4313 = vmatpush.msra.mxu1 %v6006_v61  ;;  %4335 = vmatpush.msra.mxu3 %v6020_v62  ;;  %v6072_v61 = vld [vmem:[%s10997_s3 + $0x2c60] sm:$0xff]  ;;  %v6091_v62 = vld [vmem:[%s10997_s3 + $0x2cf8] sm:$0xff] }
 0x37b   :  { %4500 = vmatpush.msra.mxu0 %v6040_v51  ;;  %4518 = vmatpush.msra.mxu2 %v6058_v6  ;;  %v6048_v51 = vld [vmem:[%s10997_s3 + $0x2ba0] sm:$0xff]  ;;  %v6109_v6 = vld [vmem:[%s10997_s3 + $0x2d88] sm:$0xff]  ;;  %v4479_v33 = vld [vmem:[#allocation1 + $0x12] sm:$0xff] }
 0x37c   :  { %4238 = vmatmul.f32.vlgmr.msrb.gmra.mxu1 %v4206_v5  ;;  %4298 = vmatmul.f32.vlgmr.msrb.gmra.mxu2 %v4209_v9  ;;  %v6123_v5 = vld [vmem:[%s10997_s3 + $0x2df8] sm:$0x1]  ;;  %v6090_v9 = vld [vmem:[%s10997_s3 + $0x2cf0] sm:$0xff]  ;;  %v4477_v37 = vld [vmem:[#allocation1] sm:$0xff] }
 0x37d   :  { %4314 = vmatpush.msra.mxu1 %v6005_v10  ;;  %4336 = vmatpush.msra.mxu3 %v6019_v44  ;;  %v6069_v10 = vld [vmem:[%s10997_s3 + $0x2c48] sm:$0xff]  ;;  %v6100_v39 = vld [vmem:[%s10997_s3 + $0x2d40] sm:$0xff] }
 0x37e   :  { %4501 = vmatpush.msra.mxu0 %v6039_v14  ;;  %4519 = vmatpush.msra.mxu2 %v6057_v16  ;;  %v6121_v44 = vld [vmem:[%s10997_s3 + $0x2de8] sm:$0xff]  ;;  %v6088_v14 = vld [vmem:[%s10997_s3 + $0x2ce0] sm:$0xff] }
 0x37f   :  { %4315 = vmatpush.msra.mxu1 %v6004_v17  ;;  %4337 = vmatpush.msra.mxu3 %v6018_v18  ;;  %v6068_v16 = vld [vmem:[%s10997_s3 + $0x2c40] sm:$0xff]  ;;  %v6087_v18 = vld [vmem:[%s10997_s3 + $0x2cd8] sm:$0xff] }
 0x380   :  { %4502 = vmatpush.msra.mxu0 %v6038_v49  ;;  %4520 = vmatpush.msra.mxu2 %v6056_v8  ;;  %v6120_v17 = vld [vmem:[%s10997_s3 + $0x2de0] sm:$0xff]  ;;  %v6067_v49 = vld [vmem:[%s10997_s3 + $0x2c38] sm:$0xff] }
 0x381   :  { %4278 = vmatmul.f32.vlgmr.msrb.gmra.mxu0 %v4208_v11  ;;  %6031 = vmatmul.msk.f32.vlgmr.msra.gmra.mxu3 %vm252_vm1, %v4211_v57  ;;  %v6108_v11 = vld [vmem:[%s10997_s3 + $0x2d80] sm:$0xff]  ;;  %v6122_v57 = vld [vmem:[%s10997_s3 + $0x2df0] sm:$0xff]  ;;  %v6119_v8 = vld [vmem:[%s10997_s3 + $0x2dd8] sm:$0xff] }
 0x382   :  { %4316 = vmatpush.msra.mxu1 %v6003_v23  ;;  %4533 = vmatpush.msrb.mxu3 %v6079_v22  ;;  %v6104_v22 = vld [vmem:[%s10997_s3 + $0x2d60] sm:$0xff]  ;;  %v6066_v23 = vld [vmem:[%s10997_s3 + $0x2c30] sm:$0xff] }
 0x383   :  { %4503 = vmatpush.msra.mxu0 %v6037_v24  ;;  %4521 = vmatpush.msra.mxu2 %v6055_v25  ;;  %v6118_v24 = vld [vmem:[%s10997_s3 + $0x2dd0] sm:$0xff]  ;;  %v6085_v25 = vld [vmem:[%s10997_s3 + $0x2cc8] sm:$0xff] }
 0x384   :  { %4317 = vmatpush.msra.mxu1 %v6002_v26  ;;  %4534 = vmatpush.msrb.mxu3 %v6078_v63  ;;  %v6103_v26 = vld [vmem:[%s10997_s3 + $0x2d58] sm:$0xff]  ;;  %v4478_v63 = vld [vmem:[#allocation1 + $0x9] sm:$0xff] }
 0x385   :  { %4504 = vmatpush.msra.mxu0 %v6036_v35  ;;  %4522 = vmatpush.msra.mxu2 %v6054_v38  ;;  %v6101_v35 = vld [vmem:[%s10997_s3 + $0x2d48] sm:$0xff]  ;;  %v6082_v38 = vld [vmem:[%s10997_s3 + $0x2cb0] sm:$0xff] }
 0x386   :  { %4318 = vmatmul.f32.vlgmr.msra.gmra.mxu1 %v10719_v13  ;;  %4535 = vmatpush.msrb.mxu3 %v6077_v40  ;;  %v6089_v13 = vld [vmem:[%s10997_s3 + $0x2ce8] sm:$0xff]  ;;  %v6114_v40 = vld [vmem:[%s10997_s3 + $0x2db0] sm:$0xff] }
 0x387   :  { %4505 = vmatpush.msra.mxu0 %v6035_v0  ;;  %4523 = vmatpush.msra.mxu2 %v6053_v1  ;;  %v6081_v0 = vld [vmem:[%s10997_s3 + $0x2ca8] sm:$0xff]  ;;  %v6099_v1 = vld [vmem:[%s10997_s3 + $0x2d38] sm:$0xff] }
 0x388   :  { %4553 = vmatpush.msrb.mxu1 %v6095_v2  ;;  %4536 = vmatpush.msrb.mxu3 %v6076_v3  ;;  %v6113_v2 = vld [vmem:[%s10997_s3 + $0x2da8] sm:$0xff]  ;;  %v6080_v3 = vld [vmem:[%s10997_s3 + $0x2ca0] sm:$0xff] }
 0x389   :  { %4506 = vmatpush.msra.mxu0 %v6034_v41  ;;  %4524 = vmatpush.msra.mxu2 %v6052_v42  ;;  %v6098_v41 = vld [vmem:[%s10997_s3 + $0x2d30] sm:$0xff]  ;;  %v6112_v42 = vld [vmem:[%s10997_s3 + $0x2da0] sm:$0xff] }
 0x38a   :  { %4554 = vmatpush.msrb.mxu1 %v6094_v43  ;;  %4537 = vmatpush.msrb.mxu3 %v6075_v46  ;;  %v4480_v43 = vld [vmem:[#allocation1 + $0x1b] sm:$0xff]  ;;  %v4482_v46 = vld [vmem:[#allocation1 + $0x2d] sm:$0xff] }
 0x38b   :  { %4507 = vmatpush.msra.mxu0 %v6033_v47  ;;  %4525 = vmatpush.msra.mxu2 %v6051_v45  ;;  %v6097_v47 = vld [vmem:[%s10997_s3 + $0x2d28] sm:$0xff]  ;;  %v6096_v45 = vld [vmem:[%s10997_s3 + $0x2d20] sm:$0xff]  ;;  %s4641_s3 = sshll.u32 %s10998_s4, 4  ;;  %s6253_s4 = smov [#allocation6]   ;;  %s4642_s3 = int_to_ptr.hbm [resolvable:$true] %s4641_s3 }
 0x38c   :  { %4555 = vmatpush.msrb.mxu1 %v6093_v48  ;;  %4538 = vmatpush.msrb.mxu3 %v6074_v53  ;;  %v4481_v48 = vld [vmem:[#allocation1 + $0x24] sm:$0xff]  ;;  %4647 = dma.vmem_to_hbm [thread:$0]  %s4640_s21, 9216, %s4642_s3, [#allocation3], %s6250_s17, %s6250_s17, %s6251_s18   ;;  %v3177_v53 = vpop.f32.mrf.mxu3 }
 0x38d   :  { %4508 = vmatpush.msra.mxu0 %v6032_v55  ;;  %4526 = vmatpush.msra.mxu2 %v6050_v56  ;;  %v3157_v55 = vpop.f32.mrf.mxu1  ;;  %v3197_v56 = vpop.f32.mrf.mxu0  ;;  %s4665_s5 = sshll.u32 %s6253_s4, 4  ;;  %s4666_s5 = int_to_ptr.vmem [resolvable:$true] %s4665_s5 }
 0x38e   :  { %4539 = vmatpush.msrb.mxu3 %v6073_v50  ;;  %4556 = vmatpush.msrb.mxu1 %v6092_v58 }
 0x38f   :  { %4573 = vmatpush.msrb.mxu0 %v6111_v52  ;;  %4527 = vmatpush.msra.mxu2 %v6049_v59  ;;  %v3217_v52 = vpop.f32.mrf.mxu2 }
 0x390   :  { %4540 = vmatpush.msrb.mxu3 %v6072_v61  ;;  %4557 = vmatpush.msrb.mxu1 %v6091_v62 }
 0x391   :  { %4574 = vmatpush.msrb.mxu0 %v6110_v60  ;;  %4528 = vmatpush.msra.mxu2 %v6048_v51 }
 0x392   :  { %4541 = vmatpush.msrb.mxu3 %v6071_v4  ;;  %4558 = vmatpush.msrb.mxu1 %v6090_v9 }
 0x393   :  { %4575 = vmatpush.msrb.mxu0 %v6109_v6  ;;  %6124 = vmatpush.msk.msrb.mxu2 %vm549_vm2, %v6123_v5 }
 0x394   :  { %4542 = vmatpush.msrb.mxu3 %v6070_v54  ;;  %4559 = vmatpush.msrb.mxu1 %v6089_v13  ;;  %v3257_v50 = vpop.f32.mrf.mxu3 }
 0x395   :  { %4576 = vmatpush.msrb.mxu0 %v6108_v11  ;;  %4598 = vmatpush.msrb.mxu2 %v6122_v57  ;;  %v3237_v58 = vpop.f32.mrf.mxu1  ;;  %v3428_v59 = vpop.f32.mrf.mxu0 }
 0x396   :  { %4543 = vmatpush.msrb.mxu3 %v6069_v10  ;;  %4560 = vmatpush.msrb.mxu1 %v6088_v14 }
 0x397   :  { %4577 = vmatpush.msrb.mxu0 %v6107_v12  ;;  %4599 = vmatpush.msrb.mxu2 %v6121_v44  ;;  %v3448_v60 = vpop.f32.mrf.mxu2 }
 0x398   :  { %4544 = vmatpush.msrb.mxu3 %v6068_v16  ;;  %4561 = vmatpush.msrb.mxu1 %v6087_v18 }
 0x399   :  { %4578 = vmatpush.msrb.mxu0 %v6106_v15  ;;  %4600 = vmatpush.msrb.mxu2 %v6120_v17 }
 0x39a   :  { %4545 = vmatpush.msrb.mxu3 %v6067_v49  ;;  %4562 = vmatpush.msrb.mxu1 %v6086_v21 }
 0x39b   :  { %4579 = vmatpush.msrb.mxu0 %v6105_v19  ;;  %4601 = vmatpush.msrb.mxu2 %v6119_v8 }
 0x39c   :  { %4546 = vmatpush.msrb.mxu3 %v6066_v23  ;;  %4563 = vmatpush.msrb.mxu1 %v6085_v25  ;;  %v3468_v61 = vpop.f32.mrf.mxu3 }
 0x39d   :  { %4580 = vmatpush.msrb.mxu0 %v6104_v22  ;;  %4602 = vmatpush.msrb.mxu2 %v6118_v24  ;;  %v3488_v62 = vpop.f32.mrf.mxu1  ;;  %v3508_v51 = vpop.f32.mrf.mxu0  ;;  %v3178_v22 = vadd.f32 %v3177_v53, %v3157_v55 }
 0x39e   :  { %4547 = vmatpush.msrb.mxu3 %v6065_v27  ;;  %4529 = vmatmul.f32.vlgmr.msra.gmra.mxu2 %v4478_v63 }
 0x39f   :  { %4581 = vmatpush.msrb.mxu0 %v6103_v26  ;;  %4603 = vmatpush.msrb.mxu2 %v6117_v28  ;;  %v3528_v6 = vpop.f32.mrf.mxu2  ;;  %v3449_v26 = vadd.f32 %v3448_v60, %v3428_v59  ;;  %v3198_v28 = vadd.f32 %v3197_v56, %v3178_v22 }
 0x3a0   :  { %4564 = vmatpush.msrb.mxu1 %v6084_v29  ;;  %4548 = vmatpush.msrb.mxu3 %v6064_v30 }
 0x3a1   :  { %4582 = vmatpush.msrb.mxu0 %v6102_v31  ;;  %4604 = vmatpush.msrb.mxu2 %v6116_v32  ;;  %v3469_v31 = vadd.f32 %v3468_v61, %v3449_v26 }
 0x3a2   :  { %4549 = vmatmul.f32.vlgmr.msrb.gmra.mxu3 %v4479_v33  ;;  %4565 = vmatpush.msrb.mxu1 %v6083_v34  ;;  %v3218_v33 = vadd.f32 %v3217_v52, %v3198_v28 }
 0x3a3   :  { %4583 = vmatpush.msrb.mxu0 %v6101_v35  ;;  %4605 = vmatpush.msrb.mxu2 %v6115_v36 }
 0x3a4   :  { %4509 = vmatmul.f32.vlgmr.msra.gmra.mxu0 %v4477_v37  ;;  %4566 = vmatpush.msrb.mxu1 %v6082_v38  ;;  %v3816_v4 = vpop.f32.mrf.mxu3  ;;  %v3489_v38 = vadd.f32 %v3488_v62, %v3469_v31 }
 0x3a5   :  { %4584 = vmatpush.msrb.mxu0 %v6100_v39  ;;  %4606 = vmatpush.msrb.mxu2 %v6114_v40  ;;  %v3836_v5 = vpop.f32.mrf.mxu1 }
 0x3a6   :  { %4567 = vmatpush.msrb.mxu1 %v6081_v0  ;;  %v3837_v12 = vadd.f32 %v3836_v5, %v3816_v4 }
 0x3a7   :  { %4585 = vmatpush.msrb.mxu0 %v6099_v1  ;;  %4607 = vmatpush.msrb.mxu2 %v6113_v2  ;;  %v3856_v11 = vpop.f32.mrf.mxu2  ;;  %v3238_v1 = vadd.f32 %v3237_v58, %v3218_v33 }
 0x3a8   :  { %4568 = vmatpush.msrb.mxu1 %v6080_v3  ;;  %v3857_v15 = vadd.f32 %v3856_v11, %v3837_v12 }
 0x3a9   :  { %4586 = vmatpush.msrb.mxu0 %v6098_v41  ;;  %4608 = vmatpush.msrb.mxu2 %v6112_v42  ;;  %v3876_v9 = vpop.f32.mrf.mxu0  ;;  %v3509_v42 = vadd.f32 %v3508_v51, %v3489_v38 }
 0x3aa   :  { %4569 = vmatmul.f32.vlgmr.msrb.gmra.mxu1 %v4480_v43  ;;  %6125 = vmatmul.msk.f32.vlgmr.msrb.gmra.mxu2 %vm252_vm1, %v4482_v46  ;;  %v3877_v17 = vadd.f32 %v3876_v9, %v3857_v15 }
 0x3ab   :  { %4587 = vmatpush.msrb.mxu0 %v6097_v47  ;;  %v3258_v47 = vadd.f32 %v3257_v50, %v3238_v1  ;;  %v3529_v55 = vadd.f32 %v3528_v6, %v3509_v42 }
 0x3ac   :  { %v3896_v54 = vpop.f32.mrf.mxu3 }
 0x3ad   :  { %4588 = vmatpush.msrb.mxu0 %v6096_v45  ;;  %v3916_v57 = vpop.f32.mrf.mxu1  ;;  %v3897_v8 = vadd.f32 %v3896_v54, %v3877_v17  ;;  %v3260_v59 = vadd.f32 %v3258_v47, %v10113_v20 }
 0x3ae   :  { %4589 = vmatmul.f32.vlgmr.msrb.gmra.mxu0 %v4481_v48 }
 0x3af   :  { %v3969_v10 = vpop.f32.mrf.mxu2  ;;  %v3917_v23 = vadd.f32 %v3916_v57, %v3897_v8  ;;  %v3531_v62 = vadd.f32 %v3529_v55, %v3260_v59 }
 0x3b1   :  { %v3970_v63 = vadd.f32 %v3969_v10, %v3917_v23 }
 0x3b2   :  { %v3989_v13 = vpop.f32.mrf.mxu0 }
 0x3b3   :  { %v3990_v34 = vadd.f32 %v3989_v13, %v3970_v63 }
 0x3c0   :  { %v4009_v14 = vpop.f32.mrf.mxu1 }
 0x3c1   :  { %v4010_v39 = vadd.f32 %v4009_v14, %v3990_v34 }
 0x3c7   :  { %v4029_v44 = vpop.f32.mrf.mxu3 }
 0x3c8   :  { %v4030_v2 = vadd.f32 %v4029_v44, %v4010_v39 }
 0x3cf   :  { %v4069_v16 = vpop.f32.mrf.mxu0  ;;  %v4049_v18 = vpop.f32.mrf.mxu2 }
 0x3d0   :  { %v4050_v43 = vadd.f32 %v4049_v18, %v4030_v2 }
 0x3d2   :  { %v4070_v56 = vadd.f32 %v4069_v16, %v4050_v43 }
 0x3f9   :  { %v4239_v49 = vpop.f32.mrf.mxu1 }
 0x3fa   :  { %v4259_v19 = vpop.f32.mrf.mxu3 }
 0x3fb   :  { %v4260_v24 = vadd.f32 %v4259_v19, %v4239_v49 }
 0x3fe   :  { %v4279_v21 = vpop.f32.mrf.mxu0 }
 0x3ff   :  { %v4299_v25 = vpop.f32.mrf.mxu2  ;;  %v4280_v29 = vadd.f32 %v4279_v21, %v4260_v24 }
 0x401   :  { %v4300_v35 = vadd.f32 %v4299_v25, %v4280_v29 }
 0x403   :  { %v4319_v30 = vpop.f32.mrf.mxu1 }
 0x404   :  { %v4339_v27 = vpop.f32.mrf.mxu3  ;;  %v4320_v3 = vadd.f32 %v4319_v30, %v4300_v35 }
 0x406   :  { %v4340_v45 = vadd.f32 %v4339_v27, %v4320_v3 }
 0x408   :  { %v4342_v60 = vadd.f32 %v4340_v45, %v4070_v56 }
 0x421   :  { %v4510_v32 = vpop.f32.mrf.mxu0  ;;  %v4530_v36 = vpop.f32.mrf.mxu2 }
 0x422   :  { %v4531_v37 = vadd.f32 %v4530_v36, %v4510_v32 }
 0x425   :  { %v4550_v40 = vpop.f32.mrf.mxu3 }
 0x426   :  { %v4551_v0 = vadd.f32 %v4550_v40, %v4531_v37 }
 0x427   :  { %v4570_v41 = vpop.f32.mrf.mxu1 }
 0x428   :  { %v4571_v46 = vadd.f32 %v4570_v41, %v4551_v0 }
 0x42b   :  { %v4590_v48 = vpop.f32.mrf.mxu0 }
 0x42c   :  { %v4591_v53 = vadd.f32 %v4590_v48, %v4571_v46 }
 0x42d   :  { %v4610_v52 = vpop.f32.mrf.mxu2 }
 0x42e   :  { %v4611_v61 = vadd.f32 %v4610_v52, %v4591_v53 }
 0x430   :  { %v4613_v4 = vadd.f32 %v4611_v61, %v4342_v60 }
 0x432   :  { %v4615_v58 = vadd.f32 %v4613_v4, %v3531_v62 }
 0x434   :  { %v4616_v5 = vadd.f32 %v4615_v58, %v9558_v7 }
 0x436   :  { %v4618_v51 = vrot.slane %v4616_v5, 1  ;;  %v4619_v50 = vrot.slane %v4616_v5, 2  ;;  %v4620_v9 = vrot.slane %v4616_v5, 3  ;;  %4629 = vst.msk [vmem:[#allocation6] sm:$0x1] %vm4628_vm3, %v4616_v5  ;;  %v4621_v20 = vrot.slane %v4616_v5, 4 }
 0x437   :  { %v4622_v6 = vrot.slane %v4616_v5, 5 }
 0x438   :  { %4630 = vst.msk [vmem:[#allocation6 + $0x1] sm:$0x1] %vm4628_vm3, %v4618_v51 }
 0x439   :  { %4631 = vst.msk [vmem:[#allocation6 + $0x2] sm:$0x1] %vm4628_vm3, %v4619_v50 }
 0x43a   :  { %4632 = vst.msk [vmem:[#allocation6 + $0x3] sm:$0x1] %vm4628_vm3, %v4620_v9 }
 0x43b   :  { %4633 = vst.msk [vmem:[#allocation6 + $0x4] sm:$0x1] %vm4628_vm3, %v4621_v20 }
 0x43c   :  { %4634 = vst.msk [vmem:[#allocation6 + $0x5] sm:$0x1] %vm4628_vm3, %v4622_v6 }
 0x43d   :  { %4673 = dma.vmem_to_hbm [thread:$0]  %s4666_s5, 96, %s4668_s24, [#allocation5], %s6254_s25, %s6254_s25, %s6255_s26  }
 0x43e   :  { %6240 = dma.done.wait [#allocation3], 9216  }
 0x43f   :  { %6241 = vsyncadd [#allocation3], 4294958080 }
 0x440   :  { %6242 = dma.done.wait [#allocation5], 9312  }
 0x441   :  { %6243 = vsyncadd [#allocation5], 4294957984 }
 0x442   :  { %4686 = vsyncpa [#allocation3], 1 }
 0x443   :  { %4687 = vsyncpa [#allocation5], 1 }

</bundles_post_ra>
